<compile_context>
chip_gen: v7x
topology: tpu7x:2x2x1
jax: 0.10.0
libtpu: 0.0.40
codegen_flags: <defaults>
</compile_context>

<pallas_src>
import functools

import numpy as np
import jax
import jax.numpy as jnp
from jax.experimental import pallas as pl
from jax.experimental.pallas import tpu as pltpu

# ----------------------------- hyper-parameters ------------------------------
HIDDEN = 128                      # forced by aggregation_custom (see note above)
NUM_HEADS = 8
HEAD_DIM = HIDDEN // NUM_HEADS    # 16
LMAX = 2
NLM = (LMAX + 1) ** 2 - 1         # 8 spherical components
NUM_RBF = 32
CUTOFF = 5.0
NUM_LAYERS = 2                    # 1 non-last (Vertex_Edge) + 1 last layer
MAX_Z = 100
EPS_LN = 1e-5

TM_DENSE = 256                    # rows per grid step, pure-matmul kernels
TM_EDGE = 128                     # rows per grid step, kernels with (TM,8,C) blocks
VMEM_LIMIT = 48 * 1024 * 1024     # sized against v7x's 64 MiB physical VMEM

# block-diagonal matrix that sums channels within a head and broadcasts the
# per-head sum back to every channel of that head (one 128x128 MXU matmul).
_hm = np.zeros((HIDDEN, NUM_HEADS), np.float32)
for _c in range(HIDDEN):
    _hm[_c, _c // HEAD_DIM] = 1.0
HEAD_BLOCK = jnp.asarray(_hm @ _hm.T)            # (HIDDEN, HIDDEN)


# --------------------------- generic row-tiled call ---------------------------
def _round_up(v, m):
    return -(-v // m) * m


def _row_index_map(ndim):
    def im(i):
        return (i,) + (0,) * (ndim - 1)
    return im


def _const_index_map(ndim):
    def im(i):
        return (0,) * ndim
    return im


def row_tiled_call(kernel, m, row_ins, const_ins, out_row_shapes, tm):
    """Run `kernel` over row tiles of size `tm`.

    kernel signature: kernel(*row_refs, *const_refs, *out_refs)
    row_ins:   arrays with leading dim m (tiled over the grid)
    const_ins: arrays passed whole to every grid step
    out_row_shapes: per-output trailing shapes; outputs get leading dim m.
    """
    tm = int(min(tm, _round_up(m, 8)))
    mp = _round_up(m, tm)
    padded = [a if mp == m else
              jnp.pad(a, ((0, mp - m),) + ((0, 0),) * (a.ndim - 1))
              for a in row_ins]

    in_specs = [pl.BlockSpec((tm,) + a.shape[1:], _row_index_map(a.ndim))
                for a in padded]
    in_specs += [pl.BlockSpec(a.shape, _const_index_map(a.ndim))
                 for a in const_ins]

    out_shape, out_specs = [], []
    for s in out_row_shapes:
        full = (mp,) + tuple(s)
        out_shape.append(jax.ShapeDtypeStruct(full, jnp.float32))
        out_specs.append(pl.BlockSpec((tm,) + tuple(s), _row_index_map(len(full))))

    outs = pl.pallas_call(
        kernel,
        out_shape=tuple(out_shape),
        grid_spec=pltpu.PrefetchScalarGridSpec(
            num_scalar_prefetch=0,
            grid=(mp // tm,),
            in_specs=in_specs,
            out_specs=tuple(out_specs),
        ),
        compiler_params=pltpu.CompilerParams(
            dimension_semantics=("parallel",),   # rows independent -> 2 TCs on v7x
            vmem_limit_bytes=VMEM_LIMIT,
        ),
    )(*padded, *const_ins)
    if not isinstance(outs, (tuple, list)):
        outs = (outs,)
    return tuple(o if mp == m else o[:m] for o in outs)


# --------------------------------- kernels ------------------------------------
def _dense_kernel(x_ref, wt_ref, b_ref, o_ref, *, act):
    y = jnp.dot(x_ref[...], wt_ref[...], preferred_element_type=jnp.float32)
    y = y + b_ref[...]
    if act == "silu":
        y = y * jax.nn.sigmoid(y)
    o_ref[...] = y


def _ln_kernel(x_ref, g_ref, b_ref, o_ref):
    x = x_ref[...]
    mu = jnp.mean(x, axis=-1, keepdims=True)
    xc = x - mu
    var = jnp.mean(xc * xc, axis=-1, keepdims=True)
    o_ref[...] = xc * jax.lax.rsqrt(var + EPS_LN) * g_ref[...] + b_ref[...]


def _ln_qkv_kernel(x_ref, g_ref, b_ref, wqkv_ref, bqkv_ref, o_ref):
    # fused LayerNorm + q/k/v projection (128 -> 384)
    x = x_ref[...]
    mu = jnp.mean(x, axis=-1, keepdims=True)
    xc = x - mu
    var = jnp.mean(xc * xc, axis=-1, keepdims=True)
    xn = xc * jax.lax.rsqrt(var + EPS_LN) * g_ref[...] + b_ref[...]
    o_ref[...] = (jnp.dot(xn, wqkv_ref[...], preferred_element_type=jnp.float32)
                  + bqkv_ref[...])


def _message_kernel(qi_ref, kvj_ref, f_ref, r_ref, d_ref, vecj_ref,
                    wdkv_ref, bdkv_ref, ws_ref, bs_ref, wfc_ref, bd_ref, aggp_ref,
                    xo_ref, vecm_ref, *, cutoff):
    # fused: dk/dv projection of f_ij, attention, cutoff, s_proj, and the
    # custom patch aggregation -> single combined per-edge output.
    dkv = (jnp.dot(f_ref[...], wdkv_ref[...], preferred_element_type=jnp.float32)
           + bdkv_ref[...])
    dkv = dkv * jax.nn.sigmoid(dkv)                                     # silu
    dk = dkv[:, :HIDDEN]
    dv = dkv[:, HIDDEN:]

    kvj = kvj_ref[...]
    kj = kvj[:, :HIDDEN]
    vj0 = kvj[:, HIDDEN:]

    prod = qi_ref[...] * kj * dk                                        # (TM, C)
    # per-head sum broadcast back to channels via one (128,128) matmul
    attn_full = jnp.dot(prod, bd_ref[...], preferred_element_type=jnp.float32)
    attn_full = attn_full * jax.nn.sigmoid(attn_full)                   # silu
    r = r_ref[...]                                                      # (TM, 1)
    cut = 0.5 * (jnp.cos(r * (np.pi / cutoff)) + 1.0)
    cut = cut * (r < cutoff).astype(jnp.float32)
    attn_full = attn_full * cut

    vj = vj0 * dv * attn_full                                           # (TM, C)

    s = jnp.dot(vj, ws_ref[...], preferred_element_type=jnp.float32) + bs_ref[...]
    s = s * jax.nn.sigmoid(s)                                           # silu
    s1 = s[:, :HIDDEN]
    s2 = s[:, HIDDEN:]
    d = d_ref[...][:, :, None]                                          # (TM, L, 1)
    vecm_ref[...] = vecj_ref[...] * s1[:, None, :] + s2[:, None, :] * d

    # aggregation_custom patch gating: one (128,256) matmul with the
    # block-placed fc_all weight, then clamp to [0, 1].
    half = HIDDEN // 2
    a = vj[:, :half]
    b = vj[:, half:]
    ex = jnp.clip(jnp.dot(vj, wfc_ref[...], preferred_element_type=jnp.float32),
                  0.0, 1.0)                                             # (TM, 2C)
    ex_a = ex[:, :HIDDEN]
    ex_b = ex[:, HIDDEN:]
    out0 = a * ex_a[:, :half] + b * ex_b[:, :half]
    out1 = a * ex_a[:, half:] + b * ex_b[:, half:]
    patch = jnp.concatenate([out0, out1], axis=-1)
    # scatter is linear, so emit xm + |p|*patch once and scatter once.
    xo_ref[...] = vj + aggp_ref[...] * patch


def _node_update_kernel(xa_ref, vecp_ref, vagg_ref, wo_ref, bo_ref,
                        dx_ref, dvec_ref):
    # fused o_proj (128 -> 384) + node update
    o = (jnp.dot(xa_ref[...], wo_ref[...], preferred_element_type=jnp.float32)
         + bo_ref[...])
    o1 = o[:, :HIDDEN]
    o2 = o[:, HIDDEN:2 * HIDDEN]
    o3 = o[:, 2 * HIDDEN:]
    vecp = vecp_ref[...]
    vec1 = vecp[:, :, :HIDDEN]
    vec2 = vecp[:, :, HIDDEN:2 * HIDDEN]
    vec3 = vecp[:, :, 2 * HIDDEN:]
    vec_dot = jnp.sum(vec1 * vec2, axis=1)                              # (TM, C)
    dx_ref[...] = vec_dot * o2 + o3
    dvec_ref[...] = vec3 * o1[:, None, :] + vagg_ref[...]


def _edge_update_kernel(vei_ref, wsj_ref, d_ref, f_ref, wf_ref, bf_ref, o_ref):
    # fused f_proj (128 -> 256) + vector-rejection edge update.
    # NOTE: matching the reference ViS_MP_Vertex_Edge.edge_update, BOTH t_trg
    # and t_src are applied to vec_i (the target node).
    d = d_ref[...][:, :, None]                                          # (TM, L, 1)
    vei = vei_ref[...]                                                  # (TM, L, 4C)
    wt_i = vei[:, :, :HIDDEN]
    tt_i = vei[:, :, 2 * HIDDEN:3 * HIDDEN]
    ts_i = vei[:, :, 3 * HIDDEN:]

    def rej(v, dd):
        proj = jnp.sum(v * dd, axis=1, keepdims=True)
        return v - proj * dd

    w1 = rej(wt_i, d)
    w2 = rej(wsj_ref[...], -d)
    w_dot = jnp.sum(w1 * w2, axis=1)                                    # (TM, C)
    t1 = rej(tt_i, d)
    t2 = rej(ts_i, -d)
    t_dot = jnp.sum(t1 * t2, axis=1)

    f = (jnp.dot(f_ref[...], wf_ref[...], preferred_element_type=jnp.float32)
         + bf_ref[...])
    f = f * jax.nn.sigmoid(f)                                           # silu
    o_ref[...] = f[:, :HIDDEN] * w_dot + f[:, HIDDEN:] * t_dot


# ------------------------------ kernel wrappers --------------------------------
def dense(x, wt, b2, act=None, tm=TM_DENSE):
    """y = act(x @ wt + b2), wt already (in, out), b2 already (1, out)."""
    (y,) = row_tiled_call(functools.partial(_dense_kernel, act=act),
                          x.shape[0], [x], [wt, b2], [(wt.shape[1],)], tm=tm)
    return y


def layernorm(x, g2, b2, tm=TM_DENSE):
    (y,) = row_tiled_call(_ln_kernel, x.shape[0], [x], [g2, b2],
                          [(x.shape[1],)], tm=tm)
    return y


# ------------------------------- module glue -----------------------------------
def cosine_cutoff(d):
    return 0.5 * (jnp.cos(d * np.pi / CUTOFF) + 1.0) * (d < CUTOFF).astype(jnp.float32)


_RBF_START = float(np.exp(-CUTOFF))
RBF_MEANS = jnp.linspace(_RBF_START, 1.0, NUM_RBF).astype(jnp.float32)
RBF_BETAS = jnp.full((NUM_RBF,), (2.0 / NUM_RBF * (1.0 - _RBF_START)) ** -2, jnp.float32)
RBF_ALPHA = 5.0 / CUTOFF


def expnorm_rbf(dist):
    d = dist[:, None]
    return cosine_cutoff(d) * jnp.exp(-RBF_BETAS * (jnp.exp(RBF_ALPHA * (-d)) - RBF_MEANS) ** 2)


def sphere_l2(v):
    x, y, z = v[:, 0], v[:, 1], v[:, 2]
    s3 = np.sqrt(3.0)
    sh = [x, y, z,
          s3 * x * z,
          s3 * x * y,
          y * y - 0.5 * (x * x + z * z),
          s3 * y * z,
          (s3 / 2.0) * (z * z - x * x)]
    return jnp.stack(sh, axis=-1)                                        # (E, 8)


def neighbor_embedding(kp, z, x, edge_index, edge_weight, edge_attr, mask):
    c = cosine_cutoff(edge_weight)
    w = dense(edge_attr, kp["dist_wt"], kp["dist_b"]) * c[:, None]
    w = jnp.where(mask[:, None], w, 0.0)                 # drop self-loop messages
    x_nb = kp["embedding"][z]
    msg = x_nb[edge_index[0]] * w
    agg = jax.ops.segment_sum(msg, edge_index[1], num_segments=x.shape[0])
    return dense(jnp.concatenate([x, agg], axis=-1), kp["comb_wt"], kp["comb_b"])


def edge_embedding(kp, edge_index, edge_attr, x):
    w = dense(edge_attr, kp["proj_wt"], kp["proj_b"])
    return (x[edge_index[1]] + x[edge_index[0]]) * w


def vis_mp_forward(kp, x, vec, edge_index, r_ij, f_ij, d_ij, last_layer):
    n = x.shape[0]
    e = r_ij.shape[0]
    src, dst = edge_index[0], edge_index[1]             # j (source), i (target)

    # VecLayerNorm('none', non-trainable) is a per-channel scale by ones.
    vec = vec * kp["vec_ln_w"][None, None, :]

    # fused LayerNorm + q/k/v projection
    (qkv,) = row_tiled_call(
        _ln_qkv_kernel, n, [x],
        [kp["ln_g"], kp["ln_b"], kp["qkv_wt"], kp["qkv_b"]],
        [(3 * HIDDEN,)], tm=TM_DENSE)
    q = qkv[:, :HIDDEN]
    kv = qkv[:, HIDDEN:]

    # fused vec_proj (+ the four edge-update projections for non-last layers)
    vflat = vec.reshape(n * NLM, HIDDEN)
    vp_all = dense(vflat, kp["vproj_wt"], kp["vproj_b"]).reshape(n, NLM, -1)
    vecp = vp_all[:, :, :3 * HIDDEN]                    # vec1|vec2|vec3

    # ----- message (per edge): dk/dv + attention + s_proj + patch agg fused -----
    x_comb, vecm = row_tiled_call(
        functools.partial(_message_kernel, cutoff=CUTOFF),
        e,
        [q[dst], kv[src], f_ij, r_ij[:, None], d_ij, vec[src]],
        [kp["dkv_wt"], kp["dkv_b"], kp["s_wt"], kp["s_b"],
         kp["fc_wt"], HEAD_BLOCK, kp["agg_abs"]],
        [(HIDDEN,), (NLM, HIDDEN)], tm=TM_EDGE)

    # ----- aggregate (single scatter per output; patch term already folded in) --
    # TODO(synk): the reference prints a host-side debug line here; skipped.
    x_agg = jax.ops.segment_sum(x_comb, dst, num_segments=n)
    vec_agg = jax.ops.segment_sum(vecm, dst, num_segments=n)

    # ----- node update (o_proj fused) -----
    dx, dvec = row_tiled_call(
        _node_update_kernel, n,
        [x_agg, vecp, vec_agg],
        [kp["o_wt"], kp["o_b"]],
        [(HIDDEN,), (NLM, HIDDEN)], tm=TM_EDGE)

    if last_layer:
        return dx, dvec, None

    # ----- edge update (ViS_MP_Vertex_Edge), f_proj fused -----
    vec_edge = vp_all[:, :, 3 * HIDDEN:]                # wt|ws|tt|ts  (N, L, 4C)
    ve_i = vec_edge[dst]                                # (E, L, 4C)
    ws_j = vec_edge[src][:, :, HIDDEN:2 * HIDDEN]       # w_src_proj(vec_j)
    (df,) = row_tiled_call(
        _edge_update_kernel, e,
        [ve_i, ws_j, d_ij, f_ij],
        [kp["f_wt"], kp["f_b"]],
        [(HIDDEN,)], tm=TM_EDGE)
    return dx, dvec, df


def visnet_block_forward(kparams, z, pos, edge_index):
    n = z.shape[0]
    x = kparams["embedding"][z]                                          # (N, C)

    # Distance (loop=True): edge_vec = pos[j] - pos[i]; self-loop weight = 0.
    mask = edge_index[0] != edge_index[1]
    edge_vec = pos[edge_index[0]] - pos[edge_index[1]]
    edge_weight = jnp.where(mask, jnp.linalg.norm(edge_vec, axis=-1), 0.0)
    edge_attr = expnorm_rbf(edge_weight)                                 # (E, num_rbf)

    norm = jnp.linalg.norm(edge_vec, axis=1, keepdims=True)
    edge_vec = jnp.where(mask[:, None],
                         edge_vec / jnp.where(norm > 0, norm, 1.0),
                         edge_vec)
    d_ij = sphere_l2(edge_vec)                                           # (E, 8)

    x = neighbor_embedding(kparams["ne"], z, x, edge_index, edge_weight, edge_attr, mask)
    vec = jnp.zeros((n, NLM, HIDDEN), jnp.float32)
    edge_attr = edge_embedding(kparams["ee"], edge_index, edge_attr, x)  # (E, C)

    for li in range(NUM_LAYERS):
        last = li == NUM_LAYERS - 1
        dx, dvec, dea = vis_mp_forward(kparams["layers"][li], x, vec, edge_index,
                                       edge_weight, edge_attr, d_ij, last)
        x = x + dx
        vec = vec + dvec
        if not last:
            edge_attr = edge_attr + dea

    x = layernorm(x, kparams["out_norm_g"], kparams["out_norm_b"])
    vec = vec * kparams["vec_out_norm_w"][None, None, :]
    return x, vec


# ------------------------------ parameter init ---------------------------------
def init_params(key):
    """Parameters in PyTorch (out, in) layout, mirroring the reference module."""
    keys = iter(jax.random.split(key, 256))

    def xav(shape):
        fan_out, fan_in = shape
        a = float(np.sqrt(6.0 / (fan_in + fan_out)))
        return jax.random.uniform(next(keys), shape, jnp.float32, -a, a)

    def nrm(shape):
        return jax.random.normal(next(keys), shape, jnp.float32)

    params = {
        "embedding": nrm((MAX_Z, HIDDEN)),
        "ne": dict(embedding=nrm((MAX_Z, HIDDEN)),
                   dist_w=xav((HIDDEN, NUM_RBF)), dist_b=jnp.zeros((HIDDEN,)),
                   comb_w=xav((HIDDEN, 2 * HIDDEN)), comb_b=jnp.zeros((HIDDEN,))),
        "ee": dict(proj_w=xav((HIDDEN, NUM_RBF)), proj_b=jnp.zeros((HIDDEN,))),
        "out_norm_g": jnp.ones((HIDDEN,)), "out_norm_b": jnp.zeros((HIDDEN,)),
        "vec_out_norm_w": jnp.ones((HIDDEN,)),
    }
    layers = []
    for li in range(NUM_LAYERS):
        last = li == NUM_LAYERS - 1
        p = dict(
            ln_g=jnp.ones((HIDDEN,)), ln_b=jnp.zeros((HIDDEN,)),
            vec_ln_w=jnp.ones((HIDDEN,)),
            vec_w=xav((3 * HIDDEN, HIDDEN)),
            q_w=xav((HIDDEN, HIDDEN)), q_b=jnp.zeros((HIDDEN,)),
            k_w=xav((HIDDEN, HIDDEN)), k_b=jnp.zeros((HIDDEN,)),
            v_w=xav((HIDDEN, HIDDEN)), v_b=jnp.zeros((HIDDEN,)),
            dk_w=xav((HIDDEN, HIDDEN)), dk_b=jnp.zeros((HIDDEN,)),
            dv_w=xav((HIDDEN, HIDDEN)), dv_b=jnp.zeros((HIDDEN,)),
            s_w=xav((2 * HIDDEN, HIDDEN)), s_b=jnp.zeros((2 * HIDDEN,)),
            o_w=xav((3 * HIDDEN, HIDDEN)), o_b=jnp.zeros((3 * HIDDEN,)),
            fc_all_w=xav((HIDDEN, HIDDEN // 2)),
            agg_param=jnp.asarray(1e-5, jnp.float32),
        )
        if not last:
            p.update(f_w=xav((2 * HIDDEN, HIDDEN)), f_b=jnp.zeros((2 * HIDDEN,)),
                     w_src_w=xav((HIDDEN, HIDDEN)), w_trg_w=xav((HIDDEN, HIDDEN)),
                     t_src_w=xav((HIDDEN, HIDDEN)), t_trg_w=xav((HIDDEN, HIDDEN)))
        layers.append(p)
    params["layers"] = layers
    return params


def prepare_params(p):
    """One-time layout prep: transpose PyTorch (out,in) weights to (in,out),
    concatenate fused projections, pre-broadcast biases."""
    def t(w):
        return jnp.transpose(w)

    def b2(b):
        return b[None, :]

    out = {
        "embedding": p["embedding"],
        "ne": dict(embedding=p["ne"]["embedding"],
                   dist_wt=t(p["ne"]["dist_w"]), dist_b=b2(p["ne"]["dist_b"]),
                   comb_wt=t(p["ne"]["comb_w"]), comb_b=b2(p["ne"]["comb_b"])),
        "ee": dict(proj_wt=t(p["ee"]["proj_w"]), proj_b=b2(p["ee"]["proj_b"])),
        "out_norm_g": b2(p["out_norm_g"]), "out_norm_b": b2(p["out_norm_b"]),
        "vec_out_norm_w": p["vec_out_norm_w"],
    }

    layers = []
    for lp in p["layers"]:
        last = "f_w" not in lp
        # fused q|k|v
        qkv_w = jnp.concatenate([lp["q_w"], lp["k_w"], lp["v_w"]], axis=0)
        qkv_b = jnp.concatenate([lp["q_b"], lp["k_b"], lp["v_b"]])
        # fused dk|dv
        dkv_w = jnp.concatenate([lp["dk_w"], lp["dv_w"]], axis=0)
        dkv_b = jnp.concatenate([lp["dk_b"], lp["dv_b"]])
        # fused vec_proj (+ w_trg|w_src|t_trg|t_src for non-last layers)
        vproj_list = [lp["vec_w"]]
        if not last:
            vproj_list += [lp["w_trg_w"], lp["w_src_w"], lp["t_trg_w"], lp["t_src_w"]]
        vproj_w = jnp.concatenate(vproj_list, axis=0)
        # fc_all placed block-wise into a (128, 256) matrix so the patch gating
        # is a single full-K matmul inside the message kernel.
        fc_t = t(lp["fc_all_w"])                          # (64, 128)
        half = HIDDEN // 2
        fc_big = jnp.zeros((HIDDEN, 2 * HIDDEN), jnp.float32)
        fc_big = fc_big.at[:half, :HIDDEN].set(fc_t)
        fc_big = fc_big.at[half:, HIDDEN:].set(fc_t)

        kl = dict(
            ln_g=b2(lp["ln_g"]), ln_b=b2(lp["ln_b"]),
            vec_ln_w=lp["vec_ln_w"],
            qkv_wt=t(qkv_w), qkv_b=b2(qkv_b),
            dkv_wt=t(dkv_w), dkv_b=b2(dkv_b),
            vproj_wt=t(vproj_w),
            vproj_b=jnp.zeros((1, vproj_w.shape[0]), jnp.float32),
            s_wt=t(lp["s_w"]), s_b=b2(lp["s_b"]),
            o_wt=t(lp["o_w"]), o_b=b2(lp["o_b"]),
            fc_wt=fc_big,
            agg_abs=jnp.broadcast_to(jnp.abs(lp["agg_param"]), (1, HIDDEN)),
        )
        if not last:
            kl.update(f_wt=t(lp["f_w"]), f_b=b2(lp["f_b"]))
        layers.append(kl)
    out["layers"] = layers
    return out


# ----------------------------------- main ---------------------------------------
if __name__ == "__main__":
    key = jax.random.PRNGKey(0)
    kz, kp, kw = jax.random.split(key, 3)

    n_graphs, atoms_per_graph = 2, 4
    n = n_graphs * atoms_per_graph                   # 8 nodes
    z = jax.random.randint(kz, (n,), 1, MAX_Z)
    pos = jax.random.uniform(kp, (n, 3), jnp.float32, 0.0, 1.0)   # all pairs < cutoff
    batch = np.repeat(np.arange(n_graphs), atoms_per_graph)

    # radius_graph(loop=True) on the host: all intra-graph pairs incl. self-loops.
    # (max_num_neighbors=32 truncation never triggers at this size.)
    src, dst = [], []
    for i in range(n):
        for j in range(n):
            if batch[i] == batch[j]:
                src.append(j)   # source node j
                dst.append(i)   # target node i
    edge_index = jnp.asarray(np.stack([src, dst]), dtype=jnp.int32)   # (2, 32)

    params = init_params(kw)
    kparams = prepare_params(params)       # one-time weight layout prep

    fwd = jax.jit(visnet_block_forward)
    x_out, vec_out = fwd(kparams, z, pos, edge_index)
    jax.block_until_ready((x_out, vec_out))

    assert x_out.shape == (n, HIDDEN)
    assert vec_out.shape == (n, NLM, HIDDEN)
    assert bool(jnp.all(jnp.isfinite(x_out))) and bool(jnp.all(jnp.isfinite(vec_out)))
    print("KERNEL_OK")
</pallas_src>

<mosaic_0001>
module attributes {stable_mosaic.version = 11 : i64} {
  func.func @_dense_kernel(%arg0: i32, %arg1: memref<32x32xf32, #tpu.memory_space<vmem>>, %arg2: memref<32x128xf32, #tpu.memory_space<vmem>>, %arg3: memref<1x128xf32, #tpu.memory_space<vmem>>, %arg4: memref<32x128xf32, #tpu.memory_space<vmem>>) attributes {dimension_semantics = [#tpu.dimension_semantics<parallel>], iteration_bounds = array<i64: 1>, scalar_prefetch = 0 : i64, scratch_operands = 0 : i64, tpu.core_type = #tpu.core_type<tc>, window_params = [{transform_indices = @transform_0, window_bounds = array<i64: 32, 32>}, {pipeline_mode = #tpu.pipeline_mode<synchronous>, transform_indices = @transform_1, window_bounds = array<i64: 32, 128>}, {pipeline_mode = #tpu.pipeline_mode<synchronous>, transform_indices = @transform_2, window_bounds = array<i64: 1, 128>}, {transform_indices = @transform_3, window_bounds = array<i64: 32, 128>}]} {
    %c0 = arith.constant 0 : index
    %c0_0 = arith.constant 0 : index
    %0 = vector.load %arg1[%c0, %c0_0] : memref<32x32xf32, #tpu.memory_space<vmem>>, vector<32x32xf32>
    %c0_1 = arith.constant 0 : index
    %c0_2 = arith.constant 0 : index
    %1 = vector.load %arg2[%c0_1, %c0_2] : memref<32x128xf32, #tpu.memory_space<vmem>>, vector<32x128xf32>
    %cst = arith.constant dense<0.000000e+00> : vector<32x128xf32>
    %2 = tpu.matmul %0, %1, %cst {dimension_numbers = #tpu.dot_dimension_numbers<[1], [0], [0], [1], [0, 0, 1, 1], [], []>} : vector<32x32xf32>, vector<32x128xf32>, vector<32x128xf32> -> vector<32x128xf32>
    %c0_3 = arith.constant 0 : index
    %c0_4 = arith.constant 0 : index
    %3 = vector.load %arg3[%c0_3, %c0_4] : memref<1x128xf32, #tpu.memory_space<vmem>>, vector<1x128xf32>
    %4 = vector.broadcast %3 : vector<1x128xf32> to vector<32x128xf32>
    %5 = arith.addf %2, %4 : vector<32x128xf32>
    %c0_5 = arith.constant 0 : index
    %c0_6 = arith.constant 0 : index
    %6 = vector.load %arg4[%c0_5, %c0_6] : memref<32x128xf32, #tpu.memory_space<vmem>>, vector<32x128xf32>
    tpu.vector_store %arg4[%c0_5, %c0_6], %5 {strides = array<i32>} : memref<32x128xf32, #tpu.memory_space<vmem>>, vector<32x128xf32>,
    return
  }
  func.func @transform_0(%arg0: i32) -> (i32, i32) {
    %c0_i32 = arith.constant 0 : i32
    %c0_i32_0 = arith.constant 0 : i32
    return %arg0, %c0_i32 : i32, i32
  }
  func.func @transform_1(%arg0: i32) -> (i32, i32) {
    %c0_i32 = arith.constant 0 : i32
    %c0_i32_0 = arith.constant 0 : i32
    %c0_i32_1 = arith.constant 0 : i32
    return %c0_i32, %c0_i32_0 : i32, i32
  }
  func.func @transform_2(%arg0: i32) -> (i32, i32) {
    %c0_i32 = arith.constant 0 : i32
    %c0_i32_0 = arith.constant 0 : i32
    %c0_i32_1 = arith.constant 0 : i32
    return %c0_i32, %c0_i32_0 : i32, i32
  }
  func.func @transform_3(%arg0: i32) -> (i32, i32) {
    %c0_i32 = arith.constant 0 : i32
    %c0_i32_0 = arith.constant 0 : i32
    return %arg0, %c0_i32 : i32, i32
  }
}

module attributes {stable_mosaic.version = 11 : i64} {
  func.func @_dense_kernel(%arg0: i32, %arg1: memref<8x256xf32, #tpu.memory_space<vmem>>, %arg2: memref<256x128xf32, #tpu.memory_space<vmem>>, %arg3: memref<1x128xf32, #tpu.memory_space<vmem>>, %arg4: memref<8x128xf32, #tpu.memory_space<vmem>>) attributes {dimension_semantics = [#tpu.dimension_semantics<parallel>], iteration_bounds = array<i64: 1>, scalar_prefetch = 0 : i64, scratch_operands = 0 : i64, tpu.core_type = #tpu.core_type<tc>, window_params = [{transform_indices = @transform_0, window_bounds = array<i64: 8, 256>}, {pipeline_mode = #tpu.pipeline_mode<synchronous>, transform_indices = @transform_1, window_bounds = array<i64: 256, 128>}, {pipeline_mode = #tpu.pipeline_mode<synchronous>, transform_indices = @transform_2, window_bounds = array<i64: 1, 128>}, {transform_indices = @transform_3, window_bounds = array<i64: 8, 128>}]} {
    %c0 = arith.constant 0 : index
    %c0_0 = arith.constant 0 : index
    %0 = vector.load %arg1[%c0, %c0_0] : memref<8x256xf32, #tpu.memory_space<vmem>>, vector<8x256xf32>
    %c0_1 = arith.constant 0 : index
    %c0_2 = arith.constant 0 : index
    %1 = vector.load %arg2[%c0_1, %c0_2] : memref<256x128xf32, #tpu.memory_space<vmem>>, vector<256x128xf32>
    %cst = arith.constant dense<0.000000e+00> : vector<8x128xf32>
    %2 = tpu.matmul %0, %1, %cst {dimension_numbers = #tpu.dot_dimension_numbers<[1], [0], [0], [1], [0, 0, 1, 1], [], []>} : vector<8x256xf32>, vector<256x128xf32>, vector<8x128xf32> -> vector<8x128xf32>
    %c0_3 = arith.constant 0 : index
    %c0_4 = arith.constant 0 : index
    %3 = vector.load %arg3[%c0_3, %c0_4] : memref<1x128xf32, #tpu.memory_space<vmem>>, vector<1x128xf32>
    %4 = vector.broadcast %3 : vector<1x128xf32> to vector<8x128xf32>
    %5 = arith.addf %2, %4 : vector<8x128xf32>
    %c0_5 = arith.constant 0 : index
    %c0_6 = arith.constant 0 : index
    %6 = vector.load %arg4[%c0_5, %c0_6] : memref<8x128xf32, #tpu.memory_space<vmem>>, vector<8x128xf32>
    tpu.vector_store %arg4[%c0_5, %c0_6], %5 {strides = array<i32>} : memref<8x128xf32, #tpu.memory_space<vmem>>, vector<8x128xf32>,
    return
  }
  func.func @transform_0(%arg0: i32) -> (i32, i32) {
    %c0_i32 = arith.constant 0 : i32
    %c0_i32_0 = arith.constant 0 : i32
    return %arg0, %c0_i32 : i32, i32
  }
  func.func @transform_1(%arg0: i32) -> (i32, i32) {
    %c0_i32 = arith.constant 0 : i32
    %c0_i32_0 = arith.constant 0 : i32
    %c0_i32_1 = arith.constant 0 : i32
    return %c0_i32, %c0_i32_0 : i32, i32
  }
  func.func @transform_2(%arg0: i32) -> (i32, i32) {
    %c0_i32 = arith.constant 0 : i32
    %c0_i32_0 = arith.constant 0 : i32
    %c0_i32_1 = arith.constant 0 : i32
    return %c0_i32, %c0_i32_0 : i32, i32
  }
  func.func @transform_3(%arg0: i32) -> (i32, i32) {
    %c0_i32 = arith.constant 0 : i32
    %c0_i32_0 = arith.constant 0 : i32
    return %arg0, %c0_i32 : i32, i32
  }
}

module attributes {stable_mosaic.version = 11 : i64} {
  func.func @_dense_kernel(%arg0: i32, %arg1: memref<64x128xf32, #tpu.memory_space<vmem>>, %arg2: memref<128x896xf32, #tpu.memory_space<vmem>>, %arg3: memref<1x896xf32, #tpu.memory_space<vmem>>, %arg4: memref<64x896xf32, #tpu.memory_space<vmem>>) attributes {dimension_semantics = [#tpu.dimension_semantics<parallel>], iteration_bounds = array<i64: 1>, scalar_prefetch = 0 : i64, scratch_operands = 0 : i64, tpu.core_type = #tpu.core_type<tc>, window_params = [{transform_indices = @transform_0, window_bounds = array<i64: 64, 128>}, {pipeline_mode = #tpu.pipeline_mode<synchronous>, transform_indices = @transform_1, window_bounds = array<i64: 128, 896>}, {pipeline_mode = #tpu.pipeline_mode<synchronous>, transform_indices = @transform_2, window_bounds = array<i64: 1, 896>}, {transform_indices = @transform_3, window_bounds = array<i64: 64, 896>}]} {
    %c0 = arith.constant 0 : index
    %c0_0 = arith.constant 0 : index
    %0 = vector.load %arg1[%c0, %c0_0] : memref<64x128xf32, #tpu.memory_space<vmem>>, vector<64x128xf32>
    %c0_1 = arith.constant 0 : index
    %c0_2 = arith.constant 0 : index
    %1 = vector.load %arg2[%c0_1, %c0_2] : memref<128x896xf32, #tpu.memory_space<vmem>>, vector<128x896xf32>
    %cst = arith.constant dense<0.000000e+00> : vector<64x896xf32>
    %2 = tpu.matmul %0, %1, %cst {dimension_numbers = #tpu.dot_dimension_numbers<[1], [0], [0], [1], [0, 0, 1, 1], [], []>} : vector<64x128xf32>, vector<128x896xf32>, vector<64x896xf32> -> vector<64x896xf32>
    %c0_3 = arith.constant 0 : index
    %c0_4 = arith.constant 0 : index
    %3 = vector.load %arg3[%c0_3, %c0_4] : memref<1x896xf32, #tpu.memory_space<vmem>>, vector<1x896xf32>
    %4 = vector.broadcast %3 : vector<1x896xf32> to vector<64x896xf32>
    %5 = arith.addf %2, %4 : vector<64x896xf32>
    %c0_5 = arith.constant 0 : index
    %c0_6 = arith.constant 0 : index
    %6 = vector.load %arg4[%c0_5, %c0_6] : memref<64x896xf32, #tpu.memory_space<vmem>>, vector<64x896xf32>
    tpu.vector_store %arg4[%c0_5, %c0_6], %5 {strides = array<i32>} : memref<64x896xf32, #tpu.memory_space<vmem>>, vector<64x896xf32>,
    return
  }
  func.func @transform_0(%arg0: i32) -> (i32, i32) {
    %c0_i32 = arith.constant 0 : i32
    %c0_i32_0 = arith.constant 0 : i32
    return %arg0, %c0_i32 : i32, i32
  }
  func.func @transform_1(%arg0: i32) -> (i32, i32) {
    %c0_i32 = arith.constant 0 : i32
    %c0_i32_0 = arith.constant 0 : i32
    %c0_i32_1 = arith.constant 0 : i32
    return %c0_i32, %c0_i32_0 : i32, i32
  }
  func.func @transform_2(%arg0: i32) -> (i32, i32) {
    %c0_i32 = arith.constant 0 : i32
    %c0_i32_0 = arith.constant 0 : i32
    %c0_i32_1 = arith.constant 0 : i32
    return %c0_i32, %c0_i32_0 : i32, i32
  }
  func.func @transform_3(%arg0: i32) -> (i32, i32) {
    %c0_i32 = arith.constant 0 : i32
    %c0_i32_0 = arith.constant 0 : i32
    return %arg0, %c0_i32 : i32, i32
  }
}

module attributes {stable_mosaic.version = 11 : i64} {
  func.func @_ln_qkv_kernel(%arg0: i32, %arg1: memref<8x128xf32, #tpu.memory_space<vmem>>, %arg2: memref<1x128xf32, #tpu.memory_space<vmem>>, %arg3: memref<1x128xf32, #tpu.memory_space<vmem>>, %arg4: memref<128x384xf32, #tpu.memory_space<vmem>>, %arg5: memref<1x384xf32, #tpu.memory_space<vmem>>, %arg6: memref<8x384xf32, #tpu.memory_space<vmem>>) attributes {dimension_semantics = [#tpu.dimension_semantics<parallel>], iteration_bounds = array<i64: 1>, scalar_prefetch = 0 : i64, scratch_operands = 0 : i64, tpu.core_type = #tpu.core_type<tc>, window_params = [{transform_indices = @transform_0, window_bounds = array<i64: 8, 128>}, {pipeline_mode = #tpu.pipeline_mode<synchronous>, transform_indices = @transform_1, window_bounds = array<i64: 1, 128>}, {pipeline_mode = #tpu.pipeline_mode<synchronous>, transform_indices = @transform_2, window_bounds = array<i64: 1, 128>}, {pipeline_mode = #tpu.pipeline_mode<synchronous>, transform_indices = @transform_3, window_bounds = array<i64: 128, 384>}, {pipeline_mode = #tpu.pipeline_mode<synchronous>, transform_indices = @transform_4, window_bounds = array<i64: 1, 384>}, {transform_indices = @transform_5, window_bounds = array<i64: 8, 384>}]} {
    %c0 = arith.constant 0 : index
    %c0_0 = arith.constant 0 : index
    %0 = vector.load %arg1[%c0, %c0_0] : memref<8x128xf32, #tpu.memory_space<vmem>>, vector<8x128xf32>
    %cst = arith.constant dense<0.000000e+00> : vector<8xf32>
    %1 = vector.multi_reduction <add>, %0, %cst [1] : vector<8x128xf32> to vector<8xf32>
    %2 = vector.shape_cast %1 : vector<8xf32> to vector<8x1xf32>
    %cst_1 = arith.constant 1.280000e+02 : f32
    %3 = vector.broadcast %cst_1 : f32 to vector<8x1xf32>
    %4 = arith.divf %2, %3 : vector<8x1xf32>
    %5 = vector.broadcast %4 : vector<8x1xf32> to vector<8x128xf32>
    %6 = arith.subf %0, %5 : vector<8x128xf32>
    %7 = arith.mulf %6, %6 : vector<8x128xf32>
    %cst_2 = arith.constant dense<0.000000e+00> : vector<8xf32>
    %8 = vector.multi_reduction <add>, %7, %cst_2 [1] : vector<8x128xf32> to vector<8xf32>
    %9 = vector.shape_cast %8 : vector<8xf32> to vector<8x1xf32>
    %cst_3 = arith.constant 1.280000e+02 : f32
    %10 = vector.broadcast %cst_3 : f32 to vector<8x1xf32>
    %11 = arith.divf %9, %10 : vector<8x1xf32>
    %cst_4 = arith.constant 9.99999974E-6 : f32
    %12 = vector.broadcast %cst_4 : f32 to vector<8x1xf32>
    %13 = arith.addf %11, %12 : vector<8x1xf32>
    %14 = math.rsqrt %13 : vector<8x1xf32>
    %15 = vector.broadcast %14 : vector<8x1xf32> to vector<8x128xf32>
    %16 = arith.mulf %6, %15 : vector<8x128xf32>
    %c0_5 = arith.constant 0 : index
    %c0_6 = arith.constant 0 : index
    %17 = vector.load %arg2[%c0_5, %c0_6] : memref<1x128xf32, #tpu.memory_space<vmem>>, vector<1x128xf32>
    %18 = vector.broadcast %17 : vector<1x128xf32> to vector<8x128xf32>
    %19 = arith.mulf %16, %18 : vector<8x128xf32>
    %c0_7 = arith.constant 0 : index
    %c0_8 = arith.constant 0 : index
    %20 = vector.load %arg3[%c0_7, %c0_8] : memref<1x128xf32, #tpu.memory_space<vmem>>, vector<1x128xf32>
    %21 = vector.broadcast %20 : vector<1x128xf32> to vector<8x128xf32>
    %22 = arith.addf %19, %21 : vector<8x128xf32>
    %c0_9 = arith.constant 0 : index
    %c0_10 = arith.constant 0 : index
    %23 = vector.load %arg4[%c0_9, %c0_10] : memref<128x384xf32, #tpu.memory_space<vmem>>, vector<128x384xf32>
    %cst_11 = arith.constant dense<0.000000e+00> : vector<8x384xf32>
    %24 = tpu.matmul %22, %23, %cst_11 {dimension_numbers = #tpu.dot_dimension_numbers<[1], [0], [0], [1], [0, 0, 1, 1], [], []>} : vector<8x128xf32>, vector<128x384xf32>, vector<8x384xf32> -> vector<8x384xf32>
    %c0_12 = arith.constant 0 : index
    %c0_13 = arith.constant 0 : index
    %25 = vector.load %arg5[%c0_12, %c0_13] : memref<1x384xf32, #tpu.memory_space<vmem>>, vector<1x384xf32>
    %26 = vector.broadcast %25 : vector<1x384xf32> to vector<8x384xf32>
    %27 = arith.addf %24, %26 : vector<8x384xf32>
    %c0_14 = arith.constant 0 : index
    %c0_15 = arith.constant 0 : index
    %28 = vector.load %arg6[%c0_14, %c0_15] : memref<8x384xf32, #tpu.memory_space<vmem>>, vector<8x384xf32>
    tpu.vector_store %arg6[%c0_14, %c0_15], %27 {strides = array<i32>} : memref<8x384xf32, #tpu.memory_space<vmem>>, vector<8x384xf32>,
    return
  }
  func.func @transform_0(%arg0: i32) -> (i32, i32) {
    %c0_i32 = arith.constant 0 : i32
    %c0_i32_0 = arith.constant 0 : i32
    return %arg0, %c0_i32 : i32, i32
  }
  func.func @transform_1(%arg0: i32) -> (i32, i32) {
    %c0_i32 = arith.constant 0 : i32
    %c0_i32_0 = arith.constant 0 : i32
    %c0_i32_1 = arith.constant 0 : i32
    return %c0_i32, %c0_i32_0 : i32, i32
  }
  func.func @transform_2(%arg0: i32) -> (i32, i32) {
    %c0_i32 = arith.constant 0 : i32
    %c0_i32_0 = arith.constant 0 : i32
    %c0_i32_1 = arith.constant 0 : i32
    return %c0_i32, %c0_i32_0 : i32, i32
  }
  func.func @transform_3(%arg0: i32) -> (i32, i32) {
    %c0_i32 = arith.constant 0 : i32
    %c0_i32_0 = arith.constant 0 : i32
    %c0_i32_1 = arith.constant 0 : i32
    return %c0_i32, %c0_i32_0 : i32, i32
  }
  func.func @transform_4(%arg0: i32) -> (i32, i32) {
    %c0_i32 = arith.constant 0 : i32
    %c0_i32_0 = arith.constant 0 : i32
    %c0_i32_1 = arith.constant 0 : i32
    return %c0_i32, %c0_i32_0 : i32, i32
  }
  func.func @transform_5(%arg0: i32) -> (i32, i32) {
    %c0_i32 = arith.constant 0 : i32
    %c0_i32_0 = arith.constant 0 : i32
    return %arg0, %c0_i32 : i32, i32
  }
}

module attributes {stable_mosaic.version = 11 : i64} {
  func.func @_edge_update_kernel(%arg0: i32, %arg1: memref<32x8x512xf32, #tpu.memory_space<vmem>>, %arg2: memref<32x8x128xf32, #tpu.memory_space<vmem>>, %arg3: memref<32x8xf32, #tpu.memory_space<vmem>>, %arg4: memref<32x128xf32, #tpu.memory_space<vmem>>, %arg5: memref<128x256xf32, #tpu.memory_space<vmem>>, %arg6: memref<1x256xf32, #tpu.memory_space<vmem>>, %arg7: memref<32x128xf32, #tpu.memory_space<vmem>>) attributes {dimension_semantics = [#tpu.dimension_semantics<parallel>], iteration_bounds = array<i64: 1>, scalar_prefetch = 0 : i64, scratch_operands = 0 : i64, tpu.core_type = #tpu.core_type<tc>, window_params = [{transform_indices = @transform_0, window_bounds = array<i64: 32, 8, 512>}, {transform_indices = @transform_1, window_bounds = array<i64: 32, 8, 128>}, {transform_indices = @transform_2, window_bounds = array<i64: 32, 8>}, {transform_indices = @transform_3, window_bounds = array<i64: 32, 128>}, {pipeline_mode = #tpu.pipeline_mode<synchronous>, transform_indices = @transform_4, window_bounds = array<i64: 128, 256>}, {pipeline_mode = #tpu.pipeline_mode<synchronous>, transform_indices = @transform_5, window_bounds = array<i64: 1, 256>}, {transform_indices = @transform_6, window_bounds = array<i64: 32, 128>}]} {
    %c0 = arith.constant 0 : index
    %c0_0 = arith.constant 0 : index
    %0 = vector.load %arg3[%c0, %c0_0] : memref<32x8xf32, #tpu.memory_space<vmem>>, vector<32x8xf32>
    %1 = vector.shape_cast %0 : vector<32x8xf32> to vector<32x8x1xf32>
    %c0_1 = arith.constant 0 : index
    %c0_2 = arith.constant 0 : index
    %c0_3 = arith.constant 0 : index
    %2 = vector.load %arg1[%c0_1, %c0_2, %c0_3] : memref<32x8x512xf32, #tpu.memory_space<vmem>>, vector<32x8x512xf32>
    %3 = vector.extract_strided_slice %2 {offsets = [0, 0, 0], sizes = [32, 8, 128], strides = [1, 1, 1]} : vector<32x8x512xf32> to vector<32x8x128xf32>
    %4 = vector.extract_strided_slice %2 {offsets = [0, 0, 256], sizes = [32, 8, 128], strides = [1, 1, 1]} : vector<32x8x512xf32> to vector<32x8x128xf32>
    %5 = vector.extract_strided_slice %2 {offsets = [0, 0, 384], sizes = [32, 8, 128], strides = [1, 1, 1]} : vector<32x8x512xf32> to vector<32x8x128xf32>
    %6 = vector.broadcast %1 : vector<32x8x1xf32> to vector<32x8x128xf32>
    %7 = arith.mulf %3, %6 : vector<32x8x128xf32>
    %cst = arith.constant dense<0.000000e+00> : vector<32x128xf32>
    %8 = vector.multi_reduction <add>, %7, %cst [1] : vector<32x8x128xf32> to vector<32x128xf32>
    %9 = vector.shape_cast %8 : vector<32x128xf32> to vector<32x1x128xf32>
    %10 = vector.broadcast %9 : vector<32x1x128xf32> to vector<32x8x128xf32>
    %11 = vector.broadcast %1 : vector<32x8x1xf32> to vector<32x8x128xf32>
    %12 = arith.mulf %10, %11 : vector<32x8x128xf32>
    %13 = arith.subf %3, %12 : vector<32x8x128xf32>
    %c0_4 = arith.constant 0 : index
    %c0_5 = arith.constant 0 : index
    %c0_6 = arith.constant 0 : index
    %14 = vector.load %arg2[%c0_4, %c0_5, %c0_6] : memref<32x8x128xf32, #tpu.memory_space<vmem>>, vector<32x8x128xf32>
    %cst_7 = arith.constant 0.000000e+00 : f32
    %15 = vector.broadcast %cst_7 : f32 to vector<32x8x1xf32>
    %16 = arith.subf %15, %1 : vector<32x8x1xf32>
    %17 = vector.broadcast %16 : vector<32x8x1xf32> to vector<32x8x128xf32>
    %18 = arith.mulf %14, %17 : vector<32x8x128xf32>
    %cst_8 = arith.constant dense<0.000000e+00> : vector<32x128xf32>
    %19 = vector.multi_reduction <add>, %18, %cst_8 [1] : vector<32x8x128xf32> to vector<32x128xf32>
    %20 = vector.shape_cast %19 : vector<32x128xf32> to vector<32x1x128xf32>
    %21 = vector.broadcast %20 : vector<32x1x128xf32> to vector<32x8x128xf32>
    %22 = vector.broadcast %16 : vector<32x8x1xf32> to vector<32x8x128xf32>
    %23 = arith.mulf %21, %22 : vector<32x8x128xf32>
    %24 = arith.subf %14, %23 : vector<32x8x128xf32>
    %25 = arith.mulf %13, %24 : vector<32x8x128xf32>
    %cst_9 = arith.constant dense<0.000000e+00> : vector<32x128xf32>
    %26 = vector.multi_reduction <add>, %25, %cst_9 [1] : vector<32x8x128xf32> to vector<32x128xf32>
    %27 = vector.broadcast %1 : vector<32x8x1xf32> to vector<32x8x128xf32>
    %28 = arith.mulf %4, %27 : vector<32x8x128xf32>
    %cst_10 = arith.constant dense<0.000000e+00> : vector<32x128xf32>
    %29 = vector.multi_reduction <add>, %28, %cst_10 [1] : vector<32x8x128xf32> to vector<32x128xf32>
    %30 = vector.shape_cast %29 : vector<32x128xf32> to vector<32x1x128xf32>
    %31 = vector.broadcast %30 : vector<32x1x128xf32> to vector<32x8x128xf32>
    %32 = vector.broadcast %1 : vector<32x8x1xf32> to vector<32x8x128xf32>
    %33 = arith.mulf %31, %32 : vector<32x8x128xf32>
    %34 = arith.subf %4, %33 : vector<32x8x128xf32>
    %cst_11 = arith.constant 0.000000e+00 : f32
    %35 = vector.broadcast %cst_11 : f32 to vector<32x8x1xf32>
    %36 = arith.subf %35, %1 : vector<32x8x1xf32>
    %37 = vector.broadcast %36 : vector<32x8x1xf32> to vector<32x8x128xf32>
    %38 = arith.mulf %5, %37 : vector<32x8x128xf32>
    %cst_12 = arith.constant dense<0.000000e+00> : vector<32x128xf32>
    %39 = vector.multi_reduction <add>, %38, %cst_12 [1] : vector<32x8x128xf32> to vector<32x128xf32>
    %40 = vector.shape_cast %39 : vector<32x128xf32> to vector<32x1x128xf32>
    %41 = vector.broadcast %40 : vector<32x1x128xf32> to vector<32x8x128xf32>
    %42 = vector.broadcast %36 : vector<32x8x1xf32> to vector<32x8x128xf32>
    %43 = arith.mulf %41, %42 : vector<32x8x128xf32>
    %44 = arith.subf %5, %43 : vector<32x8x128xf32>
    %45 = arith.mulf %34, %44 : vector<32x8x128xf32>
    %cst_13 = arith.constant dense<0.000000e+00> : vector<32x128xf32>
    %46 = vector.multi_reduction <add>, %45, %cst_13 [1] : vector<32x8x128xf32> to vector<32x128xf32>
    %c0_14 = arith.constant 0 : index
    %c0_15 = arith.constant 0 : index
    %47 = vector.load %arg4[%c0_14, %c0_15] : memref<32x128xf32, #tpu.memory_space<vmem>>, vector<32x128xf32>
    %c0_16 = arith.constant 0 : index
    %c0_17 = arith.constant 0 : index
    %48 = vector.load %arg5[%c0_16, %c0_17] : memref<128x256xf32, #tpu.memory_space<vmem>>, vector<128x256xf32>
    %cst_18 = arith.constant dense<0.000000e+00> : vector<32x256xf32>
    %49 = tpu.matmul %47, %48, %cst_18 {dimension_numbers = #tpu.dot_dimension_numbers<[1], [0], [0], [1], [0, 0, 1, 1], [], []>} : vector<32x128xf32>, vector<128x256xf32>, vector<32x256xf32> -> vector<32x256xf32>
    %c0_19 = arith.constant 0 : index
    %c0_20 = arith.constant 0 : index
    %50 = vector.load %arg6[%c0_19, %c0_20] : memref<1x256xf32, #tpu.memory_space<vmem>>, vector<1x256xf32>
    %51 = vector.broadcast %50 : vector<1x256xf32> to vector<32x256xf32>
    %52 = arith.addf %49, %51 : vector<32x256xf32>
    %53 = arith.negf %52 : vector<32x256xf32>
    %54 = math.exp %53 : vector<32x256xf32>
    %cst_21 = arith.constant 1.000000e+00 : f32
    %55 = vector.broadcast %cst_21 : f32 to vector<32x256xf32>
    %56 = arith.addf %55, %54 : vector<32x256xf32>
    %57 = arith.divf %55, %56 : vector<32x256xf32>
    %58 = arith.mulf %52, %57 : vector<32x256xf32>
    %59 = vector.extract_strided_slice %58 {offsets = [0, 0], sizes = [32, 128], strides = [1, 1]} : vector<32x256xf32> to vector<32x128xf32>
    %60 = arith.mulf %59, %26 : vector<32x128xf32>
    %61 = vector.extract_strided_slice %58 {offsets = [0, 128], sizes = [32, 128], strides = [1, 1]} : vector<32x256xf32> to vector<32x128xf32>
    %62 = arith.mulf %61, %46 : vector<32x128xf32>
    %63 = arith.addf %60, %62 : vector<32x128xf32>
    %c0_22 = arith.constant 0 : index
    %c0_23 = arith.constant 0 : index
    %64 = vector.load %arg7[%c0_22, %c0_23] : memref<32x128xf32, #tpu.memory_space<vmem>>, vector<32x128xf32>
    tpu.vector_store %arg7[%c0_22, %c0_23], %63 {strides = array<i32>} : memref<32x128xf32, #tpu.memory_space<vmem>>, vector<32x128xf32>,
    return
  }
  func.func @transform_0(%arg0: i32) -> (i32, i32, i32) {
    %c0_i32 = arith.constant 0 : i32
    %c0_i32_0 = arith.constant 0 : i32
    %c0_i32_1 = arith.constant 0 : i32
    return %arg0, %c0_i32, %c0_i32_0 : i32, i32, i32
  }
  func.func @transform_1(%arg0: i32) -> (i32, i32, i32) {
    %c0_i32 = arith.constant 0 : i32
    %c0_i32_0 = arith.constant 0 : i32
    %c0_i32_1 = arith.constant 0 : i32
    return %arg0, %c0_i32, %c0_i32_0 : i32, i32, i32
  }
  func.func @transform_2(%arg0: i32) -> (i32, i32) {
    %c0_i32 = arith.constant 0 : i32
    %c0_i32_0 = arith.constant 0 : i32
    return %arg0, %c0_i32 : i32, i32
  }
  func.func @transform_3(%arg0: i32) -> (i32, i32) {
    %c0_i32 = arith.constant 0 : i32
    %c0_i32_0 = arith.constant 0 : i32
    return %arg0, %c0_i32 : i32, i32
  }
  func.func @transform_4(%arg0: i32) -> (i32, i32) {
    %c0_i32 = arith.constant 0 : i32
    %c0_i32_0 = arith.constant 0 : i32
    %c0_i32_1 = arith.constant 0 : i32
    return %c0_i32, %c0_i32_0 : i32, i32
  }
  func.func @transform_5(%arg0: i32) -> (i32, i32) {
    %c0_i32 = arith.constant 0 : i32
    %c0_i32_0 = arith.constant 0 : i32
    %c0_i32_1 = arith.constant 0 : i32
    return %c0_i32, %c0_i32_0 : i32, i32
  }
  func.func @transform_6(%arg0: i32) -> (i32, i32) {
    %c0_i32 = arith.constant 0 : i32
    %c0_i32_0 = arith.constant 0 : i32
    return %arg0, %c0_i32 : i32, i32
  }
}

module attributes {stable_mosaic.version = 11 : i64} {
  func.func @_message_kernel(%arg0: i32, %arg1: memref<32x128xf32, #tpu.memory_space<vmem>>, %arg2: memref<32x256xf32, #tpu.memory_space<vmem>>, %arg3: memref<32x128xf32, #tpu.memory_space<vmem>>, %arg4: memref<32x1xf32, #tpu.memory_space<vmem>>, %arg5: memref<32x8xf32, #tpu.memory_space<vmem>>, %arg6: memref<32x8x128xf32, #tpu.memory_space<vmem>>, %arg7: memref<128x256xf32, #tpu.memory_space<vmem>>, %arg8: memref<1x256xf32, #tpu.memory_space<vmem>>, %arg9: memref<128x256xf32, #tpu.memory_space<vmem>>, %arg10: memref<1x256xf32, #tpu.memory_space<vmem>>, %arg11: memref<128x256xf32, #tpu.memory_space<vmem>>, %arg12: memref<128x128xf32, #tpu.memory_space<vmem>>, %arg13: memref<1x128xf32, #tpu.memory_space<vmem>>, %arg14: memref<32x128xf32, #tpu.memory_space<vmem>>, %arg15: memref<32x8x128xf32, #tpu.memory_space<vmem>>) attributes {dimension_semantics = [#tpu.dimension_semantics<parallel>], iteration_bounds = array<i64: 1>, scalar_prefetch = 0 : i64, scratch_operands = 0 : i64, tpu.core_type = #tpu.core_type<tc>, window_params = [{transform_indices = @transform_0, window_bounds = array<i64: 32, 128>}, {transform_indices = @transform_1, window_bounds = array<i64: 32, 256>}, {transform_indices = @transform_2, window_bounds = array<i64: 32, 128>}, {transform_indices = @transform_3, window_bounds = array<i64: 32, 1>}, {transform_indices = @transform_4, window_bounds = array<i64: 32, 8>}, {transform_indices = @transform_5, window_bounds = array<i64: 32, 8, 128>}, {pipeline_mode = #tpu.pipeline_mode<synchronous>, transform_indices = @transform_6, window_bounds = array<i64: 128, 256>}, {pipeline_mode = #tpu.pipeline_mode<synchronous>, transform_indices = @transform_7, window_bounds = array<i64: 1, 256>}, {pipeline_mode = #tpu.pipeline_mode<synchronous>, transform_indices = @transform_8, window_bounds = array<i64: 128, 256>}, {pipeline_mode = #tpu.pipeline_mode<synchronous>, transform_indices = @transform_9, window_bounds = array<i64: 1, 256>}, {pipeline_mode = #tpu.pipeline_mode<synchronous>, transform_indices = @transform_10, window_bounds = array<i64: 128, 256>}, {pipeline_mode = #tpu.pipeline_mode<synchronous>, transform_indices = @transform_11, window_bounds = array<i64: 128, 128>}, {pipeline_mode = #tpu.pipeline_mode<synchronous>, transform_indices = @transform_12, window_bounds = array<i64: 1, 128>}, {transform_indices = @transform_13, window_bounds = array<i64: 32, 128>}, {transform_indices = @transform_14, window_bounds = array<i64: 32, 8, 128>}]} {
    %c0 = arith.constant 0 : index
    %c0_0 = arith.constant 0 : index
    %0 = vector.load %arg3[%c0, %c0_0] : memref<32x128xf32, #tpu.memory_space<vmem>>, vector<32x128xf32>
    %c0_1 = arith.constant 0 : index
    %c0_2 = arith.constant 0 : index
    %1 = vector.load %arg7[%c0_1, %c0_2] : memref<128x256xf32, #tpu.memory_space<vmem>>, vector<128x256xf32>
    %cst = arith.constant dense<0.000000e+00> : vector<32x256xf32>
    %2 = tpu.matmul %0, %1, %cst {dimension_numbers = #tpu.dot_dimension_numbers<[1], [0], [0], [1], [0, 0, 1, 1], [], []>} : vector<32x128xf32>, vector<128x256xf32>, vector<32x256xf32> -> vector<32x256xf32>
    %c0_3 = arith.constant 0 : index
    %c0_4 = arith.constant 0 : index
    %3 = vector.load %arg8[%c0_3, %c0_4] : memref<1x256xf32, #tpu.memory_space<vmem>>, vector<1x256xf32>
    %4 = vector.broadcast %3 : vector<1x256xf32> to vector<32x256xf32>
    %5 = arith.addf %2, %4 : vector<32x256xf32>
    %6 = arith.negf %5 : vector<32x256xf32>
    %7 = math.exp %6 : vector<32x256xf32>
    %cst_5 = arith.constant 1.000000e+00 : f32
    %8 = vector.broadcast %cst_5 : f32 to vector<32x256xf32>
    %9 = arith.addf %8, %7 : vector<32x256xf32>
    %10 = arith.divf %8, %9 : vector<32x256xf32>
    %11 = arith.mulf %5, %10 : vector<32x256xf32>
    %12 = vector.extract_strided_slice %11 {offsets = [0, 0], sizes = [32, 128], strides = [1, 1]} : vector<32x256xf32> to vector<32x128xf32>
    %13 = vector.extract_strided_slice %11 {offsets = [0, 128], sizes = [32, 128], strides = [1, 1]} : vector<32x256xf32> to vector<32x128xf32>
    %c0_6 = arith.constant 0 : index
    %c0_7 = arith.constant 0 : index
    %14 = vector.load %arg2[%c0_6, %c0_7] : memref<32x256xf32, #tpu.memory_space<vmem>>, vector<32x256xf32>
    %15 = vector.extract_strided_slice %14 {offsets = [0, 0], sizes = [32, 128], strides = [1, 1]} : vector<32x256xf32> to vector<32x128xf32>
    %16 = vector.extract_strided_slice %14 {offsets = [0, 128], sizes = [32, 128], strides = [1, 1]} : vector<32x256xf32> to vector<32x128xf32>
    %c0_8 = arith.constant 0 : index
    %c0_9 = arith.constant 0 : index
    %17 = vector.load %arg1[%c0_8, %c0_9] : memref<32x128xf32, #tpu.memory_space<vmem>>, vector<32x128xf32>
    %18 = arith.mulf %17, %15 : vector<32x128xf32>
    %19 = arith.mulf %18, %12 : vector<32x128xf32>
    %c0_10 = arith.constant 0 : index
    %c0_11 = arith.constant 0 : index
    %20 = vector.load %arg12[%c0_10, %c0_11] : memref<128x128xf32, #tpu.memory_space<vmem>>, vector<128x128xf32>
    %cst_12 = arith.constant dense<0.000000e+00> : vector<32x128xf32>
    %21 = tpu.matmul %19, %20, %cst_12 {dimension_numbers = #tpu.dot_dimension_numbers<[1], [0], [0], [1], [0, 0, 1, 1], [], []>} : vector<32x128xf32>, vector<128x128xf32>, vector<32x128xf32> -> vector<32x128xf32>
    %22 = arith.negf %21 : vector<32x128xf32>
    %23 = math.exp %22 : vector<32x128xf32>
    %cst_13 = arith.constant 1.000000e+00 : f32
    %24 = vector.broadcast %cst_13 : f32 to vector<32x128xf32>
    %25 = arith.addf %24, %23 : vector<32x128xf32>
    %26 = arith.divf %24, %25 : vector<32x128xf32>
    %27 = arith.mulf %21, %26 : vector<32x128xf32>
    %c0_14 = arith.constant 0 : index
    %c0_15 = arith.constant 0 : index
    %28 = vector.load %arg4[%c0_14, %c0_15] : memref<32x1xf32, #tpu.memory_space<vmem>>, vector<32x1xf32>
    %cst_16 = arith.constant 0.628318548 : f32
    %29 = vector.broadcast %cst_16 : f32 to vector<32x1xf32>
    %30 = arith.mulf %28, %29 : vector<32x1xf32>
    %31 = math.cos %30 : vector<32x1xf32>
    %cst_17 = arith.constant 1.000000e+00 : f32
    %32 = vector.broadcast %cst_17 : f32 to vector<32x1xf32>
    %33 = arith.addf %31, %32 : vector<32x1xf32>
    %cst_18 = arith.constant 5.000000e-01 : f32
    %34 = vector.broadcast %cst_18 : f32 to vector<32x1xf32>
    %35 = arith.mulf %34, %33 : vector<32x1xf32>
    %cst_19 = arith.constant 5.000000e+00 : f32
    %36 = vector.broadcast %cst_19 : f32 to vector<32x1xf32>
    %37 = arith.cmpf olt, %28, %36 : vector<32x1xf32>
    %38 = arith.extui %37 : vector<32x1xi1> to vector<32x1xi32>
    %39 = arith.sitofp %38 : vector<32x1xi32> to vector<32x1xf32>
    %40 = arith.mulf %35, %39 : vector<32x1xf32>
    %41 = vector.broadcast %40 : vector<32x1xf32> to vector<32x128xf32>
    %42 = arith.mulf %27, %41 : vector<32x128xf32>
    %43 = arith.mulf %16, %13 : vector<32x128xf32>
    %44 = arith.mulf %43, %42 : vector<32x128xf32>
    %c0_20 = arith.constant 0 : index
    %c0_21 = arith.constant 0 : index
    %45 = vector.load %arg9[%c0_20, %c0_21] : memref<128x256xf32, #tpu.memory_space<vmem>>, vector<128x256xf32>
    %cst_22 = arith.constant dense<0.000000e+00> : vector<32x256xf32>
    %46 = tpu.matmul %44, %45, %cst_22 {dimension_numbers = #tpu.dot_dimension_numbers<[1], [0], [0], [1], [0, 0, 1, 1], [], []>} : vector<32x128xf32>, vector<128x256xf32>, vector<32x256xf32> -> vector<32x256xf32>
    %c0_23 = arith.constant 0 : index
    %c0_24 = arith.constant 0 : index
    %47 = vector.load %arg10[%c0_23, %c0_24] : memref<1x256xf32, #tpu.memory_space<vmem>>, vector<1x256xf32>
    %48 = vector.broadcast %47 : vector<1x256xf32> to vector<32x256xf32>
    %49 = arith.addf %46, %48 : vector<32x256xf32>
    %50 = arith.negf %49 : vector<32x256xf32>
    %51 = math.exp %50 : vector<32x256xf32>
    %cst_25 = arith.constant 1.000000e+00 : f32
    %52 = vector.broadcast %cst_25 : f32 to vector<32x256xf32>
    %53 = arith.addf %52, %51 : vector<32x256xf32>
    %54 = arith.divf %52, %53 : vector<32x256xf32>
    %55 = arith.mulf %49, %54 : vector<32x256xf32>
    %56 = vector.extract_strided_slice %55 {offsets = [0, 0], sizes = [32, 128], strides = [1, 1]} : vector<32x256xf32> to vector<32x128xf32>
    %57 = vector.extract_strided_slice %55 {offsets = [0, 128], sizes = [32, 128], strides = [1, 1]} : vector<32x256xf32> to vector<32x128xf32>
    %c0_26 = arith.constant 0 : index
    %c0_27 = arith.constant 0 : index
    %58 = vector.load %arg5[%c0_26, %c0_27] : memref<32x8xf32, #tpu.memory_space<vmem>>, vector<32x8xf32>
    %59 = vector.shape_cast %58 : vector<32x8xf32> to vector<32x8x1xf32>
    %c0_28 = arith.constant 0 : index
    %c0_29 = arith.constant 0 : index
    %c0_30 = arith.constant 0 : index
    %60 = vector.load %arg6[%c0_28, %c0_29, %c0_30] : memref<32x8x128xf32, #tpu.memory_space<vmem>>, vector<32x8x128xf32>
    %61 = vector.shape_cast %56 : vector<32x128xf32> to vector<32x1x128xf32>
    %62 = vector.broadcast %61 : vector<32x1x128xf32> to vector<32x8x128xf32>
    %63 = arith.mulf %60, %62 : vector<32x8x128xf32>
    %64 = vector.shape_cast %57 : vector<32x128xf32> to vector<32x1x128xf32>
    %65 = vector.broadcast %64 : vector<32x1x128xf32> to vector<32x8x128xf32>
    %66 = vector.broadcast %59 : vector<32x8x1xf32> to vector<32x8x128xf32>
    %67 = arith.mulf %65, %66 : vector<32x8x128xf32>
    %68 = arith.addf %63, %67 : vector<32x8x128xf32>
    %c0_31 = arith.constant 0 : index
    %c0_32 = arith.constant 0 : index
    %c0_33 = arith.constant 0 : index
    %69 = vector.load %arg15[%c0_31, %c0_32, %c0_33] : memref<32x8x128xf32, #tpu.memory_space<vmem>>, vector<32x8x128xf32>
    tpu.vector_store %arg15[%c0_31, %c0_32, %c0_33], %68 {strides = array<i32>} : memref<32x8x128xf32, #tpu.memory_space<vmem>>, vector<32x8x128xf32>,
    %70 = vector.extract_strided_slice %44 {offsets = [0, 0], sizes = [32, 64], strides = [1, 1]} : vector<32x128xf32> to vector<32x64xf32>
    %71 = vector.extract_strided_slice %44 {offsets = [0, 64], sizes = [32, 64], strides = [1, 1]} : vector<32x128xf32> to vector<32x64xf32>
    %c0_34 = arith.constant 0 : index
    %c0_35 = arith.constant 0 : index
    %72 = vector.load %arg11[%c0_34, %c0_35] : memref<128x256xf32, #tpu.memory_space<vmem>>, vector<128x256xf32>
    %cst_36 = arith.constant dense<0.000000e+00> : vector<32x256xf32>
    %73 = tpu.matmul %44, %72, %cst_36 {dimension_numbers = #tpu.dot_dimension_numbers<[1], [0], [0], [1], [0, 0, 1, 1], [], []>} : vector<32x128xf32>, vector<128x256xf32>, vector<32x256xf32> -> vector<32x256xf32>
    %cst_37 = arith.constant 0.000000e+00 : f32
    %cst_38 = arith.constant 1.000000e+00 : f32
    %74 = vector.broadcast %cst_37 : f32 to vector<32x256xf32>
    %75 = arith.maximumf %74, %73 : vector<32x256xf32>
    %76 = vector.broadcast %cst_38 : f32 to vector<32x256xf32>
    %77 = arith.minimumf %76, %75 : vector<32x256xf32>
    %78 = vector.extract_strided_slice %77 {offsets = [0, 0], sizes = [32, 128], strides = [1, 1]} : vector<32x256xf32> to vector<32x128xf32>
    %79 = vector.extract_strided_slice %77 {offsets = [0, 128], sizes = [32, 128], strides = [1, 1]} : vector<32x256xf32> to vector<32x128xf32>
    %80 = vector.extract_strided_slice %78 {offsets = [0, 0], sizes = [32, 64], strides = [1, 1]} : vector<32x128xf32> to vector<32x64xf32>
    %81 = arith.mulf %70, %80 : vector<32x64xf32>
    %82 = vector.extract_strided_slice %79 {offsets = [0, 0], sizes = [32, 64], strides = [1, 1]} : vector<32x128xf32> to vector<32x64xf32>
    %83 = arith.mulf %71, %82 : vector<32x64xf32>
    %84 = arith.addf %81, %83 : vector<32x64xf32>
    %85 = vector.extract_strided_slice %78 {offsets = [0, 64], sizes = [32, 64], strides = [1, 1]} : vector<32x128xf32> to vector<32x64xf32>
    %86 = arith.mulf %70, %85 : vector<32x64xf32>
    %87 = vector.extract_strided_slice %79 {offsets = [0, 64], sizes = [32, 64], strides = [1, 1]} : vector<32x128xf32> to vector<32x64xf32>
    %88 = arith.mulf %71, %87 : vector<32x64xf32>
    %89 = arith.addf %86, %88 : vector<32x64xf32>
    %90 = tpu.concatenate %84, %89 in 1 : vector<32x64xf32>, vector<32x64xf32> -> vector<32x128xf32>
    %c0_39 = arith.constant 0 : index
    %c0_40 = arith.constant 0 : index
    %91 = vector.load %arg13[%c0_39, %c0_40] : memref<1x128xf32, #tpu.memory_space<vmem>>, vector<1x128xf32>
    %92 = vector.broadcast %91 : vector<1x128xf32> to vector<32x128xf32>
    %93 = arith.mulf %92, %90 : vector<32x128xf32>
    %94 = arith.addf %44, %93 : vector<32x128xf32>
    %c0_41 = arith.constant 0 : index
    %c0_42 = arith.constant 0 : index
    %95 = vector.load %arg14[%c0_41, %c0_42] : memref<32x128xf32, #tpu.memory_space<vmem>>, vector<32x128xf32>
    tpu.vector_store %arg14[%c0_41, %c0_42], %94 {strides = array<i32>} : memref<32x128xf32, #tpu.memory_space<vmem>>, vector<32x128xf32>,
    return
  }
  func.func @transform_0(%arg0: i32) -> (i32, i32) {
    %c0_i32 = arith.constant 0 : i32
    %c0_i32_0 = arith.constant 0 : i32
    return %arg0, %c0_i32 : i32, i32
  }
  func.func @transform_1(%arg0: i32) -> (i32, i32) {
    %c0_i32 = arith.constant 0 : i32
    %c0_i32_0 = arith.constant 0 : i32
    return %arg0, %c0_i32 : i32, i32
  }
  func.func @transform_2(%arg0: i32) -> (i32, i32) {
    %c0_i32 = arith.constant 0 : i32
    %c0_i32_0 = arith.constant 0 : i32
    return %arg0, %c0_i32 : i32, i32
  }
  func.func @transform_3(%arg0: i32) -> (i32, i32) {
    %c0_i32 = arith.constant 0 : i32
    %c0_i32_0 = arith.constant 0 : i32
    return %arg0, %c0_i32 : i32, i32
  }
  func.func @transform_4(%arg0: i32) -> (i32, i32) {
    %c0_i32 = arith.constant 0 : i32
    %c0_i32_0 = arith.constant 0 : i32
    return %arg0, %c0_i32 : i32, i32
  }
  func.func @transform_5(%arg0: i32) -> (i32, i32, i32) {
    %c0_i32 = arith.constant 0 : i32
    %c0_i32_0 = arith.constant 0 : i32
    %c0_i32_1 = arith.constant 0 : i32
    return %arg0, %c0_i32, %c0_i32_0 : i32, i32, i32
  }
  func.func @transform_6(%arg0: i32) -> (i32, i32) {
    %c0_i32 = arith.constant 0 : i32
    %c0_i32_0 = arith.constant 0 : i32
    %c0_i32_1 = arith.constant 0 : i32
    return %c0_i32, %c0_i32_0 : i32, i32
  }
  func.func @transform_7(%arg0: i32) -> (i32, i32) {
    %c0_i32 = arith.constant 0 : i32
    %c0_i32_0 = arith.constant 0 : i32
    %c0_i32_1 = arith.constant 0 : i32
    return %c0_i32, %c0_i32_0 : i32, i32
  }
  func.func @transform_8(%arg0: i32) -> (i32, i32) {
    %c0_i32 = arith.constant 0 : i32
    %c0_i32_0 = arith.constant 0 : i32
    %c0_i32_1 = arith.constant 0 : i32
    return %c0_i32, %c0_i32_0 : i32, i32
  }
  func.func @transform_9(%arg0: i32) -> (i32, i32) {
    %c0_i32 = arith.constant 0 : i32
    %c0_i32_0 = arith.constant 0 : i32
    %c0_i32_1 = arith.constant 0 : i32
    return %c0_i32, %c0_i32_0 : i32, i32
  }
  func.func @transform_10(%arg0: i32) -> (i32, i32) {
    %c0_i32 = arith.constant 0 : i32
    %c0_i32_0 = arith.constant 0 : i32
    %c0_i32_1 = arith.constant 0 : i32
    return %c0_i32, %c0_i32_0 : i32, i32
  }
  func.func @transform_11(%arg0: i32) -> (i32, i32) {
    %c0_i32 = arith.constant 0 : i32
    %c0_i32_0 = arith.constant 0 : i32
    %c0_i32_1 = arith.constant 0 : i32
    return %c0_i32, %c0_i32_0 : i32, i32
  }
  func.func @transform_12(%arg0: i32) -> (i32, i32) {
    %c0_i32 = arith.constant 0 : i32
    %c0_i32_0 = arith.constant 0 : i32
    %c0_i32_1 = arith.constant 0 : i32
    return %c0_i32, %c0_i32_0 : i32, i32
  }
  func.func @transform_13(%arg0: i32) -> (i32, i32) {
    %c0_i32 = arith.constant 0 : i32
    %c0_i32_0 = arith.constant 0 : i32
    return %arg0, %c0_i32 : i32, i32
  }
  func.func @transform_14(%arg0: i32) -> (i32, i32, i32) {
    %c0_i32 = arith.constant 0 : i32
    %c0_i32_0 = arith.constant 0 : i32
    %c0_i32_1 = arith.constant 0 : i32
    return %arg0, %c0_i32, %c0_i32_0 : i32, i32, i32
  }
}

module attributes {stable_mosaic.version = 11 : i64} {
  func.func @_node_update_kernel(%arg0: i32, %arg1: memref<8x128xf32, #tpu.memory_space<vmem>>, %arg2: memref<8x8x384xf32, #tpu.memory_space<vmem>>, %arg3: memref<8x8x128xf32, #tpu.memory_space<vmem>>, %arg4: memref<128x384xf32, #tpu.memory_space<vmem>>, %arg5: memref<1x384xf32, #tpu.memory_space<vmem>>, %arg6: memref<8x128xf32, #tpu.memory_space<vmem>>, %arg7: memref<8x8x128xf32, #tpu.memory_space<vmem>>) attributes {dimension_semantics = [#tpu.dimension_semantics<parallel>], iteration_bounds = array<i64: 1>, scalar_prefetch = 0 : i64, scratch_operands = 0 : i64, tpu.core_type = #tpu.core_type<tc>, window_params = [{transform_indices = @transform_0, window_bounds = array<i64: 8, 128>}, {transform_indices = @transform_1, window_bounds = array<i64: 8, 8, 384>}, {transform_indices = @transform_2, window_bounds = array<i64: 8, 8, 128>}, {pipeline_mode = #tpu.pipeline_mode<synchronous>, transform_indices = @transform_3, window_bounds = array<i64: 128, 384>}, {pipeline_mode = #tpu.pipeline_mode<synchronous>, transform_indices = @transform_4, window_bounds = array<i64: 1, 384>}, {transform_indices = @transform_5, window_bounds = array<i64: 8, 128>}, {transform_indices = @transform_6, window_bounds = array<i64: 8, 8, 128>}]} {
    %c0 = arith.constant 0 : index
    %c0_0 = arith.constant 0 : index
    %0 = vector.load %arg1[%c0, %c0_0] : memref<8x128xf32, #tpu.memory_space<vmem>>, vector<8x128xf32>
    %c0_1 = arith.constant 0 : index
    %c0_2 = arith.constant 0 : index
    %1 = vector.load %arg4[%c0_1, %c0_2] : memref<128x384xf32, #tpu.memory_space<vmem>>, vector<128x384xf32>
    %cst = arith.constant dense<0.000000e+00> : vector<8x384xf32>
    %2 = tpu.matmul %0, %1, %cst {dimension_numbers = #tpu.dot_dimension_numbers<[1], [0], [0], [1], [0, 0, 1, 1], [], []>} : vector<8x128xf32>, vector<128x384xf32>, vector<8x384xf32> -> vector<8x384xf32>
    %c0_3 = arith.constant 0 : index
    %c0_4 = arith.constant 0 : index
    %3 = vector.load %arg5[%c0_3, %c0_4] : memref<1x384xf32, #tpu.memory_space<vmem>>, vector<1x384xf32>
    %4 = vector.broadcast %3 : vector<1x384xf32> to vector<8x384xf32>
    %5 = arith.addf %2, %4 : vector<8x384xf32>
    %6 = vector.extract_strided_slice %5 {offsets = [0, 0], sizes = [8, 128], strides = [1, 1]} : vector<8x384xf32> to vector<8x128xf32>
    %7 = vector.extract_strided_slice %5 {offsets = [0, 128], sizes = [8, 128], strides = [1, 1]} : vector<8x384xf32> to vector<8x128xf32>
    %8 = vector.extract_strided_slice %5 {offsets = [0, 256], sizes = [8, 128], strides = [1, 1]} : vector<8x384xf32> to vector<8x128xf32>
    %c0_5 = arith.constant 0 : index
    %c0_6 = arith.constant 0 : index
    %c0_7 = arith.constant 0 : index
    %9 = vector.load %arg2[%c0_5, %c0_6, %c0_7] : memref<8x8x384xf32, #tpu.memory_space<vmem>>, vector<8x8x384xf32>
    %10 = vector.extract_strided_slice %9 {offsets = [0, 0, 0], sizes = [8, 8, 128], strides = [1, 1, 1]} : vector<8x8x384xf32> to vector<8x8x128xf32>
    %11 = vector.extract_strided_slice %9 {offsets = [0, 0, 128], sizes = [8, 8, 128], strides = [1, 1, 1]} : vector<8x8x384xf32> to vector<8x8x128xf32>
    %12 = vector.extract_strided_slice %9 {offsets = [0, 0, 256], sizes = [8, 8, 128], strides = [1, 1, 1]} : vector<8x8x384xf32> to vector<8x8x128xf32>
    %13 = arith.mulf %10, %11 : vector<8x8x128xf32>
    %cst_8 = arith.constant dense<0.000000e+00> : vector<8x128xf32>
    %14 = vector.multi_reduction <add>, %13, %cst_8 [1] : vector<8x8x128xf32> to vector<8x128xf32>
    %15 = arith.mulf %14, %7 : vector<8x128xf32>
    %16 = arith.addf %15, %8 : vector<8x128xf32>
    %c0_9 = arith.constant 0 : index
    %c0_10 = arith.constant 0 : index
    %17 = vector.load %arg6[%c0_9, %c0_10] : memref<8x128xf32, #tpu.memory_space<vmem>>, vector<8x128xf32>
    tpu.vector_store %arg6[%c0_9, %c0_10], %16 {strides = array<i32>} : memref<8x128xf32, #tpu.memory_space<vmem>>, vector<8x128xf32>,
    %18 = vector.shape_cast %6 : vector<8x128xf32> to vector<8x1x128xf32>
    %19 = vector.broadcast %18 : vector<8x1x128xf32> to vector<8x8x128xf32>
    %20 = arith.mulf %12, %19 : vector<8x8x128xf32>
    %c0_11 = arith.constant 0 : index
    %c0_12 = arith.constant 0 : index
    %c0_13 = arith.constant 0 : index
    %21 = vector.load %arg3[%c0_11, %c0_12, %c0_13] : memref<8x8x128xf32, #tpu.memory_space<vmem>>, vector<8x8x128xf32>
    %22 = arith.addf %20, %21 : vector<8x8x128xf32>
    %c0_14 = arith.constant 0 : index
    %c0_15 = arith.constant 0 : index
    %c0_16 = arith.constant 0 : index
    %23 = vector.load %arg7[%c0_14, %c0_15, %c0_16] : memref<8x8x128xf32, #tpu.memory_space<vmem>>, vector<8x8x128xf32>
    tpu.vector_store %arg7[%c0_14, %c0_15, %c0_16], %22 {strides = array<i32>} : memref<8x8x128xf32, #tpu.memory_space<vmem>>, vector<8x8x128xf32>,
    return
  }
  func.func @transform_0(%arg0: i32) -> (i32, i32) {
    %c0_i32 = arith.constant 0 : i32
    %c0_i32_0 = arith.constant 0 : i32
    return %arg0, %c0_i32 : i32, i32
  }
  func.func @transform_1(%arg0: i32) -> (i32, i32, i32) {
    %c0_i32 = arith.constant 0 : i32
    %c0_i32_0 = arith.constant 0 : i32
    %c0_i32_1 = arith.constant 0 : i32
    return %arg0, %c0_i32, %c0_i32_0 : i32, i32, i32
  }
  func.func @transform_2(%arg0: i32) -> (i32, i32, i32) {
    %c0_i32 = arith.constant 0 : i32
    %c0_i32_0 = arith.constant 0 : i32
    %c0_i32_1 = arith.constant 0 : i32
    return %arg0, %c0_i32, %c0_i32_0 : i32, i32, i32
  }
  func.func @transform_3(%arg0: i32) -> (i32, i32) {
    %c0_i32 = arith.constant 0 : i32
    %c0_i32_0 = arith.constant 0 : i32
    %c0_i32_1 = arith.constant 0 : i32
    return %c0_i32, %c0_i32_0 : i32, i32
  }
  func.func @transform_4(%arg0: i32) -> (i32, i32) {
    %c0_i32 = arith.constant 0 : i32
    %c0_i32_0 = arith.constant 0 : i32
    %c0_i32_1 = arith.constant 0 : i32
    return %c0_i32, %c0_i32_0 : i32, i32
  }
  func.func @transform_5(%arg0: i32) -> (i32, i32) {
    %c0_i32 = arith.constant 0 : i32
    %c0_i32_0 = arith.constant 0 : i32
    return %arg0, %c0_i32 : i32, i32
  }
  func.func @transform_6(%arg0: i32) -> (i32, i32, i32) {
    %c0_i32 = arith.constant 0 : i32
    %c0_i32_0 = arith.constant 0 : i32
    %c0_i32_1 = arith.constant 0 : i32
    return %arg0, %c0_i32, %c0_i32_0 : i32, i32, i32
  }
}

module attributes {stable_mosaic.version = 11 : i64} {
  func.func @_dense_kernel(%arg0: i32, %arg1: memref<64x128xf32, #tpu.memory_space<vmem>>, %arg2: memref<128x384xf32, #tpu.memory_space<vmem>>, %arg3: memref<1x384xf32, #tpu.memory_space<vmem>>, %arg4: memref<64x384xf32, #tpu.memory_space<vmem>>) attributes {dimension_semantics = [#tpu.dimension_semantics<parallel>], iteration_bounds = array<i64: 1>, scalar_prefetch = 0 : i64, scratch_operands = 0 : i64, tpu.core_type = #tpu.core_type<tc>, window_params = [{transform_indices = @transform_0, window_bounds = array<i64: 64, 128>}, {pipeline_mode = #tpu.pipeline_mode<synchronous>, transform_indices = @transform_1, window_bounds = array<i64: 128, 384>}, {pipeline_mode = #tpu.pipeline_mode<synchronous>, transform_indices = @transform_2, window_bounds = array<i64: 1, 384>}, {transform_indices = @transform_3, window_bounds = array<i64: 64, 384>}]} {
    %c0 = arith.constant 0 : index
    %c0_0 = arith.constant 0 : index
    %0 = vector.load %arg1[%c0, %c0_0] : memref<64x128xf32, #tpu.memory_space<vmem>>, vector<64x128xf32>
    %c0_1 = arith.constant 0 : index
    %c0_2 = arith.constant 0 : index
    %1 = vector.load %arg2[%c0_1, %c0_2] : memref<128x384xf32, #tpu.memory_space<vmem>>, vector<128x384xf32>
    %cst = arith.constant dense<0.000000e+00> : vector<64x384xf32>
    %2 = tpu.matmul %0, %1, %cst {dimension_numbers = #tpu.dot_dimension_numbers<[1], [0], [0], [1], [0, 0, 1, 1], [], []>} : vector<64x128xf32>, vector<128x384xf32>, vector<64x384xf32> -> vector<64x384xf32>
    %c0_3 = arith.constant 0 : index
    %c0_4 = arith.constant 0 : index
    %3 = vector.load %arg3[%c0_3, %c0_4] : memref<1x384xf32, #tpu.memory_space<vmem>>, vector<1x384xf32>
    %4 = vector.broadcast %3 : vector<1x384xf32> to vector<64x384xf32>
    %5 = arith.addf %2, %4 : vector<64x384xf32>
    %c0_5 = arith.constant 0 : index
    %c0_6 = arith.constant 0 : index
    %6 = vector.load %arg4[%c0_5, %c0_6] : memref<64x384xf32, #tpu.memory_space<vmem>>, vector<64x384xf32>
    tpu.vector_store %arg4[%c0_5, %c0_6], %5 {strides = array<i32>} : memref<64x384xf32, #tpu.memory_space<vmem>>, vector<64x384xf32>,
    return
  }
  func.func @transform_0(%arg0: i32) -> (i32, i32) {
    %c0_i32 = arith.constant 0 : i32
    %c0_i32_0 = arith.constant 0 : i32
    return %arg0, %c0_i32 : i32, i32
  }
  func.func @transform_1(%arg0: i32) -> (i32, i32) {
    %c0_i32 = arith.constant 0 : i32
    %c0_i32_0 = arith.constant 0 : i32
    %c0_i32_1 = arith.constant 0 : i32
    return %c0_i32, %c0_i32_0 : i32, i32
  }
  func.func @transform_2(%arg0: i32) -> (i32, i32) {
    %c0_i32 = arith.constant 0 : i32
    %c0_i32_0 = arith.constant 0 : i32
    %c0_i32_1 = arith.constant 0 : i32
    return %c0_i32, %c0_i32_0 : i32, i32
  }
  func.func @transform_3(%arg0: i32) -> (i32, i32) {
    %c0_i32 = arith.constant 0 : i32
    %c0_i32_0 = arith.constant 0 : i32
    return %arg0, %c0_i32 : i32, i32
  }
}

module attributes {stable_mosaic.version = 11 : i64} {
  func.func @_ln_kernel(%arg0: i32, %arg1: memref<8x128xf32, #tpu.memory_space<vmem>>, %arg2: memref<1x128xf32, #tpu.memory_space<vmem>>, %arg3: memref<1x128xf32, #tpu.memory_space<vmem>>, %arg4: memref<8x128xf32, #tpu.memory_space<vmem>>) attributes {dimension_semantics = [#tpu.dimension_semantics<parallel>], iteration_bounds = array<i64: 1>, scalar_prefetch = 0 : i64, scratch_operands = 0 : i64, tpu.core_type = #tpu.core_type<tc>, window_params = [{transform_indices = @transform_0, window_bounds = array<i64: 8, 128>}, {pipeline_mode = #tpu.pipeline_mode<synchronous>, transform_indices = @transform_1, window_bounds = array<i64: 1, 128>}, {pipeline_mode = #tpu.pipeline_mode<synchronous>, transform_indices = @transform_2, window_bounds = array<i64: 1, 128>}, {transform_indices = @transform_3, window_bounds = array<i64: 8, 128>}]} {
    %c0 = arith.constant 0 : index
    %c0_0 = arith.constant 0 : index
    %0 = vector.load %arg1[%c0, %c0_0] : memref<8x128xf32, #tpu.memory_space<vmem>>, vector<8x128xf32>
    %cst = arith.constant dense<0.000000e+00> : vector<8xf32>
    %1 = vector.multi_reduction <add>, %0, %cst [1] : vector<8x128xf32> to vector<8xf32>
    %2 = vector.shape_cast %1 : vector<8xf32> to vector<8x1xf32>
    %cst_1 = arith.constant 1.280000e+02 : f32
    %3 = vector.broadcast %cst_1 : f32 to vector<8x1xf32>
    %4 = arith.divf %2, %3 : vector<8x1xf32>
    %5 = vector.broadcast %4 : vector<8x1xf32> to vector<8x128xf32>
    %6 = arith.subf %0, %5 : vector<8x128xf32>
    %7 = arith.mulf %6, %6 : vector<8x128xf32>
    %cst_2 = arith.constant dense<0.000000e+00> : vector<8xf32>
    %8 = vector.multi_reduction <add>, %7, %cst_2 [1] : vector<8x128xf32> to vector<8xf32>
    %9 = vector.shape_cast %8 : vector<8xf32> to vector<8x1xf32>
    %cst_3 = arith.constant 1.280000e+02 : f32
    %10 = vector.broadcast %cst_3 : f32 to vector<8x1xf32>
    %11 = arith.divf %9, %10 : vector<8x1xf32>
    %cst_4 = arith.constant 9.99999974E-6 : f32
    %12 = vector.broadcast %cst_4 : f32 to vector<8x1xf32>
    %13 = arith.addf %11, %12 : vector<8x1xf32>
    %14 = math.rsqrt %13 : vector<8x1xf32>
    %15 = vector.broadcast %14 : vector<8x1xf32> to vector<8x128xf32>
    %16 = arith.mulf %6, %15 : vector<8x128xf32>
    %c0_5 = arith.constant 0 : index
    %c0_6 = arith.constant 0 : index
    %17 = vector.load %arg2[%c0_5, %c0_6] : memref<1x128xf32, #tpu.memory_space<vmem>>, vector<1x128xf32>
    %18 = vector.broadcast %17 : vector<1x128xf32> to vector<8x128xf32>
    %19 = arith.mulf %16, %18 : vector<8x128xf32>
    %c0_7 = arith.constant 0 : index
    %c0_8 = arith.constant 0 : index
    %20 = vector.load %arg3[%c0_7, %c0_8] : memref<1x128xf32, #tpu.memory_space<vmem>>, vector<1x128xf32>
    %21 = vector.broadcast %20 : vector<1x128xf32> to vector<8x128xf32>
    %22 = arith.addf %19, %21 : vector<8x128xf32>
    %c0_9 = arith.constant 0 : index
    %c0_10 = arith.constant 0 : index
    %23 = vector.load %arg4[%c0_9, %c0_10] : memref<8x128xf32, #tpu.memory_space<vmem>>, vector<8x128xf32>
    tpu.vector_store %arg4[%c0_9, %c0_10], %22 {strides = array<i32>} : memref<8x128xf32, #tpu.memory_space<vmem>>, vector<8x128xf32>,
    return
  }
  func.func @transform_0(%arg0: i32) -> (i32, i32) {
    %c0_i32 = arith.constant 0 : i32
    %c0_i32_0 = arith.constant 0 : i32
    return %arg0, %c0_i32 : i32, i32
  }
  func.func @transform_1(%arg0: i32) -> (i32, i32) {
    %c0_i32 = arith.constant 0 : i32
    %c0_i32_0 = arith.constant 0 : i32
    %c0_i32_1 = arith.constant 0 : i32
    return %c0_i32, %c0_i32_0 : i32, i32
  }
  func.func @transform_2(%arg0: i32) -> (i32, i32) {
    %c0_i32 = arith.constant 0 : i32
    %c0_i32_0 = arith.constant 0 : i32
    %c0_i32_1 = arith.constant 0 : i32
    return %c0_i32, %c0_i32_0 : i32, i32
  }
  func.func @transform_3(%arg0: i32) -> (i32, i32) {
    %c0_i32 = arith.constant 0 : i32
    %c0_i32_0 = arith.constant 0 : i32
    return %arg0, %c0_i32 : i32, i32
  }
}

</mosaic_0001>

<bundles_post_ra>
// kernel: visnet_block_forward.13
= control target key start
LH: loop header
LB: loop body
LE: loop exit
PB: predicated region body
PF: predicated region fallthrough
CT: control target
= control target key end

     0   :  { %vm29_vm0 = vcmask 261120   ;;  %s237_s1 = inlined_call_operand.vmem [shape: f32[32,128], index: 1, kind: input, shape index: {}]   ;;  %s238_s0 = inlined_call_operand.vmem [shape: f32[32,32], index: 0, kind: input, shape index: {}]   ;;  %s239_s2 = inlined_call_operand.vmem [shape: f32[1,128], index: 2, kind: input, shape index: {}]   ;;  %s240_s3 = inlined_call_operand.vmem [shape: f32[32,128], index: 3, kind: output, shape index: {}]  }
   0x1   :  { %v18_v0 = vld [vmem:[%s237_s1] sm:$0xff]  ;;  %v19_v1 = vld [vmem:[%s237_s1 + $0x8] sm:$0xff]  ;;  %v20_v2 = vld [vmem:[%s237_s1 + $0x10] sm:$0xff] }
   0x2   :  { %v162_v3 = vpack.c.bf16 %v19_v1, %v18_v0  ;;  %v21_v4 = vld [vmem:[%s237_s1 + $0x18] sm:$0xff]  ;;  %v14_v5 = vld [vmem:[%s238_s0] sm:$0xff]  ;;  %v16_v6 = vld [vmem:[%s238_s0 + $0x10] sm:$0xff] }
   0x3   :  { %v166_v7 = vpack.c.bf16 %v21_v4, %v20_v2  ;;  %156 = vmatprep.mubr.msk.f32.mxu0 %vm29_vm0, %v14_v5  ;;  %159 = vmatprep.mubr.msk.f32.mxu1 %vm29_vm0, %v16_v6  ;;  %v15_v8 = vld [vmem:[%s238_s0 + $0x8] sm:$0xff]  ;;  %v17_v9 = vld [vmem:[%s238_s0 + $0x18] sm:$0xff]  ;;  %v135_v10 = vld [vmem:[%s239_s2] ss:$0 sm:$0xff] }
   0x4   :  { %163 = vmatprep.subr.bf16.mxu0 %v162_v3  ;;  %170 = vmatprep.subr.bf16.mxu1 %v162_v3 }
   0x5   :  { %165 = vmatpush3.bf16.msra.mxu0 %v162_v3  ;;  %172 = vmatpush3.bf16.msra.mxu1 %v162_v3 }
   0x6   :  { %167 = vmatprep.subr.bf16.mxu0 %v166_v7  ;;  %171 = vmatprep.subr.bf16.mxu1 %v166_v7 }
   0x9   :  { %169 = vmatpush3.bf16.msra.mxu0 %v166_v7  ;;  %173 = vmatpush3.bf16.msra.mxu1 %v166_v7 }
   0xc   :  { %157 = vmatmul.mubr.msk.f32.vlgmr.msra.gmra.mrb[0].mxu0 %vm29_vm0, %v15_v8  ;;  %160 = vmatmul.mubr.msk.f32.vlgmr.msra.gmra.mrb[0].mxu1 %vm29_vm0, %v17_v9 }
  0xdf   :  { %v158_v11 = vpop.f32.mrb[0].mxu0  ;;  %v161_v12 = vpop.f32.mrb[0].mxu1 }
  0xe0   :  { %v114_v13 = vadd.f32 %v158_v11, %v135_v10  ;;  %v124_v14 = vadd.f32 %v161_v12, %v135_v10  ;;  %v108_v15 = vpop.f32.mrb[1].mxu0  ;;  %v118_v16 = vpop.f32.mrb[1].mxu1 }
  0xe1   :  { %v109_v17 = vadd.f32 %v135_v10, %v108_v15  ;;  %v119_v18 = vadd.f32 %v135_v10, %v118_v16 }
  0xe2   :  { %128 = vst [vmem:[%s240_s3 + $0x8] sm:$0xff] %v114_v13  ;;  %130 = vst [vmem:[%s240_s3 + $0x18] sm:$0xff] %v124_v14 }
  0xe3   :  { %127 = vst [vmem:[%s240_s3] sm:$0xff] %v109_v17  ;;  %129 = vst [vmem:[%s240_s3 + $0x10] sm:$0xff] %v119_v18 }

// kernel: visnet_block_forward.14
= control target key start
LH: loop header
LB: loop body
LE: loop exit
PB: predicated region body
PF: predicated region fallthrough
CT: control target
= control target key end

     0   :  { %s326_s1 = inlined_call_operand.vmem [shape: f32[256,128], index: 1, kind: input, shape index: {}]   ;;  %s327_s0 = inlined_call_operand.vmem [shape: f32[8,256], index: 0, kind: input, shape index: {}]   ;;  %s328_s2 = inlined_call_operand.vmem [shape: f32[1,128], index: 2, kind: input, shape index: {}]   ;;  %s329_s3 = inlined_call_operand.vmem [shape: f32[8,128], index: 3, kind: output, shape index: {}]  }
   0x1   :  { %v32_v0 = vld [vmem:[%s326_s1 + $0x80] sm:$0xff]  ;;  %v33_v1 = vld [vmem:[%s326_s1 + $0x88] sm:$0xff]  ;;  %v34_v5 = vld [vmem:[%s326_s1 + $0x90] sm:$0xff] }
   0x2   :  { %v16_v2 = vld [vmem:[%s326_s1] sm:$0xff]  ;;  %v166_v3 = vpack.c.bf16 %v33_v1, %v32_v0  ;;  %v17_v4 = vld [vmem:[%s326_s1 + $0x8] sm:$0xff]  ;;  %v35_v6 = vld [vmem:[%s326_s1 + $0x98] sm:$0xff] }
   0x3   :  { %v168_v7 = vpack.c.bf16 %v17_v4, %v16_v2  ;;  %v170_v8 = vpack.c.bf16 %v35_v6, %v34_v5  ;;  %v18_v9 = vld [vmem:[%s326_s1 + $0x10] sm:$0xff]  ;;  %v19_v10 = vld [vmem:[%s326_s1 + $0x18] sm:$0xff]  ;;  %v36_v11 = vld [vmem:[%s326_s1 + $0xa0] sm:$0xff] }
   0x4   :  { %167 = vmatprep.subr.bf16.mxu0 %v166_v3  ;;  %v37_v12 = vld [vmem:[%s326_s1 + $0xa8] sm:$0xff]  ;;  %v172_v13 = vpack.c.bf16 %v19_v10, %v18_v9  ;;  %v20_v15 = vld [vmem:[%s326_s1 + $0x20] sm:$0xff]  ;;  %v38_v17 = vld [vmem:[%s326_s1 + $0xb0] sm:$0xff] }
   0x5   :  { %169 = vmatpush3.bf16.msra.mxu0 %v168_v7  ;;  %v174_v14 = vpack.c.bf16 %v37_v12, %v36_v11  ;;  %v21_v16 = vld [vmem:[%s326_s1 + $0x28] sm:$0xff]  ;;  %v39_v18 = vld [vmem:[%s326_s1 + $0xb8] sm:$0xff]  ;;  %v22_v21 = vld [vmem:[%s326_s1 + $0x30] sm:$0xff] }
   0x6   :  { %171 = vmatprep.subr.bf16.mxu0 %v170_v8  ;;  %v176_v19 = vpack.c.bf16 %v21_v16, %v20_v15  ;;  %v178_v20 = vpack.c.bf16 %v39_v18, %v38_v17  ;;  %v23_v22 = vld [vmem:[%s326_s1 + $0x38] sm:$0xff]  ;;  %v40_v23 = vld [vmem:[%s326_s1 + $0xc0] sm:$0xff]  ;;  %v41_v24 = vld [vmem:[%s326_s1 + $0xc8] sm:$0xff] }
   0x7   :  { %v15_v25 = vld [vmem:[%s327_s0 + $0x8] sm:$0xff]  ;;  %v180_v26 = vpack.c.bf16 %v23_v22, %v22_v21  ;;  %v182_v27 = vpack.c.bf16 %v41_v24, %v40_v23  ;;  %v24_v28 = vld [vmem:[%s326_s1 + $0x40] sm:$0xff]  ;;  %v42_v30 = vld [vmem:[%s326_s1 + $0xd0] sm:$0xff] }
   0x8   :  { %119 = vmatprep.mubr.f32.mxu0 %v15_v25  ;;  %v25_v29 = vld [vmem:[%s326_s1 + $0x48] sm:$0xff]  ;;  %v43_v31 = vld [vmem:[%s326_s1 + $0xd8] sm:$0xff]  ;;  %v26_v34 = vld [vmem:[%s326_s1 + $0x50] sm:$0xff] }
   0x9   :  { %173 = vmatpush3.bf16.msra.mxu0 %v172_v13  ;;  %v184_v32 = vpack.c.bf16 %v25_v29, %v24_v28  ;;  %v186_v33 = vpack.c.bf16 %v43_v31, %v42_v30  ;;  %v27_v35 = vld [vmem:[%s326_s1 + $0x58] sm:$0xff]  ;;  %v44_v36 = vld [vmem:[%s326_s1 + $0xe0] sm:$0xff]  ;;  %v45_v37 = vld [vmem:[%s326_s1 + $0xe8] sm:$0xff] }
   0xa   :  { %175 = vmatprep.subr.bf16.mxu0 %v174_v14  ;;  %v188_v38 = vpack.c.bf16 %v27_v35, %v26_v34  ;;  %v190_v39 = vpack.c.bf16 %v45_v37, %v44_v36  ;;  %v28_v40 = vld [vmem:[%s326_s1 + $0x60] sm:$0xff]  ;;  %v29_v41 = vld [vmem:[%s326_s1 + $0x68] sm:$0xff]  ;;  %v46_v42 = vld [vmem:[%s326_s1 + $0xf0] sm:$0xff] }
   0xb   :  { %v47_v43 = vld [vmem:[%s326_s1 + $0xf8] sm:$0xff]  ;;  %v192_v44 = vpack.c.bf16 %v29_v41, %v28_v40  ;;  %v30_v46 = vld [vmem:[%s326_s1 + $0x70] sm:$0xff]  ;;  %v14_v49 = vld [vmem:[%s327_s0] sm:$0xff] }
   0xc   :  { %v194_v45 = vpack.c.bf16 %v47_v43, %v46_v42  ;;  %v31_v47 = vld [vmem:[%s326_s1 + $0x78] sm:$0xff]  ;;  %v130_v51 = vld [vmem:[%s328_s2] ss:$0 sm:$0xff] }
   0xd   :  { %177 = vmatpush3.bf16.msra.mxu0 %v176_v19  ;;  %v196_v48 = vpack.c.bf16 %v31_v47, %v30_v46 }
   0xe   :  { %179 = vmatprep.subr.bf16.mxu0 %v178_v20 }
  0x11   :  { %181 = vmatpush3.bf16.msra.mxu0 %v180_v26 }
  0x12   :  { %183 = vmatprep.subr.bf16.mxu0 %v182_v27 }
  0x15   :  { %185 = vmatpush3.bf16.msra.mxu0 %v184_v32 }
  0x16   :  { %187 = vmatprep.subr.bf16.mxu0 %v186_v33 }
  0x19   :  { %189 = vmatpush3.bf16.msra.mxu0 %v188_v38 }
  0x1a   :  { %191 = vmatprep.subr.bf16.mxu0 %v190_v39 }
  0x1d   :  { %193 = vmatpush3.bf16.msra.mxu0 %v192_v44 }
  0x1e   :  { %195 = vmatprep.subr.bf16.mxu0 %v194_v45 }
  0x21   :  { %197 = vmatpush3.bf16.msra.mxu0 %v196_v48 }
  0x24   :  { %120 = vmatmul.mubr.f32.vlgmr.msra.gmra.mrb[0].mxu0 %v14_v49 }
  0xf7   :  { %v163_v50 = vpop.f32.mrb[0].mxu0 }
  0xf8   :  { %v164_v52 = vpop.f32.mrb[1].mxu0 }
  0xf9   :  { %v165_v53 = vadd.f32 %v164_v52, %v163_v50 }
  0xfb   :  { %v122_v54 = vadd.f32 %v165_v53, %v130_v51 }
  0xfd   :  { %125 = vst [vmem:[%s329_s3] sm:$0xff] %v122_v54 }

// kernel: visnet_block_forward.17
= control target key start
LH: loop header
LB: loop body
LE: loop exit
PB: predicated region body
PF: predicated region fallthrough
CT: control target
= control target key end

     0   :  { %v872_v3 = vmov 0.0   ;;  %s1562_s1 = inlined_call_operand.vmem [shape: f32[128,896], index: 1, kind: input, shape index: {}]   ;;  %s1563_s0 = inlined_call_operand.vmem [shape: f32[64,128], index: 0, kind: input, shape index: {}]   ;;  %s1564_s2 = inlined_call_operand.vmem [shape: f32[1,896], index: 2, kind: input, shape index: {}]   ;;  %s1565_s3 = inlined_call_operand.vmem [shape: f32[64,896], index: 3, kind: output, shape index: {}]  }
   0x1   :  { %v23_v0 = vld [vmem:[%s1562_s1 + $0x8] sm:$0xff]  ;;  %v30_v1 = vld [vmem:[%s1562_s1 + $0x40] sm:$0xff]  ;;  %235 = vmatprep.mubr.f32.mxu0 %v872_v3  ;;  %348 = vmatprep.mubr.f32.mxu1 %v872_v3  ;;  %v29_v5 = vld [vmem:[%s1562_s1 + $0x38] sm:$0xff] }
   0x2   :  { %v22_v2 = vld [vmem:[%s1562_s1] sm:$0xff]  ;;  %v743_v4 = vpack.c.bf16 %v30_v1, %v23_v0  ;;  %v37_v6 = vld [vmem:[%s1562_s1 + $0x78] sm:$0xff]  ;;  %v44_v7 = vld [vmem:[%s1562_s1 + $0xb0] sm:$0xff] }
   0x3   :  { %v745_v8 = vpack.c.bf16 %v29_v5, %v22_v2  ;;  %v747_v9 = vpack.c.bf16 %v44_v7, %v37_v6  ;;  %v36_v10 = vld [vmem:[%s1562_s1 + $0x70] sm:$0xff]  ;;  %v43_v11 = vld [vmem:[%s1562_s1 + $0xa8] sm:$0xff]  ;;  %v58_v13 = vld [vmem:[%s1562_s1 + $0x120] sm:$0xff] }
   0x4   :  { %v51_v12 = vld [vmem:[%s1562_s1 + $0xe8] sm:$0xff]  ;;  %744 = vmatprep.subr.bf16.mxu0 %v743_v4  ;;  %v749_v14 = vpack.c.bf16 %v43_v11, %v36_v10  ;;  %v50_v16 = vld [vmem:[%s1562_s1 + $0xe0] sm:$0xff]  ;;  %v57_v17 = vld [vmem:[%s1562_s1 + $0x118] sm:$0xff] }
   0x5   :  { %746 = vmatpush1.bf16.msra.mxu0 %v745_v8  ;;  %v751_v15 = vpack.c.bf16 %v58_v13, %v51_v12  ;;  %v65_v18 = vld [vmem:[%s1562_s1 + $0x158] sm:$0xff]  ;;  %v72_v19 = vld [vmem:[%s1562_s1 + $0x190] sm:$0xff]  ;;  %v31_v24 = vld [vmem:[%s1562_s1 + $0x48] sm:$0xff]  ;;  %v753_v25 = vpack.c.bf16 %v57_v17, %v50_v16 }
   0x6   :  { %748 = vmatprep.subr.bf16.mxu0 %v747_v9  ;;  %v25_v20 = vld [vmem:[%s1562_s1 + $0x18] sm:$0xff]  ;;  %v32_v21 = vld [vmem:[%s1562_s1 + $0x50] sm:$0xff]  ;;  %v39_v28 = vld [vmem:[%s1562_s1 + $0x88] sm:$0xff]  ;;  %v755_v29 = vpack.c.bf16 %v72_v19, %v65_v18 }
   0x7   :  { %v775_v22 = vpack.c.bf16 %v32_v21, %v25_v20  ;;  %v24_v23 = vld [vmem:[%s1562_s1 + $0x10] sm:$0xff]  ;;  %v71_v30 = vld [vmem:[%s1562_s1 + $0x188] sm:$0xff]  ;;  %v46_v32 = vld [vmem:[%s1562_s1 + $0xc0] sm:$0xff] }
   0x8   :  { %v64_v26 = vld [vmem:[%s1562_s1 + $0x150] sm:$0xff]  ;;  %v777_v27 = vpack.c.bf16 %v31_v24, %v24_v23  ;;  %v79_v31 = vld [vmem:[%s1562_s1 + $0x1c8] sm:$0xff]  ;;  %v86_v33 = vld [vmem:[%s1562_s1 + $0x200] sm:$0xff]  ;;  %v779_v34 = vpack.c.bf16 %v46_v32, %v39_v28 }
   0x9   :  { %750 = vmatpush1.bf16.msra.mxu0 %v749_v14  ;;  %776 = vmatprep.subr.bf16.mxu1 %v775_v22  ;;  %v38_v35 = vld [vmem:[%s1562_s1 + $0x80] sm:$0xff]  ;;  %v45_v36 = vld [vmem:[%s1562_s1 + $0xb8] sm:$0xff]  ;;  %v60_v39 = vld [vmem:[%s1562_s1 + $0x130] sm:$0xff]  ;;  %v757_v40 = vpack.c.bf16 %v71_v30, %v64_v26  ;;  %v759_v44 = vpack.c.bf16 %v86_v33, %v79_v31 }
   0xa   :  { %752 = vmatprep.subr.bf16.mxu0 %v751_v15  ;;  %778 = vmatpush1.bf16.msra.mxu1 %v777_v27  ;;  %v781_v37 = vpack.c.bf16 %v45_v36, %v38_v35  ;;  %v53_v38 = vld [vmem:[%s1562_s1 + $0xf8] sm:$0xff]  ;;  %v78_v41 = vld [vmem:[%s1562_s1 + $0x1c0] sm:$0xff]  ;;  %v52_v43 = vld [vmem:[%s1562_s1 + $0xf0] sm:$0xff] }
   0xb   :  { %780 = vmatprep.subr.bf16.mxu1 %v779_v34  ;;  %v783_v42 = vpack.c.bf16 %v60_v39, %v53_v38  ;;  %v85_v45 = vld [vmem:[%s1562_s1 + $0x1f8] sm:$0xff]  ;;  %v59_v47 = vld [vmem:[%s1562_s1 + $0x128] sm:$0xff]  ;;  %v100_v48 = vld [vmem:[%s1562_s1 + $0x270] sm:$0xff] }
   0xc   :  { %v93_v46 = vld [vmem:[%s1562_s1 + $0x238] sm:$0xff]  ;;  %v785_v49 = vpack.c.bf16 %v59_v47, %v52_v43  ;;  %v67_v50 = vld [vmem:[%s1562_s1 + $0x168] sm:$0xff]  ;;  %v74_v51 = vld [vmem:[%s1562_s1 + $0x1a0] sm:$0xff]  ;;  %v761_v55 = vpack.c.bf16 %v85_v45, %v78_v41 }
   0xd   :  { %754 = vmatpush1.bf16.msra.mxu0 %v753_v25  ;;  %v787_v52 = vpack.c.bf16 %v74_v51, %v67_v50  ;;  %v66_v53 = vld [vmem:[%s1562_s1 + $0x160] sm:$0xff]  ;;  %v73_v54 = vld [vmem:[%s1562_s1 + $0x198] sm:$0xff]  ;;  %v88_v57 = vld [vmem:[%s1562_s1 + $0x210] sm:$0xff]  ;;  %v763_v58 = vpack.c.bf16 %v100_v48, %v93_v46 }
   0xe   :  { %756 = vmatprep.subr.bf16.mxu0 %v755_v29  ;;  %782 = vmatpush1.bf16.msra.mxu1 %v781_v37  ;;  %v81_v56 = vld [vmem:[%s1562_s1 + $0x1d8] sm:$0xff]  ;;  %v92_v59 = vld [vmem:[%s1562_s1 + $0x230] sm:$0xff]  ;;  %v99_v60 = vld [vmem:[%s1562_s1 + $0x268] sm:$0xff]  ;;  %v789_v63 = vpack.c.bf16 %v73_v54, %v66_v53 }
   0xf   :  { %784 = vmatprep.subr.bf16.mxu1 %v783_v42  ;;  %v107_v61 = vld [vmem:[%s1562_s1 + $0x2a8] sm:$0xff]  ;;  %v114_v62 = vld [vmem:[%s1562_s1 + $0x2e0] sm:$0xff]  ;;  %v791_v0 = vpack.c.bf16 %v88_v57, %v81_v56  ;;  %v80_v1 = vld [vmem:[%s1562_s1 + $0x1d0] sm:$0xff]  ;;  %v765_v4 = vpack.c.bf16 %v99_v60, %v92_v59 }
  0x10   :  { %v87_v2 = vld [vmem:[%s1562_s1 + $0x208] sm:$0xff]  ;;  %v102_v6 = vld [vmem:[%s1562_s1 + $0x280] sm:$0xff]  ;;  %v767_v7 = vpack.c.bf16 %v114_v62, %v107_v61  ;;  %v113_v9 = vld [vmem:[%s1562_s1 + $0x2d8] sm:$0xff] }
  0x11   :  { %758 = vmatpush1.bf16.msra.mxu0 %v757_v40  ;;  %v95_v5 = vld [vmem:[%s1562_s1 + $0x248] sm:$0xff]  ;;  %v106_v8 = vld [vmem:[%s1562_s1 + $0x2a0] sm:$0xff]  ;;  %v121_v10 = vld [vmem:[%s1562_s1 + $0x318] sm:$0xff]  ;;  %v793_v12 = vpack.c.bf16 %v87_v2, %v80_v1 }
  0x12   :  { %760 = vmatprep.subr.bf16.mxu0 %v759_v44  ;;  %786 = vmatpush1.bf16.msra.mxu1 %v785_v49  ;;  %v128_v11 = vld [vmem:[%s1562_s1 + $0x350] sm:$0xff]  ;;  %v795_v13 = vpack.c.bf16 %v102_v6, %v95_v5  ;;  %v94_v14 = vld [vmem:[%s1562_s1 + $0x240] sm:$0xff]  ;;  %v101_v15 = vld [vmem:[%s1562_s1 + $0x278] sm:$0xff]  ;;  %v769_v16 = vpack.c.bf16 %v113_v9, %v106_v8 }
  0x13   :  { %788 = vmatprep.subr.bf16.mxu1 %v787_v52  ;;  %v109_v17 = vld [vmem:[%s1562_s1 + $0x2b8] sm:$0xff]  ;;  %v116_v18 = vld [vmem:[%s1562_s1 + $0x2f0] sm:$0xff]  ;;  %v771_v19 = vpack.c.bf16 %v128_v11, %v121_v10  ;;  %v127_v21 = vld [vmem:[%s1562_s1 + $0x348] sm:$0xff]  ;;  %v797_v24 = vpack.c.bf16 %v101_v15, %v94_v14 }
  0x14   :  { %v120_v20 = vld [vmem:[%s1562_s1 + $0x310] sm:$0xff]  ;;  %v27_v22 = vld [vmem:[%s1562_s1 + $0x28] sm:$0xff]  ;;  %v34_v23 = vld [vmem:[%s1562_s1 + $0x60] sm:$0xff]  ;;  %v799_v25 = vpack.c.bf16 %v116_v18, %v109_v17 }
  0x15   :  { %762 = vmatpush1.bf16.msra.mxu0 %v761_v55  ;;  %v108_v26 = vld [vmem:[%s1562_s1 + $0x2b0] sm:$0xff]  ;;  %v115_v27 = vld [vmem:[%s1562_s1 + $0x2e8] sm:$0xff]  ;;  %v773_v28 = vpack.c.bf16 %v127_v21, %v120_v20  ;;  %v130_v30 = vld [vmem:[%s1562_s1 + $0x360] sm:$0xff]  ;;  %v807_v31 = vpack.c.bf16 %v34_v23, %v27_v22 }
  0x16   :  { %764 = vmatprep.subr.bf16.mxu0 %v763_v58  ;;  %790 = vmatpush1.bf16.msra.mxu1 %v789_v63  ;;  %v123_v29 = vld [vmem:[%s1562_s1 + $0x328] sm:$0xff]  ;;  %v26_v32 = vld [vmem:[%s1562_s1 + $0x20] sm:$0xff]  ;;  %v33_v33 = vld [vmem:[%s1562_s1 + $0x58] sm:$0xff]  ;;  %v801_v36 = vpack.c.bf16 %v115_v27, %v108_v26 }
  0x17   :  { %792 = vmatprep.subr.bf16.mxu1 %v791_v0  ;;  %v41_v34 = vld [vmem:[%s1562_s1 + $0x98] sm:$0xff]  ;;  %v48_v35 = vld [vmem:[%s1562_s1 + $0xd0] sm:$0xff]  ;;  %v803_v37 = vpack.c.bf16 %v130_v30, %v123_v29  ;;  %v122_v38 = vld [vmem:[%s1562_s1 + $0x320] sm:$0xff]  ;;  %v809_v41 = vpack.c.bf16 %v33_v33, %v26_v32 }
  0x18   :  { %v129_v39 = vld [vmem:[%s1562_s1 + $0x358] sm:$0xff]  ;;  %v1108_v40 = vld [vmem:[%s1563_s0] sm:$0xff]  ;;  %v28_v42 = vld [vmem:[%s1562_s1 + $0x30] sm:$0xff]  ;;  %v811_v44 = vpack.c.bf16 %v48_v35, %v41_v34 }
  0x19   :  { %766 = vmatpush1.bf16.msra.mxu0 %v765_v4  ;;  %v35_v43 = vld [vmem:[%s1562_s1 + $0x68] sm:$0xff]  ;;  %v40_v45 = vld [vmem:[%s1562_s1 + $0x90] sm:$0xff]  ;;  %v62_v48 = vld [vmem:[%s1562_s1 + $0x140] sm:$0xff]  ;;  %v805_v49 = vpack.c.bf16 %v129_v39, %v122_v38 }
  0x1a   :  { %768 = vmatprep.subr.bf16.mxu0 %v767_v7  ;;  %794 = vmatpush1.bf16.msra.mxu1 %v793_v12  ;;  %v47_v46 = vld [vmem:[%s1562_s1 + $0xc8] sm:$0xff]  ;;  %v839_v50 = vpack.c.bf16 %v35_v43, %v28_v42  ;;  %v42_v53 = vld [vmem:[%s1562_s1 + $0xa0] sm:$0xff]  ;;  %v49_v54 = vld [vmem:[%s1562_s1 + $0xd8] sm:$0xff] }
  0x1b   :  { %796 = vmatprep.subr.bf16.mxu1 %v795_v13  ;;  %v55_v47 = vld [vmem:[%s1562_s1 + $0x108] sm:$0xff]  ;;  %v813_v52 = vpack.c.bf16 %v47_v46, %v40_v45  ;;  %v54_v56 = vld [vmem:[%s1562_s1 + $0x100] sm:$0xff]  ;;  %v61_v57 = vld [vmem:[%s1562_s1 + $0x138] sm:$0xff]  ;;  %v843_v60 = vpack.c.bf16 %v49_v54, %v42_v53 }
  0x1c   :  { %v1133_v51 = vld [vmem:[%s1563_s0 + $0x8] sm:$0xff]  ;;  %v815_v55 = vpack.c.bf16 %v62_v48, %v55_v47  ;;  %v69_v58 = vld [vmem:[%s1562_s1 + $0x178] sm:$0xff]  ;;  %v76_v59 = vld [vmem:[%s1562_s1 + $0x1b0] sm:$0xff]  ;;  %v817_v62 = vpack.c.bf16 %v61_v57, %v54_v56 }
  0x1d   :  { %770 = vmatpush1.bf16.msra.mxu0 %v769_v16  ;;  %v1158_v61 = vld [vmem:[%s1563_s0 + $0x10] sm:$0xff]  ;;  %v63_v0 = vld [vmem:[%s1562_s1 + $0x148] sm:$0xff]  ;;  %v819_v1 = vpack.c.bf16 %v76_v59, %v69_v58  ;;  %v90_v6 = vld [vmem:[%s1562_s1 + $0x220] sm:$0xff] }
  0x1e   :  { %772 = vmatprep.subr.bf16.mxu0 %v771_v19  ;;  %798 = vmatpush1.bf16.msra.mxu1 %v797_v24  ;;  %v56_v63 = vld [vmem:[%s1562_s1 + $0x110] sm:$0xff]  ;;  %v75_v4 = vld [vmem:[%s1562_s1 + $0x1a8] sm:$0xff]  ;;  %v1185_v8 = vld [vmem:[%s1563_s0 + $0x18] sm:$0xff] }
  0x1f   :  { %800 = vmatprep.subr.bf16.mxu1 %v799_v25  ;;  %v68_v2 = vld [vmem:[%s1562_s1 + $0x170] sm:$0xff]  ;;  %v83_v5 = vld [vmem:[%s1562_s1 + $0x1e8] sm:$0xff]  ;;  %v847_v7 = vpack.c.bf16 %v63_v0, %v56_v63  ;;  %v70_v10 = vld [vmem:[%s1562_s1 + $0x180] sm:$0xff] }
  0x20   :  { %v821_v9 = vpack.c.bf16 %v75_v4, %v68_v2  ;;  %v77_v11 = vld [vmem:[%s1562_s1 + $0x1b8] sm:$0xff]  ;;  %v823_v12 = vpack.c.bf16 %v90_v6, %v83_v5  ;;  %v82_v13 = vld [vmem:[%s1562_s1 + $0x1e0] sm:$0xff]  ;;  %v104_v16 = vld [vmem:[%s1562_s1 + $0x290] sm:$0xff] }
  0x21   :  { %774 = vmatpush1.bf16.msra.mxu0 %v773_v28  ;;  %v89_v14 = vld [vmem:[%s1562_s1 + $0x218] sm:$0xff]  ;;  %v851_v17 = vpack.c.bf16 %v77_v11, %v70_v10  ;;  %v1212_v18 = vld [vmem:[%s1563_s0 + $0x20] sm:$0xff]  ;;  %v84_v20 = vld [vmem:[%s1562_s1 + $0x1f0] sm:$0xff] }
  0x22   :  { %808 = vmatprep.subr.bf16.mxu0 %v807_v31  ;;  %802 = vmatpush1.bf16.msra.mxu1 %v801_v36  ;;  %v97_v15 = vld [vmem:[%s1562_s1 + $0x258] sm:$0xff]  ;;  %v825_v19 = vpack.c.bf16 %v89_v14, %v82_v13  ;;  %v91_v21 = vld [vmem:[%s1562_s1 + $0x228] sm:$0xff]  ;;  %v96_v23 = vld [vmem:[%s1562_s1 + $0x250] sm:$0xff] }
  0x23   :  { %804 = vmatprep.subr.bf16.mxu1 %v803_v37  ;;  %v827_v22 = vpack.c.bf16 %v104_v16, %v97_v15  ;;  %v103_v24 = vld [vmem:[%s1562_s1 + $0x288] sm:$0xff]  ;;  %v118_v26 = vld [vmem:[%s1562_s1 + $0x300] sm:$0xff]  ;;  %v855_v27 = vpack.c.bf16 %v91_v21, %v84_v20  ;;  %v105_v31 = vld [vmem:[%s1562_s1 + $0x298] sm:$0xff] }
  0x24   :  { %236 = vmatmul.mubr.f32.vlgmr.msra.gmra.mrb[0].mxu0 %v1108_v40  ;;  %v111_v25 = vld [vmem:[%s1562_s1 + $0x2c8] sm:$0xff]  ;;  %v829_v29 = vpack.c.bf16 %v103_v24, %v96_v23  ;;  %v98_v30 = vld [vmem:[%s1562_s1 + $0x260] sm:$0xff]  ;;  %v117_v34 = vld [vmem:[%s1562_s1 + $0x2f8] sm:$0xff] }
  0x25   :  { %810 = vmatpush1.bf16.msra.mxu0 %v809_v41  ;;  %241 = vmatprep.mubr.f32.mxu0 %v872_v3  ;;  %v1239_v28 = vld [vmem:[%s1563_s0 + $0x28] sm:$0xff]  ;;  %v831_v32 = vpack.c.bf16 %v118_v26, %v111_v25  ;;  %v110_v33 = vld [vmem:[%s1562_s1 + $0x2c0] sm:$0xff]  ;;  %v125_v35 = vld [vmem:[%s1562_s1 + $0x338] sm:$0xff]  ;;  %v859_v37 = vpack.c.bf16 %v105_v31, %v98_v30 }
  0x26   :  { %812 = vmatprep.subr.bf16.mxu0 %v811_v44  ;;  %806 = vmatpush1.bf16.msra.mxu1 %v805_v49  ;;  %v132_v36 = vld [vmem:[%s1562_s1 + $0x370] sm:$0xff]  ;;  %v833_v39 = vpack.c.bf16 %v117_v34, %v110_v33  ;;  %v119_v42 = vld [vmem:[%s1562_s1 + $0x308] sm:$0xff]  ;;  %v21_v47 = vld [vmem:[%s1563_s0 + $0x38] sm:$0xff] }
  0x27   :  { %840 = vmatprep.subr.bf16.mxu1 %v839_v50  ;;  %v20_v38 = vld [vmem:[%s1563_s0 + $0x30] sm:$0xff]  ;;  %v835_v43 = vpack.c.bf16 %v132_v36, %v125_v35  ;;  %v131_v45 = vld [vmem:[%s1562_s1 + $0x368] sm:$0xff]  ;;  %v126_v49 = vld [vmem:[%s1562_s1 + $0x340] sm:$0xff] }
  0x28   :  { %242 = vmatmul.mubr.f32.gmra.mrb[2].mxu0 %v1133_v51  ;;  %v112_v41 = vld [vmem:[%s1562_s1 + $0x2d0] sm:$0xff]  ;;  %v1319_v54 = vld [vmem:[%s1564_s2] sm:$0xff] }
  0x29   :  { %814 = vmatpush1.bf16.msra.mxu0 %v813_v52  ;;  %247 = vmatprep.mubr.f32.mxu0 %v872_v3  ;;  %v124_v44 = vld [vmem:[%s1562_s1 + $0x330] sm:$0xff]  ;;  %v863_v46 = vpack.c.bf16 %v119_v42, %v112_v41 }
  0x2a   :  { %816 = vmatprep.subr.bf16.mxu0 %v815_v55  ;;  %349 = vmatmul.mubr.f32.vlgmr.msra.gmra.mrb[0].mxu1 %v1108_v40  ;;  %v837_v48 = vpack.c.bf16 %v131_v45, %v124_v44 }
  0x2b   :  { %842 = vmatpush3.bf16.msra.mxu1 %v839_v50  ;;  %354 = vmatprep.mubr.f32.mxu1 %v872_v3  ;;  %v133_v50 = vld [vmem:[%s1562_s1 + $0x378] sm:$0xff] }
  0x2c   :  { %248 = vmatmul.mubr.f32.gmra.mrb[4].mxu0 %v1158_v61  ;;  %844 = vmatprep.subr.bf16.mxu1 %v843_v60  ;;  %v867_v52 = vpack.c.bf16 %v133_v50, %v126_v49 }
  0x2d   :  { %818 = vmatpush1.bf16.msra.mxu0 %v817_v62  ;;  %253 = vmatprep.mubr.f32.mxu0 %v872_v3 }
  0x2e   :  { %820 = vmatprep.subr.bf16.mxu0 %v819_v1  ;;  %355 = vmatmul.mubr.f32.gmra.mrb[2].mxu1 %v1133_v51 }
  0x2f   :  { %846 = vmatpush3.bf16.msra.mxu1 %v843_v60  ;;  %360 = vmatprep.mubr.f32.mxu1 %v872_v3 }
  0x30   :  { %254 = vmatmul.mubr.f32.gmra.mrb[6].mxu0 %v1185_v8  ;;  %848 = vmatprep.subr.bf16.mxu1 %v847_v7 }
  0x31   :  { %822 = vmatpush1.bf16.msra.mxu0 %v821_v9  ;;  %259 = vmatprep.mubr.f32.mxu0 %v872_v3 }
  0x32   :  { %824 = vmatprep.subr.bf16.mxu0 %v823_v12  ;;  %361 = vmatmul.mubr.f32.gmra.mrb[4].mxu1 %v1158_v61 }
  0x33   :  { %850 = vmatpush3.bf16.msra.mxu1 %v847_v7  ;;  %366 = vmatprep.mubr.f32.mxu1 %v872_v3 }
  0x34   :  { %260 = vmatmul.mubr.f32.gmra.mrb[8].mxu0 %v1212_v18  ;;  %852 = vmatprep.subr.bf16.mxu1 %v851_v17 }
  0x35   :  { %826 = vmatpush1.bf16.msra.mxu0 %v825_v19  ;;  %265 = vmatprep.mubr.f32.mxu0 %v872_v3 }
  0x36   :  { %828 = vmatprep.subr.bf16.mxu0 %v827_v22  ;;  %367 = vmatmul.mubr.f32.gmra.mrb[6].mxu1 %v1185_v8 }
  0x37   :  { %854 = vmatpush3.bf16.msra.mxu1 %v851_v17  ;;  %372 = vmatprep.mubr.f32.mxu1 %v872_v3 }
  0x38   :  { %266 = vmatmul.mubr.f32.gmra.mrb[10].mxu0 %v1239_v28  ;;  %856 = vmatprep.subr.bf16.mxu1 %v855_v27 }
  0x39   :  { %830 = vmatpush1.bf16.msra.mxu0 %v829_v29  ;;  %271 = vmatprep.mubr.f32.mxu0 %v872_v3 }
  0x3a   :  { %832 = vmatprep.subr.bf16.mxu0 %v831_v32  ;;  %373 = vmatmul.mubr.f32.gmra.mrb[8].mxu1 %v1212_v18 }
  0x3b   :  { %858 = vmatpush3.bf16.msra.mxu1 %v855_v27  ;;  %378 = vmatprep.mubr.f32.mxu1 %v872_v3 }
  0x3c   :  { %272 = vmatmul.mubr.f32.gmra.mrb[12].mxu0 %v20_v38  ;;  %860 = vmatprep.subr.bf16.mxu1 %v859_v37 }
  0x3d   :  { %834 = vmatpush1.bf16.msra.mxu0 %v833_v39  ;;  %277 = vmatprep.mubr.f32.mxu0 %v872_v3 }
  0x3e   :  { %836 = vmatprep.subr.bf16.mxu0 %v835_v43  ;;  %379 = vmatmul.mubr.f32.gmra.mrb[10].mxu1 %v1239_v28 }
  0x3f   :  { %862 = vmatpush3.bf16.msra.mxu1 %v859_v37  ;;  %384 = vmatprep.mubr.f32.mxu1 %v872_v3 }
  0x40   :  { %278 = vmatmul.mubr.f32.gmra.mrb[14].mxu0 %v21_v47  ;;  %864 = vmatprep.subr.bf16.mxu1 %v863_v46 }
  0x41   :  { %838 = vmatpush1.bf16.msra.mxu0 %v837_v48  ;;  %461 = vmatprep.mubr.f32.mxu0 %v872_v3 }
  0x42   :  { %385 = vmatmul.mubr.f32.gmra.mrb[12].mxu1 %v20_v38 }
  0x43   :  { %866 = vmatpush3.bf16.msra.mxu1 %v863_v46  ;;  %390 = vmatprep.mubr.f32.mxu1 %v872_v3 }
  0x44   :  { %462 = vmatmul.mubr.f32.vlgmr.msra.gmra.mrb[16].mxu0 %v1108_v40  ;;  %868 = vmatprep.subr.bf16.mxu1 %v867_v52 }
  0x45   :  { %467 = vmatprep.mubr.f32.mxu0 %v872_v3 }
  0x46   :  { %391 = vmatmul.mubr.f32.gmra.mrb[14].mxu1 %v21_v47 }
  0x47   :  { %870 = vmatpush3.bf16.msra.mxu1 %v867_v52  ;;  %731 = vmatprep.mubr.f32.mxu1 %v1108_v40  ;;  %v136_v40 = vlaneseq }
  0x48   :  { %468 = vmatmul.mubr.f32.gmra.mrb[18].mxu0 %v1133_v51 }
  0x49   :  { %473 = vmatprep.mubr.f32.mxu0 %v872_v3 }
  0x4a   :  { %732 = vmatmul.mubr.f32.vlgmr.msra.gmra.mrb[16].mxu1 %v1133_v51  ;;  %v1313_v51 = vshrl.u32 %v136_v40, 7 }
  0x4b   :  { %734 = vmatprep.mubr.f32.mxu1 %v1158_v61 }
  0x4c   :  { %474 = vmatmul.mubr.f32.gmra.mrb[20].mxu0 %v1158_v61  ;;  %v138_v53 = vsub.s32 0, %v1313_v51  ;;  %v142_v55 = vsub.s32 1, %v1313_v51  ;;  %v150_v59 = vsub.s32 3, %v1313_v51  ;;  %v154_v46 = vsub.s32 4, %v1313_v51 }
  0x4d   :  { %479 = vmatprep.mubr.f32.mxu0 %v872_v3  ;;  %v158_v48 = vsub.s32 5, %v1313_v51 }
  0x4e   :  { %735 = vmatmul.mubr.f32.gmra.mrb[18].mxu1 %v1185_v8  ;;  %v1323_v56 = vrot.slane %v1319_v54, %v138_v53  ;;  %v1326_v57 = vrot.slane %v1319_v54, %v142_v55  ;;  %v1342_v1 = vrot.slane %v1319_v54, %v150_v59 }
  0x4f   :  { %737 = vmatprep.mubr.f32.mxu1 %v1212_v18 }
  0x50   :  { %480 = vmatmul.mubr.f32.gmra.mrb[22].mxu0 %v1185_v8 }
  0x51   :  { %485 = vmatprep.mubr.f32.mxu0 %v872_v3 }
  0x52   :  { %738 = vmatmul.mubr.f32.gmra.mrb[20].mxu1 %v1239_v28 }
  0x53   :  { %740 = vmatprep.mubr.f32.mxu1 %v20_v38 }
  0x54   :  { %486 = vmatmul.mubr.f32.gmra.mrb[24].mxu0 %v1212_v18 }
  0x55   :  { %491 = vmatprep.mubr.f32.mxu0 %v872_v3 }
  0x56   :  { %741 = vmatmul.mubr.f32.gmra.mrb[22].mxu1 %v21_v47 }
  0x58   :  { %492 = vmatmul.mubr.f32.gmra.mrb[26].mxu0 %v1239_v28 }
  0x59   :  { %497 = vmatprep.mubr.f32.mxu0 %v872_v3 }
  0x5c   :  { %498 = vmatmul.mubr.f32.gmra.mrb[28].mxu0 %v20_v38 }
  0x5d   :  { %503 = vmatprep.mubr.f32.mxu0 %v872_v3  ;;  %v146_v3 = vsub.s32 2, %v1313_v51 }
  0x5f   :  { %v1336_v63 = vrot.slane %v1319_v54, %v146_v3 }
  0x60   :  { %504 = vmatmul.mubr.f32.gmra.mrb[30].mxu0 %v21_v47 }
  0xf7   :  { %v237_v58 = vpop.f32.mrb[0].mxu0 }
  0xf8   :  { %v238_v60 = vadd.f32 %v237_v58, %v1323_v56  ;;  %v239_v61 = vpop.f32.mrb[1].mxu0  ;;  %v1438_v58 = vrot.slane %v1319_v54, %v154_v46 }
  0xf9   :  { %v240_v62 = vadd.f32 %v239_v61, %v1326_v57 }
  0xfa   :  { %615 = vst [vmem:[%s1565_s3] sm:$0xff] %v238_v60  ;;  %v1445_v60 = vrot.slane %v1319_v54, %v158_v48 }
  0xfb   :  { %616 = vst [vmem:[%s1565_s3 + $0x8] sm:$0xff] %v240_v62  ;;  %v243_v0 = vpop.f32.mrb[2].mxu0 }
  0xfc   :  { %v244_v2 = vadd.f32 %v243_v0, %v1323_v56  ;;  %v245_v4 = vpop.f32.mrb[3].mxu0  ;;  %v162_v0 = vsub.s32 6, %v1313_v51 }
  0xfd   :  { %v246_v5 = vadd.f32 %v245_v4, %v1326_v57  ;;  %v350_v6 = vpop.f32.mrb[0].mxu1 }
  0xfe   :  { %622 = vst [vmem:[%s1565_s3 + $0x38] sm:$0xff] %v244_v2  ;;  %v351_v7 = vadd.f32 %v350_v6, %v1336_v63  ;;  %v352_v8 = vpop.f32.mrb[1].mxu1 }
  0xff   :  { %623 = vst [vmem:[%s1565_s3 + $0x40] sm:$0xff] %v246_v5  ;;  %v249_v9 = vpop.f32.mrb[4].mxu0  ;;  %v353_v10 = vadd.f32 %v352_v8, %v1342_v1 }
 0x100   :  { %v250_v11 = vadd.f32 %v249_v9, %v1323_v56  ;;  %v251_v12 = vpop.f32.mrb[5].mxu0  ;;  %617 = vst [vmem:[%s1565_s3 + $0x10] sm:$0xff] %v351_v7  ;;  %v163_v9 = vrot.slane %v1319_v54, %v162_v0 }
 0x101   :  { %v252_v13 = vadd.f32 %v251_v12, %v1326_v57  ;;  %618 = vst [vmem:[%s1565_s3 + $0x18] sm:$0xff] %v353_v10  ;;  %v356_v14 = vpop.f32.mrb[2].mxu1 }
 0x102   :  { %629 = vst [vmem:[%s1565_s3 + $0x70] sm:$0xff] %v250_v11  ;;  %v357_v15 = vadd.f32 %v356_v14, %v1336_v63  ;;  %v358_v16 = vpop.f32.mrb[3].mxu1 }
 0x103   :  { %630 = vst [vmem:[%s1565_s3 + $0x78] sm:$0xff] %v252_v13  ;;  %v255_v17 = vpop.f32.mrb[6].mxu0  ;;  %v359_v18 = vadd.f32 %v358_v16, %v1342_v1 }
 0x104   :  { %v256_v19 = vadd.f32 %v255_v17, %v1323_v56  ;;  %v257_v20 = vpop.f32.mrb[7].mxu0  ;;  %624 = vst [vmem:[%s1565_s3 + $0x48] sm:$0xff] %v357_v15 }
 0x105   :  { %v258_v21 = vadd.f32 %v257_v20, %v1326_v57  ;;  %625 = vst [vmem:[%s1565_s3 + $0x50] sm:$0xff] %v359_v18  ;;  %v362_v22 = vpop.f32.mrb[4].mxu1 }
 0x106   :  { %636 = vst [vmem:[%s1565_s3 + $0xa8] sm:$0xff] %v256_v19  ;;  %v363_v23 = vadd.f32 %v362_v22, %v1336_v63  ;;  %v364_v24 = vpop.f32.mrb[5].mxu1 }
 0x107   :  { %637 = vst [vmem:[%s1565_s3 + $0xb0] sm:$0xff] %v258_v21  ;;  %v261_v25 = vpop.f32.mrb[8].mxu0  ;;  %v365_v26 = vadd.f32 %v364_v24, %v1342_v1 }
 0x108   :  { %v262_v27 = vadd.f32 %v261_v25, %v1323_v56  ;;  %v263_v28 = vpop.f32.mrb[9].mxu0  ;;  %631 = vst [vmem:[%s1565_s3 + $0x80] sm:$0xff] %v363_v23 }
 0x109   :  { %v264_v29 = vadd.f32 %v263_v28, %v1326_v57  ;;  %632 = vst [vmem:[%s1565_s3 + $0x88] sm:$0xff] %v365_v26  ;;  %v368_v30 = vpop.f32.mrb[6].mxu1 }
 0x10a   :  { %643 = vst [vmem:[%s1565_s3 + $0xe0] sm:$0xff] %v262_v27  ;;  %v369_v31 = vadd.f32 %v368_v30, %v1336_v63  ;;  %v370_v32 = vpop.f32.mrb[7].mxu1 }
 0x10b   :  { %644 = vst [vmem:[%s1565_s3 + $0xe8] sm:$0xff] %v264_v29  ;;  %v267_v33 = vpop.f32.mrb[10].mxu0  ;;  %v371_v34 = vadd.f32 %v370_v32, %v1342_v1 }
 0x10c   :  { %v268_v35 = vadd.f32 %v267_v33, %v1323_v56  ;;  %v269_v36 = vpop.f32.mrb[11].mxu0  ;;  %638 = vst [vmem:[%s1565_s3 + $0xb8] sm:$0xff] %v369_v31 }
 0x10d   :  { %v270_v37 = vadd.f32 %v269_v36, %v1326_v57  ;;  %639 = vst [vmem:[%s1565_s3 + $0xc0] sm:$0xff] %v371_v34  ;;  %v374_v38 = vpop.f32.mrb[8].mxu1 }
 0x10e   :  { %650 = vst [vmem:[%s1565_s3 + $0x118] sm:$0xff] %v268_v35  ;;  %v375_v39 = vadd.f32 %v374_v38, %v1336_v63  ;;  %v376_v41 = vpop.f32.mrb[9].mxu1 }
 0x10f   :  { %651 = vst [vmem:[%s1565_s3 + $0x120] sm:$0xff] %v270_v37  ;;  %v273_v42 = vpop.f32.mrb[12].mxu0  ;;  %v377_v43 = vadd.f32 %v376_v41, %v1342_v1 }
 0x110   :  { %v274_v44 = vadd.f32 %v273_v42, %v1323_v56  ;;  %v275_v45 = vpop.f32.mrb[13].mxu0  ;;  %645 = vst [vmem:[%s1565_s3 + $0xf0] sm:$0xff] %v375_v39 }
 0x111   :  { %v276_v47 = vadd.f32 %v275_v45, %v1326_v57  ;;  %646 = vst [vmem:[%s1565_s3 + $0xf8] sm:$0xff] %v377_v43  ;;  %v380_v49 = vpop.f32.mrb[10].mxu1 }
 0x112   :  { %657 = vst [vmem:[%s1565_s3 + $0x150] sm:$0xff] %v274_v44  ;;  %v381_v50 = vadd.f32 %v380_v49, %v1336_v63  ;;  %v382_v52 = vpop.f32.mrb[11].mxu1 }
 0x113   :  { %658 = vst [vmem:[%s1565_s3 + $0x158] sm:$0xff] %v276_v47  ;;  %v279_v40 = vpop.f32.mrb[14].mxu0  ;;  %v383_v53 = vadd.f32 %v382_v52, %v1342_v1 }
 0x114   :  { %v280_v55 = vadd.f32 %v279_v40, %v1323_v56  ;;  %v281_v3 = vpop.f32.mrb[15].mxu0  ;;  %652 = vst [vmem:[%s1565_s3 + $0x128] sm:$0xff] %v381_v50 }
 0x115   :  { %v282_v59 = vadd.f32 %v281_v3, %v1326_v57  ;;  %653 = vst [vmem:[%s1565_s3 + $0x130] sm:$0xff] %v383_v53  ;;  %v386_v61 = vpop.f32.mrb[12].mxu1 }
 0x116   :  { %664 = vst [vmem:[%s1565_s3 + $0x188] sm:$0xff] %v280_v55  ;;  %v387_v56 = vadd.f32 %v386_v61, %v1336_v63  ;;  %v388_v62 = vpop.f32.mrb[13].mxu1 }
 0x117   :  { %665 = vst [vmem:[%s1565_s3 + $0x190] sm:$0xff] %v282_v59  ;;  %v463_v57 = vpop.f32.mrb[16].mxu0  ;;  %v389_v2 = vadd.f32 %v388_v62, %v1342_v1 }
 0x118   :  { %v464_v4 = vadd.f32 %v463_v57, %v1438_v58  ;;  %v465_v5 = vpop.f32.mrb[17].mxu0  ;;  %659 = vst [vmem:[%s1565_s3 + $0x160] sm:$0xff] %v387_v56 }
 0x119   :  { %v466_v6 = vadd.f32 %v465_v5, %v1445_v60  ;;  %660 = vst [vmem:[%s1565_s3 + $0x168] sm:$0xff] %v389_v2  ;;  %v392_v51 = vpop.f32.mrb[14].mxu1 }
 0x11a   :  { %619 = vst [vmem:[%s1565_s3 + $0x20] sm:$0xff] %v464_v4  ;;  %v393_v7 = vadd.f32 %v392_v51, %v1336_v63  ;;  %v394_v8 = vpop.f32.mrb[15].mxu1 }
 0x11b   :  { %620 = vst [vmem:[%s1565_s3 + $0x28] sm:$0xff] %v466_v6  ;;  %v469_v10 = vpop.f32.mrb[18].mxu0  ;;  %v395_v11 = vadd.f32 %v394_v8, %v1342_v1 }
 0x11c   :  { %v470_v12 = vadd.f32 %v469_v10, %v1438_v58  ;;  %v471_v13 = vpop.f32.mrb[19].mxu0  ;;  %666 = vst [vmem:[%s1565_s3 + $0x198] sm:$0xff] %v393_v7 }
 0x11d   :  { %v472_v14 = vadd.f32 %v471_v13, %v1445_v60  ;;  %667 = vst [vmem:[%s1565_s3 + $0x1a0] sm:$0xff] %v395_v11  ;;  %v733_v54 = vpop.f32.mrb[16].mxu1 }
 0x11e   :  { %626 = vst [vmem:[%s1565_s3 + $0x58] sm:$0xff] %v470_v12  ;;  %v582_v63 = vadd.f32 %v733_v54, %v163_v9  ;;  %v576_v1 = vpop.f32.mrb[17].mxu1 }
 0x11f   :  { %627 = vst [vmem:[%s1565_s3 + $0x60] sm:$0xff] %v472_v14  ;;  %v475_v15 = vpop.f32.mrb[20].mxu0  ;;  %v577_v16 = vadd.f32 %v576_v1, %v163_v9 }
 0x120   :  { %v476_v17 = vadd.f32 %v475_v15, %v1438_v58  ;;  %v477_v18 = vpop.f32.mrb[21].mxu0  ;;  %628 = vst [vmem:[%s1565_s3 + $0x68] sm:$0xff] %v582_v63 }
 0x121   :  { %v478_v19 = vadd.f32 %v477_v18, %v1445_v60  ;;  %621 = vst [vmem:[%s1565_s3 + $0x30] sm:$0xff] %v577_v16  ;;  %v736_v20 = vpop.f32.mrb[18].mxu1 }
 0x122   :  { %633 = vst [vmem:[%s1565_s3 + $0x90] sm:$0xff] %v476_v17  ;;  %v592_v21 = vadd.f32 %v736_v20, %v163_v9  ;;  %v586_v22 = vpop.f32.mrb[19].mxu1 }
 0x123   :  { %634 = vst [vmem:[%s1565_s3 + $0x98] sm:$0xff] %v478_v19  ;;  %v481_v23 = vpop.f32.mrb[22].mxu0  ;;  %v587_v24 = vadd.f32 %v586_v22, %v163_v9 }
 0x124   :  { %v482_v25 = vadd.f32 %v481_v23, %v1438_v58  ;;  %v483_v26 = vpop.f32.mrb[23].mxu0  ;;  %642 = vst [vmem:[%s1565_s3 + $0xd8] sm:$0xff] %v592_v21 }
 0x125   :  { %v484_v27 = vadd.f32 %v483_v26, %v1445_v60  ;;  %635 = vst [vmem:[%s1565_s3 + $0xa0] sm:$0xff] %v587_v24  ;;  %v739_v28 = vpop.f32.mrb[20].mxu1 }
 0x126   :  { %640 = vst [vmem:[%s1565_s3 + $0xc8] sm:$0xff] %v482_v25  ;;  %v602_v29 = vadd.f32 %v739_v28, %v163_v9  ;;  %v596_v30 = vpop.f32.mrb[21].mxu1 }
 0x127   :  { %641 = vst [vmem:[%s1565_s3 + $0xd0] sm:$0xff] %v484_v27  ;;  %v487_v31 = vpop.f32.mrb[24].mxu0  ;;  %v597_v32 = vadd.f32 %v596_v30, %v163_v9 }
 0x128   :  { %v488_v33 = vadd.f32 %v487_v31, %v1438_v58  ;;  %v489_v34 = vpop.f32.mrb[25].mxu0  ;;  %656 = vst [vmem:[%s1565_s3 + $0x148] sm:$0xff] %v602_v29 }
 0x129   :  { %v490_v35 = vadd.f32 %v489_v34, %v1445_v60  ;;  %649 = vst [vmem:[%s1565_s3 + $0x110] sm:$0xff] %v597_v32  ;;  %v742_v36 = vpop.f32.mrb[22].mxu1 }
 0x12a   :  { %647 = vst [vmem:[%s1565_s3 + $0x100] sm:$0xff] %v488_v33  ;;  %v612_v37 = vadd.f32 %v742_v36, %v163_v9  ;;  %v606_v38 = vpop.f32.mrb[23].mxu1 }
 0x12b   :  { %648 = vst [vmem:[%s1565_s3 + $0x108] sm:$0xff] %v490_v35  ;;  %v493_v39 = vpop.f32.mrb[26].mxu0  ;;  %v607_v41 = vadd.f32 %v606_v38, %v163_v9 }
 0x12c   :  { %v494_v42 = vadd.f32 %v493_v39, %v1438_v58  ;;  %v495_v43 = vpop.f32.mrb[27].mxu0  ;;  %670 = vst [vmem:[%s1565_s3 + $0x1b8] sm:$0xff] %v612_v37 }
 0x12d   :  { %v496_v44 = vadd.f32 %v495_v43, %v1445_v60  ;;  %663 = vst [vmem:[%s1565_s3 + $0x180] sm:$0xff] %v607_v41 }
 0x12e   :  { %654 = vst [vmem:[%s1565_s3 + $0x138] sm:$0xff] %v494_v42 }
 0x12f   :  { %655 = vst [vmem:[%s1565_s3 + $0x140] sm:$0xff] %v496_v44  ;;  %v499_v45 = vpop.f32.mrb[28].mxu0 }
 0x130   :  { %v500_v46 = vadd.f32 %v499_v45, %v1438_v58  ;;  %v501_v47 = vpop.f32.mrb[29].mxu0 }
 0x131   :  { %v502_v48 = vadd.f32 %v501_v47, %v1445_v60 }
 0x132   :  { %661 = vst [vmem:[%s1565_s3 + $0x170] sm:$0xff] %v500_v46 }
 0x133   :  { %662 = vst [vmem:[%s1565_s3 + $0x178] sm:$0xff] %v502_v48  ;;  %v505_v49 = vpop.f32.mrb[30].mxu0 }
 0x134   :  { %v506_v50 = vadd.f32 %v505_v49, %v1438_v58  ;;  %v507_v52 = vpop.f32.mrb[31].mxu0 }
 0x135   :  { %v508_v40 = vadd.f32 %v507_v52, %v1445_v60 }
 0x136   :  { %668 = vst [vmem:[%s1565_s3 + $0x1a8] sm:$0xff] %v506_v50 }
 0x137   :  { %669 = vst [vmem:[%s1565_s3 + $0x1b0] sm:$0xff] %v508_v40 }

// kernel: visnet_block_forward.16
= control target key start
LH: loop header
LB: loop body
LE: loop exit
PB: predicated region body
PF: predicated region fallthrough
CT: control target
= control target key end

     0   :  { %v377_v3 = vmov 0.0|0.0   ;;  %v378_v57 = vmov 0.0   ;;  %vm379_vm0 = vmmov 0   ;;  %s588_s0 = inlined_call_operand.vmem [shape: f32[8,128], index: 0, kind: input, shape index: {}]   ;;  %s589_s3 = inlined_call_operand.vmem [shape: f32[128,384], index: 3, kind: input, shape index: {}]   ;;  %s590_s1 = inlined_call_operand.vmem [shape: f32[1,128], index: 1, kind: input, shape index: {}]   ;;  %s591_s2 = inlined_call_operand.vmem [shape: f32[1,128], index: 2, kind: input, shape index: {}]   ;;  %s592_s4 = inlined_call_operand.vmem [shape: f32[1,384], index: 4, kind: input, shape index: {}]   ;;  %s593_s5 = inlined_call_operand.vmem [shape: f32[8,384], index: 5, kind: output, shape index: {}]  }
   0x1   :  { %v20_v0 = vld [vmem:[%s588_s0] sm:$0xff]  ;;  %v50_v1 = vld [vmem:[%s589_s3 + $0x8] sm:$0xff]  ;;  %348 = vmatprep.subr.bf16.mxu1 %v377_v3  ;;  %v52_v6 = vld [vmem:[%s589_s3 + $0x18] sm:$0xff]  ;;  %178 = vmatprep.mubr.f32.mxu0 %v378_v57 }
   0x2   :  { %21 = vadd.xlane.f32.xlu0 %v20_v0  ;;  %v53_v2 = vld [vmem:[%s589_s3 + $0x20] sm:$0xff]  ;;  %v51_v7 = vld [vmem:[%s589_s3 + $0x10] sm:$0xff]  ;;  %v54_v8 = vld [vmem:[%s589_s3 + $0x28] sm:$0xff]  ;;  %313 = vmatprep.mubr.msk.f32.mxu1 %vm379_vm0, %v378_v57 }
   0x3   :  { %v49_v4 = vld [vmem:[%s589_s3] sm:$0xff]  ;;  %v316_v5 = vpack.c.bf16 %v53_v2, %v50_v1  ;;  %v349_v10 = vpack.c.bf16 %v54_v8, %v51_v7  ;;  %v56_v11 = vld [vmem:[%s589_s3 + $0x38] sm:$0xff]  ;;  %v59_v12 = vld [vmem:[%s589_s3 + $0x50] sm:$0xff] }
   0x4   :  { %v318_v9 = vpack.c.bf16 %v52_v6, %v49_v4  ;;  %v55_v13 = vld [vmem:[%s589_s3 + $0x30] sm:$0xff]  ;;  %v320_v14 = vpack.c.bf16 %v59_v12, %v56_v11  ;;  %v58_v15 = vld [vmem:[%s589_s3 + $0x48] sm:$0xff]  ;;  %v57_v16 = vld [vmem:[%s589_s3 + $0x40] sm:$0xff] }
   0x5   :  { %317 = vmatprep.subr.bf16.mxu0 %v316_v5  ;;  %v60_v17 = vld [vmem:[%s589_s3 + $0x58] sm:$0xff]  ;;  %350 = vmatpush3.bf16.msra.mxu1 %v349_v10  ;;  %v322_v18 = vpack.c.bf16 %v58_v15, %v55_v13  ;;  %v62_v20 = vld [vmem:[%s589_s3 + $0x68] sm:$0xff]  ;;  %v65_v21 = vld [vmem:[%s589_s3 + $0x80] sm:$0xff] }
   0x6   :  { %319 = vmatpush1.bf16.msra.mxu0 %v318_v9  ;;  %v352_v19 = vpack.c.bf16 %v60_v17, %v57_v16  ;;  %v61_v22 = vld [vmem:[%s589_s3 + $0x60] sm:$0xff]  ;;  %351 = vmatprep.subr.bf16.mxu1 %v377_v3  ;;  %v324_v23 = vpack.c.bf16 %v65_v21, %v62_v20  ;;  %v64_v24 = vld [vmem:[%s589_s3 + $0x78] sm:$0xff]  ;;  %v63_v25 = vld [vmem:[%s589_s3 + $0x70] sm:$0xff] }
   0x7   :  { %321 = vmatprep.subr.bf16.mxu0 %v320_v14  ;;  %v66_v26 = vld [vmem:[%s589_s3 + $0x88] sm:$0xff]  ;;  %v326_v27 = vpack.c.bf16 %v64_v24, %v61_v22  ;;  %v68_v33 = vld [vmem:[%s589_s3 + $0x98] sm:$0xff]  ;;  %v71_v34 = vld [vmem:[%s589_s3 + $0xb0] sm:$0xff] }
   0x8   :  { %v355_v28 = vpack.c.bf16 %v66_v26, %v63_v25  ;;  %v328_v35 = vpack.c.bf16 %v71_v34, %v68_v33  ;;  %v67_v36 = vld [vmem:[%s589_s3 + $0x90] sm:$0xff]  ;;  %v70_v37 = vld [vmem:[%s589_s3 + $0xa8] sm:$0xff]  ;;  %v69_v38 = vld [vmem:[%s589_s3 + $0xa0] sm:$0xff] }
   0x9   :  { %353 = vmatpush3.bf16.msra.mxu1 %v352_v19  ;;  %v330_v39 = vpack.c.bf16 %v70_v37, %v67_v36  ;;  %v72_v40 = vld [vmem:[%s589_s3 + $0xb8] sm:$0xff]  ;;  %v74_v42 = vld [vmem:[%s589_s3 + $0xc8] sm:$0xff]  ;;  %v77_v43 = vld [vmem:[%s589_s3 + $0xe0] sm:$0xff] }
   0xa   :  { %323 = vmatpush1.bf16.msra.mxu0 %v322_v18  ;;  %354 = vmatprep.subr.bf16.mxu1 %v377_v3  ;;  %v358_v41 = vpack.c.bf16 %v72_v40, %v69_v38  ;;  %v332_v44 = vpack.c.bf16 %v77_v43, %v74_v42  ;;  %v73_v45 = vld [vmem:[%s589_s3 + $0xc0] sm:$0xff]  ;;  %v76_v46 = vld [vmem:[%s589_s3 + $0xd8] sm:$0xff]  ;;  %v75_v47 = vld [vmem:[%s589_s3 + $0xd0] sm:$0xff] }
   0xb   :  { %325 = vmatprep.subr.bf16.mxu0 %v324_v23  ;;  %v334_v48 = vpack.c.bf16 %v76_v46, %v73_v45  ;;  %v78_v49 = vld [vmem:[%s589_s3 + $0xe8] sm:$0xff]  ;;  %v80_v50 = vld [vmem:[%s589_s3 + $0xf8] sm:$0xff]  ;;  %v83_v51 = vld [vmem:[%s589_s3 + $0x110] sm:$0xff] }
   0xc   :  { %v361_v52 = vpack.c.bf16 %v78_v49, %v75_v47  ;;  %v336_v53 = vpack.c.bf16 %v83_v51, %v80_v50  ;;  %v79_v54 = vld [vmem:[%s589_s3 + $0xf0] sm:$0xff]  ;;  %v82_v55 = vld [vmem:[%s589_s3 + $0x108] sm:$0xff]  ;;  %v81_v56 = vld [vmem:[%s589_s3 + $0x100] sm:$0xff] }
   0xd   :  { %356 = vmatpush3.bf16.msra.mxu1 %v355_v28  ;;  %v338_v58 = vpack.c.bf16 %v82_v55, %v79_v54  ;;  %v84_v59 = vld [vmem:[%s589_s3 + $0x118] sm:$0xff]  ;;  %v86_v60 = vld [vmem:[%s589_s3 + $0x128] sm:$0xff]  ;;  %v89_v61 = vld [vmem:[%s589_s3 + $0x140] sm:$0xff] }
   0xe   :  { %327 = vmatpush1.bf16.msra.mxu0 %v326_v27  ;;  %357 = vmatprep.subr.bf16.mxu1 %v377_v3  ;;  %v364_v62 = vpack.c.bf16 %v84_v59, %v81_v56  ;;  %v340_v63 = vpack.c.bf16 %v89_v61, %v86_v60  ;;  %v88_v1 = vld [vmem:[%s589_s3 + $0x138] sm:$0xff]  ;;  %v87_v2 = vld [vmem:[%s589_s3 + $0x130] sm:$0xff]  ;;  %v90_v4 = vld [vmem:[%s589_s3 + $0x148] sm:$0xff] }
   0xf   :  { %329 = vmatprep.subr.bf16.mxu0 %v328_v35  ;;  %v92_v5 = vld [vmem:[%s589_s3 + $0x158] sm:$0xff]  ;;  %v95_v6 = vld [vmem:[%s589_s3 + $0x170] sm:$0xff]  ;;  %v367_v8 = vpack.c.bf16 %v90_v4, %v87_v2  ;;  %v94_v11 = vld [vmem:[%s589_s3 + $0x168] sm:$0xff] }
  0x10   :  { %v344_v9 = vpack.c.bf16 %v95_v6, %v92_v5  ;;  %v91_v10 = vld [vmem:[%s589_s3 + $0x150] sm:$0xff]  ;;  %v93_v12 = vld [vmem:[%s589_s3 + $0x160] sm:$0xff]  ;;  %v96_v13 = vld [vmem:[%s589_s3 + $0x178] sm:$0xff] }
  0x11   :  { %359 = vmatpush3.bf16.msra.mxu1 %v358_v41  ;;  %v346_v14 = vpack.c.bf16 %v94_v11, %v91_v10  ;;  %v370_v15 = vpack.c.bf16 %v96_v13, %v93_v12  ;;  %v262_v20 = vld [vmem:[%s590_s1] ss:$0 sm:$0xff] }
  0x12   :  { %331 = vmatpush1.bf16.msra.mxu0 %v330_v39  ;;  %360 = vmatprep.subr.bf16.mxu1 %v377_v3  ;;  %v263_v22 = vld [vmem:[%s591_s2] ss:$0 sm:$0xff] }
  0x13   :  { %333 = vmatprep.subr.bf16.mxu0 %v332_v44  ;;  %v97_v28 = vld [vmem:[%s592_s4] sm:$0x7] }
  0x15   :  { %362 = vmatpush3.bf16.msra.mxu1 %v361_v52 }
  0x16   :  { %335 = vmatpush1.bf16.msra.mxu0 %v334_v48  ;;  %363 = vmatprep.subr.bf16.mxu1 %v377_v3 }
  0x17   :  { %337 = vmatprep.subr.bf16.mxu0 %v336_v53 }
  0x19   :  { %365 = vmatpush3.bf16.msra.mxu1 %v364_v62 }
  0x1a   :  { %339 = vmatpush1.bf16.msra.mxu0 %v338_v58  ;;  %366 = vmatprep.subr.bf16.mxu1 %v377_v3 }
  0x1b   :  { %341 = vmatprep.subr.bf16.mxu0 %v340_v63 }
  0x1d   :  { %368 = vmatpush3.bf16.msra.mxu1 %v367_v8 }
  0x1e   :  { %369 = vmatprep.subr.bf16.mxu1 %v377_v3  ;;  %v99_v3 = vlaneseq }
  0x20   :  { %v100_v25 = vshrl.u32 %v99_v3, 7 }
  0x21   :  { %371 = vmatpush3.bf16.msra.mxu1 %v370_v15 }
  0x22   :  { %v101_v26 = vsub.s32 0, %v100_v25  ;;  %v109_v27 = vsub.s32 2, %v100_v25 }
  0x8f   :  { %v22_v29 = vpop.xlane.xlu0 %21 }
  0x90   :  { %v24_v30 = vmul.f32 0.0078125, %v22_v29  ;;  %v105_v29 = vsub.s32 1, %v100_v25 }
  0x92   :  { %v471_v31 = vsub.f32 %v20_v0, %v24_v30  ;;  %v85_v0 = vld [vmem:[%s589_s3 + $0x120] sm:$0xff]  ;;  %v102_v30 = vrot.slane %v97_v28, %v101_v26 }
  0x93   :  { %v342_v7 = vpack.c.bf16 %v88_v1, %v85_v0 }
  0x94   :  { %v26_v32 = vmul.f32 %v471_v31, %v471_v31 }
  0x95   :  { %343 = vmatpush1.bf16.msra.mxu0 %v342_v7 }
  0x96   :  { %27 = vadd.xlane.f32.xlu0 %v26_v32  ;;  %345 = vmatprep.subr.bf16.mxu0 %v344_v9  ;;  %v110_v32 = vrot.slane %v97_v28, %v109_v27 }
  0x99   :  { %347 = vmatpush1.bf16.msra.mxu0 %v346_v14 }
 0x123   :  { %v28_v16 = vpop.xlane.xlu0 %27 }
 0x124   :  { %v29_v17 = vmul.f32 0.0078125, %v28_v16 }
 0x126   :  { %v30_v18 = vadd.f32 1e-05, %v29_v17 }
 0x128   :  { %375 = vrsqrt.f32 %v30_v18 }
 0x132   :  { %v376_v19 = vpop.eup %375 }
 0x133   :  { %v32_v21 = vmul.f32 %v376_v19, %v471_v31  ;;  %v106_v31 = vrot.slane %v97_v28, %v105_v29 }
 0x135   :  { %v40_v23 = vmul.f32 %v262_v20, %v32_v21 }
 0x137   :  { %v48_v24 = vadd.f32 %v263_v22, %v40_v23 }
 0x139   :  { %179 = vmatmul.mubr.f32.vlgmr.msra.gmra.mrb[0].mxu0 %v48_v24  ;;  %314 = vmatmul.mubr.f32.vlgmr.msra.gmra.mrb[0].mxu1 %v48_v24 }
 0x20c   :  { %v180_v33 = vpop.f32.mrb[0].mxu0  ;;  %v251_v34 = vpop.f32.mrb[0].mxu1 }
 0x20d   :  { %v181_v35 = vadd.f32 %v180_v33, %v102_v30  ;;  %v252_v36 = vadd.f32 %v251_v34, %v110_v32  ;;  %v182_v37 = vpop.f32.mrb[1].mxu0  ;;  %v315_v38 = vpop.f32.mrb[1].mxu1 }
 0x20e   :  { %v183_v39 = vadd.f32 %v182_v37, %v106_v31 }
 0x20f   :  { %255 = vst [vmem:[%s593_s5] sm:$0xff] %v181_v35  ;;  %257 = vst [vmem:[%s593_s5 + $0x10] sm:$0xff] %v252_v36 }
 0x210   :  { %256 = vst [vmem:[%s593_s5 + $0x8] sm:$0xff] %v183_v39 }

// kernel: visnet_block_forward.20
= control target key start
LH: loop header
LB: loop body
LE: loop exit
PB: predicated region body
PF: predicated region fallthrough
CT: control target
= control target key end

     0   :  { %v27_v0 = vlaneseq  ;;  %v2448_v4 = vmov 0.0   ;;  %vm2236_vm0 = vcmask 1041409   ;;  %vm2238_vm1 = vcmask 1042434   ;;  %s4455_s4 = inlined_call_operand.vmem [shape: f32[128,256], index: 4, kind: input, shape index: {}]   ;;  %s4456_s2 = inlined_call_operand.vmem [shape: f32[32,8], index: 2, kind: input, shape index: {}]   ;;  %s4457_s3 = inlined_call_operand.vmem [shape: f32[32,128], index: 3, kind: input, shape index: {}]   ;;  %s4458_s0 = inlined_call_operand.vmem [shape: f32[32,8,512], index: 0, kind: input, shape index: {}]   ;;  %s4459_s1 = inlined_call_operand.vmem [shape: f32[32,8,128], index: 1, kind: input, shape index: {}]   ;;  %s4460_s5 = inlined_call_operand.vmem [shape: f32[1,256], index: 5, kind: input, shape index: {}]   ;;  %s4461_s6 = inlined_call_operand.vmem [shape: f32[32,128], index: 6, kind: output, shape index: {}]  }
   0x1   :  { %v2016_v1 = vld [vmem:[%s4455_s4 + $0x8] sm:$0xff]  ;;  %v2018_v2 = vld [vmem:[%s4455_s4 + $0x18] sm:$0xff]  ;;  %v2015_v3 = vld [vmem:[%s4455_s4] sm:$0xff]  ;;  %2123 = vmatprep.mubr.f32.mxu0 %v2448_v4  ;;  %2135 = vmatprep.mubr.f32.mxu1 %v2448_v4  ;;  %vm2240_vm2 = vcmask 1043459   ;;  %vm2242_vm3 = vcmask 1044484   ;;  %vm2244_vm4 = vcmask 1045509  }
   0x2   :  { %v2367_v5 = vpack.c.bf16 %v2018_v2, %v2016_v1  ;;  %v2017_v6 = vld [vmem:[%s4455_s4 + $0x10] sm:$0xff]  ;;  %v2020_v7 = vld [vmem:[%s4455_s4 + $0x28] sm:$0xff]  ;;  %v2022_v8 = vld [vmem:[%s4455_s4 + $0x38] sm:$0xff]  ;;  %v2504_v9 = vshrl.u32 %v27_v0, 7  ;;  %vm2246_vm5 = vcmask 1046534   ;;  %vm2248_vm6 = vcmask 1047559  }
   0x3   :  { %v2369_v10 = vpack.c.bf16 %v2017_v6, %v2015_v3  ;;  %v2371_v11 = vpack.c.bf16 %v2022_v8, %v2020_v7  ;;  %v2509_v12 = vld [vmem:[%s4456_s2 + $0x8] sm:$0xff]  ;;  %v2514_v13 = vld [vmem:[%s4456_s2] sm:$0xff]  ;;  %v2021_v16 = vld [vmem:[%s4455_s4 + $0x30] sm:$0xff] }
   0x4   :  { %v2019_v14 = vld [vmem:[%s4455_s4 + $0x20] sm:$0xff]  ;;  %2368 = vmatprep.subr.bf16.mxu0 %v2367_v5  ;;  %2399 = vmatprep.subr.bf16.mxu1 %v2367_v5  ;;  %v2520_v15 = vsub.s32 0, %v2504_v9  ;;  %v2024_v17 = vld [vmem:[%s4455_s4 + $0x48] sm:$0xff]  ;;  %v2026_v18 = vld [vmem:[%s4455_s4 + $0x58] sm:$0xff]  ;;  %v2532_v19 = vsub.s32 1, %v2504_v9  ;;  %v43_v48 = vsub.s32 2, %v2504_v9 }
   0x5   :  { %2370 = vmatpush1.bf16.msra.mxu0 %v2369_v10  ;;  %2407 = vmatpush1.bf16.msra.mxu1 %v2369_v10  ;;  %v2373_v20 = vpack.c.bf16 %v2021_v16, %v2019_v14  ;;  %v2375_v23 = vpack.c.bf16 %v2026_v18, %v2024_v17  ;;  %v2023_v24 = vld [vmem:[%s4455_s4 + $0x40] sm:$0xff]  ;;  %v2025_v25 = vld [vmem:[%s4455_s4 + $0x50] sm:$0xff]  ;;  %v2028_v26 = vld [vmem:[%s4455_s4 + $0x68] sm:$0xff]  ;;  %v50_v1 = vsub.s32 3, %v2504_v9  ;;  %v57_v18 = vsub.s32 4, %v2504_v9 }
   0x6   :  { %4514 = vst [vmem:[#allocation2_spill] sm:$0xff] %v2520_v15  ;;  %4515 = vst [vmem:[#allocation3_spill] sm:$0xff] %v2532_v19  ;;  %2372 = vmatprep.subr.bf16.mxu0 %v2371_v11  ;;  %2400 = vmatprep.subr.bf16.mxu1 %v2371_v11  ;;  %v86_v21 = vrot.slane %v2509_v12, %v2520_v15  ;;  %v30_v22 = vrot.slane %v2514_v13, %v2520_v15  ;;  %v2030_v27 = vld [vmem:[%s4455_s4 + $0x78] sm:$0xff]  ;;  %v2557_v31 = vld [vmem:[%s4456_s2 + $0x10] sm:$0xff] }
   0x7   :  { %v93_v28 = vrot.slane %v2509_v12, %v2532_v19  ;;  %v37_v29 = vrot.slane %v2514_v13, %v2532_v19  ;;  %v2377_v30 = vpack.c.bf16 %v2025_v25, %v2023_v24  ;;  %v2379_v32 = vpack.c.bf16 %v2030_v27, %v2028_v26  ;;  %v2027_v33 = vld [vmem:[%s4455_s4 + $0x60] sm:$0xff]  ;;  %v2029_v34 = vld [vmem:[%s4455_s4 + $0x70] sm:$0xff]  ;;  %v2032_v35 = vld [vmem:[%s4455_s4 + $0x88] sm:$0xff] }
   0x8   :  { %88 = vbcast.lane.b32.xlu1 %v86_v21, 256  ;;  %32 = vbcast.lane.b32.xlu0 %v30_v22, 256  ;;  %v2034_v36 = vld [vmem:[%s4455_s4 + $0x98] sm:$0xff]  ;;  %v149_v37 = vrot.slane %v2557_v31, %v2532_v19  ;;  %v142_v38 = vrot.slane %v2557_v31, %v2520_v15  ;;  %v2381_v39 = vpack.c.bf16 %v2029_v34, %v2027_v33  ;;  %v2031_v42 = vld [vmem:[%s4455_s4 + $0x80] sm:$0xff]  ;;  %v2033_v43 = vld [vmem:[%s4455_s4 + $0x90] sm:$0xff]  ;;  %v64_v26 = vsub.s32 5, %v2504_v9 }
   0x9   :  { %2374 = vmatpush1.bf16.msra.mxu0 %v2373_v20  ;;  %2408 = vmatpush1.bf16.msra.mxu1 %v2373_v20  ;;  %v2578_v40 = vld [vmem:[%s4456_s2 + $0x18] sm:$0xff]  ;;  %v2383_v41 = vpack.c.bf16 %v2034_v36, %v2032_v35  ;;  %v2036_v44 = vld [vmem:[%s4455_s4 + $0xa8] sm:$0xff]  ;;  %v2385_v49 = vpack.c.bf16 %v2033_v43, %v2031_v42  ;;  %v2035_v51 = vld [vmem:[%s4455_s4 + $0xa0] sm:$0xff]  ;;  %v100_v55 = vrot.slane %v2509_v12, %v43_v48  ;;  %v78_v36 = vsub.s32 7, %v2504_v9 }
   0xa   :  { %2376 = vmatprep.subr.bf16.mxu0 %v2375_v23  ;;  %2401 = vmatprep.subr.bf16.mxu1 %v2375_v23  ;;  %v2038_v45 = vld [vmem:[%s4455_s4 + $0xb8] sm:$0xff]  ;;  %v205_v46 = vrot.slane %v2578_v40, %v2532_v19  ;;  %v198_v47 = vrot.slane %v2578_v40, %v2520_v15  ;;  %v2037_v52 = vld [vmem:[%s4455_s4 + $0xb0] sm:$0xff]  ;;  %v2040_v53 = vld [vmem:[%s4455_s4 + $0xc8] sm:$0xff]  ;;  %v44_v56 = vrot.slane %v2514_v13, %v43_v48 }
   0xb   :  { %v2387_v50 = vpack.c.bf16 %v2038_v45, %v2036_v44  ;;  %v2042_v54 = vld [vmem:[%s4455_s4 + $0xd8] sm:$0xff]  ;;  %v2389_v57 = vpack.c.bf16 %v2037_v52, %v2035_v51  ;;  %v2039_v59 = vld [vmem:[%s4455_s4 + $0xc0] sm:$0xff]  ;;  %v2041_v60 = vld [vmem:[%s4455_s4 + $0xd0] sm:$0xff]  ;;  %v212_v63 = vrot.slane %v2578_v40, %v43_v48  ;;  %v156_v0 = vrot.slane %v2557_v31, %v43_v48 }
   0xc   :  { %95 = vbcast.lane.b32.xlu1 %v93_v28, 256  ;;  %39 = vbcast.lane.b32.xlu0 %v37_v29, 256  ;;  %v2391_v58 = vpack.c.bf16 %v2042_v54, %v2040_v53  ;;  %v2044_v61 = vld [vmem:[%s4455_s4 + $0xe8] sm:$0xff]  ;;  %v2046_v62 = vld [vmem:[%s4455_s4 + $0xf8] sm:$0xff]  ;;  %v2393_v2 = vpack.c.bf16 %v2041_v60, %v2039_v59  ;;  %v2043_v5 = vld [vmem:[%s4455_s4 + $0xe0] sm:$0xff]  ;;  %v107_v7 = vrot.slane %v2509_v12, %v50_v1 }
   0xd   :  { %2378 = vmatpush1.bf16.msra.mxu0 %v2377_v30  ;;  %2409 = vmatpush1.bf16.msra.mxu1 %v2377_v30  ;;  %v2395_v3 = vpack.c.bf16 %v2046_v62, %v2044_v61  ;;  %v2045_v6 = vld [vmem:[%s4455_s4 + $0xf0] sm:$0xff]  ;;  %v51_v8 = vrot.slane %v2514_v13, %v50_v1  ;;  %v2011_v11 = vld [vmem:[%s4457_s3] sm:$0xff]  ;;  %v219_v16 = vrot.slane %v2578_v40, %v50_v1  ;;  %v2012_v20 = vld [vmem:[%s4457_s3 + $0x8] sm:$0xff]  ;;  %v71_v30 = vsub.s32 6, %v2504_v9 }
   0xe   :  { %2380 = vmatprep.subr.bf16.mxu0 %v2379_v32  ;;  %2402 = vmatprep.subr.bf16.mxu1 %v2379_v32  ;;  %v2397_v10 = vpack.c.bf16 %v2045_v6, %v2043_v5  ;;  %v2013_v14 = vld [vmem:[%s4457_s3 + $0x10] sm:$0xff]  ;;  %v163_v17 = vrot.slane %v2557_v31, %v50_v1  ;;  %v2014_v21 = vld [vmem:[%s4457_s3 + $0x18] sm:$0xff]  ;;  %v114_v22 = vrot.slane %v2509_v12, %v57_v18  ;;  %v2673_v42 = vld [vmem:[%s4458_s0 + $0x100] sm:$0xff] }
   0xf   :  { %v58_v23 = vrot.slane %v2514_v13, %v57_v18  ;;  %v226_v24 = vrot.slane %v2578_v40, %v57_v18  ;;  %v170_v25 = vrot.slane %v2557_v31, %v57_v18  ;;  %v121_v27 = vrot.slane %v2509_v12, %v64_v26  ;;  %v2678_v9 = vld [vmem:[%s4458_s0 + $0x110] sm:$0xff]  ;;  %v2714_v48 = vld [vmem:[%s4459_s1] sm:$0xff]  ;;  %v2726_v52 = vld [vmem:[%s4458_s0 + $0x18] sm:$0xff] }
  0x10   :  { %151 = vbcast.lane.b32.xlu1 %v149_v37, 256  ;;  %144 = vbcast.lane.b32.xlu0 %v142_v38, 256  ;;  %v65_v28 = vrot.slane %v2514_v13, %v64_v26  ;;  %v177_v29 = vrot.slane %v2557_v31, %v64_v26  ;;  %v128_v32 = vrot.slane %v2509_v12, %v71_v30 }
  0x11   :  { %2382 = vmatpush1.bf16.msra.mxu0 %v2381_v39  ;;  %2410 = vmatpush1.bf16.msra.mxu1 %v2381_v39  ;;  %v72_v33 = vrot.slane %v2514_v13, %v71_v30  ;;  %v240_v34 = vrot.slane %v2578_v40, %v71_v30  ;;  %v184_v35 = vrot.slane %v2557_v31, %v71_v30  ;;  %v2756_v30 = vld [vmem:[%s4458_s0 + $0x138] sm:$0xff] }
  0x12   :  { %2384 = vmatprep.subr.bf16.mxu0 %v2383_v41  ;;  %2403 = vmatprep.subr.bf16.mxu1 %v2383_v41  ;;  %v135_v37 = vrot.slane %v2509_v12, %v78_v36  ;;  %v79_v38 = vrot.slane %v2514_v13, %v78_v36  ;;  %v191_v39 = vrot.slane %v2557_v31, %v78_v36  ;;  %v2685_v13 = vld [vmem:[%s4458_s0 + $0x118] sm:$0xff]  ;;  %v2690_v31 = vld [vmem:[%s4459_s1 + $0x40] sm:$0xff] }
  0x13   :  { %v247_v41 = vrot.slane %v2578_v40, %v78_v36 }
  0x14   :  { %207 = vbcast.lane.b32.xlu1 %v205_v46, 256  ;;  %200 = vbcast.lane.b32.xlu0 %v198_v47, 256  ;;  %v2704_v46 = vld [vmem:[%s4458_s0] sm:$0xff]  ;;  %v2709_v47 = vld [vmem:[%s4458_s0 + $0x10] sm:$0xff] }
  0x15   :  { %2386 = vmatpush1.bf16.msra.mxu0 %v2385_v49  ;;  %2411 = vmatpush1.bf16.msra.mxu1 %v2385_v49 }
  0x16   :  { %2388 = vmatprep.subr.bf16.mxu0 %v2387_v50  ;;  %2404 = vmatprep.subr.bf16.mxu1 %v2387_v50 }
  0x18   :  { %102 = vbcast.lane.b32.xlu1 %v100_v55, 256  ;;  %46 = vbcast.lane.b32.xlu0 %v44_v56, 256 }
  0x19   :  { %2390 = vmatpush1.bf16.msra.mxu0 %v2389_v57  ;;  %2412 = vmatpush1.bf16.msra.mxu1 %v2389_v57 }
  0x1a   :  { %2392 = vmatprep.subr.bf16.mxu0 %v2391_v58  ;;  %2405 = vmatprep.subr.bf16.mxu1 %v2391_v58 }
  0x1c   :  { %214 = vbcast.lane.b32.xlu1 %v212_v63, 256  ;;  %158 = vbcast.lane.b32.xlu0 %v156_v0, 256 }
  0x1d   :  { %2394 = vmatpush1.bf16.msra.mxu0 %v2393_v2  ;;  %2413 = vmatpush1.bf16.msra.mxu1 %v2393_v2 }
  0x1e   :  { %2396 = vmatprep.subr.bf16.mxu0 %v2395_v3  ;;  %2406 = vmatprep.subr.bf16.mxu1 %v2395_v3 }
  0x20   :  { %109 = vbcast.lane.b32.xlu1 %v107_v7, 256  ;;  %53 = vbcast.lane.b32.xlu0 %v51_v8, 256 }
  0x21   :  { %2398 = vmatpush1.bf16.msra.mxu0 %v2397_v10  ;;  %2414 = vmatpush1.bf16.msra.mxu1 %v2397_v10 }
  0x24   :  { %2124 = vmatmul.mubr.f32.vlgmr.msra.gmra.mrb[0].mxu0 %v2011_v11  ;;  %2136 = vmatmul.mubr.f32.vlgmr.msra.gmra.mrb[0].mxu1 %v2013_v14 }
  0x25   :  { %221 = vbcast.lane.b32.xlu1 %v219_v16, 256  ;;  %165 = vbcast.lane.b32.xlu0 %v163_v17, 256 }
  0x26   :  { %2129 = vmatprep.mubr.f32.mxu0 %v2448_v4  ;;  %2141 = vmatprep.mubr.f32.mxu1 %v2448_v4  ;;  %v233_v4 = vrot.slane %v2578_v40, %v64_v26 }
  0x28   :  { %2130 = vmatmul.mubr.f32.gmra.mrb[2].mxu0 %v2012_v20  ;;  %2142 = vmatmul.mubr.f32.gmra.mrb[2].mxu1 %v2014_v21 }
  0x29   :  { %116 = vbcast.lane.b32.xlu1 %v114_v22, 256  ;;  %60 = vbcast.lane.b32.xlu0 %v58_v23, 256  ;;  %v2739_v22 = vld [vmem:[%s4458_s0 + $0x120] sm:$0xff] }
  0x2d   :  { %228 = vbcast.lane.b32.xlu1 %v226_v24, 256  ;;  %172 = vbcast.lane.b32.xlu0 %v170_v25, 256  ;;  %v2744_v25 = vld [vmem:[%s4458_s0 + $0x130] sm:$0xff] }
  0x31   :  { %123 = vbcast.lane.b32.xlu1 %v121_v27, 256  ;;  %67 = vbcast.lane.b32.xlu0 %v65_v28, 256 }
  0x35   :  { %235 = vbcast.lane.b32.xlu1 %v233_v4, 256  ;;  %179 = vbcast.lane.b32.xlu0 %v177_v29, 256  ;;  %v2751_v29 = vld [vmem:[%s4459_s1 + $0x48] sm:$0xff] }
  0x39   :  { %130 = vbcast.lane.b32.xlu1 %v128_v32, 256  ;;  %74 = vbcast.lane.b32.xlu0 %v72_v33, 256 }
  0x3d   :  { %242 = vbcast.lane.b32.xlu1 %v240_v34, 256  ;;  %186 = vbcast.lane.b32.xlu0 %v184_v35, 256 }
  0x41   :  { %137 = vbcast.lane.b32.xlu1 %v135_v37, 256  ;;  %81 = vbcast.lane.b32.xlu0 %v79_v38, 256 }
  0x45   :  { %193 = vbcast.lane.b32.xlu0 %v191_v39, 256  ;;  %249 = vbcast.lane.b32.xlu1 %v247_v41, 256 }
  0x7a   :  { %v2680_v12 = vpop.permute.xlu1 %88  ;;  %v2699_v45 = vpop.permute.xlu0 %32 }
  0x7b   :  { %v355_v40 = vmul.f32 %v2673_v42, %v2680_v12  ;;  %v2695_v43 = vsub.f32 0.0, %v2680_v12  ;;  %v1219_v44 = vmul.f32 %v2678_v9, %v2680_v12  ;;  %v2717_v49 = vsub.f32 0.0, %v2699_v45 }
  0x7c   :  { %v347_v53 = vmul.f32 %v2704_v46, %v2699_v45  ;;  %v1211_v55 = vmul.f32 %v2709_v47, %v2699_v45 }
  0x7d   :  { %v707_v50 = vmul.f32 %v2695_v43, %v2690_v31  ;;  %v1507_v51 = vmul.f32 %v2695_v43, %v2685_v13  ;;  %v699_v54 = vmul.f32 %v2717_v49, %v2714_v48  ;;  %v427_v56 = vrot.slane %v355_v40, 4 }
  0x7e   :  { %v1291_v57 = vrot.slane %v1219_v44, 4  ;;  %v1499_v60 = vmul.f32 %v2717_v49, %v2726_v52  ;;  %v379_v61 = vrot.slane %v347_v53, 4  ;;  %v1243_v63 = vrot.slane %v1211_v55, 4  ;;  %v2746_v4 = vpop.permute.xlu1 %95 }
  0x7f   :  { %v779_v58 = vrot.slane %v707_v50, 4  ;;  %v1579_v59 = vrot.slane %v1507_v51, 4  ;;  %v731_v62 = vrot.slane %v699_v54, 4  ;;  %v428_v0 = vadd.f32 %v427_v56, %v355_v40 }
  0x80   :  { %v1292_v1 = vadd.f32 %v1291_v57, %v1219_v44  ;;  %v1531_v5 = vrot.slane %v1499_v60, 4  ;;  %v380_v6 = vadd.f32 %v379_v61, %v347_v53  ;;  %v1244_v8 = vadd.f32 %v1243_v63, %v1211_v55 }
  0x81   :  { %v780_v2 = vadd.f32 %v779_v58, %v707_v50  ;;  %v1580_v3 = vadd.f32 %v1579_v59, %v1507_v51  ;;  %v732_v7 = vadd.f32 %v731_v62, %v699_v54  ;;  %v429_v10 = vrot.slane %v428_v0, 2 }
  0x82   :  { %v1293_v11 = vrot.slane %v1292_v1, 2  ;;  %v1532_v17 = vadd.f32 %v1531_v5, %v1499_v60  ;;  %v381_v18 = vrot.slane %v380_v6, 2  ;;  %v1245_v21 = vrot.slane %v1244_v8, 2 }
  0x83   :  { %v781_v14 = vrot.slane %v780_v2, 2  ;;  %v1581_v16 = vrot.slane %v1580_v3, 2  ;;  %v733_v20 = vrot.slane %v732_v7, 2  ;;  %v430_v23 = vadd.f32 %v429_v10, %v428_v0 }
  0x84   :  { %v1294_v24 = vadd.f32 %v1293_v11, %v1292_v1  ;;  %v1533_v28 = vrot.slane %v1532_v17, 2  ;;  %v356_v32 = vmul.f32 %v2739_v22, %v2746_v4  ;;  %v2761_v33 = vsub.f32 0.0, %v2746_v4 }
  0x85   :  { %v782_v26 = vadd.f32 %v781_v14, %v780_v2  ;;  %v1582_v27 = vadd.f32 %v1581_v16, %v1580_v3  ;;  %v382_v34 = vadd.f32 %v381_v18, %v380_v6  ;;  %v734_v35 = vadd.f32 %v733_v20, %v732_v7 }
  0x86   :  { %v1246_v36 = vadd.f32 %v1245_v21, %v1244_v8  ;;  %v1220_v37 = vmul.f32 %v2744_v25, %v2746_v4  ;;  %v431_v38 = vrot.slane %v430_v23, 1  ;;  %v1295_v39 = vrot.slane %v1294_v24, 1 }
  0x87   :  { %v433_v41 = vrot.slane %v356_v32, 4  ;;  %v708_v40 = vmul.f32 %v2761_v33, %v2751_v29  ;;  %v783_v44 = vrot.slane %v782_v26, 1  ;;  %v1583_v50 = vrot.slane %v1582_v27, 1 }
  0x88   :  { %v1534_v51 = vadd.f32 %v1533_v28, %v1532_v17  ;;  %v1508_v53 = vmul.f32 %v2761_v33, %v2756_v30  ;;  %v1297_v55 = vrot.slane %v1220_v37, 4  ;;  %v383_v56 = vrot.slane %v382_v34, 1 }
  0x89   :  { %v785_v54 = vrot.slane %v708_v40, 4  ;;  %v735_v57 = vrot.slane %v734_v35, 1  ;;  %v432_v59 = vadd.f32 %v431_v38, %v430_v23  ;;  %v1247_v60 = vrot.slane %v1246_v36, 1 }
  0x8a   :  { %v1585_v58 = vrot.slane %v1508_v53, 4  ;;  %v434_v61 = vadd.f32 %v433_v41, %v356_v32  ;;  %v784_v63 = vadd.f32 %v783_v44, %v782_v26  ;;  %v1296_v0 = vadd.f32 %v1295_v39, %v1294_v24 }
  0x8b   :  { %v786_v62 = vadd.f32 %v785_v54, %v708_v40  ;;  %v1584_v1 = vadd.f32 %v1583_v50, %v1582_v27  ;;  %v1535_v2 = vrot.slane %v1534_v51, 1  ;;  %v1298_v3 = vadd.f32 %v1297_v55, %v1220_v37  ;;  %v2783_v40 = vpop.permute.xlu0 %39  ;;  %v2803_v54 = vld [vmem:[%s4458_s0 + $0x30] sm:$0xff]  ;;  %v2808_v55 = vld [vmem:[%s4458_s0 + $0x38] sm:$0xff] }
  0x8c   :  { %v1586_v5 = vadd.f32 %v1585_v58, %v1508_v53  ;;  %v384_v6 = vadd.f32 %v383_v56, %v382_v34  ;;  %v736_v7 = vadd.f32 %v735_v57, %v734_v35  ;;  %v579_v8 = vmul.f32 %v432_v59, %v2680_v12 }
  0x8d   :  { %v1248_v10 = vadd.f32 %v1247_v60, %v1246_v36  ;;  %v435_v11 = vrot.slane %v434_v61, 2  ;;  %v787_v14 = vrot.slane %v786_v62, 2  ;;  %v931_v16 = vmul.f32 %v784_v63, %v2695_v43 }
  0x8e   :  { %v1443_v17 = vmul.f32 %v1296_v0, %v2680_v12  ;;  %v1731_v18 = vmul.f32 %v1584_v1, %v2695_v43  ;;  %v1536_v20 = vadd.f32 %v1535_v2, %v1534_v51  ;;  %v1299_v21 = vrot.slane %v1298_v3, 2  ;;  %v2823_v2 = vpop.permute.xlu1 %151 }
  0x8f   :  { %v1587_v23 = vrot.slane %v1586_v5, 2  ;;  %v571_v24 = vmul.f32 %v384_v6, %v2699_v45  ;;  %v923_v26 = vmul.f32 %v736_v7, %v2717_v49  ;;  %v611_v27 = vsub.f32 %v2673_v42, %v579_v8 }
  0x90   :  { %v1435_v28 = vmul.f32 %v1248_v10, %v2699_v45  ;;  %v436_v32 = vadd.f32 %v435_v11, %v434_v61  ;;  %v788_v34 = vadd.f32 %v787_v14, %v786_v62  ;;  %v963_v35 = vsub.f32 %v2690_v31, %v931_v16  ;;  %v2788_v31 = vld [vmem:[%s4458_s0 + $0x20] sm:$0xff]  ;;  %v2835_v14 = vld [vmem:[%s4459_s1 + $0x88] sm:$0xff] }
  0x91   :  { %v1475_v36 = vsub.f32 %v2678_v9, %v1443_v17  ;;  %v1763_v12 = vsub.f32 %v2685_v13, %v1731_v18  ;;  %v1723_v43 = vmul.f32 %v1536_v20, %v2717_v49  ;;  %v1300_v37 = vadd.f32 %v1299_v21, %v1298_v3  ;;  %v2817_v61 = vld [vmem:[%s4458_s0 + $0x220] sm:$0xff] }
  0x92   :  { %v1588_v38 = vadd.f32 %v1587_v23, %v1586_v5  ;;  %v603_v39 = vsub.f32 %v2704_v46, %v571_v24  ;;  %v955_v41 = vsub.f32 %v2714_v48, %v923_v26  ;;  %v437_v42 = vrot.slane %v436_v32, 1  ;;  %v2798_v48 = vld [vmem:[%s4459_s1 + $0x8] sm:$0xff] }
  0x93   :  { %v789_v45 = vrot.slane %v788_v34, 1  ;;  %v2791_v9 = vsub.f32 0.0, %v2783_v40  ;;  %v995_v13 = vmul.f32 %v963_v35, %v611_v27  ;;  %v1795_v49 = vmul.f32 %v1763_v12, %v1475_v36 }
  0x94   :  { %v1467_v44 = vsub.f32 %v2709_v47, %v1435_v28  ;;  %v1755_v46 = vsub.f32 %v2726_v52, %v1723_v43  ;;  %v1301_v50 = vrot.slane %v1300_v37, 1  ;;  %v1589_v51 = vrot.slane %v1588_v38, 1 }
  0x95   :  { %v987_v53 = vmul.f32 %v955_v41, %v603_v39  ;;  %v348_v47 = vmul.f32 %v2788_v31, %v2783_v40  ;;  %v438_v52 = vadd.f32 %v437_v42, %v436_v32  ;;  %v790_v56 = vadd.f32 %v789_v45, %v788_v34  ;;  %v2848_v41 = vld [vmem:[%s4458_s0 + $0x230] sm:$0xff] }
  0x96   :  { %v700_v57 = vmul.f32 %v2791_v9, %v2798_v48  ;;  %v1067_v58 = vrot.slane %v995_v13, 4  ;;  %v1867_v59 = vrot.slane %v1795_v49, 4  ;;  %v1787_v60 = vmul.f32 %v1755_v46, %v1467_v44 }
  0x97   :  { %v1302_v62 = vadd.f32 %v1301_v50, %v1300_v37  ;;  %v1590_v63 = vadd.f32 %v1589_v51, %v1588_v38  ;;  %v1212_v0 = vmul.f32 %v2803_v54, %v2783_v40  ;;  %v1500_v1 = vmul.f32 %v2791_v9, %v2808_v55 }
  0x98   :  { %v1019_v3 = vrot.slane %v987_v53, 4  ;;  %v385_v5 = vrot.slane %v348_v47, 4  ;;  %v2826_v6 = vsub.f32 0.0, %v2823_v2  ;;  %v580_v7 = vmul.f32 %v438_v52, %v2746_v4  ;;  %v2857_v52 = vpop.permute.xlu0 %144 }
  0x99   :  { %v932_v8 = vmul.f32 %v790_v56, %v2761_v33  ;;  %v737_v10 = vrot.slane %v700_v57, 4  ;;  %v364_v11 = vmul.f32 %v2817_v61, %v2823_v2  ;;  %v1068_v16 = vadd.f32 %v1067_v58, %v995_v13 }
  0x9a   :  { %v1868_v17 = vadd.f32 %v1867_v59, %v1795_v49  ;;  %v1819_v18 = vrot.slane %v1787_v60, 4  ;;  %v1444_v20 = vmul.f32 %v1302_v62, %v2746_v4  ;;  %v1732_v21 = vmul.f32 %v1590_v63, %v2761_v33 }
  0x9b   :  { %v1249_v23 = vrot.slane %v1212_v0, 4  ;;  %v1537_v24 = vrot.slane %v1500_v1, 4  ;;  %v1020_v26 = vadd.f32 %v1019_v3, %v987_v53  ;;  %v386_v27 = vadd.f32 %v385_v5, %v348_v47  ;;  %v2855_v47 = vld [vmem:[%s4458_s0 + $0x238] sm:$0xff] }
  0x9c   :  { %v716_v28 = vmul.f32 %v2826_v6, %v2835_v14  ;;  %v612_v32 = vsub.f32 %v2739_v22, %v580_v7  ;;  %v964_v34 = vsub.f32 %v2751_v29, %v932_v8  ;;  %v738_v35 = vadd.f32 %v737_v10, %v700_v57 }
  0x9d   :  { %v481_v36 = vrot.slane %v364_v11, 4  ;;  %v1069_v12 = vrot.slane %v1068_v16, 2  ;;  %v1869_v43 = vrot.slane %v1868_v17, 2  ;;  %v1820_v37 = vadd.f32 %v1819_v18, %v1787_v60  ;;  %v2877_v18 = vld [vmem:[%s4458_s0 + $0x210] sm:$0xff] }
  0x9e   :  { %v1476_v4 = vsub.f32 %v2744_v25, %v1444_v20  ;;  %v1764_v33 = vsub.f32 %v2756_v30, %v1732_v21  ;;  %v1250_v38 = vadd.f32 %v1249_v23, %v1212_v0  ;;  %v1538_v39 = vadd.f32 %v1537_v24, %v1500_v1  ;;  %v2865_v0 = vld [vmem:[%s4458_s0 + $0x200] sm:$0xff] }
  0x9f   :  { %v387_v42 = vrot.slane %v386_v27, 2  ;;  %v833_v22 = vrot.slane %v716_v28, 4  ;;  %v1021_v45 = vrot.slane %v1020_v26, 2  ;;  %v996_v29 = vmul.f32 %v964_v34, %v612_v32  ;;  %v2870_v1 = vld [vmem:[%s4459_s1 + $0x80] sm:$0xff] }
  0xa0   :  { %v739_v13 = vrot.slane %v738_v35, 2  ;;  %v482_v49 = vadd.f32 %v481_v36, %v364_v11  ;;  %v1070_v44 = vadd.f32 %v1069_v12, %v1068_v16  ;;  %v1821_v46 = vrot.slane %v1820_v37, 2 }
  0xa1   :  { %v1228_v25 = vmul.f32 %v2848_v41, %v2823_v2  ;;  %v1870_v50 = vadd.f32 %v1869_v43, %v1868_v17  ;;  %v1796_v30 = vmul.f32 %v1764_v33, %v1476_v4  ;;  %v1251_v51 = vrot.slane %v1250_v38, 2 }
  0xa2   :  { %v1539_v53 = vrot.slane %v1538_v39, 2  ;;  %v388_v56 = vadd.f32 %v387_v42, %v386_v27  ;;  %v834_v57 = vadd.f32 %v833_v22, %v716_v28  ;;  %v2860_v58 = vsub.f32 0.0, %v2857_v52 }
  0xa3   :  { %v1022_v59 = vadd.f32 %v1021_v45, %v1020_v26  ;;  %v1073_v60 = vrot.slane %v996_v29, 4  ;;  %v740_v62 = vadd.f32 %v739_v13, %v738_v35  ;;  %v483_v63 = vrot.slane %v482_v49, 2 }
  0xa4   :  { %v1071_v3 = vrot.slane %v1070_v44, 1  ;;  %v1822_v5 = vadd.f32 %v1821_v46, %v1820_v37  ;;  %v1345_v7 = vrot.slane %v1228_v25, 4  ;;  %v1516_v8 = vmul.f32 %v2826_v6, %v2855_v47 }
  0xa5   :  { %v1871_v10 = vrot.slane %v1870_v50, 1  ;;  %v1873_v11 = vrot.slane %v1796_v30, 4  ;;  %v1252_v16 = vadd.f32 %v1251_v51, %v1250_v38  ;;  %v1540_v17 = vadd.f32 %v1539_v53, %v1538_v39 }
  0xa6   :  { %v389_v20 = vrot.slane %v388_v56, 1  ;;  %v835_v21 = vrot.slane %v834_v57, 2  ;;  %v363_v23 = vmul.f32 %v2865_v0, %v2857_v52  ;;  %v715_v24 = vmul.f32 %v2860_v58, %v2870_v1 }
  0xa7   :  { %v1023_v26 = vrot.slane %v1022_v59, 1  ;;  %v1074_v27 = vadd.f32 %v1073_v60, %v996_v29  ;;  %v741_v28 = vrot.slane %v740_v62, 1  ;;  %v484_v32 = vadd.f32 %v483_v63, %v482_v49 }
  0xa8   :  { %v1823_v34 = vrot.slane %v1822_v5, 1  ;;  %v1346_v35 = vadd.f32 %v1345_v7, %v1228_v25  ;;  %v1633_v36 = vrot.slane %v1516_v8, 4  ;;  %v1227_v12 = vmul.f32 %v2877_v18, %v2857_v52  ;;  %v2909_v7 = vld [vmem:[%s4459_s1 + $0xc8] sm:$0xff] }
  0xa9   :  { %v2885_v43 = vadd.f32 %v1071_v3, %v1070_v44  ;;  %v1874_v37 = vadd.f32 %v1873_v11, %v1796_v30  ;;  %v1253_v4 = vrot.slane %v1252_v16, 1  ;;  %v1541_v33 = vrot.slane %v1540_v17, 1 }
  0xaa   :  { %v390_v38 = vadd.f32 %v389_v20, %v388_v56  ;;  %v836_v39 = vadd.f32 %v835_v21, %v834_v57  ;;  %v475_v42 = vrot.slane %v363_v23, 4  ;;  %v827_v22 = vrot.slane %v715_v24, 4  ;;  %v2896_v56 = vld [vmem:[%s4458_s0 + $0x218] sm:$0xff] }
  0xab   :  { %4516 = vst [vmem:[#allocation4_spill] sm:$0xff] %v2885_v43  ;;  %v2887_v45 = vadd.f32 %v1871_v10, %v1870_v50  ;;  %v1075_v29 = vrot.slane %v1074_v27, 2  ;;  %v742_v13 = vadd.f32 %v741_v28, %v740_v62  ;;  %v485_v49 = vrot.slane %v484_v32, 1 }
  0xac   :  { %v2889_v46 = vadd.f32 %v1023_v26, %v1022_v59  ;;  %v1347_v25 = vrot.slane %v1346_v35, 2  ;;  %v1634_v51 = vadd.f32 %v1633_v36, %v1516_v8  ;;  %v1339_v53 = vrot.slane %v1227_v12, 4  ;;  %v2899_v59 = vpop.permute.xlu1 %207  ;;  %v2925_v26 = vld [vmem:[%s4458_s0 + $0x338] sm:$0xff] }
  0xad   :  { %4517 = vst [vmem:[#allocation5_spill] sm:$0xff] %v2887_v45  ;;  %v2891_v60 = vadd.f32 %v1823_v34, %v1822_v5  ;;  %v1875_v44 = vrot.slane %v1874_v37, 2  ;;  %v1254_v30 = vadd.f32 %v1253_v4, %v1252_v16  ;;  %v1542_v63 = vadd.f32 %v1541_v33, %v1540_v17  ;;  %v2904_v5 = vld [vmem:[%s4458_s0 + $0x320] sm:$0xff] }
  0xae   :  { %4518 = vst [vmem:[#allocation6_spill] sm:$0xff] %v2889_v46  ;;  %v572_v50 = vmul.f32 %v390_v38, %v2783_v40  ;;  %v837_v57 = vrot.slane %v836_v39, 1  ;;  %v476_v62 = vadd.f32 %v475_v42, %v363_v23  ;;  %v828_v3 = vadd.f32 %v827_v22, %v715_v24  ;;  %v2920_v24 = vld [vmem:[%s4458_s0 + $0x330] sm:$0xff] }
  0xaf   :  { %4519 = vst [vmem:[#allocation7_spill] sm:$0xff] %v2891_v60  ;;  %v1076_v8 = vadd.f32 %v1075_v29, %v1074_v27  ;;  %v924_v10 = vmul.f32 %v742_v13, %v2791_v9  ;;  %v486_v11 = vadd.f32 %v485_v49, %v484_v32  ;;  %v2913_v16 = vsub.f32 0.0, %v2899_v59 }
  0xb0   :  { %v1348_v17 = vadd.f32 %v1347_v25, %v1346_v35  ;;  %v1635_v20 = vrot.slane %v1634_v51, 2  ;;  %v1340_v21 = vadd.f32 %v1339_v53, %v1227_v12  ;;  %v1515_v23 = vmul.f32 %v2860_v58, %v2896_v56 }
  0xb1   :  { %v1436_v27 = vmul.f32 %v1254_v30, %v2783_v40  ;;  %v1724_v28 = vmul.f32 %v1542_v63, %v2791_v9  ;;  %v372_v32 = vmul.f32 %v2904_v5, %v2899_v59  ;;  %v724_v34 = vmul.f32 %v2913_v16, %v2909_v7 }
  0xb2   :  { %v604_v35 = vsub.f32 %v2788_v31, %v572_v50  ;;  %v838_v36 = vadd.f32 %v837_v57, %v836_v39  ;;  %v477_v12 = vrot.slane %v476_v62, 2  ;;  %v829_v4 = vrot.slane %v828_v3, 2 }
  0xb3   :  { %v956_v33 = vsub.f32 %v2798_v48, %v924_v10  ;;  %v588_v38 = vmul.f32 %v486_v11, %v2823_v2  ;;  %v1236_v40 = vmul.f32 %v2920_v24, %v2899_v59  ;;  %v1524_v9 = vmul.f32 %v2913_v16, %v2925_v26 }
  0xb4   :  { %v1349_v42 = vrot.slane %v1348_v17, 1  ;;  %v1636_v22 = vadd.f32 %v1635_v20, %v1634_v51  ;;  %v1341_v29 = vrot.slane %v1340_v21, 2  ;;  %v1627_v13 = vrot.slane %v1515_v23, 4  ;;  %v2948_v51 = vld [vmem:[%s4458_s0 + $0x300] sm:$0xff] }
  0xb5   :  { %v1468_v49 = vsub.f32 %v2803_v54, %v1436_v27  ;;  %v1756_v31 = vsub.f32 %v2808_v55, %v1724_v28  ;;  %v529_v39 = vrot.slane %v372_v32, 4  ;;  %v881_v25 = vrot.slane %v724_v34, 4  ;;  %4520 = vst [vmem:[#allocation8_spill] sm:$0xff] %v2948_v51 }
  0xb6   :  { %v2942_v53 = vadd.f32 %v1875_v44, %v1874_v37  ;;  %v940_v48 = vmul.f32 %v838_v36, %v2826_v6  ;;  %v478_v30 = vadd.f32 %v477_v12, %v476_v62  ;;  %v830_v63 = vadd.f32 %v829_v4, %v828_v3  ;;  %v2953_v3 = vpop.permute.xlu0 %200 }
  0xb7   :  { %v1077_v50 = vrot.slane %v1076_v8, 1  ;;  %v988_v57 = vmul.f32 %v956_v33, %v604_v35  ;;  %v1393_v10 = vrot.slane %v1236_v40, 4  ;;  %v1681_v11 = vrot.slane %v1524_v9, 4 }
  0xb8   :  { %v1350_v54 = vadd.f32 %v1349_v42, %v1348_v17  ;;  %v1637_v20 = vrot.slane %v1636_v22, 1  ;;  %v1342_v55 = vadd.f32 %v1341_v29, %v1340_v21  ;;  %v1628_v27 = vadd.f32 %v1627_v13, %v1515_v23 }
  0xb9   :  { %v2950_v28 = vmul.f32 %v1756_v31, %v1468_v49  ;;  %v620_v37 = vsub.f32 %v2817_v61, %v588_v38  ;;  %v530_v44 = vadd.f32 %v529_v39, %v372_v32  ;;  %v882_v62 = vadd.f32 %v881_v25, %v724_v34 }
  0xba   :  { %v972_v35 = vsub.f32 %v2835_v14, %v940_v48  ;;  %v479_v36 = vrot.slane %v478_v30, 1  ;;  %v831_v12 = vrot.slane %v830_v63, 1  ;;  %v371_v4 = vmul.f32 %v2948_v51, %v2953_v3  ;;  %v2982_v48 = vld [vmem:[%s4458_s0 + $0x318] sm:$0xff] }
  0xbb   :  { %v1025_v33 = vrot.slane %v988_v57, 4  ;;  %v1394_v21 = vadd.f32 %v1393_v10, %v1236_v40  ;;  %v1682_v23 = vadd.f32 %v1681_v11, %v1524_v9  ;;  %v2960_v42 = vmul.f32 %v1350_v54, %v2823_v2  ;;  %v2970_v40 = vld [vmem:[%s4458_s0 + $0x310] sm:$0xff]  ;;  %v2975_v9 = vld [vmem:[%s4459_s1 + $0xc0] sm:$0xff]  ;;  %4524 = vst [vmem:[#allocation12_spill] sm:$0xff] %v2982_v48 }
  0xbc   :  { %v1638_v61 = vadd.f32 %v1637_v20, %v1636_v22  ;;  %v1343_v32 = vrot.slane %v1342_v55, 1  ;;  %v1629_v34 = vrot.slane %v1628_v27, 2  ;;  %v2962_v38 = vadd.f32 %v1077_v50, %v1076_v8  ;;  %4522 = vst [vmem:[#allocation10_spill] sm:$0xff] %v2970_v40  ;;  %4523 = vst [vmem:[#allocation11_spill] sm:$0xff] %v2975_v9 }
  0xbd   :  { %v1825_v14 = vrot.slane %v2950_v28, 4  ;;  %v531_v29 = vrot.slane %v530_v44, 2  ;;  %v883_v13 = vrot.slane %v882_v62, 2  ;;  %v2965_v49 = vmul.f32 %v972_v35, %v620_v37  ;;  %v2997_v35 = vld [vmem:[%s4458_s0 + $0x140] sm:$0xff] }
  0xbe   :  { %4521 = vst [vmem:[#allocation9_spill] sm:$0xff] %v2962_v38  ;;  %v480_v31 = vadd.f32 %v479_v36, %v478_v30  ;;  %v832_v39 = vadd.f32 %v831_v12, %v830_v63  ;;  %v523_v2 = vrot.slane %v371_v4, 4  ;;  %v2977_v8 = vadd.f32 %v1025_v33, %v988_v57  ;;  %4525 = vst [vmem:[#allocation13_spill] sm:$0xff] %v2997_v35  ;;  %v3003_v33 = vpop.permute.xlu1 %102 }
  0xbf   :  { %v1395_v22 = vrot.slane %v1394_v21, 2  ;;  %v1683_v25 = vrot.slane %v1682_v23, 2  ;;  %v2985_v30 = vsub.f32 0.0, %v2953_v3  ;;  %v1484_v63 = vsub.f32 %v2848_v41, %v2960_v42  ;;  %v3008_v42 = vld [vmem:[%s4459_s1 + $0x50] sm:$0xff] }
  0xc0   :  { %v1740_v50 = vmul.f32 %v1638_v61, %v2826_v6  ;;  %v1344_v10 = vadd.f32 %v1343_v32, %v1342_v55  ;;  %v1630_v11 = vadd.f32 %v1629_v34, %v1628_v27  ;;  %v532_v54 = vadd.f32 %v531_v29, %v530_v44  ;;  %4526 = vst [vmem:[#allocation14_spill] sm:$0xff] %v3008_v42 }
  0xc1   :  { %v884_v57 = vadd.f32 %v883_v13, %v882_v62  ;;  %v723_v20 = vmul.f32 %v2985_v30, %v2975_v9  ;;  %v1235_v37 = vmul.f32 %v2970_v40, %v2953_v3  ;;  %v587_v36 = vmul.f32 %v480_v31, %v2857_v52 }
  0xc2   :  { %v939_v41 = vmul.f32 %v832_v39, %v2860_v58  ;;  %v524_v6 = vadd.f32 %v523_v2, %v371_v4  ;;  %v1523_v55 = vmul.f32 %v2985_v30, %v2982_v48  ;;  %v1396_v27 = vadd.f32 %v1395_v22, %v1394_v21 }
  0xc3   :  { %v1684_v44 = vadd.f32 %v1683_v25, %v1682_v23  ;;  %v875_v62 = vrot.slane %v723_v20, 4  ;;  %v1387_v12 = vrot.slane %v1235_v37, 4  ;;  %v1631_v61 = vrot.slane %v1630_v11, 1 }
  0xc4   :  { %v1675_v32 = vrot.slane %v1523_v55, 4  ;;  %v357_v34 = vmul.f32 %v2997_v35, %v3003_v33  ;;  %v3013_v4 = vsub.f32 0.0, %v3003_v33  ;;  %v533_v29 = vrot.slane %v532_v54, 1 }
  0xc5   :  { %v885_v21 = vrot.slane %v884_v57, 1  ;;  %v876_v23 = vadd.f32 %v875_v62, %v723_v20  ;;  %v1388_v13 = vadd.f32 %v1387_v12, %v1235_v37  ;;  %v1772_v31 = vsub.f32 %v2855_v47, %v1740_v50 }
  0xc6   :  { %v525_v39 = vrot.slane %v524_v6, 2  ;;  %v1676_v2 = vadd.f32 %v1675_v32, %v1523_v55  ;;  %v709_v22 = vmul.f32 %v3013_v4, %v3008_v42  ;;  %v1397_v25 = vrot.slane %v1396_v27, 1 }
  0xc7   :  { %v1685_v17 = vrot.slane %v1684_v44, 1  ;;  %v877_v45 = vrot.slane %v876_v23, 2  ;;  %v1389_v38 = vrot.slane %v1388_v13, 2  ;;  %v619_v43 = vsub.f32 %v2865_v0, %v587_v36 }
  0xc8   :  { %v1677_v60 = vrot.slane %v1676_v2, 2  ;;  %v439_v19 = vrot.slane %v357_v34, 4  ;;  %v791_v46 = vrot.slane %v709_v22, 4  ;;  %v971_v15 = vsub.f32 %v2870_v1, %v939_v41 }
  0xc9   :  { %v1632_v20 = vadd.f32 %v1631_v61, %v1630_v11  ;;  %v534_v37 = vadd.f32 %v533_v29, %v532_v54  ;;  %v886_v62 = vadd.f32 %v885_v21, %v884_v57  ;;  %v1826_v47 = vadd.f32 %v1825_v14, %v2950_v28 }
  0xca   :  { %v1121_v50 = vrot.slane %v2965_v49, 4  ;;  %v526_v55 = vadd.f32 %v525_v39, %v524_v6  ;;  %v878_v12 = vadd.f32 %v877_v45, %v876_v23  ;;  %v1398_v32 = vadd.f32 %v1397_v25, %v1396_v27 }
  0xcb   :  { %v1686_v42 = vadd.f32 %v1685_v17, %v1684_v44  ;;  %v1390_v35 = vadd.f32 %v1389_v38, %v1388_v13  ;;  %v1678_v48 = vadd.f32 %v1677_v60, %v1676_v2  ;;  %v1804_v40 = vmul.f32 %v1772_v31, %v1484_v63 }
  0xcc   :  { %v1451_v0 = vmul.f32 %v1344_v10, %v2857_v52  ;;  %v440_v36 = vadd.f32 %v439_v19, %v357_v34  ;;  %v792_v9 = vadd.f32 %v791_v46, %v709_v22  ;;  %v1003_v51 = vmul.f32 %v971_v15, %v619_v43 }
  0xcd   :  { %v1739_v1 = vmul.f32 %v1632_v20, %v2860_v58  ;;  %v596_v11 = vmul.f32 %v534_v37, %v2899_v59  ;;  %v948_v28 = vmul.f32 %v886_v62, %v2913_v16  ;;  %v1027_v14 = vrot.slane %v2977_v8, 2 }
  0xce   :  { %v1122_v45 = vadd.f32 %v1121_v50, %v2965_v49  ;;  %v527_v54 = vrot.slane %v526_v55, 1  ;;  %v879_v17 = vrot.slane %v878_v12, 1  ;;  %v1460_v60 = vmul.f32 %v1398_v32, %v2899_v59  ;;  %v3060_v50 = vpop.permute.xlu0 %46  ;;  %v4530_v32 = vld [vmem:[#allocation11_spill] sm:$0xff] }
  0xcf   :  { %v1748_v38 = vmul.f32 %v1686_v42, %v2913_v16  ;;  %v1391_v52 = vrot.slane %v1390_v35, 1  ;;  %v1679_v19 = vrot.slane %v1678_v48, 1  ;;  %v1921_v46 = vrot.slane %v1804_v40, 4 }
  0xd0   :  { %v1483_v15 = vsub.f32 %v2877_v18, %v1451_v0  ;;  %v441_v58 = vrot.slane %v440_v36, 2  ;;  %v793_v43 = vrot.slane %v792_v9, 2  ;;  %v1115_v63 = vrot.slane %v1003_v51, 4 }
  0xd1   :  { %v1771_v10 = vsub.f32 %v2896_v56, %v1739_v1  ;;  %v628_v57 = vsub.f32 %v2904_v5, %v596_v11  ;;  %v980_v49 = vsub.f32 %v2909_v7, %v948_v28  ;;  %v4527_v41 = vrot.slane %v2942_v53, 1  ;;  %v3044_v56 = vld [vmem:[%s4458_s0 + $0x150] sm:$0xff]  ;;  %v4531_v11 = vld [vmem:[#allocation10_spill] sm:$0xff] }
  0xd2   :  { %v1827_v16 = vrot.slane %v1826_v47, 2  ;;  %v528_v6 = vadd.f32 %v527_v54, %v526_v55  ;;  %v880_v27 = vadd.f32 %v879_v17, %v878_v12  ;;  %v1492_v44 = vsub.f32 %v2920_v24, %v1460_v60  ;;  %v4529_v55 = vld [vmem:[#allocation8_spill] sm:$0xff] }
  0xd3   :  { %v3037_v59 = vadd.f32 %v4527_v41, %v2942_v53  ;;  %v1780_v18 = vsub.f32 %v2925_v26, %v1748_v38  ;;  %v1392_v42 = vadd.f32 %v1391_v52, %v1390_v35  ;;  %v1680_v61 = vadd.f32 %v1679_v19, %v1678_v48  ;;  %v3050_v53 = vld [vmem:[%s4458_s0 + $0x158] sm:$0xff]  ;;  %v3077_v17 = vld [vmem:[%s4459_s1 + $0x10] sm:$0xff] }
  0xd4   :  { %v1028_v5 = vadd.f32 %v1027_v14, %v2977_v8  ;;  %v1123_v7 = vrot.slane %v1122_v45, 2  ;;  %v442_v34 = vadd.f32 %v441_v58, %v440_v36  ;;  %v794_v29 = vadd.f32 %v793_v43, %v792_v9  ;;  %v4532_v14 = vld [vmem:[#allocation12_spill] sm:$0xff] }
  0xd5   :  { %4528 = vst [vmem:[#allocation15_spill] sm:$0xff] %v3037_v59  ;;  %v1922_v24 = vadd.f32 %v1921_v46, %v1804_v40  ;;  %v1116_v21 = vadd.f32 %v1115_v63, %v1003_v51  ;;  %v1803_v26 = vmul.f32 %v1771_v10, %v1483_v15  ;;  %v1012_v35 = vmul.f32 %v980_v49, %v628_v57  ;;  %v3086_v49 = vld [vmem:[%s4458_s0 + $0x50] sm:$0xff] }
  0xd6   :  { %v1828_v48 = vadd.f32 %v1827_v16, %v1826_v47  ;;  %v595_v23 = vmul.f32 %v528_v6, %v2953_v3  ;;  %v947_v13 = vmul.f32 %v880_v27, %v2985_v30  ;;  %v1221_v8 = vmul.f32 %v3044_v56, %v3003_v33 }
  0xd7   :  { %v1812_v31 = vmul.f32 %v1780_v18, %v1492_v44  ;;  %v1459_v39 = vmul.f32 %v1392_v42, %v2953_v3  ;;  %v1747_v2 = vmul.f32 %v1680_v61, %v2985_v30  ;;  %v1509_v9 = vmul.f32 %v3013_v4, %v3050_v53  ;;  %v3067_v30 = vld [vmem:[%s4458_s0 + $0x40] sm:$0xff] }
  0xd8   :  { %v1029_v40 = vrot.slane %v1028_v5, 1  ;;  %v1124_v51 = vadd.f32 %v1123_v7, %v1122_v45  ;;  %v443_v22 = vrot.slane %v442_v34, 1  ;;  %v795_v25 = vrot.slane %v794_v29, 1 }
  0xd9   :  { %v1923_v20 = vrot.slane %v1922_v24, 2  ;;  %v1117_v37 = vrot.slane %v1116_v21, 2  ;;  %v1915_v62 = vrot.slane %v1803_v26, 4  ;;  %v1169_v47 = vrot.slane %v1012_v35, 4 }
  0xda   :  { %v627_v12 = vsub.f32 %v4529_v55, %v595_v23  ;;  %v979_v0 = vsub.f32 %v4530_v32, %v947_v13  ;;  %v1303_v3 = vrot.slane %v1221_v8, 4  ;;  %v3070_v36 = vsub.f32 0.0, %v3060_v50  ;;  %v3120_v32 = vld [vmem:[%s4459_s1 + $0xd0] sm:$0xff] }
  0xdb   :  { %v1969_v1 = vrot.slane %v1812_v31, 4  ;;  %v1491_v28 = vsub.f32 %v4531_v11, %v1459_v39  ;;  %v1779_v45 = vsub.f32 %v4532_v14, %v1747_v2  ;;  %v1591_v54 = vrot.slane %v1509_v9, 4  ;;  %v3103_v2 = vpop.permute.xlu1 %214 }
  0xdc   :  { %v1829_v60 = vrot.slane %v1828_v48, 1  ;;  %v1125_v38 = vrot.slane %v1124_v51, 1  ;;  %v444_v52 = vadd.f32 %v443_v22, %v442_v34  ;;  %v796_v19 = vadd.f32 %v795_v25, %v794_v29  ;;  %v3099_v29 = vld [vmem:[%s4458_s0 + $0x58] sm:$0xff]  ;;  %v4537_v22 = vld [vmem:[#allocation14_spill] sm:$0xff] }
  0xdd   :  { %v3079_v46 = vadd.f32 %v1029_v40, %v1028_v5  ;;  %v1916_v15 = vadd.f32 %v1915_v62, %v1803_v26  ;;  %v1170_v58 = vadd.f32 %v1169_v47, %v1012_v35  ;;  %v349_v43 = vmul.f32 %v3067_v30, %v3060_v50  ;;  %v4536_v40 = vld [vmem:[#allocation13_spill] sm:$0xff] }
  0xde   :  { %v1924_v63 = vadd.f32 %v1923_v20, %v1922_v24  ;;  %v1011_v10 = vmul.f32 %v979_v0, %v627_v12  ;;  %v1304_v57 = vadd.f32 %v1303_v3, %v1221_v8  ;;  %v701_v41 = vmul.f32 %v3070_v36, %v3077_v17 }
  0xdf   :  { %4533 = vst [vmem:[#allocation8_spill] sm:$0xff] %v3079_v46  ;;  %v1118_v16 = vadd.f32 %v1117_v37, %v1116_v21  ;;  %v1970_v6 = vadd.f32 %v1969_v1, %v1812_v31  ;;  %v1811_v27 = vmul.f32 %v1779_v45, %v1491_v28  ;;  %v1592_v44 = vadd.f32 %v1591_v54, %v1509_v9  ;;  %v3108_v9 = vld [vmem:[%s4458_s0 + $0x340] sm:$0xff] }
  0xe0   :  { %v3090_v18 = vadd.f32 %v1829_v60, %v1828_v48  ;;  %v3092_v42 = vadd.f32 %v1125_v38, %v1124_v51  ;;  %v581_v61 = vmul.f32 %v444_v52, %v3003_v33  ;;  %v933_v5 = vmul.f32 %v796_v19, %v3013_v4  ;;  %v3131_v19 = vld [vmem:[%s4458_s0 + $0x350] sm:$0xff] }
  0xe1   :  { %v1917_v7 = vrot.slane %v1916_v15, 2  ;;  %v1171_v34 = vrot.slane %v1170_v58, 2  ;;  %v391_v24 = vrot.slane %v349_v43, 4  ;;  %v1213_v21 = vmul.f32 %v3086_v49, %v3060_v50 }
  0xe2   :  { %4534 = vst [vmem:[#allocation11_spill] sm:$0xff] %v3090_v18  ;;  %4535 = vst [vmem:[#allocation10_spill] sm:$0xff] %v3092_v42  ;;  %v1925_v26 = vrot.slane %v1924_v63, 1  ;;  %v1163_v35 = vrot.slane %v1011_v10, 4  ;;  %v1305_v48 = vrot.slane %v1304_v57, 2  ;;  %v743_v23 = vrot.slane %v701_v41, 4 }
  0xe3   :  { %v1119_v13 = vrot.slane %v1118_v16, 1  ;;  %v1971_v8 = vrot.slane %v1970_v6, 2  ;;  %v1963_v31 = vrot.slane %v1811_v27, 4  ;;  %v1593_v39 = vrot.slane %v1592_v44, 2 }
  0xe4   :  { %v613_v51 = vsub.f32 %v4536_v40, %v581_v61  ;;  %v965_v25 = vsub.f32 %v4537_v22, %v933_v5  ;;  %v1501_v20 = vmul.f32 %v3070_v36, %v3099_v29  ;;  %v3115_v37 = vsub.f32 0.0, %v3103_v2 }
  0xe5   :  { %v1918_v62 = vadd.f32 %v1917_v7, %v1916_v15  ;;  %v1172_v47 = vadd.f32 %v1171_v34, %v1170_v58  ;;  %v392_v55 = vadd.f32 %v391_v24, %v349_v43  ;;  %v1255_v12 = vrot.slane %v1213_v21, 4 }
  0xe6   :  { %v1164_v0 = vadd.f32 %v1163_v35, %v1011_v10  ;;  %v1306_v3 = vadd.f32 %v1305_v48, %v1304_v57  ;;  %v744_v1 = vadd.f32 %v743_v23, %v701_v41  ;;  %v373_v11 = vmul.f32 %v3108_v9, %v3103_v2  ;;  %v3138_v57 = vld [vmem:[%s4458_s0 + $0x358] sm:$0xff] }
  0xe7   :  { %v3124_v28 = vadd.f32 %v1925_v26, %v1924_v63  ;;  %v1972_v14 = vadd.f32 %v1971_v8, %v1970_v6  ;;  %v1964_v45 = vadd.f32 %v1963_v31, %v1811_v27  ;;  %v1594_v54 = vadd.f32 %v1593_v39, %v1592_v44 }
  0xe8   :  { %v3126_v60 = vadd.f32 %v1119_v13, %v1118_v16  ;;  %v997_v38 = vmul.f32 %v965_v25, %v613_v51  ;;  %v1543_v52 = vrot.slane %v1501_v20, 4  ;;  %v725_v15 = vmul.f32 %v3115_v37, %v3120_v32  ;;  %v3151_v51 = vld [vmem:[%s4458_s0 + $0x240] sm:$0xff] }
  0xe9   :  { %4538 = vst [vmem:[#allocation12_spill] sm:$0xff] %v3124_v28  ;;  %v1919_v58 = vrot.slane %v1918_v62, 1  ;;  %v1173_v43 = vrot.slane %v1172_v47, 1  ;;  %v393_v10 = vrot.slane %v392_v55, 2  ;;  %v1256_v63 = vadd.f32 %v1255_v12, %v1213_v21 }
  0xea   :  { %4539 = vst [vmem:[#allocation13_spill] sm:$0xff] %v3126_v60  ;;  %v1165_v41 = vrot.slane %v1164_v0, 2  ;;  %v1307_v16 = vrot.slane %v1306_v3, 1  ;;  %v745_v6 = vrot.slane %v744_v1, 2  ;;  %v535_v27 = vrot.slane %v373_v11, 4 }
  0xeb   :  { %v1973_v44 = vrot.slane %v1972_v14, 1  ;;  %v1965_v61 = vrot.slane %v1964_v45, 2  ;;  %v1595_v5 = vrot.slane %v1594_v54, 1  ;;  %v1237_v7 = vmul.f32 %v3131_v19, %v3103_v2 }
  0xec   :  { %v1079_v34 = vrot.slane %v997_v38, 4  ;;  %v1544_v24 = vadd.f32 %v1543_v52, %v1501_v20  ;;  %v887_v26 = vrot.slane %v725_v15, 4  ;;  %v1525_v21 = vmul.f32 %v3115_v37, %v3138_v57 }
  0xed   :  { %v3144_v35 = vadd.f32 %v1919_v58, %v1918_v62  ;;  %v3146_v48 = vadd.f32 %v1173_v43, %v1172_v47  ;;  %v394_v23 = vadd.f32 %v393_v10, %v392_v55  ;;  %v1257_v13 = vrot.slane %v1256_v63, 2  ;;  %v3157_v58 = vpop.permute.xlu0 %158 }
  0xee   :  { %v1166_v8 = vadd.f32 %v1165_v41, %v1164_v0  ;;  %v1308_v31 = vadd.f32 %v1307_v16, %v1306_v3  ;;  %v746_v39 = vadd.f32 %v745_v6, %v744_v1  ;;  %v536_v40 = vadd.f32 %v535_v27, %v373_v11  ;;  %v3162_v0 = vld [vmem:[%s4459_s1 + $0x90] sm:$0xff] }
  0xef   :  { %4540 = vst [vmem:[#allocation14_spill] sm:$0xff] %v3144_v35  ;;  %4541 = vst [vmem:[#allocation16_spill] sm:$0xff] %v3146_v48  ;;  %v3153_v22 = vadd.f32 %v1973_v44, %v1972_v14  ;;  %v1966_v25 = vadd.f32 %v1965_v61, %v1964_v45  ;;  %v1596_v20 = vadd.f32 %v1595_v5, %v1594_v54  ;;  %v1399_v12 = vrot.slane %v1237_v7, 4  ;;  %v3177_v61 = vld [vmem:[%s4458_s0 + $0x250] sm:$0xff] }
  0xf0   :  { %v3155_v62 = vadd.f32 %v1079_v34, %v997_v38  ;;  %v1545_v47 = vrot.slane %v1544_v24, 2  ;;  %v888_v52 = vadd.f32 %v887_v26, %v725_v15  ;;  %v1687_v55 = vrot.slane %v1525_v21, 4 }
  0xf1   :  { %4542 = vst [vmem:[#allocation17_spill] sm:$0xff] %v3153_v22  ;;  %v395_v3 = vrot.slane %v394_v23, 1  ;;  %v1258_v1 = vadd.f32 %v1257_v13, %v1256_v63  ;;  %v365_v11 = vmul.f32 %v3151_v51, %v3157_v58  ;;  %v3167_v14 = vsub.f32 0.0, %v3157_v58 }
  0xf2   :  { %v1167_v45 = vrot.slane %v1166_v8, 1  ;;  %v1445_v54 = vmul.f32 %v1308_v31, %v3003_v33  ;;  %v747_v38 = vrot.slane %v746_v39, 1  ;;  %v537_v15 = vrot.slane %v536_v40, 2  ;;  %v3182_v33 = vld [vmem:[%s4458_s0 + $0x258] sm:$0xff] }
  0xf3   :  { %v1967_v43 = vrot.slane %v1966_v25, 1  ;;  %v1733_v10 = vmul.f32 %v1596_v20, %v3013_v4  ;;  %v1400_v41 = vadd.f32 %v1399_v12, %v1237_v7  ;;  %v717_v16 = vmul.f32 %v3167_v14, %v3162_v0 }
  0xf4   :  { %v1081_v63 = vrot.slane %v3155_v62, 2  ;;  %v1546_v6 = vadd.f32 %v1545_v47, %v1544_v24  ;;  %v889_v27 = vrot.slane %v888_v52, 2  ;;  %v1688_v44 = vadd.f32 %v1687_v55, %v1525_v21 }
  0xf5   :  { %v396_v4 = vadd.f32 %v395_v3, %v394_v23  ;;  %v1259_v5 = vrot.slane %v1258_v1, 1  ;;  %v487_v7 = vrot.slane %v365_v11, 4  ;;  %v839_v34 = vrot.slane %v717_v16, 4  ;;  %v3195_v23 = vld [vmem:[%s4458_s0 + $0x160] sm:$0xff] }
  0xf6   :  { %v3184_v26 = vadd.f32 %v1167_v45, %v1166_v8  ;;  %v1477_v24 = vsub.f32 %v3044_v56, %v1445_v54  ;;  %v748_v13 = vadd.f32 %v747_v38, %v746_v39  ;;  %v538_v21 = vadd.f32 %v537_v15, %v536_v40  ;;  %v3200_v54 = vpop.permute.xlu1 %109  ;;  %v3205_v38 = vld [vmem:[%s4459_s1 + $0x58] sm:$0xff] }
  0xf7   :  { %v1765_v31 = vsub.f32 %v3050_v53, %v1733_v10  ;;  %v1401_v20 = vrot.slane %v1400_v41, 2  ;;  %v1229_v12 = vmul.f32 %v3177_v61, %v3157_v58  ;;  %v1517_v47 = vmul.f32 %v3167_v14, %v3182_v33 }
  0xf8   :  { %4543 = vst [vmem:[#allocation18_spill] sm:$0xff] %v3184_v26  ;;  %v3197_v8 = vadd.f32 %v1967_v43, %v1966_v25  ;;  %v1547_v55 = vrot.slane %v1546_v6, 1  ;;  %v890_v56 = vadd.f32 %v889_v27, %v888_v52  ;;  %v1689_v39 = vrot.slane %v1688_v44, 2 }
  0xf9   :  { %v573_v40 = vmul.f32 %v396_v4, %v3060_v50  ;;  %v1260_v53 = vadd.f32 %v1259_v5, %v1258_v1  ;;  %v488_v3 = vadd.f32 %v487_v7, %v365_v11  ;;  %v840_v45 = vadd.f32 %v839_v34, %v717_v16 }
  0xfa   :  { %4544 = vst [vmem:[#allocation19_spill] sm:$0xff] %v3197_v8  ;;  %v925_v15 = vmul.f32 %v748_v13, %v3070_v36  ;;  %v539_v10 = vrot.slane %v538_v21, 1  ;;  %v358_v25 = vmul.f32 %v3195_v23, %v3200_v54  ;;  %v3211_v52 = vsub.f32 0.0, %v3200_v54 }
  0xfb   :  { %v3213_v43 = vmul.f32 %v1765_v31, %v1477_v24  ;;  %v1402_v1 = vadd.f32 %v1401_v20, %v1400_v41  ;;  %v1351_v11 = vrot.slane %v1229_v12, 4  ;;  %v1639_v16 = vrot.slane %v1517_v47, 4  ;;  %v3223_v41 = vld [vmem:[%s4458_s0 + $0x170] sm:$0xff] }
  0xfc   :  { %v1548_v27 = vadd.f32 %v1547_v55, %v1546_v6  ;;  %v891_v4 = vrot.slane %v890_v56, 1  ;;  %v1690_v5 = vadd.f32 %v1689_v39, %v1688_v44  ;;  %v710_v7 = vmul.f32 %v3211_v52, %v3205_v38 }
  0xfd   :  { %v605_v34 = vsub.f32 %v3067_v30, %v573_v40  ;;  %v1437_v13 = vmul.f32 %v1260_v53, %v3060_v50  ;;  %v489_v22 = vrot.slane %v488_v3, 2  ;;  %v841_v8 = vrot.slane %v840_v45, 2 }
  0xfe   :  { %v957_v48 = vsub.f32 %v3077_v17, %v925_v15  ;;  %v540_v26 = vadd.f32 %v539_v10, %v538_v21  ;;  %v445_v6 = vrot.slane %v358_v25, 4  ;;  %v797_v24 = vrot.slane %v710_v7, 4  ;;  %v3234_v15 = vld [vmem:[%s4458_s0 + $0x178] sm:$0xff] }
  0xff   :  { %v3226_v44 = vadd.f32 %v1081_v63, %v3155_v62  ;;  %v1403_v31 = vrot.slane %v1402_v1, 1  ;;  %v1352_v20 = vadd.f32 %v1351_v11, %v1229_v12  ;;  %v1640_v30 = vadd.f32 %v1639_v16, %v1517_v47 }
 0x100   :  { %v1879_v50 = vrot.slane %v3213_v43, 4  ;;  %v1725_v55 = vmul.f32 %v1548_v27, %v3070_v36  ;;  %v892_v39 = vadd.f32 %v891_v4, %v890_v56  ;;  %v1691_v17 = vrot.slane %v1690_v5, 1  ;;  %v3242_v36 = vld [vmem:[%s4458_s0 + $0x60] sm:$0xff] }
 0x101   :  { %v1469_v21 = vsub.f32 %v3086_v49, %v1437_v13  ;;  %v490_v40 = vadd.f32 %v489_v22, %v488_v3  ;;  %v842_v53 = vadd.f32 %v841_v8, %v840_v45  ;;  %v1222_v62 = vmul.f32 %v3223_v41, %v3200_v54 }
 0x102   :  { %v989_v63 = vmul.f32 %v957_v48, %v605_v34  ;;  %v597_v12 = vmul.f32 %v540_v26, %v3103_v2  ;;  %v446_v47 = vadd.f32 %v445_v6, %v358_v25  ;;  %v798_v10 = vadd.f32 %v797_v24, %v710_v7  ;;  %v3248_v26 = vpop.permute.xlu0 %53 }
 0x103   :  { %v1404_v49 = vadd.f32 %v1403_v31, %v1402_v1  ;;  %v1353_v22 = vrot.slane %v1352_v20, 2  ;;  %v1641_v8 = vrot.slane %v1640_v30, 2  ;;  %v1309_v56 = vrot.slane %v1222_v62, 4  ;;  %v3255_v1 = vld [vmem:[%s4459_s1 + $0x18] sm:$0xff] }
 0x104   :  { %v1757_v3 = vsub.f32 %v3099_v29, %v1725_v55  ;;  %v949_v45 = vmul.f32 %v892_v39, %v3115_v37  ;;  %v1692_v11 = vadd.f32 %v1691_v17, %v1690_v5  ;;  %v1510_v48 = vmul.f32 %v3211_v52, %v3234_v15 }
 0x105   :  { %v491_v25 = vrot.slane %v490_v40, 1  ;;  %v843_v16 = vrot.slane %v842_v53, 1  ;;  %v1310_v27 = vadd.f32 %v1309_v56, %v1222_v62  ;;  %v350_v4 = vmul.f32 %v3242_v36, %v3248_v26 }
 0x106   :  { %v447_v29 = vrot.slane %v446_v47, 2  ;;  %v799_v7 = vrot.slane %v798_v10, 2  ;;  %v1597_v34 = vrot.slane %v1510_v48, 4  ;;  %v3258_v5 = vsub.f32 0.0, %v3248_v26 }
 0x107   :  { %v629_v13 = vsub.f32 %v3108_v9, %v597_v12  ;;  %v1461_v6 = vmul.f32 %v1404_v49, %v3103_v2  ;;  %v1354_v24 = vadd.f32 %v1353_v22, %v1352_v20  ;;  %v1642_v31 = vadd.f32 %v1641_v8, %v1640_v30 }
 0x108   :  { %v981_v55 = vsub.f32 %v3120_v32, %v949_v45  ;;  %v1311_v39 = vrot.slane %v1310_v27, 2  ;;  %v1598_v17 = vadd.f32 %v1597_v34, %v1510_v48  ;;  %v702_v62 = vmul.f32 %v3258_v5, %v3255_v1 }
 0x109   :  { %v1749_v56 = vmul.f32 %v1692_v11, %v3115_v37  ;;  %v492_v59 = vadd.f32 %v491_v25, %v490_v40  ;;  %v844_v28 = vadd.f32 %v843_v16, %v842_v53  ;;  %v397_v35 = vrot.slane %v350_v4, 4 }
 0x10a   :  { %v448_v18 = vadd.f32 %v447_v29, %v446_v47  ;;  %v800_v42 = vadd.f32 %v799_v7, %v798_v10  ;;  %v1599_v60 = vrot.slane %v1598_v17, 2  ;;  %v749_v9 = vrot.slane %v702_v62, 4 }
 0x10b   :  { %v1031_v12 = vrot.slane %v989_v63, 4  ;;  %v1789_v2 = vmul.f32 %v1757_v3, %v1469_v21  ;;  %v1355_v20 = vrot.slane %v1354_v24, 1  ;;  %v1643_v30 = vrot.slane %v1642_v31, 1 }
 0x10c   :  { %v1880_v32 = vadd.f32 %v1879_v50, %v3213_v43  ;;  %v1493_v49 = vsub.f32 %v3131_v19, %v1461_v6  ;;  %v1312_v22 = vadd.f32 %v1311_v39, %v1310_v27  ;;  %v1600_v8 = vadd.f32 %v1599_v60, %v1598_v17 }
 0x10d   :  { %v589_v45 = vmul.f32 %v492_v59, %v3157_v58  ;;  %v941_v37 = vmul.f32 %v844_v28, %v3167_v14  ;;  %v398_v40 = vadd.f32 %v397_v35, %v350_v4  ;;  %v750_v53 = vadd.f32 %v749_v9, %v702_v62  ;;  %v3277_v35 = vld [vmem:[%s4458_s0 + $0x70] sm:$0xff] }
 0x10e   :  { %v1013_v47 = vmul.f32 %v981_v55, %v629_v13  ;;  %v1781_v10 = vsub.f32 %v3138_v57, %v1749_v56  ;;  %v449_v11 = vrot.slane %v448_v18, 1  ;;  %v801_v48 = vrot.slane %v800_v42, 1  ;;  %v3282_v57 = vld [vmem:[%s4458_s0 + $0x78] sm:$0xff] }
 0x10f   :  { %v1032_v21 = vadd.f32 %v1031_v12, %v989_v63  ;;  %v1831_v3 = vrot.slane %v1789_v2, 4  ;;  %v1356_v25 = vadd.f32 %v1355_v20, %v1354_v24  ;;  %v1644_v16 = vadd.f32 %v1643_v30, %v1642_v31 }
 0x110   :  { %v1083_v43 = vrot.slane %v3226_v44, 1  ;;  %v1881_v19 = vrot.slane %v1880_v32, 2  ;;  %v1313_v50 = vrot.slane %v1312_v22, 1  ;;  %v1601_v60 = vrot.slane %v1600_v8, 1 }
 0x111   :  { %v621_v59 = vsub.f32 %v3151_v51, %v589_v45  ;;  %v973_v28 = vsub.f32 %v3162_v0, %v941_v37  ;;  %v399_v63 = vrot.slane %v398_v40, 2  ;;  %v751_v27 = vrot.slane %v750_v53, 2  ;;  %v3296_v45 = vpop.permute.xlu1 %221  ;;  %v3301_v37 = vld [vmem:[%s4458_s0 + $0x360] sm:$0xff] }
 0x112   :  { %v1175_v4 = vrot.slane %v1013_v47, 4  ;;  %v1813_v29 = vmul.f32 %v1781_v10, %v1493_v49  ;;  %v450_v7 = vadd.f32 %v449_v11, %v448_v18  ;;  %v802_v34 = vadd.f32 %v801_v48, %v800_v42  ;;  %v3311_v11 = vld [vmem:[%s4459_s1 + $0xd8] sm:$0xff] }
 0x113   :  { %v1033_v13 = vrot.slane %v1032_v21, 2  ;;  %v1832_v51 = vadd.f32 %v1831_v3, %v1789_v2  ;;  %v1453_v0 = vmul.f32 %v1356_v25, %v3157_v58  ;;  %v1741_v6 = vmul.f32 %v1644_v16, %v3167_v14 }
 0x114   :  { %v1314_v24 = vadd.f32 %v1313_v50, %v1312_v22  ;;  %v1602_v31 = vadd.f32 %v1601_v60, %v1600_v8  ;;  %v1214_v55 = vmul.f32 %v3277_v35, %v3248_v26  ;;  %v1502_v39 = vmul.f32 %v3258_v5, %v3282_v57 }
 0x115   :  { %v1882_v17 = vadd.f32 %v1881_v19, %v1880_v32  ;;  %v1005_v62 = vmul.f32 %v973_v28, %v621_v59  ;;  %v400_v56 = vadd.f32 %v399_v63, %v398_v40  ;;  %v752_v9 = vadd.f32 %v751_v27, %v750_v53 }
 0x116   :  { %v1176_v18 = vadd.f32 %v1175_v4, %v1013_v47  ;;  %v1975_v42 = vrot.slane %v1813_v29, 4  ;;  %v582_v12 = vmul.f32 %v450_v7, %v3200_v54  ;;  %v934_v58 = vmul.f32 %v802_v34, %v3211_v52 }
 0x117   :  { %v1034_v2 = vadd.f32 %v1033_v13, %v1032_v21  ;;  %v1833_v14 = vrot.slane %v1832_v51, 2  ;;  %v1485_v20 = vsub.f32 %v3177_v61, %v1453_v0  ;;  %v1773_v30 = vsub.f32 %v3182_v33, %v1741_v6 }
 0x118   :  { %v1446_v49 = vmul.f32 %v1314_v24, %v3200_v54  ;;  %v1734_v22 = vmul.f32 %v1602_v31, %v3211_v52  ;;  %v1261_v32 = vrot.slane %v1214_v55, 4  ;;  %v1549_v8 = vrot.slane %v1502_v39, 4  ;;  %v3329_v24 = vld [vmem:[%s4458_s0 + $0x370] sm:$0xff]  ;;  %v3334_v31 = vld [vmem:[%s4458_s0 + $0x378] sm:$0xff] }
 0x119   :  { %v1127_v40 = vrot.slane %v1005_v62, 4  ;;  %v401_v53 = vrot.slane %v400_v56, 1  ;;  %v753_v47 = vrot.slane %v752_v9, 1  ;;  %v3304_v61 = vsub.f32 0.0, %v3296_v45 }
 0x11a   :  { %v1177_v33 = vrot.slane %v1176_v18, 2  ;;  %v1976_v10 = vadd.f32 %v1975_v42, %v1813_v29  ;;  %v614_v54 = vsub.f32 %v3195_v23, %v582_v12  ;;  %v966_v52 = vsub.f32 %v3205_v38, %v934_v58 }
 0x11b   :  { %v1883_v48 = vrot.slane %v1882_v17, 1  ;;  %v1834_v21 = vadd.f32 %v1833_v14, %v1832_v51  ;;  %v1805_v3 = vmul.f32 %v1773_v30, %v1485_v20  ;;  %v374_v25 = vmul.f32 %v3301_v37, %v3296_v45 }
 0x11c   :  { %v1478_v16 = vsub.f32 %v3223_v41, %v1446_v49  ;;  %v1766_v19 = vsub.f32 %v3234_v15, %v1734_v22  ;;  %v1262_v50 = vadd.f32 %v1261_v32, %v1214_v55  ;;  %v1550_v60 = vadd.f32 %v1549_v8, %v1502_v39 }
 0x11d   :  { %v1128_v23 = vadd.f32 %v1127_v40, %v1005_v62  ;;  %v402_v59 = vadd.f32 %v401_v53, %v400_v56  ;;  %v754_v38 = vadd.f32 %v753_v47, %v752_v9  ;;  %v726_v28 = vmul.f32 %v3304_v61, %v3311_v11  ;;  %v3348_v40 = vpop.permute.xlu0 %165  ;;  %v3353_v53 = vld [vmem:[%s4458_s0 + $0x260] sm:$0xff] }
 0x11e   :  { %v1035_v63 = vrot.slane %v1034_v2, 1  ;;  %v1178_v27 = vadd.f32 %v1177_v33, %v1176_v18  ;;  %v1977_v4 = vrot.slane %v1976_v10, 2  ;;  %v998_v29 = vmul.f32 %v966_v52, %v614_v54  ;;  %v3360_v54 = vld [vmem:[%s4458_s0 + $0x270] sm:$0xff] }
 0x11f   :  { %v3322_v7 = vadd.f32 %v1083_v43, %v3226_v44  ;;  %v3324_v41 = vadd.f32 %v1883_v48, %v1882_v17  ;;  %v1927_v15 = vrot.slane %v1805_v3, 4  ;;  %v541_v34 = vrot.slane %v374_v25, 4 }
 0x120   :  { %v1835_v13 = vrot.slane %v1834_v21, 1  ;;  %v1798_v51 = vmul.f32 %v1766_v19, %v1478_v16  ;;  %v1263_v0 = vrot.slane %v1262_v50, 2  ;;  %v1551_v6 = vrot.slane %v1550_v60, 2 }
 0x121   :  { %4545 = vst [vmem:[#allocation20_spill] sm:$0xff] %v3322_v7  ;;  %4546 = vst [vmem:[#allocation21_spill] sm:$0xff] %v3324_v41  ;;  %v1129_v44 = vrot.slane %v1128_v23, 2  ;;  %v574_v43 = vmul.f32 %v402_v59, %v3248_v26  ;;  %v926_v55 = vmul.f32 %v754_v38, %v3258_v5  ;;  %v893_v39 = vrot.slane %v726_v28, 4 }
 0x122   :  { %v3338_v17 = vadd.f32 %v1035_v63, %v1034_v2  ;;  %v1179_v62 = vrot.slane %v1178_v27, 1  ;;  %v1978_v56 = vadd.f32 %v1977_v4, %v1976_v10  ;;  %v1085_v9 = vrot.slane %v998_v29, 4 }
 0x123   :  { %v1928_v18 = vadd.f32 %v1927_v15, %v1805_v3  ;;  %v542_v42 = vadd.f32 %v541_v34, %v374_v25  ;;  %v1238_v12 = vmul.f32 %v3329_v24, %v3296_v45  ;;  %v1526_v58 = vmul.f32 %v3304_v61, %v3334_v31  ;;  %v3368_v3 = vld [vmem:[%s4458_s0 + $0x278] sm:$0xff] }
 0x124   :  { %4547 = vst [vmem:[#allocation22_spill] sm:$0xff] %v3338_v17  ;;  %v3344_v14 = vadd.f32 %v1835_v13, %v1834_v21  ;;  %v1885_v20 = vrot.slane %v1798_v51, 4  ;;  %v1264_v30 = vadd.f32 %v1263_v0, %v1262_v50  ;;  %v1552_v49 = vadd.f32 %v1551_v6, %v1550_v60  ;;  %v3373_v25 = vld [vmem:[%s4459_s1 + $0x98] sm:$0xff] }
 0x125   :  { %v1130_v22 = vadd.f32 %v1129_v44, %v1128_v23  ;;  %v606_v2 = vsub.f32 %v3242_v36, %v574_v43  ;;  %v958_v32 = vsub.f32 %v3255_v1, %v926_v55  ;;  %v894_v8 = vadd.f32 %v893_v39, %v726_v28 }
 0x126   :  { %4548 = vst [vmem:[#allocation23_spill] sm:$0xff] %v3344_v14  ;;  %v3355_v47 = vadd.f32 %v1179_v62, %v1178_v27  ;;  %v1979_v33 = vrot.slane %v1978_v56, 1  ;;  %v1086_v10 = vadd.f32 %v1085_v9, %v998_v29  ;;  %v3363_v36 = vsub.f32 0.0, %v3348_v40  ;;  %v3387_v9 = vpop.permute.xlu1 %116 }
 0x127   :  { %v1929_v1 = vrot.slane %v1928_v18, 2  ;;  %v543_v52 = vrot.slane %v542_v42, 2  ;;  %v1405_v48 = vrot.slane %v1238_v12, 4  ;;  %v1693_v21 = vrot.slane %v1526_v58, 4 }
 0x128   :  { %4549 = vst [vmem:[#allocation24_spill] sm:$0xff] %v3355_v47  ;;  %v1886_v16 = vadd.f32 %v1885_v20, %v1798_v51  ;;  %v1265_v19 = vrot.slane %v1264_v30, 1  ;;  %v1553_v50 = vrot.slane %v1552_v49, 1  ;;  %v366_v60 = vmul.f32 %v3353_v53, %v3348_v40 }
 0x129   :  { %v1131_v23 = vrot.slane %v1130_v22, 1  ;;  %v990_v59 = vmul.f32 %v958_v32, %v606_v2  ;;  %v895_v38 = vrot.slane %v894_v8, 2  ;;  %v1230_v28 = vmul.f32 %v3360_v54, %v3348_v40 }
 0x12a   :  { %v3379_v63 = vadd.f32 %v1979_v33, %v1978_v56  ;;  %v1087_v27 = vrot.slane %v1086_v10, 2  ;;  %v718_v4 = vmul.f32 %v3363_v36, %v3373_v25  ;;  %v1518_v29 = vmul.f32 %v3363_v36, %v3368_v3 }
 0x12b   :  { %v1930_v15 = vadd.f32 %v1929_v1, %v1928_v18  ;;  %v544_v34 = vadd.f32 %v543_v52, %v542_v42  ;;  %v1406_v13 = vadd.f32 %v1405_v48, %v1238_v12  ;;  %v1694_v51 = vadd.f32 %v1693_v21, %v1526_v58  ;;  %v3392_v18 = vld [vmem:[%s4458_s0 + $0x180] sm:$0xff] }
 0x12c   :  { %4550 = vst [vmem:[#allocation25_spill] sm:$0xff] %v3379_v63  ;;  %v1887_v0 = vrot.slane %v1886_v16, 2  ;;  %v1266_v6 = vadd.f32 %v1265_v19, %v1264_v30  ;;  %v1554_v44 = vadd.f32 %v1553_v50, %v1552_v49  ;;  %v493_v43 = vrot.slane %v366_v60, 4 }
 0x12d   :  { %v3385_v55 = vadd.f32 %v1131_v23, %v1130_v22  ;;  %v1037_v39 = vrot.slane %v990_v59, 4  ;;  %v896_v62 = vadd.f32 %v895_v38, %v894_v8  ;;  %v1357_v56 = vrot.slane %v1230_v28, 4  ;;  %v3400_v22 = vld [vmem:[%s4459_s1 + $0x60] sm:$0xff] }
 0x12e   :  { %v1088_v20 = vadd.f32 %v1087_v27, %v1086_v10  ;;  %v845_v2 = vrot.slane %v718_v4, 4  ;;  %v1645_v32 = vrot.slane %v1518_v29, 4  ;;  %v3395_v42 = vsub.f32 0.0, %v3387_v9 }
 0x12f   :  { %4551 = vst [vmem:[#allocation26_spill] sm:$0xff] %v3385_v55  ;;  %v1931_v12 = vrot.slane %v1930_v15, 1  ;;  %v545_v58 = vrot.slane %v544_v34, 1  ;;  %v1407_v30 = vrot.slane %v1406_v13, 2  ;;  %v1695_v49 = vrot.slane %v1694_v51, 2 }
 0x130   :  { %v1888_v8 = vadd.f32 %v1887_v0, %v1886_v16  ;;  %v1438_v33 = vmul.f32 %v1266_v6, %v3248_v26  ;;  %v1726_v10 = vmul.f32 %v1554_v44, %v3258_v5  ;;  %v494_v1 = vadd.f32 %v493_v43, %v366_v60 }
 0x131   :  { %v1038_v52 = vadd.f32 %v1037_v39, %v990_v59  ;;  %v897_v48 = vrot.slane %v896_v62, 1  ;;  %v1358_v21 = vadd.f32 %v1357_v56, %v1230_v28  ;;  %v359_v19 = vmul.f32 %v3392_v18, %v3387_v9  ;;  %v3415_v28 = vld [vmem:[%s4458_s0 + $0x190] sm:$0xff] }
 0x132   :  { %v1089_v50 = vrot.slane %v1088_v20, 1  ;;  %v846_v23 = vadd.f32 %v845_v2, %v718_v4  ;;  %v1646_v38 = vadd.f32 %v1645_v32, %v1518_v29  ;;  %v711_v27 = vmul.f32 %v3395_v42, %v3400_v22 }
 0x133   :  { %v3408_v63 = vadd.f32 %v1931_v12, %v1930_v15  ;;  %v546_v16 = vadd.f32 %v545_v58, %v544_v34  ;;  %v1408_v0 = vadd.f32 %v1407_v30, %v1406_v13  ;;  %v1696_v26 = vadd.f32 %v1695_v49, %v1694_v51  ;;  %v3420_v15 = vld [vmem:[%s4458_s0 + $0x198] sm:$0xff] }
 0x134   :  { %v1889_v6 = vrot.slane %v1888_v8, 1  ;;  %v1470_v5 = vsub.f32 %v3277_v35, %v1438_v33  ;;  %v1758_v60 = vsub.f32 %v3282_v57, %v1726_v10  ;;  %v495_v59 = vrot.slane %v494_v1, 2 }
 0x135   :  { %4552 = vst [vmem:[#allocation27_spill] sm:$0xff] %v3408_v63  ;;  %v1039_v4 = vrot.slane %v1038_v52, 2  ;;  %v898_v29 = vadd.f32 %v897_v48, %v896_v62  ;;  %v1359_v44 = vrot.slane %v1358_v21, 2  ;;  %v451_v34 = vrot.slane %v359_v19, 4  ;;  %v3439_v48 = vpop.permute.xlu0 %60 }
 0x136   :  { %v3422_v13 = vadd.f32 %v1089_v50, %v1088_v20  ;;  %v847_v35 = vrot.slane %v846_v23, 2  ;;  %v1647_v51 = vrot.slane %v1646_v38, 2  ;;  %v803_v57 = vrot.slane %v711_v27, 4  ;;  %v3434_v20 = vld [vmem:[%s4458_s0 + $0x80] sm:$0xff] }
 0x137   :  { %v598_v43 = vmul.f32 %v546_v16, %v3296_v45  ;;  %v1409_v39 = vrot.slane %v1408_v0, 1  ;;  %v1697_v56 = vrot.slane %v1696_v26, 1  ;;  %v1223_v2 = vmul.f32 %v3415_v28, %v3387_v9 }
 0x138   :  { %4553 = vst [vmem:[#allocation28_spill] sm:$0xff] %v3422_v13  ;;  %v3427_v62 = vadd.f32 %v1889_v6, %v1888_v8  ;;  %v1790_v32 = vmul.f32 %v1758_v60, %v1470_v5  ;;  %v496_v12 = vadd.f32 %v495_v59, %v494_v1  ;;  %v1511_v58 = vmul.f32 %v3395_v42, %v3420_v15  ;;  %v3444_v8 = vld [vmem:[%s4459_s1 + $0x20] sm:$0xff]  ;;  %v3449_v6 = vld [vmem:[%s4458_s0 + $0x90] sm:$0xff] }
 0x139   :  { %v3436_v30 = vadd.f32 %v1039_v4, %v1038_v52  ;;  %v950_v49 = vmul.f32 %v898_v29, %v3304_v61  ;;  %v1360_v33 = vadd.f32 %v1359_v44, %v1358_v21  ;;  %v452_v10 = vadd.f32 %v451_v34, %v359_v19 }
 0x13a   :  { %4554 = vst [vmem:[#allocation29_spill] sm:$0xff] %v3427_v62  ;;  %v848_v1 = vadd.f32 %v847_v35, %v846_v23  ;;  %v1648_v50 = vadd.f32 %v1647_v51, %v1646_v38  ;;  %v804_v16 = vadd.f32 %v803_v57, %v711_v27  ;;  %v3452_v52 = vsub.f32 0.0, %v3439_v48 }
 0x13b   :  { %v1410_v21 = vadd.f32 %v1409_v39, %v1408_v0  ;;  %v1698_v19 = vadd.f32 %v1697_v56, %v1696_v26  ;;  %v1315_v5 = vrot.slane %v1223_v2, 4  ;;  %v351_v60 = vmul.f32 %v3434_v20, %v3439_v48 }
 0x13c   :  { %v1837_v59 = vrot.slane %v1790_v32, 4  ;;  %v497_v4 = vrot.slane %v496_v12, 1  ;;  %v1603_v29 = vrot.slane %v1511_v58, 4  ;;  %v703_v23 = vmul.f32 %v3452_v52, %v3444_v8 }
 0x13d   :  { %v630_v38 = vsub.f32 %v3301_v37, %v598_v43  ;;  %v1361_v27 = vrot.slane %v1360_v33, 1  ;;  %v453_v44 = vrot.slane %v452_v10, 2  ;;  %v1215_v34 = vmul.f32 %v3449_v6, %v3439_v48 }
 0x13e   :  { %v982_v0 = vsub.f32 %v3311_v11, %v950_v49  ;;  %v849_v26 = vrot.slane %v848_v1, 1  ;;  %v1649_v35 = vrot.slane %v1648_v50, 1  ;;  %v805_v51 = vrot.slane %v804_v16, 2 }
 0x13f   :  { %v1462_v57 = vmul.f32 %v1410_v21, %v3296_v45  ;;  %v1316_v39 = vadd.f32 %v1315_v5, %v1223_v2  ;;  %v403_v56 = vrot.slane %v351_v60, 4  ;;  %v755_v62 = vrot.slane %v703_v23, 4  ;;  %v3468_v45 = vld [vmem:[%s4458_s0 + $0x98] sm:$0xff] }
 0x140   :  { %v1838_v47 = vadd.f32 %v1837_v59, %v1790_v32  ;;  %v1750_v41 = vmul.f32 %v1698_v19, %v3304_v61  ;;  %v498_v13 = vadd.f32 %v497_v4, %v496_v12  ;;  %v1604_v37 = vadd.f32 %v1603_v29, %v1511_v58 }
 0x141   :  { %v1041_v43 = vrot.slane %v3436_v30, 1  ;;  %v1362_v7 = vadd.f32 %v1361_v27, %v1360_v33  ;;  %v454_v63 = vadd.f32 %v453_v44, %v452_v10  ;;  %v1267_v14 = vrot.slane %v1215_v34, 4 }
 0x142   :  { %v1014_v55 = vmul.f32 %v982_v0, %v630_v38  ;;  %v850_v11 = vadd.f32 %v849_v26, %v848_v1  ;;  %v1650_v49 = vadd.f32 %v1649_v35, %v1648_v50  ;;  %v806_v17 = vadd.f32 %v805_v51, %v804_v16  ;;  %v3507_v51 = vld [vmem:[%s4458_s0 + $0x398] sm:$0xff] }
 0x143   :  { %v1494_v2 = vsub.f32 %v3329_v24, %v1462_v57  ;;  %v1317_v32 = vrot.slane %v1316_v39, 2  ;;  %v404_v61 = vadd.f32 %v403_v56, %v351_v60  ;;  %v756_v12 = vadd.f32 %v755_v62, %v703_v23  ;;  %v3479_v24 = vld [vmem:[%s4458_s0 + $0x380] sm:$0xff] }
 0x144   :  { %v1839_v58 = vrot.slane %v1838_v47, 2  ;;  %v1782_v21 = vsub.f32 %v3334_v31, %v1750_v41  ;;  %v590_v33 = vmul.f32 %v498_v13, %v3348_v40  ;;  %v1605_v10 = vrot.slane %v1604_v37, 2 }
 0x145   :  { %v1454_v1 = vmul.f32 %v1362_v7, %v3348_v40  ;;  %v455_v50 = vrot.slane %v454_v63, 1  ;;  %v1268_v16 = vadd.f32 %v1267_v14, %v1215_v34  ;;  %v1503_v19 = vmul.f32 %v3452_v52, %v3468_v45  ;;  %v3483_v40 = vpop.permute.xlu1 %228  ;;  %v3488_v14 = vld [vmem:[%s4459_s1 + $0xe0] sm:$0xff] }
 0x146   :  { %v1181_v5 = vrot.slane %v1014_v55, 4  ;;  %v942_v62 = vmul.f32 %v850_v11, %v3363_v36  ;;  %v1742_v41 = vmul.f32 %v1650_v49, %v3363_v36  ;;  %v807_v31 = vrot.slane %v806_v17, 1 }
 0x147   :  { %v1318_v13 = vadd.f32 %v1317_v32, %v1316_v39  ;;  %v405_v60 = vrot.slane %v404_v61, 2  ;;  %v757_v59 = vrot.slane %v756_v12, 2  ;;  %v1555_v7 = vrot.slane %v1503_v19, 4 }
 0x148   :  { %v622_v4 = vsub.f32 %v3353_v53, %v590_v33  ;;  %v1606_v29 = vadd.f32 %v1605_v10, %v1604_v37  ;;  %v375_v23 = vmul.f32 %v3479_v24, %v3483_v40  ;;  %v3494_v36 = vsub.f32 0.0, %v3483_v40  ;;  %v3502_v53 = vld [vmem:[%s4458_s0 + $0x390] sm:$0xff] }
 0x149   :  { %v1486_v38 = vsub.f32 %v3360_v54, %v1454_v1  ;;  %v456_v27 = vadd.f32 %v455_v50, %v454_v63  ;;  %v1269_v44 = vrot.slane %v1268_v16, 2  ;;  %v1556_v34 = vadd.f32 %v1555_v7, %v1503_v19 }
 0x14a   :  { %v974_v0 = vsub.f32 %v3373_v25, %v942_v62  ;;  %v1774_v26 = vsub.f32 %v3368_v3, %v1742_v41  ;;  %v808_v35 = vadd.f32 %v807_v31, %v806_v17  ;;  %v727_v54 = vmul.f32 %v3494_v36, %v3488_v14 }
 0x14b   :  { %v1319_v63 = vrot.slane %v1318_v13, 1  ;;  %v406_v57 = vadd.f32 %v405_v60, %v404_v61  ;;  %v758_v39 = vadd.f32 %v757_v59, %v756_v12  ;;  %v1557_v25 = vrot.slane %v1556_v34, 2 }
 0x14c   :  { %v1814_v56 = vmul.f32 %v1782_v21, %v1494_v2  ;;  %v1607_v3 = vrot.slane %v1606_v29, 1  ;;  %v547_v17 = vrot.slane %v375_v23, 4  ;;  %v899_v37 = vrot.slane %v727_v54, 4 }
 0x14d   :  { %v1270_v11 = vadd.f32 %v1269_v44, %v1268_v16  ;;  %v1558_v49 = vadd.f32 %v1557_v25, %v1556_v34  ;;  %v1239_v32 = vmul.f32 %v3502_v53, %v3483_v40  ;;  %v1527_v33 = vmul.f32 %v3494_v36, %v3507_v51 }
 0x14e   :  { %v3515_v10 = vadd.f32 %v1839_v58, %v1838_v47  ;;  %v1006_v1 = vmul.f32 %v974_v0, %v622_v4  ;;  %v1806_v50 = vmul.f32 %v1774_v26, %v1486_v38  ;;  %v583_v61 = vmul.f32 %v456_v27, %v3387_v9  ;;  %v3522_v47 = vld [vmem:[%s4458_s0 + $0x280] sm:$0xff] }
 0x14f   :  { %v935_v12 = vmul.f32 %v808_v35, %v3395_v42  ;;  %v1320_v2 = vadd.f32 %v1319_v63, %v1318_v13  ;;  %v407_v21 = vrot.slane %v406_v57, 1  ;;  %v759_v19 = vrot.slane %v758_v39, 1 }
 0x150   :  { %v1182_v62 = vadd.f32 %v1181_v5, %v1014_v55  ;;  %v1608_v16 = vadd.f32 %v1607_v3, %v1606_v29  ;;  %v548_v41 = vadd.f32 %v547_v17, %v375_v23  ;;  %v900_v31 = vadd.f32 %v899_v37, %v727_v54  ;;  %v3527_v23 = vpop.permute.xlu0 %172 }
 0x151   :  { %v1271_v60 = vrot.slane %v1270_v11, 1  ;;  %v1559_v59 = vrot.slane %v1558_v49, 1  ;;  %v1411_v7 = vrot.slane %v1239_v32, 4  ;;  %v1699_v44 = vrot.slane %v1527_v33, 4 }
 0x152   :  { %v1981_v58 = vrot.slane %v1814_v56, 4  ;;  %v1133_v4 = vrot.slane %v1006_v1, 4  ;;  %v1933_v38 = vrot.slane %v1806_v50, 4  ;;  %v615_v13 = vsub.f32 %v3392_v18, %v583_v61 }
 0x153   :  { %v967_v27 = vsub.f32 %v3400_v22, %v935_v12  ;;  %v1447_v55 = vmul.f32 %v1320_v2, %v3387_v9  ;;  %v408_v5 = vadd.f32 %v407_v21, %v406_v57  ;;  %v760_v29 = vadd.f32 %v759_v19, %v758_v39 }
 0x154   :  { %v1735_v34 = vmul.f32 %v1608_v16, %v3395_v42  ;;  %v549_v0 = vrot.slane %v548_v41, 2  ;;  %v901_v26 = vrot.slane %v900_v31, 2  ;;  %v367_v35 = vmul.f32 %v3522_v47, %v3527_v23 }
 0x155   :  { %v1272_v54 = vadd.f32 %v1271_v60, %v1270_v11  ;;  %v1560_v63 = vadd.f32 %v1559_v59, %v1558_v49  ;;  %v1412_v25 = vadd.f32 %v1411_v7, %v1239_v32  ;;  %v1700_v3 = vadd.f32 %v1699_v44, %v1527_v33 }
 0x156   :  { %v1183_v18 = vrot.slane %v1182_v62, 2  ;;  %v1982_v17 = vadd.f32 %v1981_v58, %v1814_v56  ;;  %v1134_v22 = vadd.f32 %v1133_v4, %v1006_v1  ;;  %v1934_v37 = vadd.f32 %v1933_v38, %v1806_v50 }
 0x157   :  { %v999_v9 = vmul.f32 %v967_v27, %v615_v13  ;;  %v1479_v57 = vsub.f32 %v3415_v28, %v1447_v55  ;;  %v575_v39 = vmul.f32 %v408_v5, %v3439_v48  ;;  %v927_v42 = vmul.f32 %v760_v29, %v3452_v52 }
 0x158   :  { %v1767_v61 = vsub.f32 %v3420_v15, %v1735_v34  ;;  %v550_v12 = vadd.f32 %v549_v0, %v548_v41  ;;  %v902_v2 = vadd.f32 %v901_v26, %v900_v31  ;;  %v499_v21 = vrot.slane %v367_v35, 4 }
 0x159   :  { %v1439_v11 = vmul.f32 %v1272_v54, %v3439_v48  ;;  %v1727_v49 = vmul.f32 %v1560_v63, %v3452_v52  ;;  %v1413_v32 = vrot.slane %v1412_v25, 2  ;;  %v1701_v56 = vrot.slane %v1700_v3, 2 }
 0x15a   :  { %v1841_v33 = vrot.slane %v3515_v10, 1  ;;  %v1184_v1 = vadd.f32 %v1183_v18, %v1182_v62  ;;  %v1983_v50 = vrot.slane %v1982_v17, 2  ;;  %v1135_v28 = vrot.slane %v1134_v22, 2 }
 0x15b   :  { %v1935_v19 = vrot.slane %v1934_v37, 2  ;;  %v1091_v16 = vrot.slane %v999_v9, 4  ;;  %v607_v60 = vsub.f32 %v3434_v20, %v575_v39  ;;  %v959_v15 = vsub.f32 %v3444_v8, %v927_v42 }
 0x15c   :  { %v1799_v41 = vmul.f32 %v1767_v61, %v1479_v57  ;;  %v551_v31 = vrot.slane %v550_v12, 1  ;;  %v903_v59 = vrot.slane %v902_v2, 1  ;;  %v500_v7 = vadd.f32 %v499_v21, %v367_v35 }
 0x15d   :  { %v1471_v48 = vsub.f32 %v3449_v6, %v1439_v11  ;;  %v1759_v52 = vsub.f32 %v3468_v45, %v1727_v49  ;;  %v1414_v44 = vadd.f32 %v1413_v32, %v1412_v25  ;;  %v1702_v58 = vadd.f32 %v1701_v56, %v1700_v3  ;;  %v3557_v45 = vld [vmem:[%s4458_s0 + $0x290] sm:$0xff] }
 0x15e   :  { %v3546_v62 = vadd.f32 %v1041_v43, %v3436_v30  ;;  %v3549_v4 = vadd.f32 %v1841_v33, %v3515_v10  ;;  %v1984_v20 = vadd.f32 %v1983_v50, %v1982_v17  ;;  %v3552_v8 = vsub.f32 0.0, %v3527_v23  ;;  %v3562_v30 = vld [vmem:[%s4458_s0 + $0x298] sm:$0xff]  ;;  %v3567_v43 = vld [vmem:[%s4459_s1 + $0xa0] sm:$0xff]  ;;  %v3581_v33 = vpop.permute.xlu1 %123 }
 0x15f   :  { %v1185_v38 = vrot.slane %v1184_v1, 1  ;;  %v1136_v13 = vadd.f32 %v1135_v28, %v1134_v22  ;;  %v1092_v27 = vadd.f32 %v1091_v16, %v999_v9  ;;  %v991_v6 = vmul.f32 %v959_v15, %v607_v60 }
 0x160   :  { %4555 = vst [vmem:[#allocation30_spill] sm:$0xff] %v3546_v62  ;;  %4556 = vst [vmem:[#allocation31_spill] sm:$0xff] %v3549_v4  ;;  %v1936_v10 = vadd.f32 %v1935_v19, %v1934_v37  ;;  %v552_v55 = vadd.f32 %v551_v31, %v550_v12  ;;  %v904_v5 = vadd.f32 %v903_v59, %v902_v2  ;;  %v501_v29 = vrot.slane %v500_v7, 2  ;;  %v3590_v19 = vld [vmem:[%s4458_s0 + $0x1a0] sm:$0xff]  ;;  %v3602_v59 = vld [vmem:[%s4459_s1 + $0x68] sm:$0xff] }
 0x161   :  { %v1891_v34 = vrot.slane %v1799_v41, 4  ;;  %v1791_v0 = vmul.f32 %v1759_v52, %v1471_v48  ;;  %v1415_v26 = vrot.slane %v1414_v44, 1  ;;  %v1703_v35 = vrot.slane %v1702_v58, 1 }
 0x162   :  { %v1985_v54 = vrot.slane %v1984_v20, 1  ;;  %v719_v63 = vmul.f32 %v3552_v8, %v3567_v43  ;;  %v1231_v25 = vmul.f32 %v3557_v45, %v3527_v23  ;;  %v1519_v3 = vmul.f32 %v3552_v8, %v3562_v30 }
 0x163   :  { %v3575_v18 = vadd.f32 %v1185_v38, %v1184_v1  ;;  %v1137_v17 = vrot.slane %v1136_v13, 1  ;;  %v1093_v22 = vrot.slane %v1092_v27, 2  ;;  %v1043_v37 = vrot.slane %v991_v6, 4 }
 0x164   :  { %v1937_v9 = vrot.slane %v1936_v10, 1  ;;  %v599_v57 = vmul.f32 %v552_v55, %v3483_v40  ;;  %v951_v39 = vmul.f32 %v904_v5, %v3494_v36  ;;  %v502_v42 = vadd.f32 %v501_v29, %v500_v7 }
 0x165   :  { %4557 = vst [vmem:[#allocation32_spill] sm:$0xff] %v3575_v18  ;;  %v1892_v61 = vadd.f32 %v1891_v34, %v1799_v41  ;;  %v1843_v12 = vrot.slane %v1791_v0, 4  ;;  %v1416_v2 = vadd.f32 %v1415_v26, %v1414_v44  ;;  %v1704_v21 = vadd.f32 %v1703_v35, %v1702_v58  ;;  %v3609_v58 = vld [vmem:[%s4458_s0 + $0x1b0] sm:$0xff]  ;;  %v3638_v26 = vld [vmem:[%s4459_s1 + $0x28] sm:$0xff] }
 0x166   :  { %v3579_v11 = vadd.f32 %v1985_v54, %v1984_v20  ;;  %v851_v49 = vrot.slane %v719_v63, 4  ;;  %v1363_v32 = vrot.slane %v1231_v25, 4  ;;  %v1651_v56 = vrot.slane %v1519_v3, 4 }
 0x167   :  { %v3583_v1 = vadd.f32 %v1137_v17, %v1136_v13  ;;  %v3585_v50 = vadd.f32 %v1093_v22, %v1092_v27  ;;  %v1044_v28 = vadd.f32 %v1043_v37, %v991_v6  ;;  %v3593_v16 = vsub.f32 0.0, %v3581_v33  ;;  %v3618_v27 = vpop.permute.xlu0 %67 }
 0x168   :  { %4558 = vst [vmem:[#allocation33_spill] sm:$0xff] %v3579_v11  ;;  %v3595_v60 = vadd.f32 %v1937_v9, %v1936_v10  ;;  %v631_v15 = vsub.f32 %v3479_v24, %v599_v57  ;;  %v983_v41 = vsub.f32 %v3488_v14, %v951_v39  ;;  %v503_v31 = vrot.slane %v502_v42, 1  ;;  %v3614_v24 = vld [vmem:[%s4458_s0 + $0x1b8] sm:$0xff]  ;;  %v3647_v9 = vld [vmem:[%s4458_s0 + $0xb0] sm:$0xff] }
 0x169   :  { %4559 = vst [vmem:[#allocation34_spill] sm:$0xff] %v3583_v1  ;;  %4560 = vst [vmem:[#allocation35_spill] sm:$0xff] %v3585_v50  ;;  %v1893_v7 = vrot.slane %v1892_v61, 2  ;;  %v1844_v48 = vadd.f32 %v1843_v12, %v1791_v0  ;;  %v1463_v52 = vmul.f32 %v1416_v2, %v3483_v40  ;;  %v1751_v44 = vmul.f32 %v1704_v21, %v3494_v36  ;;  %v3633_v0 = vld [vmem:[%s4458_s0 + $0xa0] sm:$0xff] }
 0x16a   :  { %4561 = vst [vmem:[#allocation36_spill] sm:$0xff] %v3595_v60  ;;  %v852_v14 = vadd.f32 %v851_v49, %v719_v63  ;;  %v1364_v20 = vadd.f32 %v1363_v32, %v1231_v25  ;;  %v1652_v38 = vadd.f32 %v1651_v56, %v1519_v3  ;;  %v360_v13 = vmul.f32 %v3590_v19, %v3581_v33 }
 0x16b   :  { %v1045_v36 = vrot.slane %v1044_v28, 2  ;;  %v712_v6 = vmul.f32 %v3593_v16, %v3602_v59  ;;  %v3624_v10 = vsub.f32 0.0, %v3618_v27  ;;  %v1015_v55 = vmul.f32 %v983_v41, %v631_v15 }
 0x16c   :  { %v504_v5 = vadd.f32 %v503_v31, %v502_v42  ;;  %v1224_v29 = vmul.f32 %v3609_v58, %v3581_v33  ;;  %v1512_v34 = vmul.f32 %v3593_v16, %v3614_v24  ;;  %v3640_v35 = vadd.f32 %v1893_v7, %v1892_v61  ;;  %v3666_v7 = vld [vmem:[%s4458_s0 + $0xb8] sm:$0xff] }
 0x16d   :  { %v1845_v54 = vrot.slane %v1844_v48, 2  ;;  %v1495_v63 = vsub.f32 %v3502_v53, %v1463_v52  ;;  %v1783_v25 = vsub.f32 %v3507_v51, %v1751_v44  ;;  %v853_v3 = vrot.slane %v852_v14, 2 }
 0x16e   :  { %4562 = vst [vmem:[#allocation37_spill] sm:$0xff] %v3640_v35  ;;  %v1365_v17 = vrot.slane %v1364_v20, 2  ;;  %v1653_v22 = vrot.slane %v1652_v38, 2  ;;  %v457_v37 = vrot.slane %v360_v13, 4  ;;  %v3649_v57 = vadd.f32 %v1045_v36, %v1044_v28  ;;  %v3698_v35 = vld [vmem:[%s4458_s0 + $0x3b0] sm:$0xff] }
 0x16f   :  { %v809_v39 = vrot.slane %v712_v6, 4  ;;  %v352_v42 = vmul.f32 %v3633_v0, %v3618_v27  ;;  %v704_v53 = vmul.f32 %v3624_v10, %v3638_v26  ;;  %v1187_v61 = vrot.slane %v1015_v55, 4 }
 0x170   :  { %4563 = vst [vmem:[#allocation38_spill] sm:$0xff] %v3649_v57  ;;  %v3656_v51 = vmul.f32 %v504_v5, %v3527_v23  ;;  %v1321_v12 = vrot.slane %v1224_v29, 4  ;;  %v1609_v2 = vrot.slane %v1512_v34, 4  ;;  %v3659_v49 = vadd.f32 %v1845_v54, %v1844_v48 }
 0x171   :  { %v1815_v32 = vmul.f32 %v1783_v25, %v1495_v63  ;;  %v1216_v56 = vmul.f32 %v3647_v9, %v3618_v27  ;;  %v854_v28 = vadd.f32 %v853_v3, %v852_v14  ;;  %v1366_v15 = vadd.f32 %v1365_v17, %v1364_v20  ;;  %v3677_v3 = vld [vmem:[%s4458_s0 + $0x3a0] sm:$0xff] }
 0x172   :  { %4564 = vst [vmem:[#allocation39_spill] sm:$0xff] %v3659_v49  ;;  %v1654_v41 = vadd.f32 %v1653_v22, %v1652_v38  ;;  %v458_v31 = vadd.f32 %v457_v37, %v360_v13  ;;  %v810_v44 = vadd.f32 %v809_v39, %v712_v6  ;;  %v409_v36 = vrot.slane %v352_v42, 4 }
 0x173   :  { %v761_v5 = vrot.slane %v704_v53, 4  ;;  %v1188_v48 = vadd.f32 %v1187_v61, %v1015_v55  ;;  %v1322_v63 = vadd.f32 %v1321_v12, %v1224_v29  ;;  %v1610_v25 = vadd.f32 %v1609_v2, %v1512_v34  ;;  %v3679_v61 = vpop.permute.xlu1 %235  ;;  %v3684_v12 = vld [vmem:[%s4459_s1 + $0xe8] sm:$0xff]  ;;  %v3686_v2 = vpop.f32.mrb[0].mxu0 }
 0x174   :  { %v1987_v20 = vrot.slane %v1815_v32, 4  ;;  %v1273_v38 = vrot.slane %v1216_v56, 4  ;;  %v1504_v13 = vmul.f32 %v3624_v10, %v3666_v7  ;;  %v855_v6 = vrot.slane %v854_v28, 1  ;;  %4565 = vst [vmem:[#allocation40_spill] sm:$0xff] %v3686_v2 }
 0x175   :  { %v1367_v17 = vrot.slane %v1366_v15, 1  ;;  %v1655_v55 = vrot.slane %v1654_v41, 1  ;;  %v459_v22 = vrot.slane %v458_v31, 2  ;;  %v811_v37 = vrot.slane %v810_v44, 2 }
 0x176   :  { %v410_v39 = vadd.f32 %v409_v36, %v352_v42  ;;  %v762_v29 = vadd.f32 %v761_v5, %v704_v53  ;;  %v1561_v34 = vrot.slane %v1504_v13, 4  ;;  %v1323_v21 = vrot.slane %v1322_v63, 2 }
 0x177   :  { %v1611_v40 = vrot.slane %v1610_v25, 2  ;;  %v376_v14 = vmul.f32 %v3677_v3, %v3679_v61  ;;  %v3691_v52 = vsub.f32 0.0, %v3679_v61  ;;  %v1189_v42 = vrot.slane %v1188_v48, 2 }
 0x178   :  { %v3693_v53 = vadd.f32 %v1987_v20, %v1815_v32  ;;  %v1274_v36 = vadd.f32 %v1273_v38, %v1216_v56  ;;  %v1562_v5 = vadd.f32 %v1561_v34, %v1504_v13  ;;  %v856_v54 = vadd.f32 %v855_v6, %v854_v28  ;;  %v3705_v32 = vld [vmem:[%s4458_s0 + $0x3b8] sm:$0xff] }
 0x179   :  { %v1368_v11 = vadd.f32 %v1367_v17, %v1366_v15  ;;  %v460_v18 = vadd.f32 %v459_v22, %v458_v31  ;;  %v728_v50 = vmul.f32 %v3691_v52, %v3684_v12  ;;  %v1656_v60 = vadd.f32 %v1655_v55, %v1654_v41 }
 0x17a   :  { %v812_v4 = vadd.f32 %v811_v37, %v810_v44  ;;  %v411_v1 = vrot.slane %v410_v39, 2  ;;  %v763_v49 = vrot.slane %v762_v29, 2  ;;  %v1324_v56 = vadd.f32 %v1323_v21, %v1322_v63 }
 0x17b   :  { %v1612_v28 = vadd.f32 %v1611_v40, %v1610_v25  ;;  %v553_v15 = vrot.slane %v376_v14, 4  ;;  %v905_v31 = vrot.slane %v728_v50, 4  ;;  %v3707_v20 = vadd.f32 %v1189_v42, %v1188_v48 }
 0x17c   :  { %v1275_v38 = vrot.slane %v1274_v36, 2  ;;  %v1563_v13 = vrot.slane %v1562_v5, 2  ;;  %v1240_v6 = vmul.f32 %v3698_v35, %v3679_v61  ;;  %v943_v41 = vmul.f32 %v856_v54, %v3552_v8 }
 0x17d   :  { %4566 = vst [vmem:[#allocation41_spill] sm:$0xff] %v3707_v20  ;;  %v1455_v44 = vmul.f32 %v1368_v11, %v3527_v23  ;;  %v461_v17 = vrot.slane %v460_v18, 1  ;;  %v1528_v55 = vmul.f32 %v3691_v52, %v3705_v32  ;;  %v1743_v21 = vmul.f32 %v1656_v60, %v3552_v8  ;;  %v3722_v8 = vld [vmem:[%s4458_s0 + $0x2a0] sm:$0xff] }
 0x17e   :  { %v813_v40 = vrot.slane %v812_v4, 1  ;;  %v412_v63 = vadd.f32 %v411_v1, %v410_v39  ;;  %v764_v25 = vadd.f32 %v763_v49, %v762_v29  ;;  %v1325_v48 = vrot.slane %v1324_v56, 1 }
 0x17f   :  { %v1613_v22 = vrot.slane %v1612_v28, 1  ;;  %v554_v37 = vadd.f32 %v553_v15, %v376_v14  ;;  %v906_v34 = vadd.f32 %v905_v31, %v728_v50  ;;  %v1989_v42 = vrot.slane %v3693_v53, 2 }
 0x180   :  { %v1276_v62 = vadd.f32 %v1275_v38, %v1274_v36  ;;  %v1564_v57 = vadd.f32 %v1563_v13, %v1562_v5  ;;  %v1417_v54 = vrot.slane %v1240_v6, 4  ;;  %v975_v23 = vsub.f32 %v3567_v43, %v943_v41  ;;  %v3725_v5 = vpop.permute.xlu0 %179 }
 0x181   :  { %v1487_v11 = vsub.f32 %v3557_v45, %v1455_v44  ;;  %v462_v46 = vadd.f32 %v461_v17, %v460_v18  ;;  %v1705_v2 = vrot.slane %v1528_v55, 4  ;;  %v1775_v1 = vsub.f32 %v3562_v30, %v1743_v21  ;;  %v3742_v17 = vld [vmem:[%s4459_s1 + $0xa8] sm:$0xff] }
 0x182   :  { %v814_v60 = vadd.f32 %v813_v40, %v812_v4  ;;  %v413_v50 = vrot.slane %v412_v63, 1  ;;  %v765_v49 = vrot.slane %v764_v25, 1  ;;  %v1326_v14 = vadd.f32 %v1325_v48, %v1324_v56 }
 0x183   :  { %v1614_v39 = vadd.f32 %v1613_v22, %v1612_v28  ;;  %v555_v29 = vrot.slane %v554_v37, 2  ;;  %v907_v36 = vrot.slane %v906_v34, 2  ;;  %v1277_v43 = vrot.slane %v1276_v62, 1  ;;  %v3736_v28 = vpop.f32.mrb[0].mxu1 }
 0x184   :  { %v1565_v45 = vrot.slane %v1564_v57, 1  ;;  %v1418_v18 = vadd.f32 %v1417_v54, %v1240_v6  ;;  %v368_v15 = vmul.f32 %v3722_v8, %v3725_v5  ;;  %v4567_v31 = vsub.f32 %v3522_v47, %v3656_v51 }
 0x185   :  { %v584_v4 = vmul.f32 %v462_v46, %v3581_v33  ;;  %v1706_v30 = vadd.f32 %v1705_v2, %v1528_v55  ;;  %v3734_v56 = vsub.f32 0.0, %v3725_v5  ;;  %v1807_v13 = vmul.f32 %v1775_v1, %v1487_v11 }
 0x186   :  { %v1007_v38 = vmul.f32 %v975_v23, %v4567_v31  ;;  %v936_v41 = vmul.f32 %v814_v60, %v3593_v16  ;;  %v414_v44 = vadd.f32 %v413_v50, %v412_v63  ;;  %v766_v6 = vadd.f32 %v765_v49, %v764_v25 }
 0x187   :  { %v1448_v47 = vmul.f32 %v1326_v14, %v3581_v33  ;;  %v1736_v46 = vmul.f32 %v1614_v39, %v3593_v16  ;;  %v556_v51 = vadd.f32 %v555_v29, %v554_v37  ;;  %v908_v2 = vadd.f32 %v907_v36, %v906_v34 }
 0x188   :  { %v1278_v55 = vadd.f32 %v1277_v43, %v1276_v62  ;;  %v1566_v21 = vadd.f32 %v1565_v45, %v1564_v57  ;;  %v1419_v40 = vrot.slane %v1418_v18, 2  ;;  %v505_v48 = vrot.slane %v368_v15, 4  ;;  %v3755_v62 = vld [vmem:[%s4458_s0 + $0x2b0] sm:$0xff] }
 0x189   :  { %v1139_v22 = vrot.slane %v1007_v38, 4  ;;  %v616_v54 = vsub.f32 %v3590_v19, %v584_v4  ;;  %v1707_v63 = vrot.slane %v1706_v30, 2  ;;  %v720_v25 = vmul.f32 %v3734_v56, %v3742_v17  ;;  %v3760_v19 = vld [vmem:[%s4458_s0 + $0x2b8] sm:$0xff] }
 0x18a   :  { %v1939_v23 = vrot.slane %v1807_v13, 4  ;;  %v968_v11 = vsub.f32 %v3602_v59, %v936_v41  ;;  %v576_v33 = vmul.f32 %v414_v44, %v3618_v27  ;;  %v928_v16 = vmul.f32 %v766_v6, %v3624_v10 }
 0x18b   :  { %v1480_v57 = vsub.f32 %v3609_v58, %v1448_v47  ;;  %v1768_v37 = vsub.f32 %v3614_v24, %v1736_v46  ;;  %v557_v34 = vrot.slane %v556_v51, 1  ;;  %v909_v59 = vrot.slane %v908_v2, 1 }
 0x18c   :  { %v1440_v1 = vmul.f32 %v1278_v55, %v3618_v27  ;;  %v1728_v60 = vmul.f32 %v1566_v21, %v3624_v10  ;;  %v1420_v50 = vadd.f32 %v1419_v40, %v1418_v18  ;;  %v506_v49 = vadd.f32 %v505_v48, %v368_v15  ;;  %v3772_v18 = vpop.f32.mrb[1].mxu0  ;;  %v3784_v21 = vpop.permute.xlu1 %130 }
 0x18d   :  { %v1708_v14 = vadd.f32 %v1707_v63, %v1706_v30  ;;  %v857_v39 = vrot.slane %v720_v25, 4  ;;  %v1232_v29 = vmul.f32 %v3755_v62, %v3725_v5  ;;  %v1520_v36 = vmul.f32 %v3734_v56, %v3760_v19  ;;  %4568 = vst [vmem:[#allocation42_spill] sm:$0xff] %v3772_v18 }
 0x18e   :  { %v1140_v43 = vadd.f32 %v1139_v22, %v1007_v38  ;;  %v1940_v58 = vadd.f32 %v1939_v23, %v1807_v13  ;;  %v608_v24 = vsub.f32 %v3633_v0, %v576_v33  ;;  %v960_v45 = vsub.f32 %v3638_v26, %v928_v16 }
 0x18f   :  { %v1000_v31 = vmul.f32 %v968_v11, %v616_v54  ;;  %v1800_v27 = vmul.f32 %v1768_v37, %v1480_v57  ;;  %v558_v4 = vadd.f32 %v557_v34, %v556_v51  ;;  %v910_v10 = vadd.f32 %v909_v59, %v908_v2 }
 0x190   :  { %v1472_v15 = vsub.f32 %v3647_v9, %v1440_v1  ;;  %v1760_v30 = vsub.f32 %v3666_v7, %v1728_v60  ;;  %v1421_v41 = vrot.slane %v1420_v50, 1  ;;  %v507_v44 = vrot.slane %v506_v49, 2  ;;  %v3801_v1 = vld [vmem:[%s4458_s0 + $0x1c0] sm:$0xff]  ;;  %v3806_v60 = vld [vmem:[%s4459_s1 + $0x70] sm:$0xff] }
 0x191   :  { %v1709_v6 = vrot.slane %v1708_v14, 1  ;;  %v858_v47 = vadd.f32 %v857_v39, %v720_v25  ;;  %v1369_v38 = vrot.slane %v1232_v29, 4  ;;  %v1657_v13 = vrot.slane %v1520_v36, 4 }
 0x192   :  { %v3780_v26 = vadd.f32 %v1989_v42, %v3693_v53  ;;  %v1141_v46 = vrot.slane %v1140_v43, 2  ;;  %v992_v51 = vmul.f32 %v960_v45, %v608_v24  ;;  %v1941_v2 = vrot.slane %v1940_v58, 2 }
 0x193   :  { %v1097_v55 = vrot.slane %v1000_v31, 4  ;;  %v600_v9 = vmul.f32 %v558_v4, %v3679_v61  ;;  %v952_v7 = vmul.f32 %v910_v10, %v3691_v52  ;;  %v1897_v40 = vrot.slane %v1800_v27, 4 }
 0x194   :  { %4569 = vst [vmem:[#allocation43_spill] sm:$0xff] %v3780_v26  ;;  %v1792_v48 = vmul.f32 %v1760_v30, %v1472_v15  ;;  %v1422_v22 = vadd.f32 %v1421_v41, %v1420_v50  ;;  %v508_v54 = vadd.f32 %v507_v44, %v506_v49  ;;  %v1710_v63 = vadd.f32 %v1709_v6, %v1708_v14  ;;  %v3838_v6 = vld [vmem:[%s4458_s0 + $0x1d8] sm:$0xff] }
 0x195   :  { %v859_v25 = vrot.slane %v858_v47, 2  ;;  %v1370_v23 = vadd.f32 %v1369_v38, %v1232_v29  ;;  %v1658_v11 = vadd.f32 %v1657_v13, %v1520_v36  ;;  %v3787_v42 = vadd.f32 %v1141_v46, %v1140_v43  ;;  %v3811_v29 = vpop.permute.xlu0 %74  ;;  %v3848_v38 = vld [vmem:[%s4459_s1 + $0x30] sm:$0xff]  ;;  %v3850_v13 = vpop.f32.mrb[1].mxu1 }
 0x196   :  { %v1049_v33 = vrot.slane %v992_v51, 4  ;;  %v3790_v16 = vsub.f32 0.0, %v3784_v21  ;;  %v3792_v57 = vadd.f32 %v1941_v2, %v1940_v58  ;;  %v3794_v37 = vadd.f32 %v1097_v55, %v1000_v31  ;;  %4576 = vst [vmem:[#allocation50_spill] sm:$0xff] %v3850_v13  ;;  %v3856_v55 = vld [vmem:[%s4458_s0 + $0xd0] sm:$0xff] }
 0x197   :  { %4570 = vst [vmem:[#allocation44_spill] sm:$0xff] %v3787_v42  ;;  %v632_v34 = vsub.f32 %v3677_v3, %v600_v9  ;;  %v984_v59 = vsub.f32 %v3684_v12, %v952_v7  ;;  %v3808_v50 = vadd.f32 %v1897_v40, %v1800_v27  ;;  %v1849_v49 = vrot.slane %v1792_v48, 4  ;;  %v3861_v9 = vld [vmem:[%s4458_s0 + $0xd8] sm:$0xff] }
 0x198   :  { %4571 = vst [vmem:[#allocation45_spill] sm:$0xff] %v3792_v57  ;;  %4572 = vst [vmem:[#allocation46_spill] sm:$0xff] %v3794_v37  ;;  %v1464_v14 = vmul.f32 %v1422_v22, %v3679_v61  ;;  %v509_v39 = vrot.slane %v508_v54, 1  ;;  %v1752_v3 = vmul.f32 %v1710_v63, %v3691_v52  ;;  %v860_v12 = vadd.f32 %v859_v25, %v858_v47  ;;  %v3826_v52 = vld [vmem:[%s4458_s0 + $0x1d0] sm:$0xff]  ;;  %v3843_v47 = vld [vmem:[%s4458_s0 + $0xc0] sm:$0xff] }
 0x199   :  { %4573 = vst [vmem:[#allocation47_spill] sm:$0xff] %v3808_v50  ;;  %v1371_v36 = vrot.slane %v1370_v23, 2  ;;  %v1659_v43 = vrot.slane %v1658_v11, 2  ;;  %v3815_v24 = vadd.f32 %v1049_v33, %v992_v51  ;;  %v361_v45 = vmul.f32 %v3801_v1, %v3784_v21  ;;  %v3908_v37 = vld [vmem:[%s4458_s0 + $0x3d0] sm:$0xff]  ;;  %v3934_v57 = vpop.permute.xlu0 %186 }
 0x19a   :  { %v713_v31 = vmul.f32 %v3790_v16, %v3806_v60  ;;  %v1016_v4 = vmul.f32 %v984_v59, %v632_v34  ;;  %v3829_v10 = vsub.f32 0.0, %v3811_v29  ;;  %v3832_v30 = vadd.f32 %v1849_v49, %v1792_v48 }
 0x19b   :  { %4574 = vst [vmem:[#allocation48_spill] sm:$0xff] %v3815_v24  ;;  %v1496_v41 = vsub.f32 %v3698_v35, %v1464_v14  ;;  %v510_v44 = vadd.f32 %v509_v39, %v508_v54  ;;  %v1784_v35 = vsub.f32 %v3705_v32, %v1752_v3  ;;  %v861_v46 = vrot.slane %v860_v12, 1  ;;  %v3878_v3 = vpop.permute.xlu1 %242 }
 0x19c   :  { %4575 = vst [vmem:[#allocation49_spill] sm:$0xff] %v3832_v30  ;;  %v1372_v51 = vadd.f32 %v1371_v36, %v1370_v23  ;;  %v1660_v2 = vadd.f32 %v1659_v43, %v1658_v11  ;;  %v463_v40 = vrot.slane %v361_v45, 4  ;;  %v815_v48 = vrot.slane %v713_v31, 4  ;;  %v3883_v36 = vld [vmem:[%s4458_s0 + $0x3c0] sm:$0xff]  ;;  %v3888_v43 = vld [vmem:[%s4459_s1 + $0xf0] sm:$0xff] }
 0x19d   :  { %v1225_v32 = vmul.f32 %v3826_v52, %v3784_v21  ;;  %v1193_v22 = vrot.slane %v1016_v4, 4  ;;  %v1513_v54 = vmul.f32 %v3790_v16, %v3838_v6  ;;  %v353_v63 = vmul.f32 %v3843_v47, %v3811_v29 }
 0x19e   :  { %v705_v25 = vmul.f32 %v3829_v10, %v3848_v38  ;;  %v592_v11 = vmul.f32 %v510_v44, %v3725_v5  ;;  %v1217_v33 = vmul.f32 %v3856_v55, %v3811_v29  ;;  %v1505_v34 = vmul.f32 %v3829_v10, %v3861_v9  ;;  %v3890_v44 = vpop.f32.mrb[2].mxu0 }
 0x19f   :  { %v1816_v59 = vmul.f32 %v1784_v35, %v1496_v41  ;;  %v862_v49 = vadd.f32 %v861_v46, %v860_v12  ;;  %v1373_v14 = vrot.slane %v1372_v51, 1  ;;  %v1661_v39 = vrot.slane %v1660_v2, 1  ;;  %4577 = vst [vmem:[#allocation51_spill] sm:$0xff] %v3890_v44  ;;  %v3895_v35 = vpop.f32.mrb[2].mxu1 }
 0x1a0   :  { %v464_v53 = vadd.f32 %v463_v40, %v361_v45  ;;  %v816_v0 = vadd.f32 %v815_v48, %v713_v31  ;;  %v1327_v41 = vrot.slane %v1225_v32, 4  ;;  %v3893_v12 = vsub.f32 0.0, %v3878_v3  ;;  %4578 = vst [vmem:[#allocation52_spill] sm:$0xff] %v3895_v35 }
 0x1a1   :  { %v3897_v46 = vadd.f32 %v1193_v22, %v1016_v4  ;;  %v1615_v15 = vrot.slane %v1513_v54, 4  ;;  %v415_v27 = vrot.slane %v353_v63, 4  ;;  %v767_v61 = vrot.slane %v705_v25, 4 }
 0x1a2   :  { %v1279_v58 = vrot.slane %v1217_v33, 4  ;;  %v1567_v23 = vrot.slane %v1505_v34, 4  ;;  %v377_v7 = vmul.f32 %v3883_v36, %v3878_v3  ;;  %v729_v45 = vmul.f32 %v3893_v12, %v3888_v43 }
 0x1a3   :  { %4579 = vst [vmem:[#allocation53_spill] sm:$0xff] %v3897_v46  ;;  %v624_v31 = vsub.f32 %v3722_v8, %v592_v11  ;;  %v944_v40 = vmul.f32 %v862_v49, %v3734_v56  ;;  %v1374_v48 = vadd.f32 %v1373_v14, %v1372_v51  ;;  %v1662_v26 = vadd.f32 %v1661_v39, %v1660_v2  ;;  %v3914_v8 = vld [vmem:[%s4458_s0 + $0x3d8] sm:$0xff] }
 0x1a4   :  { %v1993_v20 = vrot.slane %v1816_v59, 4  ;;  %v465_v4 = vrot.slane %v464_v53, 2  ;;  %v817_v22 = vrot.slane %v816_v0, 2  ;;  %v1328_v50 = vadd.f32 %v1327_v41, %v1225_v32 }
 0x1a5   :  { %v1616_v35 = vadd.f32 %v1615_v15, %v1513_v54  ;;  %v416_v42 = vadd.f32 %v415_v27, %v353_v63  ;;  %v768_v44 = vadd.f32 %v767_v61, %v705_v25  ;;  %v1280_v51 = vadd.f32 %v1279_v58, %v1217_v33  ;;  %v3921_v27 = vpop.f32.mrb[3].mxu0 }
 0x1a6   :  { %v1568_v2 = vadd.f32 %v1567_v23, %v1505_v34  ;;  %v559_v11 = vrot.slane %v377_v7, 4  ;;  %v911_v49 = vrot.slane %v729_v45, 4  ;;  %v976_v32 = vsub.f32 %v3742_v17, %v944_v40  ;;  %4580 = vst [vmem:[#allocation54_spill] sm:$0xff] %v3921_v27 }
 0x1a7   :  { %v1456_v14 = vmul.f32 %v1374_v48, %v3725_v5  ;;  %v1744_v39 = vmul.f32 %v1662_v26, %v3734_v56  ;;  %v1241_v15 = vmul.f32 %v3908_v37, %v3878_v3  ;;  %v466_v61 = vadd.f32 %v465_v4, %v464_v53  ;;  %v3930_v26 = vld [vmem:[%s4458_s0 + $0x2c0] sm:$0xff] }
 0x1a8   :  { %v818_v54 = vadd.f32 %v817_v22, %v816_v0  ;;  %v1329_v63 = vrot.slane %v1328_v50, 2  ;;  %v1529_v58 = vmul.f32 %v3893_v12, %v3914_v8  ;;  %v3925_v25 = vadd.f32 %v1993_v20, %v1816_v59 }
 0x1a9   :  { %v1617_v23 = vrot.slane %v1616_v35, 2  ;;  %v417_v33 = vrot.slane %v416_v42, 2  ;;  %v769_v17 = vrot.slane %v768_v44, 2  ;;  %v1281_v34 = vrot.slane %v1280_v51, 2 }
 0x1aa   :  { %4581 = vst [vmem:[#allocation55_spill] sm:$0xff] %v3925_v25  ;;  %v1569_v5 = vrot.slane %v1568_v2, 2  ;;  %v560_v41 = vadd.f32 %v559_v11, %v377_v7  ;;  %v912_v56 = vadd.f32 %v911_v49, %v729_v45  ;;  %v1008_v53 = vmul.f32 %v976_v32, %v624_v31 }
 0x1ab   :  { %v1488_v0 = vsub.f32 %v3755_v62, %v1456_v14  ;;  %v1776_v40 = vsub.f32 %v3760_v19, %v1744_v39  ;;  %v1423_v48 = vrot.slane %v1241_v15, 4  ;;  %v467_v20 = vrot.slane %v466_v61, 1 }
 0x1ac   :  { %v819_v59 = vrot.slane %v818_v54, 1  ;;  %v1330_v4 = vadd.f32 %v1329_v63, %v1328_v50  ;;  %v1711_v22 = vrot.slane %v1529_v58, 4  ;;  %v1618_v46 = vadd.f32 %v1617_v23, %v1616_v35 }
 0x1ad   :  { %v418_v7 = vadd.f32 %v417_v33, %v416_v42  ;;  %v770_v45 = vadd.f32 %v769_v17, %v768_v44  ;;  %v369_v11 = vmul.f32 %v3930_v26, %v3934_v57  ;;  %v1282_v49 = vadd.f32 %v1281_v34, %v1280_v51  ;;  %v3946_v42 = vld [vmem:[%s4459_s1 + $0xb0] sm:$0xff] }
 0x1ae   :  { %v1570_v25 = vadd.f32 %v1569_v5, %v1568_v2  ;;  %v561_v31 = vrot.slane %v560_v41, 2  ;;  %v913_v32 = vrot.slane %v912_v56, 2  ;;  %v1145_v62 = vrot.slane %v1008_v53, 4  ;;  %v3948_v5 = vpop.f32.mrb[3].mxu1 }
 0x1af   :  { %v3938_v14 = vmul.f32 %v1776_v40, %v1488_v0  ;;  %v1424_v19 = vadd.f32 %v1423_v48, %v1241_v15  ;;  %v3941_v39 = vsub.f32 0.0, %v3934_v57  ;;  %v468_v50 = vadd.f32 %v467_v20, %v466_v61  ;;  %4582 = vst [vmem:[#allocation56_spill] sm:$0xff] %v3948_v5 }
 0x1b0   :  { %v820_v63 = vadd.f32 %v819_v59, %v818_v54  ;;  %v1331_v27 = vrot.slane %v1330_v4, 1  ;;  %v1712_v35 = vadd.f32 %v1711_v22, %v1529_v58  ;;  %v1619_v44 = vrot.slane %v1618_v46, 1 }
 0x1b1   :  { %v419_v51 = vrot.slane %v418_v7, 1  ;;  %v771_v2 = vrot.slane %v770_v45, 1  ;;  %v511_v23 = vrot.slane %v369_v11, 4  ;;  %v1283_v33 = vrot.slane %v1282_v49, 1 }
 0x1b2   :  { %v1571_v17 = vrot.slane %v1570_v25, 1  ;;  %v562_v34 = vadd.f32 %v561_v31, %v560_v41  ;;  %v914_v15 = vadd.f32 %v913_v32, %v912_v56  ;;  %v3950_v0 = vadd.f32 %v1145_v62, %v1008_v53  ;;  %v3960_v41 = vld [vmem:[%s4458_s0 + $0x2d0] sm:$0xff]  ;;  %v3965_v56 = vld [vmem:[%s4458_s0 + $0x2d8] sm:$0xff] }
 0x1b3   :  { %v1945_v61 = vrot.slane %v3938_v14, 4  ;;  %v1425_v54 = vrot.slane %v1424_v19, 2  ;;  %v721_v58 = vmul.f32 %v3941_v39, %v3946_v42  ;;  %v585_v40 = vmul.f32 %v468_v50, %v3784_v21 }
 0x1b4   :  { %4583 = vst [vmem:[#allocation57_spill] sm:$0xff] %v3950_v0  ;;  %v937_v48 = vmul.f32 %v820_v63, %v3790_v16  ;;  %v1332_v20 = vadd.f32 %v1331_v27, %v1330_v4  ;;  %v1713_v59 = vrot.slane %v1712_v35, 2  ;;  %v1620_v53 = vadd.f32 %v1619_v44, %v1618_v46 }
 0x1b5   :  { %v420_v22 = vadd.f32 %v419_v51, %v418_v7  ;;  %v772_v31 = vadd.f32 %v771_v2, %v770_v45  ;;  %v512_v32 = vadd.f32 %v511_v23, %v369_v11  ;;  %v1284_v62 = vadd.f32 %v1283_v33, %v1282_v49 }
 0x1b6   :  { %v1572_v50 = vadd.f32 %v1571_v17, %v1570_v25  ;;  %v563_v5 = vrot.slane %v562_v34, 1  ;;  %v915_v63 = vrot.slane %v914_v15, 1  ;;  %v1426_v27 = vadd.f32 %v1425_v54, %v1424_v19 }
 0x1b7   :  { %v863_v4 = vrot.slane %v721_v58, 4  ;;  %v1233_v30 = vmul.f32 %v3960_v41, %v3934_v57  ;;  %v1521_v13 = vmul.f32 %v3941_v39, %v3965_v56  ;;  %v617_v18 = vsub.f32 %v3801_v1, %v585_v40 }
 0x1b8   :  { %v969_v24 = vsub.f32 %v3806_v60, %v937_v48  ;;  %v1449_v46 = vmul.f32 %v1332_v20, %v3784_v21  ;;  %v1714_v7 = vadd.f32 %v1713_v59, %v1712_v35  ;;  %v1737_v45 = vmul.f32 %v1620_v53, %v3790_v16  ;;  %v4000_v20 = vpop.permute.xlu0 %81 }
 0x1b9   :  { %v577_v25 = vmul.f32 %v420_v22, %v3811_v29  ;;  %v929_v11 = vmul.f32 %v772_v31, %v3829_v10  ;;  %v513_v49 = vrot.slane %v512_v32, 2  ;;  %v1441_v19 = vmul.f32 %v1284_v62, %v3811_v29 }
 0x1ba   :  { %v1729_v44 = vmul.f32 %v1572_v50, %v3829_v10  ;;  %v564_v51 = vadd.f32 %v563_v5, %v562_v34  ;;  %v916_v2 = vadd.f32 %v915_v63, %v914_v15  ;;  %v1427_v23 = vrot.slane %v1426_v27, 1  ;;  %v3987_v10 = vld [vmem:[%s4458_s0 + $0x1e0] sm:$0xff] }
 0x1bb   :  { %v864_v1 = vadd.f32 %v863_v4, %v721_v58  ;;  %v1375_v33 = vrot.slane %v1233_v30, 4  ;;  %v1663_v60 = vrot.slane %v1521_v13, 4  ;;  %v1001_v35 = vmul.f32 %v969_v24, %v617_v18  ;;  %v3992_v34 = vld [vmem:[%s4458_s0 + $0xe0] sm:$0xff]  ;;  %v3998_v58 = vpop.permute.xlu1 %137 }
 0x1bc   :  { %v1481_v16 = vsub.f32 %v3826_v52, %v1449_v46  ;;  %v1715_v17 = vrot.slane %v1714_v7, 1  ;;  %v1769_v54 = vsub.f32 %v3838_v6, %v1737_v45  ;;  %v609_v40 = vsub.f32 %v3843_v47, %v577_v25 }
 0x1bd   :  { %v961_v29 = vsub.f32 %v3848_v38, %v929_v11  ;;  %v514_v48 = vadd.f32 %v513_v49, %v512_v32  ;;  %v1473_v18 = vsub.f32 %v3856_v55, %v1441_v19  ;;  %v1761_v24 = vsub.f32 %v3861_v9, %v1729_v44 }
 0x1be   :  { %v601_v52 = vmul.f32 %v564_v51, %v3878_v3  ;;  %v953_v6 = vmul.f32 %v916_v2, %v3893_v12  ;;  %v1428_v47 = vadd.f32 %v1427_v23, %v1426_v27  ;;  %v865_v38 = vrot.slane %v864_v1, 2 }
 0x1bf   :  { %v1376_v15 = vadd.f32 %v1375_v33, %v1233_v30  ;;  %v1664_v5 = vadd.f32 %v1663_v60, %v1521_v13  ;;  %v4003_v59 = vadd.f32 %v1945_v61, %v3938_v14  ;;  %v1716_v53 = vadd.f32 %v1715_v17, %v1714_v7  ;;  %v4012_v30 = vld [vmem:[%s4459_s1 + $0x38] sm:$0xff] }
 0x1c0   :  { %v362_v55 = vmul.f32 %v3987_v10, %v3998_v58  ;;  %v354_v9 = vmul.f32 %v3992_v34, %v4000_v20  ;;  %v1103_v22 = vrot.slane %v1001_v35, 4  ;;  %v1801_v31 = vmul.f32 %v1769_v54, %v1481_v16  ;;  %v4039_v16 = vld [vmem:[%s4458_s0 + $0x2e0] sm:$0xff] }
 0x1c1   :  { %4584 = vst [vmem:[#allocation58_spill] sm:$0xff] %v4003_v59  ;;  %v993_v32 = vmul.f32 %v961_v29, %v609_v40  ;;  %v515_v62 = vrot.slane %v514_v48, 1  ;;  %v1793_v13 = vmul.f32 %v1761_v24, %v1473_v18  ;;  %v633_v14 = vsub.f32 %v3883_v36, %v601_v52  ;;  %v4046_v40 = vld [vmem:[%s4458_s0 + $0x1f0] sm:$0xff] }
 0x1c2   :  { %v985_v61 = vsub.f32 %v3888_v43, %v953_v6  ;;  %v4017_v50 = vsub.f32 0.0, %v4000_v20  ;;  %v1465_v63 = vmul.f32 %v1428_v47, %v3878_v3  ;;  %v866_v27 = vadd.f32 %v865_v38, %v864_v1  ;;  %v4055_v6 = vpop.permute.xlu0 %193  ;;  %v4065_v38 = vld [vmem:[%s4458_s0 + $0xf0] sm:$0xff] }
 0x1c3   :  { %v1377_v4 = vrot.slane %v1376_v15, 2  ;;  %v1665_v46 = vrot.slane %v1664_v5, 2  ;;  %v1753_v7 = vmul.f32 %v1716_v53, %v3893_v12  ;;  %v469_v45 = vrot.slane %v362_v55, 4  ;;  %v4032_v12 = vld [vmem:[%s4459_s1 + $0x78] sm:$0xff] }
 0x1c4   :  { %v421_v25 = vrot.slane %v354_v9, 4  ;;  %v706_v11 = vmul.f32 %v4017_v50, %v4012_v30  ;;  %v1903_v36 = vrot.slane %v1801_v31, 4  ;;  %v516_v19 = vadd.f32 %v515_v62, %v514_v48 }
 0x1c5   :  { %v4025_v43 = vsub.f32 0.0, %v3998_v58  ;;  %v1055_v44 = vrot.slane %v993_v32, 4  ;;  %v1855_v51 = vrot.slane %v1793_v13, 4  ;;  %v4027_v3 = vmul.f32 %v985_v61, %v633_v14 }
 0x1c6   :  { %v773_v2 = vrot.slane %v706_v11, 4  ;;  %v4034_v23 = vadd.f32 %v1103_v22, %v1001_v35  ;;  %v867_v1 = vrot.slane %v866_v27, 1  ;;  %v1378_v33 = vadd.f32 %v1377_v4, %v1376_v15 }
 0x1c7   :  { %4585 = vst [vmem:[#allocation59_spill] sm:$0xff] %v4027_v3  ;;  %v1666_v60 = vadd.f32 %v1665_v46, %v1664_v5  ;;  %v1497_v17 = vsub.f32 %v3908_v37, %v1465_v63  ;;  %v1785_v54 = vsub.f32 %v3914_v8, %v1753_v7  ;;  %v470_v29 = vadd.f32 %v469_v45, %v362_v55  ;;  %v4098_v7 = vld [vmem:[%s4458_s0 + $0x2f0] sm:$0xff] }
 0x1c8   :  { %4586 = vst [vmem:[#allocation60_spill] sm:$0xff] %v4034_v23  ;;  %v422_v35 = vadd.f32 %v421_v25, %v354_v9  ;;  %v4048_v48 = vadd.f32 %v1903_v36, %v1801_v31  ;;  %v4051_v18 = vmul.f32 %v516_v19, %v3934_v57  ;;  %v714_v24 = vmul.f32 %v4025_v43, %v4032_v12  ;;  %v4072_v9 = vld [vmem:[%s4458_s0 + $0x1f8] sm:$0xff] }
 0x1c9   :  { %v774_v52 = vadd.f32 %v773_v2, %v706_v11  ;;  %v4057_v37 = vadd.f32 %v1055_v44, %v993_v32  ;;  %v4059_v8 = vadd.f32 %v1855_v51, %v1793_v13  ;;  %v370_v15 = vmul.f32 %v4039_v16, %v4055_v6  ;;  %v4079_v31 = vld [vmem:[%s4458_s0 + $0xf8] sm:$0xff] }
 0x1ca   :  { %4587 = vst [vmem:[#allocation61_spill] sm:$0xff] %v4048_v48  ;;  %v868_v5 = vadd.f32 %v867_v1, %v866_v27  ;;  %v1379_v53 = vrot.slane %v1378_v33, 1  ;;  %v1667_v55 = vrot.slane %v1666_v60, 1  ;;  %v1226_v22 = vmul.f32 %v4046_v40, %v3998_v58  ;;  %v4084_v32 = vld [vmem:[%s4459_s1 + $0xb8] sm:$0xff] }
 0x1cb   :  { %4588 = vst [vmem:[#allocation62_spill] sm:$0xff] %v4059_v8  ;;  %v4086_v62 = vmul.f32 %v1785_v54, %v1497_v17  ;;  %v471_v13 = vrot.slane %v470_v29, 2  ;;  %v423_v14 = vrot.slane %v422_v35, 2  ;;  %v4089_v61 = vsub.f32 0.0, %v4055_v6 }
 0x1cc   :  { %v625_v63 = vsub.f32 %v3930_v26, %v4051_v18  ;;  %v821_v27 = vrot.slane %v714_v24, 4  ;;  %v775_v4 = vrot.slane %v774_v52, 2  ;;  %v1218_v46 = vmul.f32 %v4065_v38, %v4000_v20  ;;  %v4107_v26 = vld [vmem:[%s4458_s0 + $0x2f8] sm:$0xff] }
 0x1cd   :  { %4589 = vst [vmem:[#allocation63_spill] sm:$0xff] %v4086_v62  ;;  %v1514_v45 = vmul.f32 %v4025_v43, %v4072_v9  ;;  %v1506_v25 = vmul.f32 %v4017_v50, %v4079_v31  ;;  %v517_v11 = vrot.slane %v370_v15, 4  ;;  %v722_v36 = vmul.f32 %v4089_v61, %v4084_v32 }
 0x1ce   :  { %v945_v19 = vmul.f32 %v868_v5, %v3941_v39  ;;  %v1380_v44 = vadd.f32 %v1379_v53, %v1378_v33  ;;  %v1668_v51 = vadd.f32 %v1667_v55, %v1666_v60  ;;  %v1333_v2 = vrot.slane %v1226_v22, 4 }
 0x1cf   :  { %v472_v1 = vadd.f32 %v471_v13, %v470_v29  ;;  %v424_v17 = vadd.f32 %v423_v14, %v422_v35  ;;  %v869_v54 = vrot.slane %v722_v36, 4  ;;  %v1234_v18 = vmul.f32 %v4098_v7, %v4055_v6 }
 0x1d0   :  { %v822_v47 = vadd.f32 %v821_v27, %v714_v24  ;;  %v776_v49 = vadd.f32 %v775_v4, %v774_v52  ;;  %v1285_v21 = vrot.slane %v1218_v46, 4  ;;  %v1522_v48 = vmul.f32 %v4089_v61, %v4107_v26 }
 0x1d1   :  { %v1621_v3 = vrot.slane %v1514_v45, 4  ;;  %v1573_v23 = vrot.slane %v1506_v25, 4  ;;  %v518_v59 = vadd.f32 %v517_v11, %v370_v15  ;;  %v870_v8 = vadd.f32 %v869_v54, %v722_v36  ;;  %v4123_v15 = vld [vmem:[%s4458_s0 + $0x3e0] sm:$0xff] }
 0x1d2   :  { %v977_v33 = vsub.f32 %v3946_v42, %v945_v19  ;;  %v1457_v60 = vmul.f32 %v1380_v44, %v3934_v57  ;;  %v1745_v29 = vmul.f32 %v1668_v51, %v3941_v39  ;;  %v1334_v35 = vadd.f32 %v1333_v2, %v1226_v22  ;;  %4590 = vst [vmem:[#allocation64_spill] sm:$0xff] %v4123_v15  ;;  %v4125_v39 = vpop.permute.xlu1 %249 }
 0x1d3   :  { %v473_v53 = vrot.slane %v472_v1, 1  ;;  %v425_v24 = vrot.slane %v424_v17, 1  ;;  %v1381_v52 = vrot.slane %v1234_v18, 4  ;;  %v823_v55 = vrot.slane %v822_v47, 2 }
 0x1d4   :  { %v777_v13 = vrot.slane %v776_v49, 1  ;;  %v1286_v14 = vadd.f32 %v1285_v21, %v1218_v46  ;;  %v1669_v27 = vrot.slane %v1522_v48, 4  ;;  %v1622_v42 = vadd.f32 %v1621_v3, %v1514_v45 }
 0x1d5   :  { %v1574_v4 = vadd.f32 %v1573_v23, %v1506_v25  ;;  %v519_v57 = vrot.slane %v518_v59, 2  ;;  %v871_v11 = vrot.slane %v870_v8, 2  ;;  %v1009_v22 = vmul.f32 %v977_v33, %v625_v63  ;;  %v4134_v23 = vld [vmem:[%s4459_s1 + $0xf8] sm:$0xff] }
 0x1d6   :  { %v1489_v36 = vsub.f32 %v3960_v41, %v1457_v60  ;;  %v1777_v19 = vsub.f32 %v3965_v56, %v1745_v29  ;;  %v1335_v44 = vrot.slane %v1334_v35, 2  ;;  %v474_v51 = vadd.f32 %v473_v53, %v472_v1  ;;  %4591 = vst [vmem:[#allocation65_spill] sm:$0xff] %v4134_v23 }
 0x1d7   :  { %v426_v21 = vadd.f32 %v425_v24, %v424_v17  ;;  %v1382_v46 = vadd.f32 %v1381_v52, %v1234_v18  ;;  %v378_v2 = vmul.f32 %v4123_v15, %v4125_v39  ;;  %v778_v54 = vadd.f32 %v777_v13, %v776_v49  ;;  %v4144_v49 = vld [vmem:[%s4458_s0 + $0x3f0] sm:$0xff] }
 0x1d8   :  { %v1287_v5 = vrot.slane %v1286_v14, 2  ;;  %v1670_v3 = vadd.f32 %v1669_v27, %v1522_v48  ;;  %v4137_v63 = vsub.f32 0.0, %v4125_v39  ;;  %v824_v41 = vadd.f32 %v823_v55, %v822_v47  ;;  %4593 = vst [vmem:[#allocation67_spill] sm:$0xff] %v4144_v49  ;;  %v4152_v47 = vld [vmem:[%s4458_s0 + $0x3f8] sm:$0xff] }
 0x1d9   :  { %v1575_v56 = vrot.slane %v1574_v4, 2  ;;  %v520_v45 = vadd.f32 %v519_v57, %v518_v59  ;;  %v872_v25 = vadd.f32 %v871_v11, %v870_v8  ;;  %v1151_v1 = vrot.slane %v1009_v22, 4  ;;  %4594 = vst [vmem:[#allocation68_spill] sm:$0xff] %v4152_v47 }
 0x1da   :  { %4592 = vst [vmem:[#allocation66_spill] sm:$0xff] %v4137_v63  ;;  %v4139_v17 = vmul.f32 %v1777_v19, %v1489_v36  ;;  %v1336_v18 = vadd.f32 %v1335_v44, %v1334_v35  ;;  %v1623_v33 = vrot.slane %v1622_v42, 2  ;;  %v4147_v48 = vmul.f32 %v474_v51, %v3998_v58 }
 0x1db   :  { %v1383_v60 = vrot.slane %v1382_v46, 2  ;;  %v565_v59 = vrot.slane %v378_v2, 4  ;;  %v730_v8 = vmul.f32 %v4137_v63, %v4134_v23  ;;  %v578_v29 = vmul.f32 %v426_v21, %v4000_v20 }
 0x1dc   :  { %v930_v35 = vmul.f32 %v778_v54, %v4017_v50  ;;  %v1288_v53 = vadd.f32 %v1287_v5, %v1286_v14  ;;  %v1671_v24 = vrot.slane %v1670_v3, 2  ;;  %v1576_v52 = vadd.f32 %v1575_v56, %v1574_v4  ;;  %v4166_v5 = vld [vmem:[%s4460_s5] sm:$0x3] }
 0x1dd   :  { %v521_v55 = vrot.slane %v520_v45, 1  ;;  %v873_v13 = vrot.slane %v872_v25, 1  ;;  %v1242_v27 = vmul.f32 %v4144_v49, %v4125_v39  ;;  %v1951_v57 = vrot.slane %v4139_v17, 4 }
 0x1de   :  { %v825_v11 = vrot.slane %v824_v41, 1  ;;  %v1624_v36 = vadd.f32 %v1623_v33, %v1622_v42  ;;  %v1530_v19 = vmul.f32 %v4137_v63, %v4152_v47  ;;  %v1337_v44 = vrot.slane %v1336_v18, 1 }
 0x1df   :  { %v1384_v51 = vadd.f32 %v1383_v60, %v1382_v46  ;;  %v566_v21 = vadd.f32 %v565_v59, %v378_v2  ;;  %v917_v62 = vrot.slane %v730_v8, 4  ;;  %v610_v14 = vsub.f32 %v3992_v34, %v578_v29  ;;  %v4595_v60 = vld [vmem:[#allocation2_spill] sm:$0xff] }
 0x1e0   :  { %v962_v4 = vsub.f32 %v4012_v30, %v930_v35  ;;  %v1289_v54 = vrot.slane %v1288_v53, 1  ;;  %v1672_v56 = vadd.f32 %v1671_v24, %v1670_v3  ;;  %v1577_v0 = vrot.slane %v1576_v52, 1  ;;  %v4596_v3 = vld [vmem:[#allocation40_spill] sm:$0xff] }
 0x1e1   :  { %v522_v42 = vadd.f32 %v521_v55, %v520_v45  ;;  %v874_v33 = vadd.f32 %v873_v13, %v872_v25  ;;  %v1429_v49 = vrot.slane %v1242_v27, 4  ;;  %v4170_v47 = vadd.f32 %v1151_v1, %v1009_v22 }
 0x1e2   :  { %v826_v46 = vadd.f32 %v825_v11, %v824_v41  ;;  %v1717_v2 = vrot.slane %v1530_v19, 4  ;;  %v4174_v59 = vrot.slane %v4166_v5, %v4595_v60  ;;  %v1625_v23 = vrot.slane %v1624_v36, 1 }
 0x1e3   :  { %v1385_v15 = vrot.slane %v1384_v51, 1  ;;  %v567_v63 = vrot.slane %v566_v21, 2  ;;  %v918_v34 = vadd.f32 %v917_v62, %v730_v8  ;;  %v994_v29 = vmul.f32 %v962_v4, %v610_v14 }
 0x1e4   :  { %v1290_v30 = vadd.f32 %v1289_v54, %v1288_v53  ;;  %v1673_v35 = vrot.slane %v1672_v56, 1  ;;  %v4178_v45 = vadd.f32 %v4596_v3, %v4174_v59  ;;  %v1578_v25 = vadd.f32 %v1577_v0, %v1576_v52  ;;  %v4601_v3 = vld [vmem:[#allocation38_spill] sm:$0xff] }
 0x1e5   :  { %v594_v22 = vmul.f32 %v522_v42, %v4055_v6  ;;  %v946_v41 = vmul.f32 %v874_v33, %v4089_v61  ;;  %v1430_v1 = vadd.f32 %v1429_v49, %v1242_v27  ;;  %v4183_v24 = vmul.f32 %v826_v46, %v4025_v43 }
 0x1e6   :  { %v1338_v55 = vadd.f32 %v1337_v44, %v1336_v18  ;;  %v1718_v13 = vadd.f32 %v1717_v2, %v1530_v19  ;;  %v2359_v62 = vmul.f32 -1.442695, %v4178_v45  ;;  %v1626_v8 = vadd.f32 %v1625_v23, %v1624_v36  ;;  %v4599_v2 = vld [vmem:[#allocation6_spill] sm:$0xff] }
 0x1e7   :  { %v1386_v53 = vadd.f32 %v1385_v15, %v1384_v51  ;;  %v568_v11 = vadd.f32 %v567_v63, %v566_v21  ;;  %v919_v14 = vrot.slane %v918_v34, 2  ;;  %v1061_v4 = vrot.slane %v994_v29, 4 }
 0x1e8   :  { %v1442_v54 = vmul.f32 %v1290_v30, %v4000_v20  ;;  %v1674_v0 = vadd.f32 %v1673_v35, %v1672_v56  ;;  %2416 = vpow2.f32 %v2359_v62  ;;  %v1730_v52 = vmul.f32 %v1578_v25, %v4017_v50 }
 0x1e9   :  { %v626_v49 = vsub.f32 %v4039_v16, %v594_v22  ;;  %v978_v27 = vsub.f32 %v4084_v32, %v946_v41  ;;  %v1431_v42 = vrot.slane %v1430_v1, 2  ;;  %v4191_v18 = vadd.f32 %v1951_v57, %v4139_v17 }
 0x1ea   :  { %v618_v15 = vsub.f32 %v3987_v10, %v4147_v48  ;;  %v1450_v23 = vmul.f32 %v1338_v55, %v3998_v58  ;;  %v1719_v63 = vrot.slane %v1718_v13, 2  ;;  %v970_v20 = vsub.f32 %v4032_v12, %v4183_v24  ;;  %v4603_v55 = vld [vmem:[#allocation22_spill] sm:$0xff] }
 0x1eb   :  { %v1458_v36 = vmul.f32 %v1386_v53, %v4055_v6  ;;  %v569_v50 = vrot.slane %v568_v11, 1  ;;  %v920_v19 = vadd.f32 %v919_v14, %v918_v34  ;;  %v1738_v16 = vmul.f32 %v1626_v8, %v4025_v43 }
 0x1ec   :  { %v1474_v32 = vsub.f32 %v4065_v38, %v1442_v54  ;;  %v1746_v17 = vmul.f32 %v1674_v0, %v4089_v61  ;;  %v1062_v57 = vadd.f32 %v1061_v4, %v994_v29  ;;  %v1762_v44 = vsub.f32 %v4079_v31, %v1730_v52  ;;  %v4597_v61 = vld [vmem:[#allocation48_spill] sm:$0xff]  ;;  %v4604_v4 = vld [vmem:[#allocation3_spill] sm:$0xff]  ;;  %v4605_v0 = vld [vmem:[#allocation30_spill] sm:$0xff] }
 0x1ed   :  { %v1010_v10 = vmul.f32 %v978_v27, %v626_v49  ;;  %v1432_v48 = vadd.f32 %v1431_v42, %v1430_v1  ;;  %v1482_v58 = vsub.f32 %v4046_v40, %v1450_v23  ;;  %v1720_v51 = vadd.f32 %v1719_v63, %v1718_v13  ;;  %v4600_v40 = vld [vmem:[#allocation8_spill] sm:$0xff]  ;;  %v4606_v27 = vld [vmem:[#allocation66_spill] sm:$0xff] }
 0x1ee   :  { %v1057_v12 = vrot.slane %v4057_v37, 2  ;;  %v4207_v6 = vadd.f32 %v3736_v28, %v4174_v59  ;;  %v1490_v43 = vsub.f32 %v4098_v7, %v1458_v36  ;;  %v570_v38 = vadd.f32 %v569_v50, %v568_v11  ;;  %v4607_v63 = vld [vmem:[#allocation42_spill] sm:$0xff] }
 0x1ef   :  { %v921_v21 = vrot.slane %v920_v19, 1  ;;  %v4598_v56 = vrot.slane %v4597_v61, 2  ;;  %v1778_v33 = vsub.f32 %v4107_v26, %v1746_v17  ;;  %v1063_v46 = vrot.slane %v1062_v57, 2 }
 0x1f0   :  { %v2237_v60 = vsel %vm2236_vm0, %v4600_v40, %v4599_v2  ;;  %v1770_v34 = vsub.f32 %v4072_v9, %v1738_v16  ;;  %v1794_v28 = vmul.f32 %v1762_v44, %v1474_v32  ;;  %v1157_v29 = vrot.slane %v1010_v10, 4  ;;  %v4612_v40 = vld [vmem:[#allocation68_spill] sm:$0xff] }
 0x1f1   :  { %v1052_v31 = vadd.f32 %v4598_v56, %v4597_v61  ;;  %v1433_v30 = vrot.slane %v1432_v48, 1  ;;  %v1721_v35 = vrot.slane %v1720_v51, 1  ;;  %v4602_v25 = vrot.slane %v4601_v3, 1 }
 0x1f2   :  { %v2417_v7 = vpop.eup %2416  ;;  %v1058_v41 = vadd.f32 %v1057_v12, %v4057_v37  ;;  %v2363_v26 = vmul.f32 -1.442695, %v4207_v6  ;;  %v922_v1 = vadd.f32 %v921_v21, %v920_v19  ;;  %v2239_v13 = vsel %vm2238_vm1, %v4603_v55, %v2237_v60  ;;  %v4615_v55 = vld [vmem:[#allocation62_spill] sm:$0xff] }
 0x1f3   :  { %v1048_v22 = vadd.f32 %v4602_v25, %v4601_v3  ;;  %v2172_v24 = vadd.f32 1.0, %v2417_v7  ;;  %v1810_v9 = vmul.f32 %v1778_v33, %v1490_v43  ;;  %v602_v62 = vmul.f32 %v570_v38, %v4125_v39  ;;  %v4610_v43 = vld [vmem:[#allocation50_spill] sm:$0xff] }
 0x1f4   :  { %v1053_v8 = vrot.slane %v1052_v31, 1  ;;  %v1064_v53 = vadd.f32 %v1063_v46, %v1062_v57  ;;  %v1158_v11 = vadd.f32 %v1157_v29, %v1010_v10  ;;  %v1434_v14 = vadd.f32 %v1433_v30, %v1432_v48  ;;  %v4611_v46 = vld [vmem:[#allocation67_spill] sm:$0xff] }
 0x1f5   :  { %2418 = vrcp.f32 %v2172_v24  ;;  %v4228_v54 = vrot.slane %v4166_v5, %v4604_v4  ;;  %v1722_v37 = vadd.f32 %v1721_v35, %v1720_v51  ;;  %v2241_v52 = vsel %vm2240_vm2, %v4605_v0, %v2239_v13  ;;  %v4609_v51 = vld [vmem:[#allocation65_spill] sm:$0xff]  ;;  %v4621_v0 = vld [vmem:[#allocation11_spill] sm:$0xff] }
 0x1f6   :  { %2420 = vpow2.f32 %v2363_v26  ;;  %v4232_v49 = vmul.f32 %v970_v20, %v618_v15  ;;  %v954_v42 = vmul.f32 %v922_v1, %v4606_v27  ;;  %v1059_v23 = vrot.slane %v1058_v41, 1  ;;  %v4608_v20 = vld [vmem:[#allocation64_spill] sm:$0xff] }
 0x1f7   :  { %v4237_v36 = vadd.f32 %v4607_v63, %v4228_v54  ;;  %v4239_v50 = vmul.f32 %v1770_v34, %v1482_v58  ;;  %v1861_v19 = vrot.slane %v1794_v28, 4  ;;  %v1054_v5 = vadd.f32 %v1053_v8, %v1052_v31  ;;  %v4613_v34 = vld [vmem:[#allocation57_spill] sm:$0xff]  ;;  %v4623_v63 = vld [vmem:[#allocation44_spill] sm:$0xff] }
 0x1f8   :  { %v1065_v16 = vrot.slane %v1064_v53, 1  ;;  %v1957_v32 = vrot.slane %v1810_v9, 4  ;;  %v2243_v17 = vsel %vm2242_vm3, %v1048_v22, %v2241_v52  ;;  %v1159_v15 = vrot.slane %v1158_v11, 2 }
 0x1f9   :  { %v2360_v57 = vmul.f32 -1.442695, %v4237_v36  ;;  %v634_v44 = vsub.f32 %v4608_v20, %v602_v62  ;;  %v1466_v10 = vmul.f32 %v1434_v14, %v4125_v39  ;;  %v1754_v48 = vmul.f32 %v1722_v37, %v4606_v27  ;;  %v4617_v62 = vld [vmem:[#allocation10_spill] sm:$0xff]  ;;  %v4620_v37 = vld [vmem:[#allocation7_spill] sm:$0xff] }
 0x1fa   :  { %v986_v12 = vsub.f32 %v4609_v51, %v954_v42  ;;  %v1060_v58 = vadd.f32 %v1059_v23, %v1058_v41  ;;  %v4249_v38 = vadd.f32 %v4610_v43, %v4228_v54  ;;  %v1109_v21 = vrot.slane %v4232_v49, 4 }
 0x1fb   :  { %2422 = vpow2.f32 %v2360_v57  ;;  %v1066_v61 = vadd.f32 %v1065_v16, %v1064_v53  ;;  %v2245_v56 = vsel %vm2244_vm4, %v1054_v5, %v2243_v17  ;;  %v1909_v31 = vrot.slane %v4239_v50, 4  ;;  %v4618_v53 = vld [vmem:[#allocation49_spill] sm:$0xff] }
 0x1fc   :  { %v1958_v33 = vadd.f32 %v1957_v32, %v1810_v9  ;;  %v2364_v39 = vmul.f32 -1.442695, %v4249_v38  ;;  %v1498_v2 = vsub.f32 %v4611_v46, %v1466_v10  ;;  %v1786_v60 = vsub.f32 %v4612_v40, %v1754_v48  ;;  %v4616_v9 = vld [vmem:[#allocation13_spill] sm:$0xff]  ;;  %v4626_v10 = vld [vmem:[#allocation23_spill] sm:$0xff]  ;;  %v4629_v40 = vld [vmem:[#allocation34_spill] sm:$0xff] }
 0x1fd   :  { %v4614_v29 = vrot.slane %v4613_v34, 2  ;;  %v1153_v7 = vrot.slane %v4170_v47, 2  ;;  %v4261_v3 = vmul.f32 %v986_v12, %v634_v44  ;;  %v2247_v25 = vsel %vm2246_vm5, %v1060_v58, %v2245_v56  ;;  %v4627_v56 = vld [vmem:[#allocation39_spill] sm:$0xff] }
 0x1fe   :  { %v1160_v22 = vadd.f32 %v1159_v15, %v1158_v11  ;;  %v1862_v41 = vadd.f32 %v1861_v19, %v1794_v28  ;;  %v2249_v24 = vsel %vm2248_vm6, %v1066_v61, %v2247_v25  ;;  %v1857_v13 = vrot.slane %v4615_v55, 2  ;;  %v4622_v11 = vld [vmem:[#allocation51_spill] sm:$0xff]  ;;  %v4625_v15 = vld [vmem:[#allocation26_spill] sm:$0xff] }
 0x1ff   :  { %v1148_v30 = vadd.f32 %v4614_v29, %v4613_v34  ;;  %v2419_v35 = vpop.eup %2418  ;;  %2424 = vpow2.f32 %v2364_v39  ;;  %v2257_v8 = vsel %vm2236_vm0, %v4617_v62, %v4616_v9  ;;  %v4619_v14 = vrot.slane %v4618_v53, 2  ;;  %v4630_v29 = vld [vmem:[#allocation31_spill] sm:$0xff]  ;;  %v4634_v62 = vld [vmem:[#allocation14_spill] sm:$0xff] }
 0x200   :  { %v2421_v26 = vpop.eup %2420  ;;  %v2196_v1 = vmul.f32 %v2419_v35, %v4178_v45  ;;  %v2311_v28 = vsel %vm2236_vm0, %v4621_v0, %v4620_v37  ;;  %v4278_v45 = vadd.f32 %v4622_v11, %v4174_v59  ;;  %v1959_v52 = vrot.slane %v1958_v33, 2 }
 0x201   :  { %v1852_v4 = vadd.f32 %v4619_v14, %v4618_v53  ;;  %v1149_v42 = vrot.slane %v1148_v30, 1  ;;  %v1154_v23 = vadd.f32 %v1153_v7, %v4170_v47  ;;  %v4624_v19 = vrot.slane %v4623_v63, 1 }
 0x202   :  { %v4280_v27 = vmul.f32 %v2249_v24, %v2196_v1  ;;  %v2176_v16 = vadd.f32 1.0, %v2421_v26  ;;  %v1863_v32 = vrot.slane %v1862_v41, 2  ;;  %v2361_v17 = vmul.f32 -1.442695, %v4278_v45 }
 0x203   :  { %v1144_v5 = vadd.f32 %v4624_v19, %v4623_v63  ;;  %v4287_v57 = vmul.f32 %v1786_v60, %v1498_v2  ;;  %v2258_v20 = vsel %vm2238_vm1, %v4625_v15, %v2257_v8  ;;  %v1858_v44 = vadd.f32 %v1857_v13, %v4615_v55  ;;  %v4632_v55 = vld [vmem:[#allocation58_spill] sm:$0xff] }
 0x204   :  { %v2312_v48 = vsel %vm2238_vm1, %v4626_v10, %v2311_v28  ;;  %v1205_v47 = vrot.slane %v4261_v3, 4  ;;  %v1161_v12 = vrot.slane %v1160_v22, 1  ;;  %v1853_v58 = vrot.slane %v1852_v4, 1 }
 0x205   :  { %v2423_v51 = vpop.eup %2422  ;;  %2426 = vpow2.f32 %v2361_v17  ;;  %v1150_v43 = vadd.f32 %v1149_v42, %v1148_v30  ;;  %v1155_v61 = vrot.slane %v1154_v23, 1  ;;  %v4628_v39 = vrot.slane %v4627_v56, 1  ;;  %v4631_v30 = vld [vmem:[#allocation52_spill] sm:$0xff] }
 0x206   :  { %v2173_v2 = vadd.f32 1.0, %v2423_v51  ;;  %2428 = vrcp.f32 %v2176_v16  ;;  %v2259_v60 = vsel %vm2240_vm2, %v4629_v40, %v2258_v20  ;;  %v1864_v34 = vadd.f32 %v1863_v32, %v1862_v41  ;;  %v4635_v41 = vld [vmem:[#allocation12_spill] sm:$0xff]  ;;  %v4638_v32 = vld [vmem:[#allocation27_spill] sm:$0xff]  ;;  %v4640_v20 = vld [vmem:[#allocation46_spill] sm:$0xff] }
 0x207   :  { %v1848_v46 = vadd.f32 %v4628_v39, %v4627_v56  ;;  %v2313_v7 = vsel %vm2240_vm2, %v4630_v29, %v2312_v48  ;;  %v1859_v35 = vrot.slane %v1858_v44, 1  ;;  %v1953_v25 = vrot.slane %v4191_v18, 2  ;;  %v4644_v51 = vld [vmem:[#allocation54_spill] sm:$0xff] }
 0x208   :  { %2430 = vrcp.f32 %v2173_v2  ;;  %v4305_v26 = vadd.f32 %v4631_v30, %v4174_v59  ;;  %v4307_v1 = vadd.f32 %v1161_v12, %v1160_v22  ;;  %v1854_v24 = vadd.f32 %v1853_v58, %v1852_v4  ;;  %v4636_v4 = vld [vmem:[#allocation45_spill] sm:$0xff] }
 0x209   :  { %v4633_v13 = vrot.slane %v4632_v55, 2  ;;  %v2325_v8 = vsel %vm2236_vm0, %v4635_v41, %v4634_v62  ;;  %v2425_v53 = vpop.eup %2424  ;;  %v1156_v14 = vadd.f32 %v1155_v61, %v1154_v23  ;;  %v2260_v37 = vsel %vm2242_vm3, %v1144_v5, %v2259_v60 }
 0x20a   :  { %v2314_v0 = vsel %vm2242_vm3, %v1848_v46, %v2313_v7  ;;  %v1110_v59 = vadd.f32 %v1109_v21, %v4232_v49  ;;  %v1865_v22 = vrot.slane %v1864_v34, 1  ;;  %v4637_v28 = vrot.slane %v4636_v4, 1  ;;  %v4639_v49 = vld [vmem:[#allocation60_spill] sm:$0xff] }
 0x20b   :  { %v1948_v9 = vadd.f32 %v4633_v13, %v4632_v55  ;;  %v1960_v42 = vadd.f32 %v1959_v52, %v1958_v33  ;;  %v2177_v63 = vadd.f32 1.0, %v2425_v53  ;;  %v1860_v19 = vadd.f32 %v1859_v35, %v1858_v44  ;;  %v4642_v52 = vld [vmem:[#allocation4_spill] sm:$0xff]  ;;  %v4643_v44 = vld [vmem:[#allocation9_spill] sm:$0xff]  ;;  %v4647_v53 = vld [vmem:[#allocation35_spill] sm:$0xff] }
 0x20c   :  { %v1944_v11 = vadd.f32 %v4637_v28, %v4636_v4  ;;  %v1954_v16 = vadd.f32 %v1953_v25, %v4191_v18  ;;  %v2326_v23 = vsel %vm2238_vm1, %v4638_v32, %v2325_v8  ;;  %v2365_v5 = vmul.f32 -1.442695, %v4305_v26  ;;  %v4645_v46 = vld [vmem:[#allocation36_spill] sm:$0xff] }
 0x20d   :  { %v2315_v17 = vsel %vm2244_vm4, %v1854_v24, %v2314_v0  ;;  %v1949_v15 = vrot.slane %v1948_v9, 1  ;;  %2432 = vrcp.f32 %v2177_v63  ;;  %v1105_v21 = vrot.slane %v4639_v49, 2  ;;  %v4646_v24 = vld [vmem:[#allocation20_spill] sm:$0xff] }
 0x20e   :  { %v4641_v10 = vrot.slane %v4640_v20, 2  ;;  %v1111_v33 = vrot.slane %v1110_v59, 2  ;;  %v2250_v18 = vsel %vm2236_vm0, %v4643_v44, %v4642_v52  ;;  %v4337_v12 = vadd.f32 %v4644_v51, %v4228_v54  ;;  %v4649_v28 = vld [vmem:[#allocation28_spill] sm:$0xff] }
 0x20f   :  { %v2427_v58 = vpop.eup %2426  ;;  %v2261_v61 = vsel %vm2244_vm4, %v1150_v43, %v2260_v37  ;;  %v1866_v56 = vadd.f32 %v1865_v22, %v1864_v34  ;;  %v1961_v39 = vrot.slane %v1960_v42, 1  ;;  %v2327_v2 = vsel %vm2240_vm2, %v4645_v46, %v2326_v23 }
 0x210   :  { %v1100_v48 = vadd.f32 %v4641_v10, %v4640_v20  ;;  %v1955_v40 = vrot.slane %v1954_v16, 1  ;;  %v2174_v60 = vadd.f32 1.0, %v2427_v58  ;;  %2434 = vpow2.f32 %v2365_v5  ;;  %v2429_v7 = vpop.eup %2428 }
 0x211   :  { %v2362_v29 = vmul.f32 -1.442695, %v4337_v12  ;;  %v2316_v35 = vsel %vm2246_vm5, %v1860_v19, %v2315_v17  ;;  %v1950_v25 = vadd.f32 %v1949_v15, %v1948_v9  ;;  %v1106_v30 = vadd.f32 %v1105_v21, %v4639_v49 }
 0x212   :  { %v2251_v55 = vsel %vm2238_vm1, %v4646_v24, %v2250_v18  ;;  %v2431_v43 = vpop.eup %2430  ;;  %v2328_v34 = vsel %vm2242_vm3, %v1944_v11, %v2327_v2  ;;  %v1101_v13 = vrot.slane %v1100_v48, 1  ;;  %v1112_v62 = vadd.f32 %v1111_v33, %v1110_v59 }
 0x213   :  { %2436 = vrcp.f32 %v2174_v60  ;;  %v2197_v41 = vmul.f32 %v2431_v43, %v4237_v36  ;;  %v1962_v8 = vadd.f32 %v1961_v39, %v1960_v42  ;;  %v4648_v37 = vrot.slane %v4647_v53, 1  ;;  %v4650_v36 = vld [vmem:[#allocation56_spill] sm:$0xff]  ;;  %v4657_v60 = vld [vmem:[#allocation47_spill] sm:$0xff] }
 0x214   :  { %2438 = vpow2.f32 %v2362_v29  ;;  %v2200_v9 = vmul.f32 %v2429_v7, %v4207_v6  ;;  %v2317_v22 = vsel %vm2248_vm6, %v1866_v56, %v2316_v35  ;;  %v1956_v4 = vadd.f32 %v1955_v40, %v1954_v16 }
 0x215   :  { %v1096_v0 = vadd.f32 %v4648_v37, %v4647_v53  ;;  %v2252_v63 = vsel %vm2240_vm2, %v4649_v28, %v2251_v55  ;;  %v2343_v11 = vmul.f32 %v2317_v22, %v2197_v41  ;;  %v2329_v59 = vsel %vm2244_vm4, %v1950_v25, %v2328_v34  ;;  %v4659_v25 = vld [vmem:[#allocation5_spill] sm:$0xff]  ;;  %v4663_v22 = vld [vmem:[#allocation18_spill] sm:$0xff] }
 0x216   :  { %v1107_v19 = vrot.slane %v1106_v30, 1  ;;  %v4359_v42 = vadd.f32 %v4650_v36, %v4228_v54  ;;  %v2005_v32 = vrot.slane %v4287_v57, 4  ;;  %v2262_v23 = vsel %vm2246_vm5, %v1156_v14, %v2261_v61  ;;  %v4654_v61 = vld [vmem:[#allocation63_spill] sm:$0xff]  ;;  %v4661_v41 = vld [vmem:[#allocation53_spill] sm:$0xff] }
 0x217   :  { %v1102_v5 = vadd.f32 %v1101_v13, %v1100_v48  ;;  %v1113_v6 = vrot.slane %v1112_v62, 1  ;;  %v2433_v17 = vpop.eup %2432  ;;  %v2263_v16 = vsel %vm2248_vm6, %v4307_v1, %v2262_v23  ;;  %v2347_v15 = vadd.f32 %v2343_v11, %v4280_v27  ;;  %v4651_v48 = vld [vmem:[#allocation59_spill] sm:$0xff] }
 0x218   :  { %v2253_v49 = vsel %vm2242_vm3, %v1096_v0, %v2252_v63  ;;  %v2366_v21 = vmul.f32 -1.442695, %v4359_v42  ;;  %v2277_v20 = vmul.f32 %v2263_v16, %v2200_v9  ;;  %v2201_v54 = vmul.f32 %v2433_v17, %v4249_v38  ;;  %v4665_v63 = vld [vmem:[#allocation21_spill] sm:$0xff]  ;;  %v4668_v17 = vld [vmem:[#allocation19_spill] sm:$0xff] }
 0x219   :  { %v2330_v10 = vsel %vm2246_vm5, %v1956_v4, %v2329_v59  ;;  %v1910_v14 = vadd.f32 %v1909_v31, %v4239_v50  ;;  %v4652_v33 = vrot.slane %v4651_v48, 4  ;;  %v1206_v27 = vadd.f32 %v1205_v47, %v4261_v3  ;;  %2351 = vst [vmem:[%s4461_s6] sm:$0xff] %v2347_v15  ;;  %v4653_v31 = vld [vmem:[#allocation55_spill] sm:$0xff]  ;;  %v4656_v47 = vld [vmem:[#allocation61_spill] sm:$0xff]  ;;  %v4664_v4 = vld [vmem:[#allocation16_spill] sm:$0xff] }
 0x21a   :  { %v2331_v38 = vsel %vm2248_vm6, %v1962_v8, %v2330_v10  ;;  %v1108_v1 = vadd.f32 %v1107_v19, %v1106_v30  ;;  %v2435_v44 = vpop.eup %2434  ;;  %v1114_v51 = vadd.f32 %v1113_v6, %v1112_v62  ;;  %v2254_v50 = vsel %vm2244_vm4, %v1102_v5, %v2253_v49  ;;  %v4660_v30 = vld [vmem:[#allocation15_spill] sm:$0xff]  ;;  %v4669_v16 = vld [vmem:[#allocation17_spill] sm:$0xff] }
 0x21b   :  { %v1200_v52 = vadd.f32 %v4652_v33, %v4651_v48  ;;  %v2345_v18 = vmul.f32 %v2331_v38, %v2201_v54  ;;  %2440 = vpow2.f32 %v2366_v21  ;;  %v1995_v58 = vrot.slane %v4653_v31, 2  ;;  %v4671_v10 = vld [vmem:[#allocation29_spill] sm:$0xff] }
 0x21c   :  { %v4655_v56 = vrot.slane %v4654_v61, 4  ;;  %v2006_v3 = vadd.f32 %v2005_v32, %v4287_v57  ;;  %v1905_v46 = vrot.slane %v4656_v47, 2  ;;  %v4658_v29 = vrot.slane %v4657_v60, 2  ;;  %v4666_v32 = vld [vmem:[#allocation37_spill] sm:$0xff] }
 0x21d   :  { %v2437_v2 = vpop.eup %2436  ;;  %v2349_v40 = vadd.f32 %v2345_v18, %v2277_v20  ;;  %v1911_v35 = vrot.slane %v1910_v14, 2  ;;  %v2318_v24 = vsel %vm2236_vm0, %v4660_v30, %v4659_v25  ;;  %v1207_v43 = vrot.slane %v1206_v27, 2  ;;  %v4670_v20 = vld [vmem:[#allocation24_spill] sm:$0xff]  ;;  %v4672_v33 = vld [vmem:[#allocation41_spill] sm:$0xff] }
 0x21e   :  { %v2000_v39 = vadd.f32 %v4655_v56, %v4654_v61  ;;  %v1900_v7 = vadd.f32 %v4658_v29, %v4657_v60  ;;  %v2439_v55 = vpop.eup %2438  ;;  %v2198_v34 = vmul.f32 %v2437_v2, %v4278_v45  ;;  %v2255_v13 = vsel %vm2246_vm5, %v1108_v1, %v2254_v50  ;;  %v4674_v61 = vld [vmem:[#allocation25_spill] sm:$0xff]  ;;  %v4675_v56 = vld [vmem:[#allocation32_spill] sm:$0xff] }
 0x21f   :  { %v2178_v57 = vadd.f32 1.0, %v2435_v44  ;;  %2353 = vst [vmem:[%s4461_s6 + $0x10] sm:$0xff] %v2349_v40  ;;  %v2256_v62 = vsel %vm2248_vm6, %v1114_v51, %v2255_v13  ;;  %v4662_v8 = vrot.slane %v4661_v41, 2  ;;  %v1201_v37 = vrot.slane %v1200_v52, 2 }
 0x220   :  { %v2175_v0 = vadd.f32 1.0, %v2439_v55  ;;  %v2276_v9 = vmul.f32 %v2256_v62, %v2198_v34  ;;  %v2264_v45 = vsel %vm2236_vm0, %v4664_v4, %v4663_v22  ;;  %v1906_v28 = vadd.f32 %v1905_v46, %v4656_v47 }
 0x221   :  { %v1196_v53 = vadd.f32 %v4662_v8, %v4661_v41  ;;  %v2319_v11 = vsel %vm2238_vm1, %v4665_v63, %v2318_v24  ;;  %v1901_v59 = vrot.slane %v1900_v7, 1  ;;  %v1912_v19 = vadd.f32 %v1911_v35, %v1910_v14  ;;  %v4676_v35 = vld [vmem:[#allocation43_spill] sm:$0xff] }
 0x222   :  { %2442 = vrcp.f32 %v2175_v0  ;;  %v2001_v36 = vrot.slane %v2000_v39, 2  ;;  %v4667_v23 = vrot.slane %v4666_v32, 1  ;;  %v1996_v6 = vadd.f32 %v1995_v58, %v4653_v31 }
 0x223   :  { %2444 = vrcp.f32 %v2178_v57  ;;  %v2332_v15 = vsel %vm2236_vm0, %v4669_v16, %v4668_v17  ;;  %v1197_v49 = vrot.slane %v1196_v53, 1  ;;  %v1202_v21 = vadd.f32 %v1201_v37, %v1200_v52 }
 0x224   :  { %v1896_v5 = vadd.f32 %v4667_v23, %v4666_v32  ;;  %v2265_v54 = vsel %vm2238_vm1, %v4670_v20, %v2264_v45  ;;  %v2320_v14 = vsel %vm2240_vm2, %v4671_v10, %v2319_v11  ;;  %v2007_v48 = vrot.slane %v2006_v3, 2 }
 0x225   :  { %v4673_v38 = vrot.slane %v4672_v33, 1  ;;  %v1208_v44 = vadd.f32 %v1207_v43, %v1206_v27  ;;  %v1907_v18 = vrot.slane %v1906_v28, 1  ;;  %v2441_v51 = vpop.eup %2440  ;;  %v1902_v50 = vadd.f32 %v1901_v59, %v1900_v7 }
 0x226   :  { %v1913_v31 = vrot.slane %v1912_v19, 1  ;;  %v2002_v58 = vadd.f32 %v2001_v36, %v2000_v39  ;;  %v2333_v52 = vsel %vm2238_vm1, %v4674_v61, %v2332_v15  ;;  %v2266_v47 = vsel %vm2240_vm2, %v4675_v56, %v2265_v54  ;;  %v4678_v39 = vld [vmem:[#allocation33_spill] sm:$0xff] }
 0x227   :  { %v1192_v1 = vadd.f32 %v4673_v38, %v4672_v33  ;;  %v2321_v46 = vsel %vm2242_vm3, %v1896_v5, %v2320_v14  ;;  %v1997_v2 = vrot.slane %v1996_v6, 1  ;;  %v2179_v40 = vadd.f32 1.0, %v2441_v51 }
 0x228   :  { %v1198_v60 = vadd.f32 %v1197_v49, %v1196_v53  ;;  %v1203_v29 = vrot.slane %v1202_v21, 1  ;;  %v4677_v27 = vrot.slane %v4676_v35, 1  ;;  %v1908_v30 = vadd.f32 %v1907_v18, %v1906_v28 }
 0x229   :  { %v2008_v7 = vadd.f32 %v2007_v48, %v2006_v3  ;;  %2446 = vrcp.f32 %v2179_v40  ;;  %v2334_v24 = vsel %vm2240_vm2, %v4678_v39, %v2333_v52  ;;  %v2267_v55 = vsel %vm2242_vm3, %v1192_v1, %v2266_v47 }
 0x22a   :  { %v1992_v25 = vadd.f32 %v4677_v27, %v4676_v35  ;;  %v1914_v43 = vadd.f32 %v1913_v31, %v1912_v19  ;;  %v2322_v34 = vsel %vm2244_vm4, %v1902_v50, %v2321_v46  ;;  %v2003_v13 = vrot.slane %v2002_v58, 1 }
 0x22b   :  { %v1209_v57 = vrot.slane %v1208_v44, 1  ;;  %v1998_v62 = vadd.f32 %v1997_v2, %v1996_v6  ;;  %v1204_v8 = vadd.f32 %v1203_v29, %v1202_v21  ;;  %v2268_v0 = vsel %vm2244_vm4, %v1198_v60, %v2267_v55 }
 0x22c   :  { %v2443_v41 = vpop.eup %2442  ;;  %v2335_v53 = vsel %vm2242_vm3, %v1992_v25, %v2334_v24  ;;  %v2323_v22 = vsel %vm2246_vm5, %v1908_v30, %v2322_v34  ;;  %v2009_v4 = vrot.slane %v2008_v7, 1  ;;  %v2004_v28 = vadd.f32 %v2003_v13, %v2002_v58 }
 0x22d   :  { %v2445_v37 = vpop.eup %2444  ;;  %v2199_v3 = vmul.f32 %v2443_v41, %v4337_v12  ;;  %v2324_v45 = vsel %vm2248_vm6, %v1914_v43, %v2323_v22  ;;  %v1210_v63 = vadd.f32 %v1209_v57, %v1208_v44  ;;  %v2336_v59 = vsel %vm2244_vm4, %v1998_v62, %v2335_v53 }
 0x22e   :  { %v2202_v19 = vmul.f32 %v2445_v37, %v4305_v26  ;;  %v2269_v36 = vsel %vm2246_vm5, %v1204_v8, %v2268_v0  ;;  %v2010_v23 = vadd.f32 %v2009_v4, %v2008_v7  ;;  %v2337_v5 = vsel %vm2246_vm5, %v2004_v28, %v2336_v59 }
 0x22f   :  { %v2344_v11 = vmul.f32 %v2324_v45, %v2199_v3  ;;  %v2270_v12 = vsel %vm2248_vm6, %v1210_v63, %v2269_v36 }
 0x230   :  { %v2278_v17 = vmul.f32 %v2270_v12, %v2202_v19  ;;  %v2338_v15 = vsel %vm2248_vm6, %v2010_v23, %v2337_v5 }
 0x231   :  { %v2348_v32 = vadd.f32 %v2344_v11, %v2276_v9 }
 0x233   :  { %v2447_v6 = vpop.eup %2446  ;;  %2352 = vst [vmem:[%s4461_s6 + $0x8] sm:$0xff] %v2348_v32 }
 0x234   :  { %v2203_v16 = vmul.f32 %v2447_v6, %v4359_v42 }
 0x236   :  { %v2346_v49 = vmul.f32 %v2338_v15, %v2203_v16 }
 0x238   :  { %v2350_v26 = vadd.f32 %v2346_v49, %v2278_v17 }
 0x23a   :  { %2354 = vst [vmem:[%s4461_s6 + $0x18] sm:$0xff] %v2350_v26 }

// kernel: visnet_block_forward.18
= control target key start
LH: loop header
LB: loop body
LE: loop exit
PB: predicated region body
PF: predicated region fallthrough
CT: control target
= control target key end

     0   :  { %v2785_v3 = vmov 0.0   ;;  %s4483_s6 = inlined_call_operand.vmem [shape: f32[128,256], index: 6, kind: input, shape index: {}]   ;;  %s4484_s2 = inlined_call_operand.vmem [shape: f32[32,128], index: 2, kind: input, shape index: {}]   ;;  %s4485_s11 = inlined_call_operand.vmem [shape: f32[128,128], index: 11, kind: input, shape index: {}]   ;;  %s4486_s3 = inlined_call_operand.vmem [shape: f32[32,1], index: 3, kind: input, shape index: {}]   ;;  %s4487_s7 = inlined_call_operand.vmem [shape: f32[1,256], index: 7, kind: input, shape index: {}]   ;;  %s4488_s0 = inlined_call_operand.vmem [shape: f32[32,128], index: 0, kind: input, shape index: {}]   ;;  %s4489_s1 = inlined_call_operand.vmem [shape: f32[32,256], index: 1, kind: input, shape index: {}]   ;;  %s4490_s8 = inlined_call_operand.vmem [shape: f32[128,256], index: 8, kind: input, shape index: {}]   ;;  %s4491_s10 = inlined_call_operand.vmem [shape: f32[128,256], index: 10, kind: input, shape index: {}]   ;;  %s4492_s4 = inlined_call_operand.vmem [shape: f32[32,8], index: 4, kind: input, shape index: {}]   ;;  %s4493_s9 = inlined_call_operand.vmem [shape: f32[1,256], index: 9, kind: input, shape index: {}]   ;;  %s4494_s5 = inlined_call_operand.vmem [shape: f32[32,8,128], index: 5, kind: input, shape index: {}]   ;;  %s4495_s14 = inlined_call_operand.vmem [shape: f32[32,8,128], index: 14, kind: output, shape index: {1}]   ;;  %s4496_s12 = inlined_call_operand.vmem [shape: f32[1,128], index: 12, kind: input, shape index: {}]   ;;  %s4497_s13 = inlined_call_operand.vmem [shape: f32[32,128], index: 13, kind: output, shape index: {0}]  }
   0x1   :  { %v51_v0 = vld [vmem:[%s4483_s6 + $0x8] sm:$0xff]  ;;  %v53_v1 = vld [vmem:[%s4483_s6 + $0x18] sm:$0xff]  ;;  %v50_v2 = vld [vmem:[%s4483_s6] sm:$0xff]  ;;  %158 = vmatprep.mubr.f32.mxu0 %v2785_v3 }
   0x2   :  { %v2533_v4 = vpack.c.bf16 %v53_v1, %v51_v0  ;;  %v52_v5 = vld [vmem:[%s4483_s6 + $0x10] sm:$0xff]  ;;  %v55_v6 = vld [vmem:[%s4483_s6 + $0x28] sm:$0xff]  ;;  %v57_v7 = vld [vmem:[%s4483_s6 + $0x38] sm:$0xff] }
   0x3   :  { %v2535_v8 = vpack.c.bf16 %v52_v5, %v50_v2  ;;  %v2537_v9 = vpack.c.bf16 %v57_v7, %v55_v6  ;;  %v54_v10 = vld [vmem:[%s4483_s6 + $0x20] sm:$0xff]  ;;  %v56_v11 = vld [vmem:[%s4483_s6 + $0x30] sm:$0xff]  ;;  %v59_v12 = vld [vmem:[%s4483_s6 + $0x48] sm:$0xff] }
   0x4   :  { %2534 = vmatprep.subr.bf16.mxu0 %v2533_v4  ;;  %v61_v13 = vld [vmem:[%s4483_s6 + $0x58] sm:$0xff]  ;;  %v2539_v14 = vpack.c.bf16 %v56_v11, %v54_v10  ;;  %v58_v16 = vld [vmem:[%s4483_s6 + $0x40] sm:$0xff]  ;;  %v60_v17 = vld [vmem:[%s4483_s6 + $0x50] sm:$0xff] }
   0x5   :  { %2536 = vmatpush1.bf16.msra.mxu0 %v2535_v8  ;;  %v2541_v15 = vpack.c.bf16 %v61_v13, %v59_v12  ;;  %v63_v18 = vld [vmem:[%s4483_s6 + $0x68] sm:$0xff]  ;;  %v65_v19 = vld [vmem:[%s4483_s6 + $0x78] sm:$0xff]  ;;  %v2543_v20 = vpack.c.bf16 %v60_v17, %v58_v16  ;;  %v62_v22 = vld [vmem:[%s4483_s6 + $0x60] sm:$0xff] }
   0x6   :  { %2538 = vmatprep.subr.bf16.mxu0 %v2537_v9  ;;  %v2545_v21 = vpack.c.bf16 %v65_v19, %v63_v18  ;;  %v64_v23 = vld [vmem:[%s4483_s6 + $0x70] sm:$0xff]  ;;  %v67_v24 = vld [vmem:[%s4483_s6 + $0x88] sm:$0xff]  ;;  %v69_v25 = vld [vmem:[%s4483_s6 + $0x98] sm:$0xff] }
   0x7   :  { %v2547_v26 = vpack.c.bf16 %v64_v23, %v62_v22  ;;  %v2549_v27 = vpack.c.bf16 %v69_v25, %v67_v24  ;;  %v66_v28 = vld [vmem:[%s4483_s6 + $0x80] sm:$0xff]  ;;  %v68_v29 = vld [vmem:[%s4483_s6 + $0x90] sm:$0xff]  ;;  %v71_v30 = vld [vmem:[%s4483_s6 + $0xa8] sm:$0xff]  ;;  %v84_v25 = vlaneseq }
   0x8   :  { %v73_v31 = vld [vmem:[%s4483_s6 + $0xb8] sm:$0xff]  ;;  %v2551_v32 = vpack.c.bf16 %v68_v29, %v66_v28  ;;  %v70_v34 = vld [vmem:[%s4483_s6 + $0xa0] sm:$0xff]  ;;  %v72_v35 = vld [vmem:[%s4483_s6 + $0xb0] sm:$0xff] }
   0x9   :  { %2540 = vmatpush1.bf16.msra.mxu0 %v2539_v14  ;;  %v2553_v33 = vpack.c.bf16 %v73_v31, %v71_v30  ;;  %v75_v36 = vld [vmem:[%s4483_s6 + $0xc8] sm:$0xff]  ;;  %v77_v37 = vld [vmem:[%s4483_s6 + $0xd8] sm:$0xff]  ;;  %v2555_v38 = vpack.c.bf16 %v72_v35, %v70_v34  ;;  %v74_v40 = vld [vmem:[%s4483_s6 + $0xc0] sm:$0xff]  ;;  %v2786_v14 = vmov 0  }
   0xa   :  { %2542 = vmatprep.subr.bf16.mxu0 %v2541_v15  ;;  %v2557_v39 = vpack.c.bf16 %v77_v37, %v75_v36  ;;  %v76_v41 = vld [vmem:[%s4483_s6 + $0xd0] sm:$0xff]  ;;  %v79_v42 = vld [vmem:[%s4483_s6 + $0xe8] sm:$0xff]  ;;  %v81_v43 = vld [vmem:[%s4483_s6 + $0xf8] sm:$0xff]  ;;  %2687 = vset.pattern.permute.xlu0 %v2786_v14 }
   0xb   :  { %v2559_v44 = vpack.c.bf16 %v76_v41, %v74_v40  ;;  %v2561_v45 = vpack.c.bf16 %v81_v43, %v79_v42  ;;  %v78_v46 = vld [vmem:[%s4483_s6 + $0xe0] sm:$0xff]  ;;  %v80_v47 = vld [vmem:[%s4483_s6 + $0xf0] sm:$0xff]  ;;  %v47_v50 = vld [vmem:[%s4484_s2 + $0x8] sm:$0xff]  ;;  %2688 = vset.pattern.permute.xlu1 %v2786_v14 }
   0xc   :  { %v2563_v48 = vpack.c.bf16 %v80_v47, %v78_v46  ;;  %v46_v49 = vld [vmem:[%s4484_s2] sm:$0xff]  ;;  %v48_v51 = vld [vmem:[%s4484_s2 + $0x10] sm:$0xff]  ;;  %v49_v52 = vld [vmem:[%s4484_s2 + $0x18] sm:$0xff]  ;;  %v2787_v46 = vmov 683565275  }
   0xd   :  { %2544 = vmatpush1.bf16.msra.mxu0 %v2543_v20  ;;  %v259_v53 = vld [vmem:[%s4485_s11] sm:$0xff]  ;;  %v260_v54 = vld [vmem:[%s4485_s11 + $0x8] sm:$0xff]  ;;  %v261_v56 = vld [vmem:[%s4485_s11 + $0x10] sm:$0xff] }
   0xe   :  { %2546 = vmatprep.subr.bf16.mxu0 %v2545_v21  ;;  %v2565_v55 = vpack.c.bf16 %v260_v54, %v259_v53  ;;  %v262_v57 = vld [vmem:[%s4485_s11 + $0x18] sm:$0xff]  ;;  %v263_v59 = vld [vmem:[%s4485_s11 + $0x20] sm:$0xff]  ;;  %v264_v60 = vld [vmem:[%s4485_s11 + $0x28] sm:$0xff]  ;;  %v2791_v54 = vmov 920167782  }
   0xf   :  { %v2569_v58 = vpack.c.bf16 %v262_v57, %v261_v56  ;;  %v2573_v61 = vpack.c.bf16 %v264_v60, %v263_v59  ;;  %v265_v62 = vld [vmem:[%s4485_s11 + $0x30] sm:$0xff]  ;;  %v266_v63 = vld [vmem:[%s4485_s11 + $0x38] sm:$0xff]  ;;  %v267_v1 = vld [vmem:[%s4485_s11 + $0x40] sm:$0xff] }
  0x10   :  { %2566 = vmatprep.subr.bf16.mxu1 %v2565_v55  ;;  %v2577_v0 = vpack.c.bf16 %v266_v63, %v265_v62  ;;  %v268_v2 = vld [vmem:[%s4485_s11 + $0x48] sm:$0xff]  ;;  %v269_v5 = vld [vmem:[%s4485_s11 + $0x50] sm:$0xff]  ;;  %v270_v6 = vld [vmem:[%s4485_s11 + $0x58] sm:$0xff]  ;;  %v2792_v62 = vmov 1326507024  }
  0x11   :  { %2548 = vmatpush1.bf16.msra.mxu0 %v2547_v26  ;;  %2568 = vmatpush3.bf16.msra.mxu1 %v2565_v55  ;;  %v2581_v4 = vpack.c.bf16 %v268_v2, %v267_v1  ;;  %v2585_v7 = vpack.c.bf16 %v270_v6, %v269_v5  ;;  %v271_v8 = vld [vmem:[%s4485_s11 + $0x60] sm:$0xff]  ;;  %v272_v9 = vld [vmem:[%s4485_s11 + $0x68] sm:$0xff]  ;;  %v273_v11 = vld [vmem:[%s4485_s11 + $0x70] sm:$0xff] }
  0x12   :  { %2550 = vmatprep.subr.bf16.mxu0 %v2549_v27  ;;  %2570 = vmatprep.subr.bf16.mxu1 %v2569_v58  ;;  %v2589_v10 = vpack.c.bf16 %v272_v9, %v271_v8  ;;  %v274_v12 = vld [vmem:[%s4485_s11 + $0x78] sm:$0xff]  ;;  %v3034_v15 = vld [vmem:[%s4486_s3] sm:$0xff]  ;;  %v3039_v16 = vld [vmem:[%s4486_s3 + $0x8] sm:$0xff] }
  0x13   :  { %v2593_v13 = vpack.c.bf16 %v274_v12, %v273_v11  ;;  %v3042_v17 = vmul.f32 0.62831855, %v3034_v15  ;;  %v3045_v18 = vmul.f32 0.62831855, %v3039_v16  ;;  %v3053_v22 = vld [vmem:[%s4486_s3 + $0x10] sm:$0xff]  ;;  %vm816_vm13 = vcmp.lt.f32.partialorder %v3034_v15, 5.0 }
  0x14   :  { %v3061_v30 = vmul.f32 0.62831855, %v3053_v22 }
  0x15   :  { %2552 = vmatpush1.bf16.msra.mxu0 %v2551_v32  ;;  %2572 = vmatpush3.bf16.msra.mxu1 %v2569_v58  ;;  %v396_v19 = vand.u32 2147483647, %v3042_v17  ;;  %v399_v20 = vand.u32 2139095040, %v3042_v17  ;;  %v499_v21 = vand.u32 2147483647, %v3045_v18  ;;  %v502_v24 = vand.u32 2139095040, %v3045_v18 }
  0x16   :  { %2554 = vmatprep.subr.bf16.mxu0 %v2553_v33  ;;  %2574 = vmatprep.subr.bf16.mxu1 %v2573_v61  ;;  %v3063_v33 = vshrl.u32 %v84_v25, 7  ;;  %v605_v36 = vand.u32 2139095040, %v3061_v30 }
  0x17   :  { %v400_v23 = vshrl.u32 %v399_v20, 23  ;;  %v403_v26 = vand.u32 8388607, %v396_v19  ;;  %v506_v27 = vand.u32 8388607, %v499_v21  ;;  %v503_v29 = vshrl.u32 %v502_v24, 23 }
  0x19   :  { %2556 = vmatpush1.bf16.msra.mxu0 %v2555_v38  ;;  %2576 = vmatpush3.bf16.msra.mxu1 %v2573_v61  ;;  %v2446_v28 = vadd.s32 4294967169, %v400_v23  ;;  %v2450_v32 = vadd.s32 4294967169, %v503_v29  ;;  %v404_v34 = vor.u32 8388608, %v403_v26  ;;  %v507_v35 = vor.u32 8388608, %v506_v27 }
  0x1a   :  { %2558 = vmatprep.subr.bf16.mxu0 %v2557_v39  ;;  %2578 = vmatprep.subr.bf16.mxu1 %v2577_v0  ;;  %v606_v39 = vshrl.u32 %v605_v36, 23 }
  0x1b   :  { %v406_v31 = vadd.s32 1, %v2446_v28  ;;  %v509_v37 = vadd.s32 1, %v2450_v32  ;;  %v3066_v42 = vshll.u32 %v404_v34, 8 }
  0x1c   :  { %v2454_v56 = vadd.s32 4294967169, %v606_v39 }
  0x1d   :  { %2560 = vmatpush1.bf16.msra.mxu0 %v2559_v44  ;;  %2580 = vmatpush3.bf16.msra.mxu1 %v2577_v0  ;;  %vm407_vm0 = vcmp.gt.s32.totalorder %v406_v31, 0  ;;  %vm510_vm1 = vcmp.gt.s32.totalorder %v509_v37, 0  ;;  %v3068_v44 = vshll.u32 %v507_v35, 8 }
  0x1e   :  { %2562 = vmatprep.subr.bf16.mxu0 %v2561_v45  ;;  %2582 = vmatprep.subr.bf16.mxu1 %v2581_v4  ;;  %v408_v38 = vsel %vm407_vm0, %v406_v31, 0  ;;  %v511_v43 = vsel %vm510_vm1, %v509_v37, 0 }
  0x1f   :  { %v409_v40 = vshrl.u32 %v408_v38, 5  ;;  %v410_v41 = vand.u32 31, %v408_v38  ;;  %v512_v6 = vshrl.u32 %v511_v43, 5 }
  0x21   :  { %2564 = vmatpush1.bf16.msra.mxu0 %v2563_v48  ;;  %2584 = vmatpush3.bf16.msra.mxu1 %v2581_v4  ;;  %v411_v45 = vsub.s32 32, %v410_v41  ;;  %v413_v47 = vshll.u32 %v2787_v46, %v410_v41  ;;  %v2788_v48 = vmov 2475754826   ;;  %v425_v55 = vshll.u32 %v2791_v54, %v410_v41 }
  0x22   :  { %2586 = vmatprep.subr.bf16.mxu1 %v2585_v7  ;;  %vm428_vm2 = vcmp.lt.s32.totalorder %v409_v40, 1  ;;  %vm429_vm3 = vcmp.lt.s32.totalorder %v409_v40, 2  ;;  %vm430_vm4 = vcmp.lt.s32.totalorder %v409_v40, 3  ;;  %vm431_vm5 = vcmp.lt.s32.totalorder %v409_v40, 4 }
  0x23   :  { %v412_v57 = vshrl.u32 %v2787_v46, %v411_v45  ;;  %v414_v58 = vshrl.u32 %v2788_v48, %v411_v45  ;;  %v423_v61 = vshrl.u32 %v2791_v54, %v411_v45  ;;  %v426_v63 = vshrl.u32 %v2792_v62, %v411_v45 }
  0x24   :  { %159 = vmatmul.mubr.f32.vlgmr.msra.gmra.mrb[0].mxu0 %v46_v49  ;;  %v416_v49 = vshll.u32 %v2788_v48, %v410_v41  ;;  %vm531_vm6 = vcmp.lt.s32.totalorder %v512_v6, 1  ;;  %vm532_vm8 = vcmp.lt.s32.totalorder %v512_v6, 2  ;;  %vm533_vm9 = vcmp.lt.s32.totalorder %v512_v6, 3 }
  0x25   :  { %164 = vmatprep.mubr.f32.mxu0 %v2785_v3  ;;  %2588 = vmatpush3.bf16.msra.mxu1 %v2585_v7  ;;  %v415_v0 = vor.u32 %v414_v58, %v413_v47  ;;  %v427_v5 = vor.u32 %v426_v63, %v425_v55  ;;  %v513_v7 = vand.u32 31, %v511_v43  ;;  %vm534_vm10 = vcmp.lt.s32.totalorder %v512_v6, 4 }
  0x26   :  { %2590 = vmatprep.subr.bf16.mxu1 %v2589_v10 }
  0x27   :  { %v432_v8 = vsel %vm428_vm2, %v412_v57, %v415_v0  ;;  %v441_v14 = vsel %vm431_vm5, %v427_v5, 1326507024  ;;  %v514_v20 = vsub.s32 32, %v513_v7  ;;  %v516_v26 = vshll.u32 %v2787_v46, %v513_v7 }
  0x28   :  { %165 = vmatmul.mubr.f32.gmra.mrb[2].mxu0 %v47_v50  ;;  %v2789_v50 = vmov 2131351028   ;;  %v519_v38 = vshll.u32 %v2788_v48, %v513_v7  ;;  %v528_v47 = vshll.u32 %v2791_v54, %v513_v7  ;;  %v612_v57 = vadd.s32 1, %v2454_v56 }
  0x29   :  { %170 = vmatprep.mubr.f32.mxu0 %v2785_v3  ;;  %2592 = vmatpush3.bf16.msra.mxu1 %v2589_v10  ;;  %v417_v59 = vshrl.u32 %v2789_v50, %v411_v45  ;;  %v515_v31 = vshrl.u32 %v2787_v46, %v514_v20  ;;  %v517_v37 = vshrl.u32 %v2788_v48, %v514_v20 }
  0x2a   :  { %2594 = vmatprep.subr.bf16.mxu1 %v2593_v13  ;;  %v520_v39 = vshrl.u32 %v2789_v50, %v514_v20  ;;  %v522_v40 = vshll.u32 %v2789_v50, %v513_v7  ;;  %vm613_vm11 = vcmp.gt.s32.totalorder %v612_v57, 0 }
  0x2b   :  { %v418_v1 = vor.u32 %v417_v59, %v416_v49  ;;  %v518_v49 = vor.u32 %v517_v37, %v516_v26  ;;  %v614_v26 = vsel %vm613_vm11, %v612_v57, 0 }
  0x2c   :  { %171 = vmatmul.mubr.f32.gmra.mrb[4].mxu0 %v48_v51  ;;  %v419_v51 = vshll.u32 %v2789_v50, %v410_v41  ;;  %v616_v6 = vand.u32 31, %v614_v26 }
  0x2d   :  { %176 = vmatprep.mubr.f32.mxu0 %v2785_v3  ;;  %2596 = vmatpush3.bf16.msra.mxu1 %v2593_v13  ;;  %v436_v10 = vsel %vm428_vm2, %v415_v0, %v418_v1 }
  0x2e   :  { %v617_v37 = vsub.s32 32, %v616_v6 }
  0x30   :  { %177 = vmatmul.mubr.f32.gmra.mrb[6].mxu0 %v49_v52  ;;  %v2790_v52 = vmov 2102212464  }
  0x31   :  { %972 = vmatprep.mubr.f32.mxu0 %v2785_v3  ;;  %v422_v53 = vshll.u32 %v2790_v52, %v410_v41  ;;  %v420_v60 = vshrl.u32 %v2790_v52, %v411_v45  ;;  %v523_v41 = vshrl.u32 %v2790_v52, %v514_v20  ;;  %v525_v43 = vshll.u32 %v2790_v52, %v513_v7 }
  0x32   :  { %v526_v45 = vshrl.u32 %v2791_v54, %v514_v20  ;;  %v626_v57 = vshrl.u32 %v2790_v52, %v617_v37 }
  0x33   :  { %v421_v2 = vor.u32 %v420_v60, %v419_v51  ;;  %v424_v4 = vor.u32 %v423_v61, %v422_v53  ;;  %v529_v51 = vshrl.u32 %v2792_v62, %v514_v20  ;;  %v524_v55 = vor.u32 %v523_v41, %v522_v40 }
  0x34   :  { %v527_v58 = vor.u32 %v526_v45, %v525_v43  ;;  %v535_v61 = vsel %vm531_vm6, %v515_v31, %v518_v49  ;;  %v3162_v45 = vld [vmem:[%s4486_s3 + $0x18] sm:$0xff] }
  0x35   :  { %v433_v9 = vsel %vm431_vm5, %v421_v2, 2102212464  ;;  %v440_v11 = vsel %vm428_vm2, %v418_v1, %v421_v2  ;;  %v437_v13 = vsel %vm431_vm5, %v424_v4, 920167782  ;;  %v442_v25 = vsel %vm430_vm4, %v424_v4, %v441_v14 }
  0x36   :  { %v434_v12 = vsel %vm430_vm4, %v418_v1, %v433_v9  ;;  %v438_v24 = vsel %vm430_vm4, %v421_v2, %v437_v13  ;;  %v443_v28 = vsel %vm429_vm3, %v440_v11, %v442_v25  ;;  %v530_v59 = vor.u32 %v529_v51, %v528_v47 }
  0x37   :  { %v435_v23 = vsel %vm429_vm3, %v432_v8, %v434_v12  ;;  %v439_v27 = vsel %vm429_vm3, %v436_v10, %v438_v24  ;;  %v3094_v32 = vmul.u32.u64.low %v3066_v42, %v443_v28  ;;  %v3095_v34 = vmul.u32.u64.high %v3066_v42, %v443_v28, %v3094_v32 }
  0x38   :  { %v451_v29 = vmul.u32 %v3066_v42, %v435_v23  ;;  %v3098_v35 = vmul.u32.u64.low %v3066_v42, %v439_v27  ;;  %v3099_v36 = vmul.u32.u64.high %v3066_v42, %v439_v27, %v3098_v35  ;;  %v521_v42 = vor.u32 %v520_v39, %v519_v38 }
  0x39   :  { %v536_v1 = vsel %vm534_vm10, %v524_v55, 2102212464  ;;  %v540_v2 = vsel %vm534_vm10, %v527_v58, 920167782  ;;  %v544_v8 = vsel %vm534_vm10, %v530_v59, 1326507024  ;;  %v622_v51 = vshll.u32 %v2788_v48, %v616_v6 }
  0x3a   :  { %vm453_vm7 = vc.u32 %v3095_v34, %v3098_v35  ;;  %v454_v53 = vadd.s32 1, %v3099_v36  ;;  %v539_v63 = vsel %vm531_vm6, %v518_v49, %v521_v42  ;;  %v543_v4 = vsel %vm531_vm6, %v521_v42, %v524_v55 }
  0x3b   :  { %v537_v5 = vsel %vm533_vm9, %v521_v42, %v536_v1  ;;  %v541_v7 = vsel %vm533_vm9, %v524_v55, %v540_v2  ;;  %v545_v10 = vsel %vm533_vm9, %v527_v58, %v544_v8  ;;  %v602_v11 = vand.u32 2147483647, %v3061_v30 }
  0x3c   :  { %v455_v60 = vsel %vm453_vm7, %v454_v53, %v3099_v36  ;;  %v542_v9 = vsel %vm532_vm8, %v539_v63, %v541_v7  ;;  %v538_v12 = vsel %vm532_vm8, %v535_v61, %v537_v5  ;;  %v546_v13 = vsel %vm532_vm8, %v543_v4, %v545_v10 }
  0x3d   :  { %v456_v0 = vadd.s32 %v455_v60, %v451_v29  ;;  %v3123_v14 = vmul.u32.u64.low %v3068_v44, %v542_v9  ;;  %v3124_v20 = vmul.u32.u64.high %v3068_v44, %v542_v9, %v3123_v14  ;;  %v3134_v27 = vsub.s32 0, %v3063_v33  ;;  %v82_v29 = vld [vmem:[%s4487_s7] sm:$0x3] }
  0x3e   :  { %v3130_v24 = vmul.u32.u64.low %v3068_v44, %v546_v13  ;;  %v3131_v25 = vmul.u32.u64.high %v3068_v44, %v546_v13, %v3130_v24  ;;  %v3137_v28 = vsub.s32 1, %v3063_v33  ;;  %v554_v32 = vmul.u32 %v3068_v44, %v538_v12 }
  0x3f   :  { %v457_v56 = vadd.s32 536870912, %v456_v0  ;;  %v557_v36 = vadd.s32 1, %v3124_v20  ;;  %v609_v39 = vand.u32 8388607, %v602_v11  ;;  %v3152_v40 = vrot.slane %v82_v29, %v3134_v27 }
  0x40   :  { %vm556_vm12 = vc.u32 %v3131_v25, %v3123_v14  ;;  %v3155_v41 = vrot.slane %v82_v29, %v3137_v28  ;;  %v619_v44 = vshll.u32 %v2787_v46, %v616_v6  ;;  %v620_v42 = vshrl.u32 %v2788_v48, %v617_v37 }
  0x41   :  { %v3127_v23 = vshrl.u32 %v457_v56, 30  ;;  %v558_v43 = vsel %vm556_vm12, %v557_v36, %v3124_v20  ;;  %v623_v53 = vshrl.u32 %v2789_v50, %v617_v37  ;;  %v625_v55 = vshll.u32 %v2789_v50, %v616_v6 }
  0x42   :  { %v559_v49 = vadd.s32 %v558_v43, %v554_v32  ;;  %v628_v58 = vshll.u32 %v2790_v52, %v616_v6  ;;  %v610_v60 = vor.u32 8388608, %v609_v39  ;;  %v615_v61 = vshrl.u32 %v614_v26, 5 }
  0x43   :  { %v459_v31 = vshll.u32 %v3127_v23, 30  ;;  %v3173_v63 = vmul.f32 0.62831855, %v3162_v45  ;;  %v618_v2 = vshrl.u32 %v2787_v46, %v617_v37  ;;  %v629_v4 = vshrl.u32 %v2791_v54, %v617_v37 }
  0x44   :  { %v560_v1 = vadd.s32 536870912, %v559_v49  ;;  %v621_v7 = vor.u32 %v620_v42, %v619_v44  ;;  %v631_v8 = vshll.u32 %v2791_v54, %v616_v6  ;;  %v632_v56 = vshrl.u32 %v2792_v62, %v617_v37 }
  0x45   :  { %v3145_v38 = vsub.s32 %v456_v0, %v459_v31  ;;  %v452_v0 = vadd.s32 %v3098_v35, %v3095_v34  ;;  %v624_v10 = vor.u32 %v623_v53, %v622_v51  ;;  %v627_v12 = vor.u32 %v626_v57, %v625_v55 }
  0x46   :  { %v3181_v9 = vshrl.u32 %v560_v1, 30  ;;  %v630_v13 = vor.u32 %v629_v4, %v628_v58  ;;  %vm634_vm14 = vcmp.lt.s32.totalorder %v615_v61, 1  ;;  %vm637_vm15 = vcmp.lt.s32.totalorder %v615_v61, 4 }
  0x47   :  { %v462_v47 = vsub.s32 0, %v3145_v38  ;;  %v3184_v34 = vshll.u32 %v610_v60, 8  ;;  %v633_v24 = vor.u32 %v632_v56, %v631_v8  ;;  %v639_v26 = vsel %vm637_vm15, %v627_v12, 2102212464 }
  0x48   :  { %v562_v35 = vshll.u32 %v3181_v9, 30  ;;  %v708_v6 = vand.u32 2139095040, %v3173_v63  ;;  %vm635_vm1 = vcmp.lt.s32.totalorder %v615_v61, 2  ;;  %vm636_vm2 = vcmp.lt.s32.totalorder %v615_v61, 3 }
  0x49   :  { %v2447_v59 = vmin.u32 %v462_v47, %v3145_v38  ;;  %v643_v29 = vsel %vm637_vm15, %v630_v13, 920167782  ;;  %v638_v36 = vsel %vm634_vm14, %v618_v2, %v621_v7  ;;  %v642_v37 = vsel %vm634_vm14, %v621_v7, %v624_v10 }
  0x4a   :  { %v3190_v32 = vsub.s32 %v559_v49, %v562_v35  ;;  %v640_v47 = vsel %vm636_vm2, %v624_v10, %v639_v26  ;;  %v644_v51 = vsel %vm636_vm2, %v627_v12, %v643_v29  ;;  %v646_v53 = vsel %vm634_vm14, %v624_v10, %v627_v12 }
  0x4b   :  { %v464_v5 = vclz %v2447_v59  ;;  %v647_v55 = vsel %vm637_vm15, %v633_v24, 1326507024  ;;  %vm817_vm3 = vcmp.lt.f32.partialorder %v3039_v16, 5.0  ;;  %vm398_vm4 = vcmp.lt.s32.totalorder %v3042_v17, 0 }
  0x4c   :  { %v565_v42 = vsub.s32 0, %v3190_v32  ;;  %v648_v58 = vsel %vm636_vm2, %v630_v13, %v647_v55  ;;  %v645_v60 = vsel %vm635_vm1, %v642_v37, %v644_v51  ;;  %v641_v4 = vsel %vm635_vm1, %v638_v36, %v640_v47 }
  0x4d   :  { %v2448_v20 = vadd.s32 4294967294, %v464_v5  ;;  %v649_v5 = vsel %vm635_vm1, %v646_v53, %v648_v58  ;;  %v709_v56 = vshrl.u32 %v708_v6, 23  ;;  %v3223_v61 = vsel %vm816_vm13, 1.0, %v2785_v3 }
  0x4e   :  { %v2451_v59 = vmin.u32 %v565_v42, %v3190_v32  ;;  %v3209_v7 = vmul.u32.u64.low %v3184_v34, %v649_v5  ;;  %v3210_v8 = vmul.u32.u64.high %v3184_v34, %v649_v5, %v3209_v7  ;;  %vm3227_vm5 = vcmp.le.f32.partialorder %v396_v19, 0.7853982 }
  0x4f   :  { %vm2449_vm0 = vcmp.lt.s32.totalorder %v2448_v20, 0  ;;  %v2458_v26 = vadd.s32 4294967169, %v709_v56  ;;  %v705_v36 = vand.u32 2147483647, %v3173_v63  ;;  %vm501_vm6 = vcmp.lt.s32.totalorder %v3045_v18, 0 }
  0x50   :  { %v467_v31 = vsel %vm2449_vm0, 0, %v2448_v20  ;;  %v3213_v13 = vmul.u32.u64.low %v3184_v34, %v645_v60  ;;  %v3214_v20 = vmul.u32.u64.high %v3184_v34, %v645_v60, %v3213_v13  ;;  %v657_v15 = vmul.u32 %v3184_v34, %v641_v4 }
  0x51   :  { %v468_v39 = vsub.s32 32, %v467_v31  ;;  %v469_v43 = vshll.u32 %v3145_v38, %v467_v31  ;;  %v472_v44 = vsub.s32 4294967266, %v467_v31  ;;  %v482_v38 = vsub.s32 4, %v3127_v23 }
  0x52   :  { %v555_v31 = vadd.s32 %v3123_v14, %v3131_v25  ;;  %vm659_vm8 = vc.u32 %v3210_v8, %v3213_v13  ;;  %vm3244_vm10 = vcmp.le.f32.partialorder %v499_v21, 0.7853982  ;;  %v3251_v42 = vsel %vm817_vm3, 1.0, %v2785_v3 }
  0x53   :  { %v470_v49 = vshrl.u32 %v452_v0, %v468_v39  ;;  %v473_v57 = vadd.s32 127, %v472_v44  ;;  %v567_v0 = vclz %v2451_v59  ;;  %v483_v35 = vsel %vm398_vm4, %v482_v38, %v3127_v23 }
  0x54   :  { %v715_v23 = vadd.s32 1, %v2458_v26  ;;  %v485_v19 = vsel %vm3227_vm5, 0, %v483_v35  ;;  %v585_v38 = vsub.s32 4, %v3181_v9  ;;  %vm488_vm12 = vweird.f32 %v3042_v17 }
  0x55   :  { %v471_v1 = vor.u32 %v470_v49, %v469_v43  ;;  %v474_v2 = vshll.u32 %v473_v57, 23  ;;  %v2452_v24 = vadd.s32 4294967294, %v567_v0  ;;  %v660_v43 = vadd.s32 1, %v3214_v20 }
  0x56   :  { %vm716_vm9 = vcmp.gt.s32.totalorder %v715_v23, 0  ;;  %v3256_v57 = vand.u32 8388607, %v705_v36  ;;  %v3260_v58 = vand.u32 3, %v485_v19 }
  0x57   :  { %v475_v10 = vor.u32 4788187, %v474_v2  ;;  %v478_v12 = vcvt.s32.f32 %v471_v1  ;;  %vm2453_vm7 = vcmp.lt.s32.totalorder %v2452_v24, 0  ;;  %v661_v51 = vsel %vm659_vm8, %v660_v43, %v3214_v20 }
  0x58   :  { %v570_v39 = vsel %vm2453_vm7, 0, %v2452_v24  ;;  %v717_v53 = vsel %vm716_vm9, %v715_v23, 0  ;;  %vm490_vm11 = vcmp.lt.s32.totalorder %v3260_v58, 2  ;;  %vm491_vm13 = vcmp.eq.s32.totalorder %v3260_v58, 0 }
  0x59   :  { %v476_v29 = vand.u32 2147483647, %v475_v10  ;;  %v571_v44 = vsub.s32 32, %v570_v39  ;;  %v572_v14 = vshll.u32 %v3190_v32, %v570_v39  ;;  %v575_v25 = vsub.s32 4294967266, %v570_v39 }
  0x5a   :  { %v662_v32 = vadd.s32 %v661_v51, %v657_v15  ;;  %v719_v16 = vand.u32 31, %v717_v53  ;;  %vm494_vm14 = vcmp.eq.s32.totalorder %v3260_v58, 2  ;;  %vm604_vm8 = vcmp.lt.s32.totalorder %v3061_v30, 0 }
  0x5b   :  { %v479_v37 = vmul.f32 %v478_v12, %v476_v29  ;;  %v573_v55 = vshrl.u32 %v555_v31, %v571_v44  ;;  %v576_v49 = vadd.s32 127, %v575_v25  ;;  %v586_v12 = vsel %vm501_vm6, %v585_v38, %v3181_v9 }
  0x5c   :  { %v663_v2 = vadd.s32 536870912, %v662_v32  ;;  %v720_v4 = vsub.s32 32, %v719_v16  ;;  %v722_v5 = vshll.u32 %v2787_v46, %v719_v16  ;;  %v725_v0 = vshll.u32 %v2788_v48, %v719_v16 }
  0x5d   :  { %v480_v47 = vxor.u32 2147483648, %v479_v37  ;;  %v574_v60 = vor.u32 %v573_v55, %v572_v14  ;;  %v577_v1 = vshll.u32 %v576_v49, 23  ;;  %v728_v24 = vshll.u32 %v2789_v50, %v719_v16 }
  0x5e   :  { %v3268_v10 = vshrl.u32 %v663_v2, 30  ;;  %v723_v20 = vshrl.u32 %v2788_v48, %v720_v4  ;;  %v726_v35 = vshrl.u32 %v2789_v50, %v720_v4  ;;  %v3277_v29 = vshrl.u32 %v717_v53, 5 }
  0x5f   :  { %v481_v21 = vsel %vm398_vm4, %v480_v47, %v479_v37  ;;  %v578_v7 = vor.u32 4788187, %v577_v1  ;;  %v581_v56 = vcvt.s32.f32 %v574_v60  ;;  %v729_v31 = vshrl.u32 %v2790_v52, %v720_v4 }
  0x60   :  { %v484_v59 = vsel %vm3227_vm5, %v3042_v17, %v481_v21  ;;  %v665_v6 = vshll.u32 %v3268_v10, 30  ;;  %v724_v15 = vor.u32 %v723_v20, %v722_v5  ;;  %v727_v23 = vor.u32 %v726_v35, %v725_v0 }
  0x61   :  { %2689 = vcosq.f32 %v484_v59  ;;  %v579_v26 = vand.u32 2147483647, %v578_v7  ;;  %v731_v37 = vshll.u32 %v2790_v52, %v719_v16  ;;  %v732_v9 = vshrl.u32 %v2791_v54, %v720_v4 }
  0x62   :  { %2691 = vsinq.f32 %v484_v59  ;;  %v588_v50 = vsel %vm3244_vm10, 0, %v586_v12  ;;  %v3286_v19 = vsub.s32 %v662_v32, %v665_v6  ;;  %v730_v39 = vor.u32 %v729_v31, %v728_v24 }
  0x63   :  { %v582_v48 = vmul.f32 %v581_v56, %v579_v26  ;;  %v721_v43 = vshrl.u32 %v2787_v46, %v720_v4  ;;  %v733_v44 = vor.u32 %v732_v9, %v731_v37  ;;  %v734_v14 = vshll.u32 %v2791_v54, %v719_v16 }
  0x64   :  { %v735_v25 = vshrl.u32 %v2792_v62, %v720_v4  ;;  %v668_v47 = vsub.s32 0, %v3286_v19  ;;  %v3294_v51 = vand.u32 3, %v588_v50  ;;  %v713_v53 = vor.u32 8388608, %v3256_v57 }
  0x65   :  { %v583_v52 = vxor.u32 2147483648, %v582_v48  ;;  %vm737_vm15 = vcmp.lt.s32.totalorder %v3277_v29, 1  ;;  %vm738_vm0 = vcmp.lt.s32.totalorder %v3277_v29, 2  ;;  %vm740_vm1 = vcmp.lt.s32.totalorder %v3277_v29, 4 }
  0x66   :  { %v736_v55 = vor.u32 %v735_v25, %v734_v14  ;;  %v2455_v54 = vmin.u32 %v668_v47, %v3286_v19  ;;  %vm739_vm2 = vcmp.lt.s32.totalorder %v3277_v29, 3  ;;  %v741_v32 = vsel %vm737_vm15, %v721_v43, %v724_v15 }
  0x67   :  { %v584_v46 = vsel %vm501_vm6, %v583_v52, %v582_v48  ;;  %v742_v57 = vsel %vm740_vm1, %v730_v39, 2102212464  ;;  %v745_v1 = vsel %vm737_vm15, %v724_v15, %v727_v23  ;;  %v746_v5 = vsel %vm740_vm1, %v733_v44, 920167782 }
  0x68   :  { %v587_v49 = vsel %vm3244_vm10, %v3045_v18, %v584_v46  ;;  %v670_v16 = vclz %v2455_v54  ;;  %v743_v59 = vsel %vm739_vm2, %v727_v23, %v742_v57  ;;  %v749_v0 = vsel %vm737_vm15, %v727_v23, %v730_v39 }
  0x69   :  { %2693 = vcosq.f32 %v587_v49  ;;  %v3315_v34 = vsel %vm738_vm0, %v741_v32, %v743_v59  ;;  %v658_v12 = vadd.s32 %v3213_v13, %v3210_v8  ;;  %v747_v20 = vsel %vm739_vm2, %v730_v39, %v746_v5 }
  0x6a   :  { %2695 = vsinq.f32 %v587_v49  ;;  %v2456_v4 = vadd.s32 4294967294, %v670_v16  ;;  %v750_v35 = vsel %vm740_vm1, %v736_v55, 1326507024  ;;  %v3340_v31 = vsel %vm738_vm0, %v745_v1, %v747_v20 }
  0x6b   :  { %v2690_v62 = vpop.eup %2689  ;;  %vm591_vm4 = vweird.f32 %v3045_v18  ;;  %v751_v23 = vsel %vm739_vm2, %v733_v44, %v750_v35  ;;  %vm593_vm5 = vcmp.lt.s32.totalorder %v3294_v51, 2  ;;  %vm597_vm6 = vcmp.eq.s32.totalorder %v3294_v51, 2 }
  0x6c   :  { %v2692_v21 = vpop.eup %2691  ;;  %v495_v38 = vxor.u32 2147483648, %v2690_v62  ;;  %vm2457_vm3 = vcmp.lt.s32.totalorder %v2456_v4, 0  ;;  %v752_v17 = vsel %vm738_vm0, %v749_v0, %v751_v23  ;;  %vm594_vm7 = vcmp.eq.s32.totalorder %v3294_v51, 0 }
  0x6d   :  { %v492_v60 = vxor.u32 2147483648, %v2692_v21  ;;  %v673_v15 = vsel %vm2457_vm3, 0, %v2456_v4  ;;  %vm3393_vm9 = vcmp.le.f32.partialorder %v602_v11, 0.7853982  ;;  %vm818_vm15 = vcmp.lt.f32.partialorder %v3053_v22, 5.0 }
  0x6e   :  { %v496_v2 = vsel %vm494_vm14, %v495_v38, %v2692_v21  ;;  %v674_v9 = vsub.s32 32, %v673_v15  ;;  %v675_v48 = vshll.u32 %v3286_v19, %v673_v15  ;;  %v678_v43 = vsub.s32 4294967266, %v673_v15 }
  0x6f   :  { %v493_v56 = vsel %vm491_vm13, %v2690_v62, %v492_v60  ;;  %v3365_v62 = vshll.u32 %v713_v53, 8  ;;  %vm694_vm14 = vweird.f32 %v3061_v30  ;;  %vm707_vm1 = vcmp.lt.s32.totalorder %v3173_v63, 0 }
  0x70   :  { %v497_v6 = vsel %vm490_vm11, %v493_v56, %v496_v2  ;;  %v676_v52 = vshrl.u32 %v658_v12, %v674_v9  ;;  %v679_v19 = vadd.s32 127, %v678_v43  ;;  %v688_v9 = vsub.s32 4, %v3268_v10 }
  0x71   :  { %v498_v13 = vsel %vm488_vm12, nan, %v497_v6  ;;  %vm706_vm2 = vcmp.le.f32.partialorder %v705_v36, 0.7853982 }
  0x72   :  { %v808_v37 = vadd.f32 1.0, %v498_v13  ;;  %v677_v54 = vor.u32 %v676_v52, %v675_v48  ;;  %v680_v38 = vshll.u32 %v679_v19, 23  ;;  %v760_v52 = vmul.u32 %v3365_v62, %v3315_v34 }
  0x73   :  { %v2694_v55 = vpop.eup %2693  ;;  %v3404_v18 = vmul.u32.u64.low %v3365_v62, %v3340_v31  ;;  %v3405_v48 = vmul.u32.u64.high %v3365_v62, %v3340_v31, %v3404_v18  ;;  %v689_v34 = vsel %vm604_vm8, %v688_v9, %v3268_v10 }
  0x74   :  { %v812_v25 = vmul.f32 0.5, %v808_v37  ;;  %v2696_v49 = vpop.eup %2695  ;;  %v598_v21 = vxor.u32 2147483648, %v2694_v55  ;;  %v684_v1 = vcvt.s32.f32 %v677_v54  ;;  %v681_v2 = vor.u32 4788187, %v680_v38  ;;  %v239_v38 = vld [vmem:[%s4489_s1] sm:$0xff] }
  0x75   :  { %v595_v60 = vxor.u32 2147483648, %v2696_v49 }
  0x76   :  { %v828_v29 = vmul.f32 %v3223_v61, %v812_v25  ;;  %v599_v53 = vsel %vm597_vm6, %v598_v21, %v2696_v49  ;;  %v682_v35 = vand.u32 2147483647, %v681_v2  ;;  %vm797_vm6 = vweird.f32 %v3173_v63 }
  0x77   :  { %v596_v5 = vsel %vm594_vm7, %v2694_v55, %v595_v60  ;;  %vm819_vm7 = vcmp.lt.f32.partialorder %v3162_v45, 5.0 }
  0x78   :  { %834 = vperm.xlu0 %2687, %v828_v29   ;;  %v600_v20 = vsel %vm593_vm5, %v596_v5, %v599_v53  ;;  %v691_v53 = vsel %vm3393_vm9, 0, %v689_v34 }
  0x79   :  { %v601_v13 = vsel %vm591_vm4, nan, %v600_v20 }
  0x7a   :  { %v809_v23 = vadd.f32 1.0, %v601_v13  ;;  %v240_v13 = vld [vmem:[%s4489_s1 + $0x8] sm:$0xff] }
  0x7c   :  { %v813_v43 = vmul.f32 0.5, %v809_v23 }
  0x7e   :  { %v829_v25 = vmul.f32 %v3251_v42, %v813_v43 }
  0x80   :  { %839 = vperm.xlu0 %2687, %v829_v25  }
  0xf7   :  { %v160_v7 = vpop.f32.mrb[0].mxu0 }
  0xf8   :  { %v3334_v24 = vadd.f32 %v160_v7, %v3152_v40  ;;  %v162_v26 = vpop.f32.mrb[1].mxu0  ;;  %v3379_v0 = vmul.u32.u64.low %v3365_v62, %v752_v17  ;;  %v3380_v7 = vmul.u32.u64.high %v3365_v62, %v752_v17, %v3379_v0 }
  0xf9   :  { %v3343_v8 = vadd.f32 %v162_v26, %v3155_v41 }
  0xfa   :  { %v2434_v58 = vmul.f32 -1.442695, %v3334_v24  ;;  %vm762_vm10 = vc.u32 %v3380_v7, %v3404_v18 }
  0xfb   :  { %v2435_v50 = vmul.f32 -1.442695, %v3343_v8  ;;  %v166_v39 = vpop.f32.mrb[2].mxu0 }
  0xfc   :  { %2697 = vpow2.f32 %v2434_v58  ;;  %v3357_v14 = vadd.f32 %v166_v39, %v3152_v40  ;;  %v168_v44 = vpop.f32.mrb[3].mxu0  ;;  %v685_v58 = vmul.f32 %v684_v1, %v682_v35 }
  0xfd   :  { %2699 = vpow2.f32 %v2435_v50  ;;  %v3360_v47 = vadd.f32 %v168_v44, %v3155_v41  ;;  %v3409_v44 = vadd.s32 %v3404_v18, %v3380_v7  ;;  %v241_v7 = vld [vmem:[%s4489_s1 + $0x10] sm:$0xff] }
  0xfe   :  { %v2436_v46 = vmul.f32 -1.442695, %v3357_v14  ;;  %v686_v17 = vxor.u32 2147483648, %v685_v58 }
  0xff   :  { %v2437_v32 = vmul.f32 -1.442695, %v3360_v47  ;;  %v172_v57 = vpop.f32.mrb[4].mxu0 }
 0x100   :  { %2701 = vpow2.f32 %v2436_v46  ;;  %v3370_v16 = vadd.f32 %v172_v57, %v3152_v40  ;;  %v174_v59 = vpop.f32.mrb[5].mxu0  ;;  %v687_v31 = vsel %vm604_vm8, %v686_v17, %v685_v58  ;;  %v763_v46 = vadd.s32 1, %v3405_v48 }
 0x101   :  { %2703 = vpow2.f32 %v2437_v32  ;;  %v3373_v61 = vadd.f32 %v174_v59, %v3155_v41  ;;  %v690_v55 = vsel %vm3393_vm9, %v3061_v30, %v687_v31  ;;  %v247_v59 = vld [vmem:[%s4488_s0] sm:$0xff]  ;;  %vm2402_vm8 = vcmask 523264  }
 0x102   :  { %v2438_v4 = vmul.f32 -1.442695, %v3370_v16  ;;  %v764_v42 = vsel %vm762_vm10, %v763_v46, %v3405_v48  ;;  %v243_v48 = vld [vmem:[%s4489_s1 + $0x20] sm:$0xff] }
 0x103   :  { %v2439_v56 = vmul.f32 -1.442695, %v3373_v61  ;;  %v178_v12 = vpop.f32.mrb[6].mxu0  ;;  %v765_v62 = vadd.s32 %v764_v42, %v760_v52 }
 0x104   :  { %2705 = vpow2.f32 %v2438_v4  ;;  %v3387_v26 = vadd.f32 %v178_v12, %v3152_v40  ;;  %v180_v6 = vpop.f32.mrb[7].mxu0  ;;  %v251_v4 = vmul.f32 %v247_v59, %v239_v38  ;;  %v695_v12 = vand.u32 3, %v691_v53 }
 0x105   :  { %2707 = vpow2.f32 %v2439_v56  ;;  %v3398_v51 = vadd.f32 %v180_v6, %v3155_v41  ;;  %v766_v60 = vadd.s32 536870912, %v765_v62  ;;  %v248_v56 = vld [vmem:[%s4488_s0 + $0x8] sm:$0xff] }
 0x106   :  { %v2698_v37 = vpop.eup %2697  ;;  %v2440_v40 = vmul.f32 -1.442695, %v3387_v26  ;;  %v252_v18 = vmul.f32 %v248_v56, %v241_v7  ;;  %vm700_vm11 = vcmp.eq.s32.totalorder %v695_v12, 2  ;;  %vm697_vm12 = vcmp.eq.s32.totalorder %v695_v12, 0 }
 0x107   :  { %v2700_v11 = vpop.eup %2699  ;;  %v207_v50 = vadd.f32 1.0, %v2698_v37  ;;  %v2441_v39 = vmul.f32 -1.442695, %v3398_v51  ;;  %v3435_v10 = vshrl.u32 %v766_v60, 30  ;;  %vm696_vm13 = vcmp.lt.s32.totalorder %v695_v12, 2 }
 0x108   :  { %v208_v41 = vadd.f32 1.0, %v2700_v11  ;;  %2709 = vpow2.f32 %v2440_v40 }
 0x109   :  { %2711 = vrcp.f32 %v207_v50  ;;  %v768_v20 = vshll.u32 %v3435_v10, 30 }
 0x10a   :  { %v2702_v19 = vpop.eup %2701  ;;  %2713 = vrcp.f32 %v208_v41  ;;  %v242_v41 = vld [vmem:[%s4489_s1 + $0x18] sm:$0xff] }
 0x10b   :  { %v2704_v29 = vpop.eup %2703  ;;  %v209_v54 = vadd.f32 1.0, %v2702_v19  ;;  %2715 = vpow2.f32 %v2441_v39  ;;  %v3449_v58 = vsub.s32 %v765_v62, %v768_v20 }
 0x10c   :  { %v210_v49 = vadd.f32 1.0, %v2704_v29  ;;  %2717 = vcosq.f32 %v690_v55 }
 0x10d   :  { %2719 = vrcp.f32 %v209_v54 }
 0x10e   :  { %v2706_v32 = vpop.eup %2705  ;;  %2721 = vrcp.f32 %v210_v49  ;;  %v250_v49 = vld [vmem:[%s4488_s0 + $0x18] sm:$0xff] }
 0x10f   :  { %v2708_v57 = vpop.eup %2707  ;;  %v211_v21 = vadd.f32 1.0, %v2706_v32  ;;  %2723 = vsinq.f32 %v690_v55 }
 0x110   :  { %v212_v1 = vadd.f32 1.0, %v2708_v57  ;;  %v244_v57 = vld [vmem:[%s4489_s1 + $0x28] sm:$0xff] }
 0x111   :  { %2725 = vrcp.f32 %v211_v21 }
 0x112   :  { %v2710_v2 = vpop.eup %2709  ;;  %2727 = vrcp.f32 %v212_v1 }
 0x113   :  { %v2712_v5 = vpop.eup %2711  ;;  %v213_v0 = vadd.f32 1.0, %v2710_v2 }
 0x114   :  { %v2714_v35 = vpop.eup %2713  ;;  %v231_v6 = vmul.f32 %v2712_v5, %v3334_v24  ;;  %v249_v24 = vld [vmem:[%s4488_s0 + $0x10] sm:$0xff]  ;;  %v2464_v5 = vsel %vm818_vm15, 1.0, %v2785_v3 }
 0x115   :  { %v2716_v15 = vpop.eup %2715  ;;  %v232_v23 = vmul.f32 %v2714_v35, %v3343_v8  ;;  %2729 = vrcp.f32 %v213_v0  ;;  %v771_v8 = vsub.s32 0, %v3449_v58  ;;  %v253_v52 = vmul.f32 %v249_v24, %v243_v48  ;;  %v246_v35 = vld [vmem:[%s4489_s1 + $0x38] sm:$0xff] }
 0x116   :  { %v2718_v37 = vpop.eup %2717  ;;  %v214_v40 = vadd.f32 1.0, %v2716_v15  ;;  %v255_v9 = vmul.f32 %v251_v4, %v231_v6 }
 0x117   :  { %v2720_v11 = vpop.eup %2719  ;;  %v701_v50 = vxor.u32 2147483648, %v2718_v37  ;;  %v3458_v39 = vmul.f32 %v240_v13, %v232_v23  ;;  %v2459_v19 = vmin.u32 %v771_v8, %v3449_v58 }
 0x118   :  { %v2722_v43 = vpop.eup %2721  ;;  %v233_v17 = vmul.f32 %v2720_v11, %v3357_v14  ;;  %2731 = vrcp.f32 %v214_v40  ;;  %2527 = vmatprep.mubr.f32.mxu1 %v255_v9  ;;  %v245_v14 = vld [vmem:[%s4489_s1 + $0x30] sm:$0xff] }
 0x119   :  { %v2724_v25 = vpop.eup %2723  ;;  %v234_v31 = vmul.f32 %v2722_v43, %v3360_v47  ;;  %v773_v47 = vclz %v2459_v19  ;;  %v254_v30 = vmul.f32 %v250_v49, %v245_v14  ;;  %v865_v14 = vld [vmem:[%s4490_s8 + $0x8] sm:$0xff] }
 0x11a   :  { %v256_v55 = vmul.f32 %v252_v18, %v233_v17  ;;  %v698_v46 = vxor.u32 2147483648, %v2724_v25  ;;  %v702_v29 = vsel %vm700_vm11, %v701_v50, %v2724_v25  ;;  %v2162_v49 = vld [vmem:[%s4491_s10 + $0x8] sm:$0xff] }
 0x11b   :  { %v2726_v54 = vpop.eup %2725  ;;  %v3474_v42 = vmul.f32 %v242_v41, %v234_v31  ;;  %v2460_v59 = vadd.s32 4294967294, %v773_v47  ;;  %v2164_v47 = vld [vmem:[%s4491_s10 + $0x18] sm:$0xff] }
 0x11c   :  { %v2728_v34 = vpop.eup %2727  ;;  %v235_v62 = vmul.f32 %v2726_v54, %v3370_v16  ;;  %2528 = vmatmul.mubr.f32.vlgmr.msra.gmra.mrb[0].mxu1 %v256_v55  ;;  %v699_v32 = vsel %vm697_vm12, %v2718_v37, %v698_v46  ;;  %v2465_v46 = vsel %vm819_vm7, 1.0, %v2785_v3 }
 0x11d   :  { %v236_v21 = vmul.f32 %v2728_v34, %v3373_v61  ;;  %v703_v38 = vsel %vm696_vm13, %v699_v32, %v702_v29  ;;  %vm2461_vm0 = vcmp.lt.s32.totalorder %v2460_v59, 0  ;;  %v864_v34 = vld [vmem:[%s4490_s8] sm:$0xff]  ;;  %v2629_v32 = vpack.c.bf16 %v2164_v47, %v2162_v49  ;;  %v2179_v49 = vld [vmem:[%s4491_s10 + $0x90] sm:$0xff]  ;;  %v885_v47 = vld [vmem:[%s4490_s8 + $0xa8] sm:$0xff] }
 0x11e   :  { %v257_v60 = vmul.f32 %v253_v52, %v235_v62  ;;  %v704_v1 = vsel %vm694_vm14, nan, %v703_v38  ;;  %v776_v0 = vsel %vm2461_vm0, 0, %v2460_v59  ;;  %v866_v62 = vld [vmem:[%s4490_s8 + $0x10] sm:$0xff] }
 0x11f   :  { %v2730_v53 = vpop.eup %2729  ;;  %v810_v2 = vadd.f32 1.0, %v704_v1  ;;  %v3482_v4 = vmul.f32 %v244_v57, %v236_v21  ;;  %v777_v61 = vsub.s32 32, %v776_v0  ;;  %v778_v56 = vshll.u32 %v3449_v58, %v776_v0  ;;  %v2161_v21 = vld [vmem:[%s4491_s10] sm:$0xff]  ;;  %v2163_v38 = vld [vmem:[%s4491_s10 + $0x10] sm:$0xff]  ;;  %2630 = vmatprep.subr.bf16.mxu1 %v2629_v32  ;;  %v2166_v1 = vld [vmem:[%s4491_s10 + $0x28] sm:$0xff] }
 0x120   :  { %v237_v16 = vmul.f32 %v2730_v53, %v3387_v26  ;;  %2530 = vmatprep.mubr.f32.mxu1 %v257_v60  ;;  %v781_v22 = vsub.s32 4294967266, %v776_v0  ;;  %v2599_v57 = vpack.c.bf16 %v866_v62, %v864_v34  ;;  %v2631_v59 = vpack.c.bf16 %v2163_v38, %v2161_v21  ;;  %v869_v60 = vld [vmem:[%s4490_s8 + $0x28] sm:$0xff]  ;;  %v887_v34 = vld [vmem:[%s4490_s8 + $0xb8] sm:$0xff]  ;;  %v884_v21 = vld [vmem:[%s4490_s8 + $0xa0] sm:$0xff] }
 0x121   :  { %v814_v7 = vmul.f32 0.5, %v810_v2  ;;  %v779_v26 = vshrl.u32 %v3409_v44, %v777_v61  ;;  %v791_v44 = vsub.s32 4, %v3435_v10  ;;  %v2168_v2 = vld [vmem:[%s4491_s10 + $0x38] sm:$0xff]  ;;  %v2165_v61 = vld [vmem:[%s4491_s10 + $0x20] sm:$0xff]  ;;  %v2182_v62 = vld [vmem:[%s4491_s10 + $0xa8] sm:$0xff]  ;;  %v2617_v32 = vpack.c.bf16 %v887_v34, %v885_v47 }
 0x122   :  { %v2732_v12 = vpop.eup %2731  ;;  %v258_v20 = vmul.f32 %v254_v30, %v237_v16  ;;  %v782_v15 = vadd.s32 127, %v781_v22  ;;  %v871_v30 = vld [vmem:[%s4490_s8 + $0x38] sm:$0xff]  ;;  %2632 = vmatpush1.bf16.msra.mxu1 %v2631_v59  ;;  %v868_v16 = vld [vmem:[%s4490_s8 + $0x20] sm:$0xff]  ;;  %v2633_v0 = vpack.c.bf16 %v2168_v2, %v2166_v1  ;;  %v886_v38 = vld [vmem:[%s4490_s8 + $0xb0] sm:$0xff] }
 0x123   :  { %v238_v6 = vmul.f32 %v2732_v12, %v3398_v51  ;;  %v830_v13 = vmul.f32 %v2464_v5, %v814_v7  ;;  %v780_v23 = vor.u32 %v779_v26, %v778_v56  ;;  %v792_v50 = vsel %vm707_vm1, %v791_v44, %v3435_v10  ;;  %v870_v5 = vld [vmem:[%s4490_s8 + $0x30] sm:$0xff]  ;;  %v873_v12 = vld [vmem:[%s4490_s8 + $0x48] sm:$0xff]  ;;  %v872_v26 = vld [vmem:[%s4490_s8 + $0x40] sm:$0xff] }
 0x124   :  { %2531 = vmatmul.mubr.f32.gmra.mrb[2].mxu1 %v258_v20  ;;  %v783_v37 = vshll.u32 %v782_v15, 23  ;;  %v794_v8 = vsel %vm706_vm2, 0, %v792_v50  ;;  %v2601_v53 = vpack.c.bf16 %v871_v30, %v869_v60  ;;  %v2603_v7 = vpack.c.bf16 %v870_v5, %v868_v16  ;;  %v2167_v56 = vld [vmem:[%s4491_s10 + $0x30] sm:$0xff]  ;;  %2634 = vmatprep.subr.bf16.mxu1 %v2633_v0  ;;  %v875_v20 = vld [vmem:[%s4490_s8 + $0x58] sm:$0xff]  ;;  %v2174_v44 = vld [vmem:[%s4491_s10 + $0x68] sm:$0xff] }
 0x125   :  { %844 = vperm.xlu1 %2688, %v830_v13   ;;  %2257 = vmatprep.mubr.f32.mxu1 %v2785_v3  ;;  %v3493_v58 = vmul.f32 %v246_v35, %v238_v6  ;;  %v787_v9 = vcvt.s32.f32 %v780_v23  ;;  %v798_v43 = vand.u32 3, %v794_v8  ;;  %v2635_v22 = vpack.c.bf16 %v2167_v56, %v2165_v61  ;;  %v2170_v35 = vld [vmem:[%s4491_s10 + $0x48] sm:$0xff]  ;;  %v2172_v13 = vld [vmem:[%s4491_s10 + $0x58] sm:$0xff]  ;;  %v874_v15 = vld [vmem:[%s4490_s8 + $0x50] sm:$0xff] }
 0x126   :  { %v784_v40 = vor.u32 4788187, %v783_v37  ;;  %v2605_v6 = vpack.c.bf16 %v875_v20, %v873_v12  ;;  %v2637_v23 = vpack.c.bf16 %v2172_v13, %v2170_v35  ;;  %v2607_v37 = vpack.c.bf16 %v874_v15, %v872_v26  ;;  %v876_v50 = vld [vmem:[%s4490_s8 + $0x60] sm:$0xff]  ;;  %v878_v8 = vld [vmem:[%s4490_s8 + $0x70] sm:$0xff]  ;;  %v889_v2 = vld [vmem:[%s4490_s8 + $0xc8] sm:$0xff] }
 0x127   :  { %vm803_vm3 = vcmp.eq.s32.totalorder %v798_v43, 2  ;;  %vm800_vm4 = vcmp.eq.s32.totalorder %v798_v43, 0  ;;  %vm799_vm5 = vcmp.lt.s32.totalorder %v798_v43, 2  ;;  %2636 = vmatpush1.bf16.msra.mxu1 %v2635_v22  ;;  %v2619_v60 = vpack.c.bf16 %v886_v38, %v884_v21  ;;  %v2181_v30 = vld [vmem:[%s4491_s10 + $0xa0] sm:$0xff]  ;;  %v2183_v1 = vld [vmem:[%s4491_s10 + $0xb0] sm:$0xff]  ;;  %v891_v16 = vld [vmem:[%s4490_s8 + $0xd8] sm:$0xff] }
 0x128   :  { %v785_v18 = vand.u32 2147483647, %v784_v40  ;;  %v2169_v40 = vld [vmem:[%s4491_s10 + $0x40] sm:$0xff]  ;;  %2638 = vmatprep.subr.bf16.mxu1 %v2637_v23  ;;  %v2186_v5 = vld [vmem:[%s4491_s10 + $0xc8] sm:$0xff]  ;;  %v2621_v0 = vpack.c.bf16 %v891_v16, %v889_v2  ;;  %v890_v56 = vld [vmem:[%s4490_s8 + $0xd0] sm:$0xff] }
 0x129   :  { %v888_v61 = vld [vmem:[%s4490_s8 + $0xc0] sm:$0xff]  ;;  %v2187_v35 = vld [vmem:[%s4491_s10 + $0xd0] sm:$0xff]  ;;  %v893_v13 = vld [vmem:[%s4490_s8 + $0xe8] sm:$0xff] }
 0x12a   :  { %v788_v48 = vmul.f32 %v787_v9, %v785_v18  ;;  %v2171_v9 = vld [vmem:[%s4491_s10 + $0x50] sm:$0xff]  ;;  %v2623_v12 = vpack.c.bf16 %v890_v56, %v888_v61  ;;  %v2185_v20 = vld [vmem:[%s4491_s10 + $0xc0] sm:$0xff]  ;;  %v895_v26 = vld [vmem:[%s4490_s8 + $0xf8] sm:$0xff] }
 0x12b   :  { %v2639_v18 = vpack.c.bf16 %v2171_v9, %v2169_v40  ;;  %v2190_v15 = vld [vmem:[%s4491_s10 + $0xe8] sm:$0xff]  ;;  %v2625_v23 = vpack.c.bf16 %v895_v26, %v893_v13  ;;  %v892_v40 = vld [vmem:[%s4490_s8 + $0xe0] sm:$0xff]  ;;  %v894_v9 = vld [vmem:[%s4490_s8 + $0xf0] sm:$0xff] }
 0x12c   :  { %v789_v51 = vxor.u32 2147483648, %v788_v48 }
 0x12d   :  { %2640 = vmatpush1.bf16.msra.mxu1 %v2639_v18 }
 0x12e   :  { %v790_v24 = vsel %vm707_vm1, %v789_v51, %v788_v48  ;;  %v877_v48 = vld [vmem:[%s4490_s8 + $0x68] sm:$0xff]  ;;  %v879_v51 = vld [vmem:[%s4490_s8 + $0x78] sm:$0xff] }
 0x12f   :  { %v793_v11 = vsel %vm706_vm2, %v3173_v63, %v790_v24  ;;  %v867_v63 = vld [vmem:[%s4490_s8 + $0x18] sm:$0xff]  ;;  %v2609_v24 = vpack.c.bf16 %v879_v51, %v877_v48  ;;  %v2627_v48 = vpack.c.bf16 %v894_v9, %v892_v40  ;;  %v2189_v51 = vld [vmem:[%s4491_s10 + $0xe0] sm:$0xff] }
 0x130   :  { %2733 = vcosq.f32 %v793_v11  ;;  %v2597_v45 = vpack.c.bf16 %v867_v63, %v865_v14  ;;  %v2177_v63 = vld [vmem:[%s4491_s10 + $0x80] sm:$0xff] }
 0x131   :  { %2735 = vsinq.f32 %v793_v11  ;;  %v2176_v11 = vld [vmem:[%s4491_s10 + $0x78] sm:$0xff] }
 0x132   :  { %2598 = vmatprep.subr.bf16.mxu0 %v2597_v45  ;;  %v2641_v43 = vpack.c.bf16 %v2176_v11, %v2174_v44  ;;  %v2647_v45 = vpack.c.bf16 %v2179_v49, %v2177_v63  ;;  %v2191_v44 = vld [vmem:[%s4491_s10 + $0xf0] sm:$0xff]  ;;  %v3697_v11 = vsub.s32 2, %v3063_v33 }
 0x133   :  { %2600 = vmatpush1.bf16.msra.mxu0 %v2599_v57  ;;  %v2184_v57 = vld [vmem:[%s4491_s10 + $0xb8] sm:$0xff] }
 0x134   :  { %2602 = vmatprep.subr.bf16.mxu0 %v2601_v53  ;;  %2642 = vmatprep.subr.bf16.mxu1 %v2641_v43  ;;  %v2649_v59 = vpack.c.bf16 %v2184_v57, %v2182_v62  ;;  %v2651_v53 = vpack.c.bf16 %v2183_v1, %v2181_v30 }
 0x137   :  { %2604 = vmatpush1.bf16.msra.mxu0 %v2603_v7  ;;  %v2188_v7 = vld [vmem:[%s4491_s10 + $0xd8] sm:$0xff] }
 0x138   :  { %2606 = vmatprep.subr.bf16.mxu0 %v2605_v6  ;;  %v2653_v22 = vpack.c.bf16 %v2188_v7, %v2186_v5  ;;  %v2655_v6 = vpack.c.bf16 %v2187_v35, %v2185_v20 }
 0x13a   :  { %v2734_v17 = vpop.eup %2733 }
 0x13b   :  { %v2736_v41 = vpop.eup %2735  ;;  %v804_v25 = vxor.u32 2147483648, %v2734_v17  ;;  %2608 = vmatpush1.bf16.msra.mxu0 %v2607_v37  ;;  %v2192_v37 = vld [vmem:[%s4491_s10 + $0xf8] sm:$0xff] }
 0x13c   :  { %v801_v31 = vxor.u32 2147483648, %v2736_v41  ;;  %2610 = vmatprep.subr.bf16.mxu0 %v2609_v24  ;;  %v2657_v18 = vpack.c.bf16 %v2192_v37, %v2190_v15  ;;  %v2659_v24 = vpack.c.bf16 %v2191_v44, %v2189_v51 }
 0x13d   :  { %v805_v36 = vsel %vm803_vm3, %v804_v25, %v2736_v41  ;;  %v2173_v41 = vld [vmem:[%s4491_s10 + $0x60] sm:$0xff]  ;;  %v2175_v25 = vld [vmem:[%s4491_s10 + $0x70] sm:$0xff] }
 0x13e   :  { %v802_v52 = vsel %vm800_vm4, %v2734_v17, %v801_v31  ;;  %v2611_v17 = vpack.c.bf16 %v878_v8, %v876_v50  ;;  %v2643_v31 = vpack.c.bf16 %v2175_v25, %v2173_v41  ;;  %v3700_v50 = vsub.s32 3, %v3063_v33  ;;  %v1053_v8 = vld [vmem:[%s4492_s4] sm:$0xff] }
 0x13f   :  { %v806_v19 = vsel %vm799_vm5, %v802_v52, %v805_v36  ;;  %v881_v36 = vld [vmem:[%s4490_s8 + $0x88] sm:$0xff]  ;;  %v883_v52 = vld [vmem:[%s4490_s8 + $0x98] sm:$0xff]  ;;  %v1060_v43 = vrot.slane %v1053_v8, %v3134_v27  ;;  %v1074_v41 = vrot.slane %v1053_v8, %v3697_v11 }
 0x140   :  { %v807_v55 = vsel %vm797_vm6, nan, %v806_v19  ;;  %2612 = vmatpush1.bf16.msra.mxu0 %v2611_v17  ;;  %v2178_v19 = vld [vmem:[%s4491_s10 + $0x88] sm:$0xff]  ;;  %2644 = vmatpush1.bf16.msra.mxu1 %v2643_v31  ;;  %v1067_v17 = vrot.slane %v1053_v8, %v3137_v28  ;;  %v1081_v25 = vrot.slane %v1053_v8, %v3700_v50  ;;  %v3710_v31 = vsub.s32 4, %v3063_v33 }
 0x141   :  { %v811_v10 = vadd.f32 1.0, %v807_v55  ;;  %v2613_v55 = vpack.c.bf16 %v883_v52, %v881_v36  ;;  %1062 = vbcast.lane.b32.xlu0 %v1060_v43, 256  ;;  %v3713_v36 = vsub.s32 5, %v3063_v33 }
 0x142   :  { %v1088_v52 = vrot.slane %v1053_v8, %v3710_v31 }
 0x143   :  { %v815_v29 = vmul.f32 0.5, %v811_v10  ;;  %v2180_v10 = vld [vmem:[%s4491_s10 + $0x98] sm:$0xff]  ;;  %2614 = vmatprep.subr.bf16.mxu0 %v2613_v55  ;;  %v3718_v55 = vsub.s32 6, %v3063_v33 }
 0x145   :  { %v831_v54 = vmul.f32 %v2465_v46, %v815_v29  ;;  %v880_v46 = vld [vmem:[%s4490_s8 + $0x80] sm:$0xff]  ;;  %v882_v29 = vld [vmem:[%s4490_s8 + $0x90] sm:$0xff]  ;;  %1076 = vbcast.lane.b32.xlu0 %v1074_v41, 256 }
 0x146   :  { %v2615_v14 = vpack.c.bf16 %v882_v29, %v880_v46  ;;  %v1102_v46 = vrot.slane %v1053_v8, %v3718_v55 }
 0x147   :  { %849 = vperm.xlu1 %2688, %v831_v54   ;;  %v2645_v54 = vpack.c.bf16 %v2180_v10, %v2178_v19  ;;  %v1095_v19 = vrot.slane %v1053_v8, %v3713_v36  ;;  %v3721_v10 = vsub.s32 7, %v3063_v33 }
 0x148   :  { %2616 = vmatpush1.bf16.msra.mxu0 %v2615_v14 }
 0x149   :  { %2646 = vmatprep.subr.bf16.mxu1 %v2645_v54  ;;  %2618 = vmatprep.subr.bf16.mxu0 %v2617_v32  ;;  %v1109_v29 = vrot.slane %v1053_v8, %v3721_v10 }
 0x14a   :  { %2648 = vmatpush1.bf16.msra.mxu1 %v2647_v45  ;;  %1090 = vbcast.lane.b32.xlu0 %v1088_v52, 256 }
 0x14b   :  { %2650 = vmatprep.subr.bf16.mxu1 %v2649_v59  ;;  %1069 = vbcast.lane.b32.xlu1 %v1067_v17, 256  ;;  %v835_v59 = vpop.permute.xlu0 %834 }
 0x14c   :  { %2620 = vmatpush1.bf16.msra.mxu0 %v2619_v60 }
 0x14d   :  { %2622 = vmatprep.subr.bf16.mxu0 %v2621_v0 }
 0x14e   :  { %2652 = vmatpush1.bf16.msra.mxu1 %v2651_v53  ;;  %1104 = vbcast.lane.b32.xlu0 %v1102_v46, 256 }
 0x14f   :  { %2654 = vmatprep.subr.bf16.mxu1 %v2653_v22  ;;  %1083 = vbcast.lane.b32.xlu1 %v1081_v25, 256  ;;  %v840_v16 = vpop.permute.xlu0 %839 }
 0x150   :  { %2624 = vmatpush1.bf16.msra.mxu0 %v2623_v12 }
 0x151   :  { %2626 = vmatprep.subr.bf16.mxu0 %v2625_v23 }
 0x152   :  { %2656 = vmatpush1.bf16.msra.mxu1 %v2655_v6 }
 0x153   :  { %2658 = vmatprep.subr.bf16.mxu1 %v2657_v18  ;;  %1097 = vbcast.lane.b32.xlu1 %v1095_v19, 256 }
 0x154   :  { %2628 = vmatpush1.bf16.msra.mxu0 %v2627_v48 }
 0x156   :  { %2660 = vmatpush1.bf16.msra.mxu1 %v2659_v24 }
 0x157   :  { %1111 = vbcast.lane.b32.xlu1 %v1109_v29, 256 }
 0x1a4   :  { %v845_v61 = vpop.permute.xlu1 %844 }
 0x1c6   :  { %v850_v6 = vpop.permute.xlu1 %849 }
 0x1ef   :  { %v2529_v54 = vpop.f32.mrb[0].mxu1 }
 0x1f0   :  { %v2443_v14 = vmul.f32 -1.442695, %v2529_v54  ;;  %v341_v63 = vpop.f32.mrb[1].mxu1 }
 0x1f1   :  { %v2442_v49 = vmul.f32 -1.442695, %v341_v63 }
 0x1f2   :  { %2737 = vpow2.f32 %v2443_v14 }
 0x1f3   :  { %2739 = vpow2.f32 %v2442_v49 }
 0x1f7   :  { %v2532_v45 = vpop.f32.mrb[2].mxu1 }
 0x1f8   :  { %v2445_v47 = vmul.f32 -1.442695, %v2532_v45  ;;  %v351_v34 = vpop.f32.mrb[3].mxu1 }
 0x1f9   :  { %v2444_v62 = vmul.f32 -1.442695, %v351_v34 }
 0x1fa   :  { %2741 = vpow2.f32 %v2445_v47 }
 0x1fb   :  { %2743 = vpow2.f32 %v2444_v62 }
 0x1fc   :  { %v2738_v32 = vpop.eup %2737 }
 0x1fd   :  { %v2740_v57 = vpop.eup %2739  ;;  %v373_v21 = vadd.f32 1.0, %v2738_v32 }
 0x1fe   :  { %v372_v38 = vadd.f32 1.0, %v2740_v57 }
 0x1ff   :  { %2745 = vrcp.f32 %v373_v21 }
 0x200   :  { %2747 = vrcp.f32 %v372_v38 }
 0x204   :  { %v2742_v60 = vpop.eup %2741 }
 0x205   :  { %v2744_v30 = vpop.eup %2743  ;;  %v375_v1 = vadd.f32 1.0, %v2742_v60 }
 0x206   :  { %v374_v53 = vadd.f32 1.0, %v2744_v30 }
 0x207   :  { %2749 = vrcp.f32 %v375_v1 }
 0x208   :  { %2751 = vrcp.f32 %v374_v53 }
 0x209   :  { %v2746_v2 = vpop.eup %2745 }
 0x20a   :  { %v2748_v5 = vpop.eup %2747  ;;  %v385_v0 = vmul.f32 %v2746_v2, %v2529_v54 }
 0x20b   :  { %v384_v7 = vmul.f32 %v2748_v5, %v341_v63 }
 0x20c   :  { %v853_v56 = vmul.f32 %v840_v16, %v385_v0 }
 0x20d   :  { %v852_v22 = vmul.f32 %v835_v59, %v384_v7 }
 0x20e   :  { %v3726_v12 = vmul.f32 %v3474_v42, %v853_v56 }
 0x20f   :  { %v3729_v20 = vmul.f32 %v3458_v39, %v852_v22 }
 0x211   :  { %v2750_v35 = vpop.eup %2749  ;;  %973 = vmatmul.mubr.f32.vlgmr.msra.gmra.mrb[8].mxu0 %v3729_v20  ;;  %2258 = vmatmul.mubr.f32.vlgmr.msra.gmra.mrb[4].mxu1 %v3729_v20 }
 0x212   :  { %v2752_v13 = vpop.eup %2751  ;;  %v387_v26 = vmul.f32 %v2750_v35, %v2532_v45  ;;  %978 = vmatprep.mubr.f32.mxu0 %v2785_v3  ;;  %2263 = vmatprep.mubr.f32.mxu1 %v2785_v3 }
 0x213   :  { %v386_v15 = vmul.f32 %v2752_v13, %v351_v34 }
 0x214   :  { %v855_v23 = vmul.f32 %v850_v6, %v387_v26 }
 0x215   :  { %v854_v37 = vmul.f32 %v845_v61, %v386_v15  ;;  %979 = vmatmul.mubr.f32.gmra.mrb[10].mxu0 %v3726_v12  ;;  %2264 = vmatmul.mubr.f32.gmra.mrb[6].mxu1 %v3726_v12 }
 0x216   :  { %v3738_v39 = vmul.f32 %v3493_v58, %v855_v23  ;;  %984 = vmatprep.mubr.f32.mxu0 %v2785_v3  ;;  %2269 = vmatprep.mubr.f32.mxu1 %v2785_v3  ;;  %v896_v58 = vld [vmem:[%s4493_s9] sm:$0x3]  ;;  %s2793_s9 = smov 64  }
 0x217   :  { %v3743_v42 = vmul.f32 %v3482_v4, %v854_v37  ;;  %v901_v40 = vrot.slane %v896_v58, %v3134_v27  ;;  %v905_v4 = vrot.slane %v896_v58, %v3137_v28 }
 0x219   :  { %985 = vmatmul.mubr.f32.gmra.mrb[12].mxu0 %v3743_v42  ;;  %2270 = vmatmul.mubr.f32.gmra.mrb[8].mxu1 %v3743_v42 }
 0x21a   :  { %990 = vmatprep.mubr.f32.mxu0 %v2785_v3  ;;  %2275 = vmatprep.mubr.f32.mxu1 %v2785_v3 }
 0x21d   :  { %991 = vmatmul.mubr.f32.gmra.mrb[14].mxu0 %v3738_v39  ;;  %2276 = vmatmul.mubr.f32.gmra.mrb[10].mxu1 %v3738_v39 }
 0x2e4   :  { %v974_v9 = vpop.f32.mrb[8].mxu0  ;;  %v2259_v18 = vpop.f32.mrb[4].mxu1 }
 0x2e5   :  { %v3756_v48 = vadd.f32 %v974_v9, %v901_v40  ;;  %v2282_v51 = vmax.f32 %v2259_v18, 0.0  ;;  %v976_v44 = vpop.f32.mrb[9].mxu0  ;;  %v2261_v24 = vpop.f32.mrb[5].mxu1 }
 0x2e6   :  { %v3758_v3 = vadd.f32 %v976_v44, %v905_v4  ;;  %v2283_v17 = vmax.f32 %v2261_v24, 0.0 }
 0x2e7   :  { %v2466_v8 = vmul.f32 -1.442695, %v3756_v48  ;;  %v3761_v43 = vmin.f32 %v2282_v51, 1.0 }
 0x2e8   :  { %v2467_v41 = vmul.f32 -1.442695, %v3758_v3  ;;  %v980_v25 = vpop.f32.mrb[10].mxu0  ;;  %v2265_v52 = vpop.f32.mrb[6].mxu1  ;;  %v2291_v49 = vmin.f32 %v2283_v17, 1.0 }
 0x2e9   :  { %2753 = vpow2.f32 %v2466_v8  ;;  %v3764_v19 = vadd.f32 %v980_v25, %v901_v40  ;;  %v2284_v46 = vmax.f32 %v2265_v52, 0.0  ;;  %v982_v29 = vpop.f32.mrb[11].mxu0  ;;  %2346 = vrot.lane.b32.xlu0 %v3761_v43, %s2793_s9  ;;  %v2267_v54 = vpop.f32.mrb[7].mxu1  ;;  %v3806_v25 = vld [vmem:[%s4492_s4 + $0x8] sm:$0xff] }
 0x2ea   :  { %2755 = vpow2.f32 %v2467_v41  ;;  %v3768_v14 = vadd.f32 %v982_v29, %v905_v4  ;;  %v2285_v63 = vmax.f32 %v2267_v54, 0.0  ;;  %v2362_v30 = vmul.f32 %v2291_v49, %v3729_v20 }
 0x2eb   :  { %v2468_v45 = vmul.f32 -1.442695, %v3764_v19  ;;  %v3771_v47 = vmin.f32 %v2284_v46, 1.0 }
 0x2ec   :  { %v2469_v34 = vmul.f32 -1.442695, %v3768_v14  ;;  %v986_v62 = vpop.f32.mrb[12].mxu0  ;;  %v2271_v32 = vpop.f32.mrb[8].mxu1  ;;  %v2293_v59 = vmin.f32 %v2285_v63, 1.0 }
 0x2ed   :  { %2757 = vpow2.f32 %v2468_v45  ;;  %v3774_v57 = vadd.f32 %v986_v62, %v901_v40  ;;  %2306 = vrot.lane.b32.xlu0 %v2291_v49, %s2793_s9  ;;  %2348 = vrot.lane.b32.xlu1 %v3771_v47, %s2793_s9  ;;  %v988_v21 = vpop.f32.mrb[13].mxu0  ;;  %v2273_v38 = vpop.f32.mrb[9].mxu1  ;;  %v2286_v53 = vmax.f32 %v2271_v32, 0.0 }
 0x2ee   :  { %2759 = vpow2.f32 %v2469_v34  ;;  %v3779_v60 = vadd.f32 %v988_v21, %v905_v4  ;;  %v2363_v56 = vmul.f32 %v2293_v59, %v3726_v12  ;;  %v2287_v13 = vmax.f32 %v2273_v38, 0.0 }
 0x2ef   :  { %v2470_v1 = vmul.f32 -1.442695, %v3774_v57  ;;  %v3791_v6 = vmin.f32 %v2286_v53, 1.0  ;;  %v1116_v34 = vrot.slane %v3806_v25, %v3134_v27  ;;  %v1130_v53 = vrot.slane %v3806_v25, %v3697_v11 }
 0x2f0   :  { %v2471_v2 = vmul.f32 -1.442695, %v3779_v60  ;;  %v992_v16 = vpop.f32.mrb[14].mxu0  ;;  %v2277_v5 = vpop.f32.mrb[10].mxu1  ;;  %v2295_v51 = vmin.f32 %v2287_v13, 1.0  ;;  %v1151_v13 = vrot.slane %v3806_v25, %v3713_v36 }
 0x2f1   :  { %2761 = vpow2.f32 %v2470_v1  ;;  %v3784_v0 = vadd.f32 %v992_v16, %v901_v40  ;;  %2370 = vrot.lane.b32.xlu0 %v2362_v30, %s2793_s9  ;;  %2308 = vrot.lane.b32.xlu1 %v2293_v59, %s2793_s9  ;;  %v994_v7 = vpop.f32.mrb[15].mxu0  ;;  %v2279_v61 = vpop.f32.mrb[11].mxu1  ;;  %v2288_v15 = vmax.f32 %v2277_v5, 0.0 }
 0x2f2   :  { %2763 = vpow2.f32 %v2471_v2  ;;  %v3789_v22 = vadd.f32 %v994_v7, %v905_v4  ;;  %v2794_v4 = vmov 1966171168   ;;  %v2289_v24 = vmax.f32 %v2279_v61, 0.0 }
 0x2f3   :  { %v2754_v35 = vpop.eup %2753  ;;  %v2472_v26 = vmul.f32 -1.442695, %v3784_v0  ;;  %v1319_v9 = vunpack.c.l.s4 %v2794_v4  ;;  %v3798_v44 = vmin.f32 %v2288_v15, 1.0  ;;  %v2364_v29 = vmul.f32 %v2295_v51, %v3743_v42 }
 0x2f4   :  { %v2756_v23 = vpop.eup %2755  ;;  %v1021_v37 = vadd.f32 1.0, %v2754_v35  ;;  %v2473_v58 = vmul.f32 -1.442695, %v3789_v22  ;;  %v2297_v54 = vmin.f32 %v2289_v24, 1.0  ;;  %v1123_v2 = vrot.slane %v3806_v25, %v3137_v28 }
 0x2f5   :  { %v1022_v40 = vadd.f32 1.0, %v2756_v23  ;;  %2765 = vpow2.f32 %v2472_v26  ;;  %2372 = vrot.lane.b32.xlu1 %v2363_v56, %s2793_s9  ;;  %2350 = vrot.lane.b32.xlu0 %v3791_v6, %s2793_s9  ;;  %v1320_v46 = vunpack.c.0.s8 %v1319_v9  ;;  %v1137_v7 = vrot.slane %v3806_v25, %v3700_v50 }
 0x2f6   :  { %2767 = vrcp.f32 %v1021_v37  ;;  %v2365_v21 = vmul.f32 %v2297_v54, %v3738_v39  ;;  %v1158_v35 = vrot.slane %v3806_v25, %v3718_v55  ;;  %v1165_v23 = vrot.slane %v3806_v25, %v3721_v10 }
 0x2f7   :  { %v2758_v18 = vpop.eup %2757  ;;  %2769 = vrcp.f32 %v1022_v40  ;;  %v3814_v32 = vsub.s32 %v1320_v46, %v3063_v33  ;;  %v3826_v33 = vld [vmem:[%s4492_s4 + $0x10] sm:$0xff] }
 0x2f8   :  { %v2760_v8 = vpop.eup %2759  ;;  %v1023_v17 = vadd.f32 1.0, %v2758_v18  ;;  %2771 = vpow2.f32 %v2473_v58  ;;  %v1172_v15 = vrot.slane %v3826_v33, %v3134_v27  ;;  %v1186_v37 = vrot.slane %v3826_v33, %v3697_v11 }
 0x2f9   :  { %v1024_v41 = vadd.f32 1.0, %v2760_v8  ;;  %2310 = vrot.lane.b32.xlu0 %v2295_v51, %s2793_s9  ;;  %2352 = vrot.lane.b32.xlu1 %v3798_v44, %s2793_s9  ;;  %v1179_v18 = vrot.slane %v3826_v33, %v3137_v28 }
 0x2fa   :  { %2773 = vrcp.f32 %v1023_v17 }
 0x2fb   :  { %v2762_v52 = vpop.eup %2761  ;;  %2775 = vrcp.f32 %v1024_v41 }
 0x2fc   :  { %v2764_v63 = vpop.eup %2763  ;;  %v1025_v49 = vadd.f32 1.0, %v2762_v52 }
 0x2fd   :  { %v1026_v45 = vadd.f32 1.0, %v2764_v63  ;;  %2374 = vrot.lane.b32.xlu0 %v2364_v29, %s2793_s9  ;;  %2312 = vrot.lane.b32.xlu1 %v2297_v54, %s2793_s9  ;;  %v1063_v54 = vpop.permute.xlu0 %1062 }
 0x2fe   :  { %2777 = vrcp.f32 %v1025_v49 }
 0x2ff   :  { %v2766_v62 = vpop.eup %2765  ;;  %2779 = vrcp.f32 %v1026_v45  ;;  %v1200_v45 = vrot.slane %v3826_v33, %v3710_v31 }
 0x300   :  { %v2768_v38 = vpop.eup %2767  ;;  %v1027_v59 = vadd.f32 1.0, %v2766_v62 }
 0x301   :  { %v2770_v30 = vpop.eup %2769  ;;  %v1045_v1 = vmul.f32 %v2768_v38, %v3756_v48  ;;  %1118 = vbcast.lane.b32.xlu0 %v1116_v34, 256  ;;  %2376 = vrot.lane.b32.xlu1 %v2365_v21, %s2793_s9  ;;  %v1144_v48 = vrot.slane %v3806_v25, %v3710_v31 }
 0x302   :  { %v2772_v16 = vpop.eup %2771  ;;  %v3829_v5 = vmul.f32 %v2770_v30, %v3758_v3  ;;  %2781 = vrcp.f32 %v1027_v59  ;;  %v1070_v59 = vpop.permute.xlu1 %1069  ;;  %v1193_v30 = vrot.slane %v3826_v33, %v3700_v50 }
 0x303   :  { %v1324_v61 = vrot.slane %v1045_v1, %v3814_v32  ;;  %v1028_v56 = vadd.f32 1.0, %v2772_v16  ;;  %v1317_v51 = vcombine.high %v1045_v1, %v1045_v1  ;;  %v1282_v16 = vld [vmem:[%s4494_s5 + $0x8] sm:$0xff] }
 0x304   :  { %v2774_v26 = vpop.eup %2773  ;;  %v1716_v3 = vrot.slane %v3829_v5, %v3814_v32 }
 0x305   :  { %v2776_v58 = vpop.eup %2775  ;;  %v1332_v40 = vcombine.high %v1324_v61, %v1324_v61  ;;  %v3849_v4 = vrot.slane %v1324_v61, %v3814_v32  ;;  %v1047_v9 = vmul.f32 %v2774_v26, %v3764_v19  ;;  %1132 = vbcast.lane.b32.xlu0 %v1130_v53, 256  ;;  %2783 = vrcp.f32 %v1028_v56  ;;  %1125 = vbcast.lane.b32.xlu1 %v1123_v2, 256  ;;  %v1281_v19 = vld [vmem:[%s4494_s5] sm:$0xff] }
 0x306   :  { %v3855_v24 = vmul.f32 %v2776_v58, %v3768_v14  ;;  %v1732_v8 = vrot.slane %v1716_v3, %v3814_v32  ;;  %v1724_v46 = vcombine.high %v1716_v3, %v1716_v3  ;;  %v1331_v56 = vrot.slane %v1317_v51, %v3814_v32 }
 0x307   :  { %v1366_v17 = vcombine.high %v1047_v9, %v1047_v9  ;;  %v3859_v41 = vrot.slane %v1047_v9, %v3814_v32  ;;  %v1516_v52 = vrot.slane %v3849_v4, %v3134_v27  ;;  %v1354_v49 = vrot.slane %v1332_v40, %v3814_v32 }
 0x308   :  { %v2778_v29 = vpop.eup %2777  ;;  %v3868_v14 = vrot.slane %v3855_v24, %v3814_v32  ;;  %v1908_v63 = vrot.slane %v1732_v8, %v3134_v27  ;;  %v1746_v26 = vrot.slane %v1724_v46, %v3814_v32  ;;  %v1362_v46 = vcombine.high %v3849_v4, %v3849_v4  ;;  %v3930_v4 = vld [vmem:[%s4492_s4 + $0x18] sm:$0xff] }
 0x309   :  { %v2780_v34 = vpop.eup %2779  ;;  %v3875_v62 = vrot.slane %v1366_v17, %v3814_v32  ;;  %v3879_v21 = vrot.slane %v3859_v41, %v3814_v32  ;;  %v1049_v38 = vmul.f32 %v2778_v29, %v3774_v57  ;;  %1146 = vbcast.lane.b32.xlu0 %v1144_v48, 256  ;;  %v1673_v53 = vmul.f32 %v1516_v52, %v1281_v19  ;;  %v1077_v52 = vpop.permute.xlu0 %1076 }
 0x30a   :  { %v3885_v1 = vmul.f32 %v2780_v34, %v3779_v60  ;;  %v2065_v2 = vmul.f32 %v1908_v63, %v1063_v54  ;;  %v1520_v61 = vrot.slane %v1354_v49, %v3134_v27  ;;  %1139 = vbcast.lane.b32.xlu1 %v1137_v7, 256  ;;  %v1709_v60 = vcombine.high %v3829_v5, %v3829_v5  ;;  %v1283_v34 = vld [vmem:[%s4494_s5 + $0x10] sm:$0xff] }
 0x30b   :  { %v1415_v57 = vcombine.high %v1049_v38, %v1049_v38  ;;  %v3893_v48 = vrot.slane %v1049_v38, %v3814_v32  ;;  %v1214_v7 = vrot.slane %v3826_v33, %v3718_v55  ;;  %v1912_v5 = vrot.slane %v1746_v26, %v3134_v27  ;;  %v1084_v38 = vpop.permute.xlu1 %1083 }
 0x30c   :  { %v2782_v3 = vpop.eup %2781  ;;  %v3900_v58 = vrot.slane %v3885_v1, %v3814_v32  ;;  %v2097_v40 = vadd.f32 %v2065_v2, %v1673_v53  ;;  %v1674_v19 = vmul.f32 %v1520_v61, %v1282_v16  ;;  %v1754_v29 = vcombine.high %v1732_v8, %v1732_v8  ;;  %v1284_v16 = vld [vmem:[%s4494_s5 + $0x18] sm:$0xff] }
 0x30d   :  { %v3905_v9 = vrot.slane %v1415_v57, %v3814_v32  ;;  %v3909_v51 = vrot.slane %v3893_v48, %v3814_v32  ;;  %v1051_v17 = vmul.f32 %v2782_v3, %v3784_v0  ;;  %1160 = vbcast.lane.b32.xlu0 %v1158_v35, 256  ;;  %v1364_v54 = vcombine.high %v1354_v49, %v1354_v49  ;;  %v1091_v25 = vpop.permute.xlu0 %1090 }
 0x30e   :  { %2129 = vst [vmem:[%s4495_s14] sm:$0xff] %v2097_v40  ;;  %1153 = vbcast.lane.b32.xlu1 %v1151_v13, 256  ;;  %v1333_v63 = vcombine.high %v1331_v56, %v1331_v56  ;;  %v1756_v53 = vcombine.high %v1746_v26, %v1746_v26  ;;  %v2066_v49 = vmul.f32 %v1912_v5, %v1070_v59 }
 0x30f   :  { %v1464_v0 = vcombine.high %v1051_v17, %v1051_v17  ;;  %v3922_v35 = vrot.slane %v1051_v17, %v3814_v32  ;;  %v2784_v8 = vpop.eup %2783  ;;  %v1524_v13 = vrot.slane %v1362_v46, %v3134_v27  ;;  %v1916_v2 = vrot.slane %v1754_v29, %v3134_v27 }
 0x310   :  { %v1528_v61 = vrot.slane %v1364_v54, %v3134_v27  ;;  %v3946_v3 = vmul.f32 %v2784_v8, %v3789_v22  ;;  %v1207_v59 = vrot.slane %v3826_v33, %v3713_v36  ;;  %v2098_v40 = vadd.f32 %v2066_v49, %v1674_v19  ;;  %v1098_v49 = vpop.permute.xlu1 %1097 }
 0x311   :  { %v3939_v57 = vrot.slane %v1464_v0, %v3814_v32  ;;  %v3943_v26 = vrot.slane %v3922_v35, %v3814_v32  ;;  %1174 = vbcast.lane.b32.xlu0 %v1172_v15, 256  ;;  %v1675_v17 = vmul.f32 %v1524_v13, %v1283_v34  ;;  %v2067_v5 = vmul.f32 %v1916_v2, %v1077_v52  ;;  %v1289_v34 = vld [vmem:[%s4494_s5 + $0x40] sm:$0xff] }
 0x312   :  { %1167 = vbcast.lane.b32.xlu1 %v1165_v23, 256  ;;  %v1758_v22 = vcombine.high %v3855_v24, %v3855_v24  ;;  %v3962_v29 = vrot.slane %v3946_v3, %v3814_v32  ;;  %v1676_v15 = vmul.f32 %v1528_v61, %v1284_v16  ;;  %v1920_v54 = vrot.slane %v1756_v53, %v3134_v27  ;;  %v1285_v53 = vld [vmem:[%s4494_s5 + $0x20] sm:$0xff] }
 0x313   :  { %2130 = vst [vmem:[%s4495_s14 + $0x8] sm:$0xff] %v2098_v40  ;;  %v2099_v19 = vadd.f32 %v2067_v5, %v1675_v17  ;;  %v1347_v23 = vrot.slane %v1331_v56, %v3814_v32  ;;  %v1723_v52 = vrot.slane %v1709_v60, %v3814_v32  ;;  %v1361_v0 = vrot.slane %v1333_v63, %v3814_v32 }
 0x314   :  { %v2068_v8 = vmul.f32 %v1920_v54, %v1084_v38  ;;  %v1548_v56 = vrot.slane %v3879_v21, %v3134_v27  ;;  %v3984_v60 = vrot.slane %v3868_v14, %v3814_v32  ;;  %v1411_v63 = vcombine.high %v3879_v21, %v3879_v21 }
 0x315   :  { %1188 = vbcast.lane.b32.xlu0 %v1186_v37, 256  ;;  %2131 = vst [vmem:[%s4495_s14 + $0x10] sm:$0xff] %v2099_v19  ;;  %v1532_v38 = vrot.slane %v1347_v23, %v3134_v27  ;;  %v1739_v13 = vrot.slane %v1723_v52, %v3814_v32  ;;  %v1286_v37 = vld [vmem:[%s4494_s5 + $0x28] sm:$0xff]  ;;  %v1536_v2 = vrot.slane %v1361_v0, %v3134_v27 }
 0x316   :  { %v1725_v16 = vcombine.high %v1723_v52, %v1723_v52  ;;  %1181 = vbcast.lane.b32.xlu1 %v1179_v18, 256  ;;  %v2100_v21 = vadd.f32 %v2068_v8, %v1676_v15  ;;  %v1363_v61 = vcombine.high %v1347_v23, %v1347_v23  ;;  %v1365_v40 = vcombine.high %v1361_v0, %v1361_v0  ;;  %v1287_v52 = vld [vmem:[%s4494_s5 + $0x30] sm:$0xff]  ;;  %v1288_v18 = vld [vmem:[%s4494_s5 + $0x38] sm:$0xff] }
 0x317   :  { %v4000_v17 = vmul.f32 %v1548_v56, %v1289_v34  ;;  %v1381_v5 = vcombine.high %v3859_v41, %v3859_v41  ;;  %v1677_v54 = vmul.f32 %v1532_v38, %v1285_v53  ;;  %v1924_v19 = vrot.slane %v1739_v13, %v3134_v27  ;;  %v1291_v34 = vld [vmem:[%s4494_s5 + $0x50] sm:$0xff]  ;;  %v1105_v56 = vpop.permute.xlu0 %1104 }
 0x318   :  { %v1753_v46 = vrot.slane %v1725_v16, %v3814_v32  ;;  %2132 = vst [vmem:[%s4495_s14 + $0x18] sm:$0xff] %v2100_v21  ;;  %v1678_v15 = vmul.f32 %v1536_v2, %v1286_v37  ;;  %v1540_v41 = vrot.slane %v1363_v61, %v3134_v27  ;;  %v1755_v23 = vcombine.high %v1739_v13, %v1739_v13  ;;  %v1112_v16 = vpop.permute.xlu1 %1111 }
 0x319   :  { %v1544_v0 = vrot.slane %v1365_v40, %v3134_v27  ;;  %1202 = vbcast.lane.b32.xlu0 %v1200_v45, 256  ;;  %v2069_v8 = vmul.f32 %v1924_v19, %v1091_v25  ;;  %v1556_v13 = vrot.slane %v1411_v63, %v3134_v27  ;;  %v1221_v21 = vrot.slane %v3826_v33, %v3721_v10  ;;  %v1293_v33 = vld [vmem:[%s4494_s5 + $0x60] sm:$0xff] }
 0x31a   :  { %v1928_v53 = vrot.slane %v1753_v46, %v3134_v27  ;;  %v1757_v38 = vcombine.high %v1753_v46, %v1753_v46  ;;  %1195 = vbcast.lane.b32.xlu1 %v1193_v30, 256  ;;  %v1679_v37 = vmul.f32 %v1540_v41, %v1287_v52  ;;  %v1932_v2 = vrot.slane %v1755_v23, %v3134_v27 }
 0x31b   :  { %v1680_v45 = vmul.f32 %v1544_v0, %v1288_v18  ;;  %v2101_v61 = vadd.f32 %v2069_v8, %v1677_v54  ;;  %v4032_v19 = vmul.f32 %v1556_v13, %v1291_v34  ;;  %v1382_v46 = vcombine.high %v3875_v62, %v3875_v62  ;;  %v1290_v18 = vld [vmem:[%s4494_s5 + $0x48] sm:$0xff] }
 0x31c   :  { %v2070_v25 = vmul.f32 %v1928_v53, %v1098_v49  ;;  %v1936_v40 = vrot.slane %v1757_v38, %v3134_v27  ;;  %v2071_v30 = vmul.f32 %v1932_v2, %v1105_v56  ;;  %v1403_v63 = vrot.slane %v1381_v5, %v3814_v32  ;;  %v1295_v38 = vld [vmem:[%s4494_s5 + $0x70] sm:$0xff] }
 0x31d   :  { %1216 = vbcast.lane.b32.xlu0 %v1214_v7, 256  ;;  %v1773_v52 = vcombine.high %v3868_v14, %v3868_v14  ;;  %2133 = vst [vmem:[%s4495_s14 + $0x20] sm:$0xff] %v2101_v61  ;;  %v1396_v7 = vrot.slane %v3875_v62, %v3814_v32  ;;  %v1772_v14 = vrot.slane %v1758_v22, %v3814_v32  ;;  %v1292_v22 = vld [vmem:[%s4494_s5 + $0x58] sm:$0xff] }
 0x31e   :  { %v2102_v49 = vadd.f32 %v2070_v25, %v1678_v15  ;;  %v2072_v54 = vmul.f32 %v1936_v40, %v1112_v16  ;;  %1209 = vbcast.lane.b32.xlu1 %v1207_v59, 256  ;;  %v2103_v5 = vadd.f32 %v2071_v30, %v1679_v37  ;;  %v1552_v15 = vrot.slane %v1403_v63, %v3134_v27  ;;  %v1297_v25 = vld [vmem:[%s4494_s5 + $0x80] sm:$0xff]  ;;  %v1294_v40 = vld [vmem:[%s4494_s5 + $0x68] sm:$0xff] }
 0x31f   :  { %v4059_v41 = vrot.slane %v1773_v52, %v3814_v32  ;;  %v1413_v59 = vcombine.high %v1403_v63, %v1403_v63  ;;  %v1564_v23 = vrot.slane %v1396_v7, %v3134_v27  ;;  %v4069_v24 = vrot.slane %v1772_v14, %v3814_v32 }
 0x320   :  { %2134 = vst [vmem:[%s4495_s14 + $0x28] sm:$0xff] %v2102_v49  ;;  %v2104_v62 = vadd.f32 %v2072_v54, %v1680_v45  ;;  %v1412_v0 = vcombine.high %v1396_v7, %v1396_v7  ;;  %2135 = vst [vmem:[%s4495_s14 + $0x30] sm:$0xff] %v2103_v5  ;;  %v4504_v34 = vrot.slane %v3930_v4, %v3134_v27 }
 0x321   :  { %v1242_v8 = vrot.slane %v3930_v4, %v3697_v11  ;;  %v4082_v53 = vmul.f32 %v1552_v15, %v1290_v18  ;;  %v1560_v56 = vrot.slane %v1413_v59, %v3134_v27  ;;  %v1430_v13 = vcombine.high %v3893_v48, %v3893_v48  ;;  %v1296_v18 = vld [vmem:[%s4494_s5 + $0x78] sm:$0xff] }
 0x322   :  { %1230 = vbcast.lane.b32.xlu0 %v4504_v34, 256  ;;  %2136 = vst [vmem:[%s4495_s14 + $0x38] sm:$0xff] %v2104_v62  ;;  %1223 = vbcast.lane.b32.xlu1 %v1221_v21, 256  ;;  %v1235_v37 = vrot.slane %v3930_v4, %v3137_v28  ;;  %v4095_v11 = vmul.f32 %v1564_v23, %v1293_v33 }
 0x323   :  { %v1572_v2 = vrot.slane %v1412_v0, %v3134_v27  ;;  %v1256_v16 = vrot.slane %v3930_v4, %v3710_v31  ;;  %v4100_v45 = vmul.f32 %v1560_v56, %v1292_v22  ;;  %v1410_v61 = vrot.slane %v1382_v46, %v3814_v32 }
 0x324   :  { %v1774_v48 = vcombine.high %v1772_v14, %v1772_v14  ;;  %v1807_v21 = vcombine.high %v3885_v1, %v3885_v1  ;;  %v1580_v31 = vrot.slane %v3909_v51, %v3134_v27  ;;  %v4117_v46 = vrot.slane %v3900_v58, %v3814_v32 }
 0x325   :  { %v4108_v28 = vmul.f32 %v1572_v2, %v1295_v38  ;;  %v1568_v30 = vrot.slane %v1410_v61, %v3134_v27  ;;  %v1414_v1 = vcombine.high %v1410_v61, %v1410_v61  ;;  %v1460_v52 = vcombine.high %v3909_v51, %v3909_v51  ;;  %v1299_v51 = vld [vmem:[%s4494_s5 + $0x90] sm:$0xff] }
 0x326   :  { %1244 = vbcast.lane.b32.xlu0 %v1242_v8, 256  ;;  %v4121_v63 = vrot.slane %v1774_v48, %v3814_v32  ;;  %1237 = vbcast.lane.b32.xlu1 %v1235_v37, 256  ;;  %v1249_v49 = vrot.slane %v3930_v4, %v3700_v50  ;;  %v4127_v54 = vmul.f32 %v1580_v31, %v1297_v25  ;;  %v1298_v50 = vld [vmem:[%s4494_s5 + $0x88] sm:$0xff]  ;;  %v1303_v48 = vld [vmem:[%s4494_s5 + $0xb0] sm:$0xff] }
 0x327   :  { %v1452_v7 = vrot.slane %v1430_v13, %v3814_v32  ;;  %v1431_v14 = vcombine.high %v3905_v9, %v3905_v9  ;;  %v4135_v5 = vmul.f32 %v1568_v30, %v1294_v40  ;;  %v1576_v15 = vrot.slane %v1414_v1, %v3134_v27  ;;  %v1302_v31 = vld [vmem:[%s4494_s5 + $0xa8] sm:$0xff] }
 0x328   :  { %v1588_v33 = vrot.slane %v1460_v52, %v3134_v27  ;;  %v1822_v62 = vcombine.high %v3900_v58, %v3900_v58  ;;  %v1263_v23 = vrot.slane %v3930_v4, %v3713_v36  ;;  %v1445_v0 = vrot.slane %v3905_v9, %v3814_v32  ;;  %v1301_v58 = vld [vmem:[%s4494_s5 + $0xa0] sm:$0xff]  ;;  %v1300_v9 = vld [vmem:[%s4494_s5 + $0x98] sm:$0xff] }
 0x329   :  { %v1584_v59 = vrot.slane %v1452_v7, %v3134_v27  ;;  %v4150_v22 = vmul.f32 %v1576_v15, %v1296_v18  ;;  %v1821_v34 = vrot.slane %v1807_v21, %v3814_v32  ;;  %v1462_v36 = vcombine.high %v1452_v7, %v1452_v7  ;;  %v1305_v18 = vld [vmem:[%s4494_s5 + $0xc0] sm:$0xff] }
 0x32a   :  { %1258 = vbcast.lane.b32.xlu0 %v1256_v16, 256  ;;  %1251 = vbcast.lane.b32.xlu1 %v1249_v49, 256  ;;  %v4155_v8 = vmul.f32 %v1588_v33, %v1299_v51  ;;  %v4160_v38 = vrot.slane %v1822_v62, %v3814_v32  ;;  %v1596_v13 = vrot.slane %v1445_v0, %v3134_v27 }
 0x32b   :  { %v4157_v56 = vmul.f32 %v1584_v59, %v1298_v50  ;;  %v4167_v37 = vrot.slane %v1821_v34, %v3814_v32  ;;  %v1461_v2 = vcombine.high %v1445_v0, %v1445_v0  ;;  %v1459_v16 = vrot.slane %v1431_v14, %v3814_v32  ;;  %v1307_v0 = vld [vmem:[%s4494_s5 + $0xd0] sm:$0xff] }
 0x32c   :  { %v1592_v61 = vrot.slane %v1462_v36, %v3134_v27  ;;  %v1823_v25 = vcombine.high %v1821_v34, %v1821_v34  ;;  %v4177_v21 = vmul.f32 %v1596_v13, %v1301_v58  ;;  %v1479_v30 = vcombine.high %v3922_v35, %v3922_v35  ;;  %v1306_v13 = vld [vmem:[%s4494_s5 + $0xc8] sm:$0xff] }
 0x32d   :  { %v1604_v40 = vrot.slane %v1461_v2, %v3134_v27  ;;  %v1600_v52 = vrot.slane %v1459_v16, %v3134_v27  ;;  %v1856_v7 = vcombine.high %v3946_v3, %v3946_v3  ;;  %v1612_v35 = vrot.slane %v3943_v26, %v3134_v27  ;;  %v1304_v3 = vld [vmem:[%s4494_s5 + $0xb8] sm:$0xff] }
 0x32e   :  { %1265 = vbcast.lane.b32.xlu1 %v1263_v23, 256  ;;  %v4185_v1 = vmul.f32 %v1592_v61, %v1300_v9  ;;  %v4189_v49 = vrot.slane %v1823_v25, %v3814_v32  ;;  %v4202_v15 = vrot.slane %v3962_v29, %v3814_v32  ;;  %v1463_v50 = vcombine.high %v1459_v16, %v1459_v16 }
 0x32f   :  { %v4196_v14 = vmul.f32 %v1604_v40, %v1303_v48  ;;  %v4204_v51 = vmul.f32 %v1600_v52, %v1302_v31  ;;  %v1480_v33 = vcombine.high %v3939_v57, %v3939_v57  ;;  %v4208_v59 = vmul.f32 %v1612_v35, %v1305_v18  ;;  %v1308_v31 = vld [vmem:[%s4494_s5 + $0xd8] sm:$0xff] }
 0x330   :  { %v1509_v62 = vcombine.high %v3943_v26, %v3943_v26  ;;  %v1608_v23 = vrot.slane %v1463_v50, %v3134_v27  ;;  %v1501_v34 = vrot.slane %v1479_v30, %v3814_v32  ;;  %v1871_v58 = vcombine.high %v3962_v29, %v3962_v29  ;;  %v1309_v29 = vld [vmem:[%s4494_s5 + $0xe0] sm:$0xff] }
 0x331   :  { %v1494_v26 = vrot.slane %v3939_v57, %v3814_v32  ;;  %v1870_v9 = vrot.slane %v1856_v7, %v3814_v32  ;;  %v1508_v30 = vrot.slane %v1480_v33, %v3814_v32  ;;  %v1310_v7 = vld [vmem:[%s4494_s5 + $0xe8] sm:$0xff] }
 0x332   :  { %v1620_v36 = vrot.slane %v1509_v62, %v3134_v27  ;;  %v4229_v2 = vmul.f32 %v1608_v23, %v1304_v3  ;;  %v1616_v16 = vrot.slane %v1501_v34, %v3134_v27  ;;  %v4233_v61 = vrot.slane %v1871_v58, %v3814_v32 }
 0x333   :  { %v1511_v48 = vcombine.high %v1501_v34, %v1501_v34  ;;  %v1628_v40 = vrot.slane %v1494_v26, %v3134_v27  ;;  %v4242_v57 = vrot.slane %v1870_v9, %v3814_v32  ;;  %v1632_v50 = vrot.slane %v1508_v30, %v3134_v27  ;;  %v1311_v34 = vld [vmem:[%s4494_s5 + $0xf0] sm:$0xff] }
 0x334   :  { %v4238_v25 = vmul.f32 %v1620_v36, %v1307_v0  ;;  %v4248_v52 = vmul.f32 %v1616_v16, %v1306_v13  ;;  %v1872_v3 = vcombine.high %v1870_v9, %v1870_v9  ;;  %v1510_v23 = vcombine.high %v1494_v26, %v1494_v26  ;;  %v1312_v13 = vld [vmem:[%s4494_s5 + $0xf8] sm:$0xff] }
 0x335   :  { %v1624_v18 = vrot.slane %v1511_v48, %v3134_v27  ;;  %v4254_v35 = vmul.f32 %v1628_v40, %v1309_v29  ;;  %v4259_v0 = vmul.f32 %v1632_v50, %v1310_v7  ;;  %v1512_v58 = vcombine.high %v1508_v30, %v1508_v30 }
 0x336   :  { %v4262_v33 = vrot.slane %v1872_v3, %v3814_v32  ;;  %v1636_v36 = vrot.slane %v1510_v23, %v3134_v27 }
 0x337   :  { %v4257_v62 = vmul.f32 %v1624_v18, %v1308_v31  ;;  %v1640_v9 = vrot.slane %v1512_v58, %v3134_v27 }
 0x338   :  { %v4272_v16 = vmul.f32 %v1636_v36, %v1311_v34 }
 0x339   :  { %v4274_v26 = vmul.f32 %v1640_v9, %v1312_v13 }
 0x35b   :  { %v2347_v29 = vpop.permute.xlu0 %2346 }
 0x35c   :  { %v2358_v31 = vmul.f32 %v2347_v29, %v3729_v20 }
 0x35f   :  { %v2307_v32 = vpop.permute.xlu0 %2306  ;;  %v2349_v48 = vpop.permute.xlu1 %2348 }
 0x360   :  { %v2318_v40 = vmul.f32 %v2307_v32, %v3729_v20  ;;  %v2359_v3 = vmul.f32 %v2349_v48, %v3726_v12 }
 0x362   :  { %2326 = vrot.lane.b32.xlu0 %v2318_v40, %s2793_s9 }
 0x363   :  { %v2371_v30 = vpop.permute.xlu0 %2370  ;;  %v2309_v18 = vpop.permute.xlu1 %2308 }
 0x364   :  { %v2382_v7 = vadd.f32 %v2371_v30, %v2358_v31  ;;  %v2319_v50 = vmul.f32 %v2309_v18, %v3726_v12  ;;  %v1270_v30 = vrot.slane %v3930_v4, %v3718_v55 }
 0x366   :  { %2390 = vrot.lane.b32.xlu0 %v2382_v7, %s2793_s9  ;;  %2328 = vrot.lane.b32.xlu1 %v2319_v50, %s2793_s9  ;;  %v1940_v7 = vrot.slane %v3984_v60, %v3134_v27  ;;  %v1803_v50 = vcombine.high %v3984_v60, %v3984_v60  ;;  %v1805_v60 = vcombine.high %v4059_v41, %v4059_v41 }
 0x367   :  { %v2373_v23 = vpop.permute.xlu1 %2372  ;;  %v2351_v34 = vpop.permute.xlu0 %2350 }
 0x368   :  { %v2383_v58 = vadd.f32 %v2373_v23, %v2359_v3  ;;  %v2360_v29 = vmul.f32 %v2351_v34, %v3743_v42  ;;  %v1948_v55 = vrot.slane %v1803_v50, %v3134_v27 }
 0x36a   :  { %2392 = vrot.lane.b32.xlu1 %v2383_v58, %s2793_s9 }
 0x36b   :  { %v2311_v36 = vpop.permute.xlu0 %2310  ;;  %v2353_v13 = vpop.permute.xlu1 %2352 }
 0x36c   :  { %v2320_v9 = vmul.f32 %v2311_v36, %v3743_v42  ;;  %v2361_v18 = vmul.f32 %v2353_v13, %v3738_v39  ;;  %v1277_v13 = vrot.slane %v3930_v4, %v3721_v10  ;;  %v1956_v10 = vrot.slane %v4069_v24, %v3134_v27 }
 0x36d   :  { %v1804_v4 = vcombine.high %v4069_v24, %v4069_v24 }
 0x36e   :  { %2330 = vrot.lane.b32.xlu0 %v2320_v9, %s2793_s9 }
 0x36f   :  { %v2375_v32 = vpop.permute.xlu0 %2374  ;;  %v2313_v40 = vpop.permute.xlu1 %2312  ;;  %v1964_v24 = vrot.slane %v1804_v4, %v3134_v27 }
 0x370   :  { %v2384_v48 = vadd.f32 %v2375_v32, %v2360_v29  ;;  %v2321_v31 = vmul.f32 %v2313_v40, %v3738_v39  ;;  %v1944_v29 = vrot.slane %v4059_v41, %v3134_v27  ;;  %v1952_v41 = vrot.slane %v1805_v60, %v3134_v27 }
 0x372   :  { %2394 = vrot.lane.b32.xlu0 %v2384_v48, %s2793_s9  ;;  %2332 = vrot.lane.b32.xlu1 %v2321_v31, %s2793_s9 }
 0x373   :  { %v1119_v3 = vpop.permute.xlu0 %1118  ;;  %v2377_v23 = vpop.permute.xlu1 %2376 }
 0x374   :  { %v2073_v34 = vmul.f32 %v1940_v7, %v1119_v3  ;;  %v2385_v58 = vadd.f32 %v2377_v23, %v2361_v18  ;;  %v1960_v23 = vrot.slane %v4121_v63, %v3134_v27 }
 0x376   :  { %v2105_v36 = vadd.f32 %v2073_v34, %v4000_v17  ;;  %1272 = vbcast.lane.b32.xlu0 %v1270_v30, 256  ;;  %2396 = vrot.lane.b32.xlu1 %v2385_v58, %s2793_s9  ;;  %v1806_v34 = vcombine.high %v4121_v63, %v4121_v63 }
 0x377   :  { %v1133_v9 = vpop.permute.xlu0 %1132  ;;  %v1126_v32 = vpop.permute.xlu1 %1125 }
 0x378   :  { %2137 = vst [vmem:[%s4495_s14 + $0x40] sm:$0xff] %v2105_v36  ;;  %v2075_v17 = vmul.f32 %v1948_v55, %v1133_v9  ;;  %v2074_v40 = vmul.f32 %v1944_v29, %v1126_v32  ;;  %v1972_v55 = vrot.slane %v4117_v46, %v3134_v27  ;;  %v1968_v29 = vrot.slane %v1806_v34, %v3134_v27 }
 0x37a   :  { %v2107_v48 = vadd.f32 %v2075_v17, %v4032_v19  ;;  %1279 = vbcast.lane.b32.xlu1 %v1277_v13, 256  ;;  %v2106_v31 = vadd.f32 %v2074_v40, %v4082_v53  ;;  %v1852_v13 = vcombine.high %v4117_v46, %v4117_v46 }
 0x37b   :  { %v1147_v30 = vpop.permute.xlu0 %1146 }
 0x37c   :  { %2139 = vst [vmem:[%s4495_s14 + $0x50] sm:$0xff] %v2107_v48  ;;  %v2077_v18 = vmul.f32 %v1956_v10, %v1147_v30  ;;  %v1140_v7 = vpop.permute.xlu1 %1139  ;;  %2138 = vst [vmem:[%s4495_s14 + $0x48] sm:$0xff] %v2106_v31  ;;  %v1980_v46 = vrot.slane %v1852_v13, %v3134_v27  ;;  %v1976_v48 = vrot.slane %v4160_v38, %v3134_v27 }
 0x37d   :  { %v2076_v19 = vmul.f32 %v1952_v41, %v1140_v7  ;;  %v1854_v10 = vcombine.high %v4160_v38, %v4160_v38  ;;  %v1988_v30 = vrot.slane %v4167_v37, %v3134_v27  ;;  %v1853_v41 = vcombine.high %v4167_v37, %v4167_v37 }
 0x37e   :  { %v2109_v50 = vadd.f32 %v2077_v18, %v4095_v11 }
 0x37f   :  { %v2108_v53 = vadd.f32 %v2076_v19, %v4100_v45  ;;  %v1161_v3 = vpop.permute.xlu0 %1160  ;;  %v1984_v7 = vrot.slane %v1854_v10, %v3134_v27  ;;  %v1996_v37 = vrot.slane %v1853_v41, %v3134_v27 }
 0x380   :  { %2141 = vst [vmem:[%s4495_s14 + $0x60] sm:$0xff] %v2109_v50  ;;  %v2079_v58 = vmul.f32 %v1964_v24, %v1161_v3  ;;  %v1154_v36 = vpop.permute.xlu1 %1153  ;;  %v1992_v3 = vrot.slane %v4189_v49, %v3134_v27 }
 0x381   :  { %2140 = vst [vmem:[%s4495_s14 + $0x58] sm:$0xff] %v2108_v53  ;;  %v2078_v11 = vmul.f32 %v1960_v23, %v1154_v36  ;;  %v1855_v23 = vcombine.high %v4189_v49, %v4189_v49  ;;  %v2004_v36 = vrot.slane %v4202_v15, %v3134_v27 }
 0x382   :  { %v2111_v45 = vadd.f32 %v2079_v58, %v4108_v28 }
 0x383   :  { %v2110_v63 = vadd.f32 %v2078_v11, %v4135_v5  ;;  %v1175_v9 = vpop.permute.xlu0 %1174  ;;  %v1901_v11 = vcombine.high %v4202_v15, %v4202_v15 }
 0x384   :  { %2143 = vst [vmem:[%s4495_s14 + $0x70] sm:$0xff] %v2111_v45  ;;  %v2081_v60 = vmul.f32 %v1972_v55, %v1175_v9  ;;  %v1168_v17 = vpop.permute.xlu1 %1167  ;;  %v2000_v55 = vrot.slane %v1855_v23, %v3134_v27  ;;  %v2300_v23 = vmul.f32 %v3791_v6, %v3743_v42  ;;  %v1904_v6 = vcombine.high %v4262_v33, %v4262_v33 }
 0x385   :  { %2142 = vst [vmem:[%s4495_s14 + $0x68] sm:$0xff] %v2110_v63  ;;  %v2080_v28 = vmul.f32 %v1968_v29, %v1168_v17  ;;  %v2012_v15 = vrot.slane %v1901_v11, %v3134_v27  ;;  %v1903_v17 = vcombine.high %v4233_v61, %v4233_v61 }
 0x386   :  { %v2113_v32 = vadd.f32 %v2081_v60, %v4127_v54  ;;  %v2008_v60 = vrot.slane %v4233_v61, %v3134_v27 }
 0x387   :  { %v2112_v5 = vadd.f32 %v2080_v28, %v4150_v22  ;;  %v1189_v40 = vpop.permute.xlu0 %1188  ;;  %v2016_v61 = vrot.slane %v1903_v17, %v3134_v27 }
 0x388   :  { %2145 = vst [vmem:[%s4495_s14 + $0x80] sm:$0xff] %v2113_v32  ;;  %v2083_v4 = vmul.f32 %v1980_v46, %v1189_v40  ;;  %v1182_v31 = vpop.permute.xlu1 %1181  ;;  %v2020_v46 = vrot.slane %v4242_v57, %v3134_v27 }
 0x389   :  { %2144 = vst [vmem:[%s4495_s14 + $0x78] sm:$0xff] %v2112_v5  ;;  %v2082_v54 = vmul.f32 %v1976_v48, %v1182_v31 }
 0x38a   :  { %v2115_v22 = vadd.f32 %v2083_v4, %v4155_v8 }
 0x38b   :  { %v2114_v38 = vadd.f32 %v2082_v54, %v4157_v56  ;;  %v1203_v18 = vpop.permute.xlu0 %1202 }
 0x38c   :  { %2147 = vst [vmem:[%s4495_s14 + $0x90] sm:$0xff] %v2115_v22  ;;  %v2085_v19 = vmul.f32 %v1988_v30, %v1203_v18  ;;  %v1196_v50 = vpop.permute.xlu1 %1195 }
 0x38d   :  { %2146 = vst [vmem:[%s4495_s14 + $0x88] sm:$0xff] %v2114_v38  ;;  %v2084_v8 = vmul.f32 %v1984_v7, %v1196_v50  ;;  %v2474_v38 = vld [vmem:[%s4496_s12] ss:$0 sm:$0xff] }
 0x38e   :  { %v2117_v24 = vadd.f32 %v2085_v19, %v4177_v21 }
 0x38f   :  { %v2116_v56 = vadd.f32 %v2084_v8, %v4185_v1  ;;  %v1217_v53 = vpop.permute.xlu0 %1216 }
 0x390   :  { %2149 = vst [vmem:[%s4495_s14 + $0xa0] sm:$0xff] %v2117_v24  ;;  %v2087_v34 = vmul.f32 %v1996_v37, %v1217_v53  ;;  %v1210_v58 = vpop.permute.xlu1 %1209 }
 0x391   :  { %2148 = vst [vmem:[%s4495_s14 + $0x98] sm:$0xff] %v2116_v56  ;;  %v2086_v21 = vmul.f32 %v1992_v3, %v1210_v58 }
 0x392   :  { %v2119_v1 = vadd.f32 %v2087_v34, %v4196_v14 }
 0x393   :  { %v2118_v49 = vadd.f32 %v2086_v21, %v4204_v51 }
 0x394   :  { %v1231_v45 = vpop.permute.xlu0 %1230  ;;  %2151 = vst [vmem:[%s4495_s14 + $0xb0] sm:$0xff] %v2119_v1  ;;  %v1224_v63 = vpop.permute.xlu1 %1223  ;;  %v2301_v1 = vmul.f32 %v3798_v44, %v3738_v39 }
 0x395   :  { %v2089_v13 = vmul.f32 %v2004_v36, %v1231_v45  ;;  %2150 = vst [vmem:[%s4495_s14 + $0xa8] sm:$0xff] %v2118_v49  ;;  %v2088_v14 = vmul.f32 %v2000_v55, %v1224_v63 }
 0x397   :  { %v2121_v9 = vadd.f32 %v2089_v13, %v4208_v59  ;;  %v2120_v51 = vadd.f32 %v2088_v14, %v4229_v2  ;;  %v2032_v14 = vrot.slane %v1904_v6, %v3134_v27 }
 0x398   :  { %v1245_v29 = vpop.permute.xlu0 %1244  ;;  %v1238_v32 = vpop.permute.xlu1 %1237 }
 0x399   :  { %2153 = vst [vmem:[%s4495_s14 + $0xc0] sm:$0xff] %v2121_v9  ;;  %v2091_v28 = vmul.f32 %v2012_v15, %v1245_v29  ;;  %2152 = vst [vmem:[%s4495_s14 + $0xb8] sm:$0xff] %v2120_v51  ;;  %v2090_v59 = vmul.f32 %v2008_v60, %v1238_v32 }
 0x39b   :  { %v2123_v2 = vadd.f32 %v2091_v28, %v4238_v25  ;;  %v2122_v5 = vadd.f32 %v2090_v59, %v4248_v52  ;;  %v2024_v52 = vrot.slane %v4262_v33, %v3134_v27 }
 0x39c   :  { %v1259_v40 = vpop.permute.xlu0 %1258  ;;  %v1252_v10 = vpop.permute.xlu1 %1251 }
 0x39d   :  { %2155 = vst [vmem:[%s4495_s14 + $0xd0] sm:$0xff] %v2123_v2  ;;  %v2093_v48 = vmul.f32 %v2020_v46, %v1259_v40  ;;  %2154 = vst [vmem:[%s4495_s14 + $0xc8] sm:$0xff] %v2122_v5  ;;  %v2092_v4 = vmul.f32 %v2016_v61, %v1252_v10 }
 0x39f   :  { %v2125_v25 = vadd.f32 %v2093_v48, %v4254_v35  ;;  %v2124_v31 = vadd.f32 %v2092_v4, %v4257_v62  ;;  %v2298_v62 = vmul.f32 %v3761_v43, %v3729_v20 }
 0x3a0   :  { %v1266_v54 = vpop.permute.xlu1 %1265 }
 0x3a1   :  { %2157 = vst [vmem:[%s4495_s14 + $0xe0] sm:$0xff] %v2125_v25  ;;  %2156 = vst [vmem:[%s4495_s14 + $0xd8] sm:$0xff] %v2124_v31  ;;  %v2094_v22 = vmul.f32 %v2024_v52, %v1266_v54 }
 0x3a3   :  { %v2126_v30 = vadd.f32 %v2094_v22, %v4259_v0  ;;  %v2299_v0 = vmul.f32 %v3771_v47, %v3726_v12 }
 0x3a5   :  { %2158 = vst [vmem:[%s4495_s14 + $0xe8] sm:$0xff] %v2126_v30 }
 0x3d4   :  { %v2327_v35 = vpop.permute.xlu0 %2326 }
 0x3d5   :  { %v2338_v41 = vadd.f32 %v2327_v35, %v2298_v62 }
 0x3d8   :  { %v2391_v18 = vpop.permute.xlu0 %2390  ;;  %v2329_v7 = vpop.permute.xlu1 %2328 }
 0x3d9   :  { %v2403_v19 = vsel %vm2402_vm8, %v2338_v41, %v2391_v18  ;;  %v2339_v8 = vadd.f32 %v2329_v7, %v2299_v0 }
 0x3da   :  { %v2414_v50 = vmul.f32 %v2474_v38, %v2403_v19 }
 0x3dc   :  { %v2418_v24 = vadd.f32 %v2414_v50, %v3729_v20  ;;  %v2393_v37 = vpop.permute.xlu1 %2392  ;;  %v1902_v20 = vcombine.high %v4242_v57, %v4242_v57 }
 0x3dd   :  { %v2404_v43 = vsel %vm2402_vm8, %v2339_v8, %v2393_v37 }
 0x3de   :  { %2422 = vst [vmem:[%s4497_s13] sm:$0xff] %v2418_v24  ;;  %v2415_v56 = vmul.f32 %v2474_v38, %v2404_v43  ;;  %v2028_v11 = vrot.slane %v1902_v20, %v3134_v27 }
 0x3e0   :  { %v2419_v53 = vadd.f32 %v2415_v56, %v3726_v12  ;;  %v2331_v3 = vpop.permute.xlu0 %2330 }
 0x3e1   :  { %v2340_v47 = vadd.f32 %v2331_v3, %v2300_v23 }
 0x3e2   :  { %2423 = vst [vmem:[%s4497_s13 + $0x8] sm:$0xff] %v2419_v53 }
 0x3e4   :  { %v2395_v34 = vpop.permute.xlu0 %2394  ;;  %v2333_v58 = vpop.permute.xlu1 %2332 }
 0x3e5   :  { %v2405_v21 = vsel %vm2402_vm8, %v2340_v47, %v2395_v34  ;;  %v2341_v36 = vadd.f32 %v2333_v58, %v2301_v1 }
 0x3e6   :  { %v2416_v12 = vmul.f32 %v2474_v38, %v2405_v21 }
 0x3e8   :  { %v2420_v49 = vadd.f32 %v2416_v12, %v3743_v42  ;;  %v1273_v45 = vpop.permute.xlu0 %1272  ;;  %v2397_v55 = vpop.permute.xlu1 %2396 }
 0x3e9   :  { %v2095_v13 = vmul.f32 %v2028_v11, %v1273_v45  ;;  %v2406_v57 = vsel %vm2402_vm8, %v2341_v36, %v2397_v55 }
 0x3ea   :  { %2424 = vst [vmem:[%s4497_s13 + $0x10] sm:$0xff] %v2420_v49  ;;  %v2417_v63 = vmul.f32 %v2474_v38, %v2406_v57 }
 0x3eb   :  { %v2127_v44 = vadd.f32 %v2095_v13, %v4272_v16 }
 0x3ec   :  { %v2421_v9 = vadd.f32 %v2417_v63, %v3738_v39  ;;  %v1280_v15 = vpop.permute.xlu1 %1279 }
 0x3ed   :  { %2159 = vst [vmem:[%s4495_s14 + $0xf0] sm:$0xff] %v2127_v44  ;;  %v2096_v42 = vmul.f32 %v2032_v14, %v1280_v15 }
 0x3ee   :  { %2425 = vst [vmem:[%s4497_s13 + $0x18] sm:$0xff] %v2421_v9 }
 0x3ef   :  { %v2128_v33 = vadd.f32 %v2096_v42, %v4274_v26 }
 0x3f1   :  { %2160 = vst [vmem:[%s4495_s14 + $0xf8] sm:$0xff] %v2128_v33 }

// kernel: visnet_block_forward.19
= control target key start
LH: loop header
LB: loop body
LE: loop exit
PB: predicated region body
PF: predicated region fallthrough
CT: control target
= control target key end

     0   :  { %v630_v3 = vmov 0.0|0.0   ;;  %v631_v4 = vmov 0.0   ;;  %vm632_vm0 = vmmov 0   ;;  %vm366_vm1 = vcmask 1041409   ;;  %s997_s3 = inlined_call_operand.vmem [shape: f32[128,384], index: 3, kind: input, shape index: {}]   ;;  %s998_s0 = inlined_call_operand.vmem [shape: f32[8,128], index: 0, kind: input, shape index: {}]   ;;  %s999_s1 = inlined_call_operand.vmem [shape: f32[8,8,384], index: 1, kind: input, shape index: {}]   ;;  %s1000_s4 = inlined_call_operand.vmem [shape: f32[1,384], index: 4, kind: input, shape index: {}]   ;;  %s1001_s2 = inlined_call_operand.vmem [shape: f32[8,8,128], index: 2, kind: input, shape index: {}]   ;;  %s1002_s6 = inlined_call_operand.vmem [shape: f32[8,8,128], index: 6, kind: output, shape index: {1}]   ;;  %s1003_s5 = inlined_call_operand.vmem [shape: f32[8,128], index: 5, kind: output, shape index: {0}]  }
   0x1   :  { %v24_v0 = vld [vmem:[%s997_s3 + $0x8] sm:$0xff]  ;;  %v27_v1 = vld [vmem:[%s997_s3 + $0x20] sm:$0xff]  ;;  %602 = vmatprep.subr.bf16.mxu1 %v630_v3  ;;  %152 = vmatprep.mubr.f32.mxu0 %v631_v4  ;;  %v26_v6 = vld [vmem:[%s997_s3 + $0x18] sm:$0xff]  ;;  %vm369_vm2 = vcmask 1042434   ;;  %vm372_vm3 = vcmask 1043459   ;;  %vm375_vm4 = vcmask 1044484  }
   0x2   :  { %v23_v2 = vld [vmem:[%s997_s3] sm:$0xff]  ;;  %v570_v5 = vpack.c.bf16 %v27_v1, %v24_v0  ;;  %v25_v7 = vld [vmem:[%s997_s3 + $0x10] sm:$0xff]  ;;  %v28_v8 = vld [vmem:[%s997_s3 + $0x28] sm:$0xff]  ;;  %567 = vmatprep.mubr.msk.f32.mxu1 %vm632_vm0, %v631_v4  ;;  %vm378_vm5 = vcmask 1045509   ;;  %vm381_vm6 = vcmask 1046534   ;;  %vm384_vm7 = vcmask 1047559  }
   0x3   :  { %v572_v9 = vpack.c.bf16 %v26_v6, %v23_v2  ;;  %v603_v10 = vpack.c.bf16 %v28_v8, %v25_v7  ;;  %v30_v11 = vld [vmem:[%s997_s3 + $0x38] sm:$0xff]  ;;  %v33_v12 = vld [vmem:[%s997_s3 + $0x50] sm:$0xff]  ;;  %v32_v15 = vld [vmem:[%s997_s3 + $0x48] sm:$0xff] }
   0x4   :  { %v29_v13 = vld [vmem:[%s997_s3 + $0x30] sm:$0xff]  ;;  %571 = vmatprep.subr.bf16.mxu0 %v570_v5  ;;  %v574_v14 = vpack.c.bf16 %v33_v12, %v30_v11  ;;  %v31_v16 = vld [vmem:[%s997_s3 + $0x40] sm:$0xff]  ;;  %v34_v17 = vld [vmem:[%s997_s3 + $0x58] sm:$0xff] }
   0x5   :  { %573 = vmatpush1.bf16.msra.mxu0 %v572_v9  ;;  %604 = vmatpush3.bf16.msra.mxu1 %v603_v10  ;;  %v576_v18 = vpack.c.bf16 %v32_v15, %v29_v13  ;;  %v606_v19 = vpack.c.bf16 %v34_v17, %v31_v16  ;;  %v36_v20 = vld [vmem:[%s997_s3 + $0x68] sm:$0xff]  ;;  %v39_v21 = vld [vmem:[%s997_s3 + $0x80] sm:$0xff]  ;;  %v38_v24 = vld [vmem:[%s997_s3 + $0x78] sm:$0xff] }
   0x6   :  { %v35_v22 = vld [vmem:[%s997_s3 + $0x60] sm:$0xff]  ;;  %575 = vmatprep.subr.bf16.mxu0 %v574_v14  ;;  %605 = vmatprep.subr.bf16.mxu1 %v630_v3  ;;  %v578_v23 = vpack.c.bf16 %v39_v21, %v36_v20  ;;  %v37_v25 = vld [vmem:[%s997_s3 + $0x70] sm:$0xff]  ;;  %v40_v26 = vld [vmem:[%s997_s3 + $0x88] sm:$0xff] }
   0x7   :  { %v42_v27 = vld [vmem:[%s997_s3 + $0x98] sm:$0xff]  ;;  %v45_v28 = vld [vmem:[%s997_s3 + $0xb0] sm:$0xff]  ;;  %v580_v29 = vpack.c.bf16 %v38_v24, %v35_v22  ;;  %v609_v30 = vpack.c.bf16 %v40_v26, %v37_v25  ;;  %v44_v33 = vld [vmem:[%s997_s3 + $0xa8] sm:$0xff] }
   0x8   :  { %v41_v31 = vld [vmem:[%s997_s3 + $0x90] sm:$0xff]  ;;  %v582_v32 = vpack.c.bf16 %v45_v28, %v42_v27  ;;  %v43_v34 = vld [vmem:[%s997_s3 + $0xa0] sm:$0xff]  ;;  %v46_v35 = vld [vmem:[%s997_s3 + $0xb8] sm:$0xff] }
   0x9   :  { %577 = vmatpush1.bf16.msra.mxu0 %v576_v18  ;;  %607 = vmatpush3.bf16.msra.mxu1 %v606_v19  ;;  %v48_v36 = vld [vmem:[%s997_s3 + $0xc8] sm:$0xff]  ;;  %v51_v37 = vld [vmem:[%s997_s3 + $0xe0] sm:$0xff]  ;;  %v584_v38 = vpack.c.bf16 %v44_v33, %v41_v31  ;;  %v612_v39 = vpack.c.bf16 %v46_v35, %v43_v34  ;;  %v50_v42 = vld [vmem:[%s997_s3 + $0xd8] sm:$0xff] }
   0xa   :  { %579 = vmatprep.subr.bf16.mxu0 %v578_v23  ;;  %608 = vmatprep.subr.bf16.mxu1 %v630_v3  ;;  %v47_v40 = vld [vmem:[%s997_s3 + $0xc0] sm:$0xff]  ;;  %v586_v41 = vpack.c.bf16 %v51_v37, %v48_v36  ;;  %v49_v43 = vld [vmem:[%s997_s3 + $0xd0] sm:$0xff]  ;;  %v52_v44 = vld [vmem:[%s997_s3 + $0xe8] sm:$0xff] }
   0xb   :  { %v54_v45 = vld [vmem:[%s997_s3 + $0xf8] sm:$0xff]  ;;  %v57_v46 = vld [vmem:[%s997_s3 + $0x110] sm:$0xff]  ;;  %v588_v47 = vpack.c.bf16 %v50_v42, %v47_v40  ;;  %v615_v48 = vpack.c.bf16 %v52_v44, %v49_v43  ;;  %v56_v51 = vld [vmem:[%s997_s3 + $0x108] sm:$0xff] }
   0xc   :  { %v53_v49 = vld [vmem:[%s997_s3 + $0xf0] sm:$0xff]  ;;  %v590_v50 = vpack.c.bf16 %v57_v46, %v54_v45  ;;  %v55_v52 = vld [vmem:[%s997_s3 + $0x100] sm:$0xff]  ;;  %v58_v53 = vld [vmem:[%s997_s3 + $0x118] sm:$0xff]  ;;  %v73_v46 = vlaneseq }
   0xd   :  { %581 = vmatpush1.bf16.msra.mxu0 %v580_v29  ;;  %610 = vmatpush3.bf16.msra.mxu1 %v609_v30  ;;  %v60_v54 = vld [vmem:[%s997_s3 + $0x128] sm:$0xff]  ;;  %v63_v55 = vld [vmem:[%s997_s3 + $0x140] sm:$0xff]  ;;  %v592_v56 = vpack.c.bf16 %v56_v51, %v53_v49  ;;  %v618_v57 = vpack.c.bf16 %v58_v53, %v55_v52  ;;  %v62_v60 = vld [vmem:[%s997_s3 + $0x138] sm:$0xff] }
   0xe   :  { %583 = vmatprep.subr.bf16.mxu0 %v582_v32  ;;  %611 = vmatprep.subr.bf16.mxu1 %v630_v3  ;;  %v59_v58 = vld [vmem:[%s997_s3 + $0x120] sm:$0xff]  ;;  %v594_v59 = vpack.c.bf16 %v63_v55, %v60_v54  ;;  %v61_v61 = vld [vmem:[%s997_s3 + $0x130] sm:$0xff]  ;;  %v64_v62 = vld [vmem:[%s997_s3 + $0x148] sm:$0xff]  ;;  %v74_v55 = vshrl.u32 %v73_v46, 7 }
   0xf   :  { %v66_v63 = vld [vmem:[%s997_s3 + $0x158] sm:$0xff]  ;;  %v69_v0 = vld [vmem:[%s997_s3 + $0x170] sm:$0xff]  ;;  %v596_v1 = vpack.c.bf16 %v62_v60, %v59_v58  ;;  %v621_v2 = vpack.c.bf16 %v64_v62, %v61_v61  ;;  %v68_v6 = vld [vmem:[%s997_s3 + $0x168] sm:$0xff]  ;;  %v633_v61 = vmov 1966171168  }
  0x10   :  { %v65_v4 = vld [vmem:[%s997_s3 + $0x150] sm:$0xff]  ;;  %v598_v5 = vpack.c.bf16 %v69_v0, %v66_v63  ;;  %v67_v7 = vld [vmem:[%s997_s3 + $0x160] sm:$0xff]  ;;  %v70_v8 = vld [vmem:[%s997_s3 + $0x178] sm:$0xff]  ;;  %v391_v62 = vunpack.c.l.s4 %v633_v61 }
  0x11   :  { %585 = vmatpush1.bf16.msra.mxu0 %v584_v38  ;;  %613 = vmatpush3.bf16.msra.mxu1 %v612_v39  ;;  %v600_v9 = vpack.c.bf16 %v68_v6, %v65_v4  ;;  %v624_v10 = vpack.c.bf16 %v70_v8, %v67_v7  ;;  %v22_v11 = vld [vmem:[%s998_s0] sm:$0xff]  ;;  %v230_v13 = vld [vmem:[%s999_s1 + $0x8] sm:$0xff]  ;;  %v235_v15 = vld [vmem:[%s999_s1 + $0x30] sm:$0xff]  ;;  %v83_v6 = vsub.s32 2, %v74_v55  ;;  %v79_v8 = vsub.s32 1, %v74_v55 }
  0x12   :  { %587 = vmatprep.subr.bf16.mxu0 %v586_v41  ;;  %614 = vmatprep.subr.bf16.mxu1 %v630_v3  ;;  %v229_v12 = vld [vmem:[%s999_s1] sm:$0xff]  ;;  %v236_v16 = vld [vmem:[%s999_s1 + $0x38] sm:$0xff]  ;;  %v238_v17 = vld [vmem:[%s999_s1 + $0x48] sm:$0xff] }
  0x13   :  { %v233_v14 = vld [vmem:[%s999_s1 + $0x20] sm:$0xff]  ;;  %v239_v18 = vld [vmem:[%s999_s1 + $0x50] sm:$0xff]  ;;  %v242_v20 = vld [vmem:[%s999_s1 + $0x68] sm:$0xff]  ;;  %v253_v27 = vmul.f32 %v230_v13, %v229_v12  ;;  %v255_v29 = vmul.f32 %v236_v16, %v235_v15  ;;  %v392_v12 = vunpack.c.0.s8 %v391_v62 }
  0x14   :  { %v241_v19 = vld [vmem:[%s999_s1 + $0x60] sm:$0xff]  ;;  %v244_v21 = vld [vmem:[%s999_s1 + $0x78] sm:$0xff]  ;;  %v247_v23 = vld [vmem:[%s999_s1 + $0x90] sm:$0xff]  ;;  %v256_v30 = vmul.f32 %v239_v18, %v238_v17 }
  0x15   :  { %589 = vmatpush1.bf16.msra.mxu0 %v588_v47  ;;  %616 = vmatpush3.bf16.msra.mxu1 %v615_v48  ;;  %v245_v22 = vld [vmem:[%s999_s1 + $0x80] sm:$0xff]  ;;  %v248_v24 = vld [vmem:[%s999_s1 + $0x98] sm:$0xff]  ;;  %v250_v25 = vld [vmem:[%s999_s1 + $0xa8] sm:$0xff]  ;;  %v257_v31 = vmul.f32 %v242_v20, %v241_v19  ;;  %v261_v35 = vrot.slane %v253_v27, 4  ;;  %v273_v37 = vrot.slane %v255_v29, 4 }
  0x16   :  { %591 = vmatprep.subr.bf16.mxu0 %v590_v50  ;;  %617 = vmatprep.subr.bf16.mxu1 %v630_v3  ;;  %v251_v26 = vld [vmem:[%s999_s1 + $0xb0] sm:$0xff]  ;;  %v258_v32 = vmul.f32 %v245_v22, %v244_v21  ;;  %v259_v33 = vmul.f32 %v248_v24, %v247_v23  ;;  %v279_v38 = vrot.slane %v256_v30, 4  ;;  %v71_v7 = vld [vmem:[%s1000_s4] sm:$0x7]  ;;  %v395_v23 = vsub.s32 %v392_v12, %v74_v55 }
  0x17   :  { %v260_v34 = vmul.f32 %v251_v26, %v250_v25  ;;  %v285_v39 = vrot.slane %v257_v31, 4  ;;  %v262_v43 = vadd.f32 %v261_v35, %v253_v27  ;;  %v274_v45 = vadd.f32 %v273_v37, %v255_v29  ;;  %v237_v61 = vld [vmem:[%s999_s1 + $0x40] sm:$0xff] }
  0x18   :  { %v291_v40 = vrot.slane %v258_v32, 4  ;;  %v297_v41 = vrot.slane %v259_v33, 4  ;;  %v280_v47 = vadd.f32 %v279_v38, %v256_v30  ;;  %v84_v18 = vrot.slane %v71_v7, %v83_v6  ;;  %v249_v12 = vld [vmem:[%s999_s1 + $0xa0] sm:$0xff] }
  0x19   :  { %593 = vmatpush1.bf16.msra.mxu0 %v592_v56  ;;  %619 = vmatpush3.bf16.msra.mxu1 %v618_v57  ;;  %v303_v42 = vrot.slane %v260_v34, 4  ;;  %v286_v48 = vadd.f32 %v285_v39, %v257_v31  ;;  %v263_v52 = vrot.slane %v262_v43, 2  ;;  %v275_v54 = vrot.slane %v274_v45, 2 }
  0x1a   :  { %595 = vmatprep.subr.bf16.mxu0 %v594_v59  ;;  %620 = vmatprep.subr.bf16.mxu1 %v630_v3  ;;  %v292_v49 = vadd.f32 %v291_v40, %v258_v32  ;;  %v298_v50 = vadd.f32 %v297_v41, %v259_v33  ;;  %v281_v56 = vrot.slane %v280_v47, 2  ;;  %v80_v19 = vrot.slane %v71_v7, %v79_v8 }
  0x1b   :  { %v304_v51 = vadd.f32 %v303_v42, %v260_v34  ;;  %v287_v57 = vrot.slane %v286_v48, 2  ;;  %v264_v63 = vadd.f32 %v263_v52, %v262_v43 }
  0x1c   :  { %v293_v58 = vrot.slane %v292_v49, 2  ;;  %v299_v59 = vrot.slane %v298_v50, 2  ;;  %v282_v4 = vadd.f32 %v281_v56, %v280_v47 }
  0x1d   :  { %597 = vmatpush1.bf16.msra.mxu0 %v596_v1  ;;  %622 = vmatpush3.bf16.msra.mxu1 %v621_v2  ;;  %v305_v60 = vrot.slane %v304_v51, 2  ;;  %v276_v1 = vadd.f32 %v275_v54, %v274_v45  ;;  %v872_v2 = vsub.s32 0, %v74_v55  ;;  %v265_v13 = vrot.slane %v264_v63, 1  ;;  %v231_v55 = vld [vmem:[%s999_s1 + $0x10] sm:$0xff] }
  0x1e   :  { %599 = vmatprep.subr.bf16.mxu0 %v598_v5  ;;  %623 = vmatprep.subr.bf16.mxu1 %v630_v3  ;;  %v232_v3 = vld [vmem:[%s999_s1 + $0x18] sm:$0xff]  ;;  %v288_v5 = vadd.f32 %v287_v57, %v286_v48  ;;  %v283_v16 = vrot.slane %v282_v4, 1 }
  0x1f   :  { %v254_v28 = vmul.f32 %v233_v14, %v232_v3  ;;  %v277_v14 = vrot.slane %v276_v1, 1  ;;  %v76_v15 = vrot.slane %v71_v7, %v872_v2  ;;  %v266_v25 = vadd.f32 %v265_v13, %v264_v63  ;;  %v252_v13 = vld [vmem:[%s999_s1 + $0xb8] sm:$0xff] }
  0x20   :  { %v289_v17 = vrot.slane %v288_v5, 1  ;;  %v284_v31 = vadd.f32 %v283_v16, %v282_v4  ;;  %v240_v4 = vld [vmem:[%s999_s1 + $0x58] sm:$0xff] }
  0x21   :  { %601 = vmatpush1.bf16.msra.mxu0 %v600_v9  ;;  %625 = vmatpush3.bf16.msra.mxu1 %v624_v10  ;;  %v267_v36 = vrot.slane %v254_v28, 4  ;;  %v294_v9 = vadd.f32 %v293_v58, %v292_v49  ;;  %v300_v10 = vadd.f32 %v299_v59, %v298_v50  ;;  %v278_v27 = vadd.f32 %v277_v14, %v276_v1 }
  0x22   :  { %v290_v32 = vadd.f32 %v289_v17, %v288_v5  ;;  %v243_v5 = vld [vmem:[%s999_s1 + $0x70] sm:$0xff] }
  0x23   :  { %v268_v44 = vadd.f32 %v267_v36, %v254_v28  ;;  %v295_v20 = vrot.slane %v294_v9, 1  ;;  %v301_v21 = vrot.slane %v300_v10, 1 }
  0x24   :  { %153 = vmatmul.mubr.f32.vlgmr.msra.gmra.mrb[0].mxu0 %v22_v11  ;;  %568 = vmatmul.mubr.f32.vlgmr.msra.gmra.mrb[0].mxu1 %v22_v11  ;;  %v306_v11 = vadd.f32 %v305_v60, %v304_v51  ;;  %v234_v60 = vld [vmem:[%s999_s1 + $0x28] sm:$0xff] }
  0x25   :  { %v269_v53 = vrot.slane %v268_v44, 2  ;;  %v296_v36 = vadd.f32 %v295_v20, %v294_v9  ;;  %v882_v37 = vadd.f32 %v301_v21, %v300_v10  ;;  %v486_v10 = vld [vmem:[%s1001_s2] sm:$0xff]  ;;  %v487_v21 = vld [vmem:[%s1001_s2 + $0x8] sm:$0xff] }
  0x26   :  { %v307_v22 = vrot.slane %v306_v11, 1 }
  0x27   :  { %v270_v0 = vadd.f32 %v269_v53, %v268_v44 }
  0x28   :  { %v884_v38 = vadd.f32 %v307_v22, %v306_v11  ;;  %v246_v11 = vld [vmem:[%s999_s1 + $0x88] sm:$0xff]  ;;  %v488_v22 = vld [vmem:[%s1001_s2 + $0x10] sm:$0xff] }
  0x29   :  { %v271_v3 = vrot.slane %v270_v0, 1 }
  0x2b   :  { %v272_v26 = vadd.f32 %v271_v3, %v270_v0 }
  0xf7   :  { %v154_v24 = vpop.f32.mrb[0].mxu0  ;;  %v225_v28 = vpop.f32.mrb[0].mxu1 }
  0xf8   :  { %v155_v29 = vadd.f32 %v154_v24, %v76_v15  ;;  %v156_v30 = vpop.f32.mrb[1].mxu0  ;;  %v878_v33 = vadd.f32 %v225_v28, %v84_v18  ;;  %v569_v34 = vpop.f32.mrb[1].mxu1  ;;  %v491_v28 = vld [vmem:[%s1001_s2 + $0x28] sm:$0xff] }
  0xf9   :  { %v880_v35 = vadd.f32 %v156_v30, %v80_v19 }
  0xfa   :  { %v389_v39 = vcombine.high %v155_v29, %v155_v29  ;;  %v396_v40 = vrot.slane %v155_v29, %v395_v23  ;;  %v334_v41 = vrot.slane %v878_v33, 1  ;;  %v335_v42 = vrot.slane %v878_v33, 2  ;;  %v492_v29 = vld [vmem:[%s1001_s2 + $0x30] sm:$0xff] }
  0xfb   :  { %v310_v43 = vrot.slane %v880_v35, 1  ;;  %v311_v44 = vrot.slane %v880_v35, 2  ;;  %v312_v45 = vrot.slane %v880_v35, 3  ;;  %v313_v46 = vrot.slane %v880_v35, 4 }
  0xfc   :  { %v403_v47 = vrot.slane %v389_v39, %v395_v23  ;;  %v404_v48 = vcombine.high %v396_v40, %v396_v40  ;;  %v412_v49 = vrot.slane %v396_v40, %v395_v23  ;;  %v314_v50 = vrot.slane %v880_v35, 5 }
  0xfd   :  { %v315_v51 = vrot.slane %v880_v35, 6  ;;  %v316_v52 = vrot.slane %v880_v35, 7  ;;  %v896_v53 = vmul.f32 %v266_v25, %v880_v35  ;;  %v898_v54 = vmul.f32 %v310_v43, %v272_v26 }
  0xfe   :  { %v405_v56 = vcombine.high %v403_v47, %v403_v47  ;;  %v419_v57 = vrot.slane %v403_v47, %v395_v23  ;;  %v426_v58 = vrot.slane %v404_v48, %v395_v23  ;;  %v434_v59 = vcombine.high %v412_v49, %v412_v49 }
  0xff   :  { %v441_v62 = vrot.slane %v412_v49, %v872_v2  ;;  %v327_v63 = vmul.f32 %v311_v44, %v278_v27  ;;  %v328_v0 = vmul.f32 %v312_v45, %v284_v31  ;;  %v329_v1 = vmul.f32 %v313_v46, %v290_v32  ;;  %v489_v27 = vld [vmem:[%s1001_s2 + $0x18] sm:$0xff] }
 0x100   :  { %v433_v6 = vrot.slane %v405_v56, %v395_v23  ;;  %v435_v7 = vcombine.high %v419_v57, %v419_v57  ;;  %v436_v8 = vcombine.high %v426_v58, %v426_v58  ;;  %v445_v9 = vrot.slane %v426_v58, %v872_v2  ;;  %v490_v23 = vld [vmem:[%s1001_s2 + $0x20] sm:$0xff] }
 0x101   :  { %v449_v3 = vrot.slane %v434_v59, %v872_v2  ;;  %v457_v14 = vrot.slane %v419_v57, %v872_v2  ;;  %v478_v15 = vmul.f32 %v441_v62, %v231_v55  ;;  %v330_v16 = vmul.f32 %v314_v50, %v296_v36  ;;  %v493_v36 = vld [vmem:[%s1001_s2 + $0x38] sm:$0xff] }
 0x102   :  { %v437_v17 = vcombine.high %v433_v6, %v433_v6  ;;  %v453_v18 = vrot.slane %v436_v8, %v872_v2  ;;  %v461_v19 = vrot.slane %v433_v6, %v872_v2  ;;  %v465_v20 = vrot.slane %v435_v7, %v872_v2 }
 0x103   :  { %v479_v24 = vmul.f32 %v445_v9, %v234_v60  ;;  %v480_v25 = vmul.f32 %v449_v3, %v237_v61  ;;  %v482_v26 = vmul.f32 %v457_v14, %v243_v5  ;;  %v494_v30 = vadd.f32 %v486_v10, %v478_v15 }
 0x104   :  { %v469_v31 = vrot.slane %v437_v17, %v872_v2  ;;  %v481_v32 = vmul.f32 %v453_v18, %v240_v4  ;;  %v483_v34 = vmul.f32 %v461_v19, %v246_v11  ;;  %v484_v35 = vmul.f32 %v465_v20, %v249_v12 }
 0x105   :  { %v495_v39 = vadd.f32 %v487_v21, %v479_v24  ;;  %v496_v40 = vadd.f32 %v488_v22, %v480_v25  ;;  %v498_v43 = vadd.f32 %v490_v23, %v482_v26  ;;  %502 = vst [vmem:[%s1002_s6] sm:$0xff] %v494_v30  ;;  %v331_v44 = vmul.f32 %v315_v51, %v882_v37 }
 0x106   :  { %v485_v45 = vmul.f32 %v469_v31, %v252_v13  ;;  %v497_v46 = vadd.f32 %v489_v27, %v481_v32  ;;  %v499_v47 = vadd.f32 %v491_v28, %v483_v34  ;;  %v500_v2 = vadd.f32 %v492_v29, %v484_v35 }
 0x107   :  { %503 = vst [vmem:[%s1002_s6 + $0x8] sm:$0xff] %v495_v39  ;;  %504 = vst [vmem:[%s1002_s6 + $0x10] sm:$0xff] %v496_v40  ;;  %v332_v48 = vmul.f32 %v316_v52, %v884_v38  ;;  %v336_v37 = vrot.slane %v878_v33, 3  ;;  %v337_v49 = vrot.slane %v878_v33, 4  ;;  %v338_v50 = vrot.slane %v878_v33, 5 }
 0x108   :  { %506 = vst [vmem:[%s1002_s6 + $0x20] sm:$0xff] %v498_v43  ;;  %v501_v51 = vadd.f32 %v493_v36, %v485_v45  ;;  %505 = vst [vmem:[%s1002_s6 + $0x18] sm:$0xff] %v497_v46  ;;  %v339_v38 = vrot.slane %v878_v33, 6  ;;  %v340_v52 = vrot.slane %v878_v33, 7  ;;  %v349_v55 = vadd.f32 %v896_v53, %v878_v33 }
 0x109   :  { %507 = vst [vmem:[%s1002_s6 + $0x28] sm:$0xff] %v499_v47  ;;  %508 = vst [vmem:[%s1002_s6 + $0x30] sm:$0xff] %v500_v2  ;;  %v350_v56 = vadd.f32 %v334_v41, %v898_v54  ;;  %v351_v57 = vadd.f32 %v335_v42, %v327_v63  ;;  %v352_v58 = vadd.f32 %v336_v37, %v328_v0 }
 0x10a   :  { %v353_v59 = vadd.f32 %v337_v49, %v329_v1  ;;  %509 = vst [vmem:[%s1002_s6 + $0x38] sm:$0xff] %v501_v51  ;;  %v354_v60 = vadd.f32 %v338_v50, %v330_v16  ;;  %v355_v61 = vadd.f32 %v339_v38, %v331_v44  ;;  %v356_v62 = vadd.f32 %v340_v52, %v332_v48 }
 0x10b   :  { %v365_v4 = vrot.slane %v350_v56, 7  ;;  %v368_v5 = vrot.slane %v351_v57, 6  ;;  %v371_v6 = vrot.slane %v352_v58, 5 }
 0x10c   :  { %v374_v33 = vrot.slane %v353_v59, 4  ;;  %v377_v54 = vrot.slane %v354_v60, 3  ;;  %v380_v0 = vrot.slane %v355_v61, 2  ;;  %v383_v7 = vrot.slane %v356_v62, 1 }
 0x10d   :  { %v367_v53 = vsel %vm366_vm1, %v365_v4, %v349_v55 }
 0x10e   :  { %v370_v41 = vsel %vm369_vm2, %v368_v5, %v367_v53 }
 0x10f   :  { %v373_v42 = vsel %vm372_vm3, %v371_v6, %v370_v41 }
 0x110   :  { %v376_v63 = vsel %vm375_vm4, %v374_v33, %v373_v42 }
 0x111   :  { %v379_v1 = vsel %vm378_vm5, %v377_v54, %v376_v63 }
 0x112   :  { %v382_v8 = vsel %vm381_vm6, %v380_v0, %v379_v1 }
 0x113   :  { %v385_v9 = vsel %vm384_vm7, %v383_v7, %v382_v8 }
 0x114   :  { %387 = vst [vmem:[%s1003_s5] sm:$0xff] %v385_v9 }

// kernel: visnet_block_forward.22
= control target key start
LH: loop header
LB: loop body
LE: loop exit
PB: predicated region body
PF: predicated region fallthrough
CT: control target
= control target key end

     0   :  { %v466_v3 = vmov 0.0   ;;  %s758_s1 = inlined_call_operand.vmem [shape: f32[128,384], index: 1, kind: input, shape index: {}]   ;;  %s759_s0 = inlined_call_operand.vmem [shape: f32[64,128], index: 0, kind: input, shape index: {}]   ;;  %s760_s2 = inlined_call_operand.vmem [shape: f32[1,384], index: 2, kind: input, shape index: {}]   ;;  %s761_s3 = inlined_call_operand.vmem [shape: f32[64,384], index: 3, kind: output, shape index: {}]  }
   0x1   :  { %v23_v0 = vld [vmem:[%s758_s1 + $0x8] sm:$0xff]  ;;  %v26_v1 = vld [vmem:[%s758_s1 + $0x20] sm:$0xff]  ;;  %151 = vmatprep.mubr.f32.mxu0 %v466_v3  ;;  %v25_v5 = vld [vmem:[%s758_s1 + $0x18] sm:$0xff] }
   0x2   :  { %v22_v2 = vld [vmem:[%s758_s1] sm:$0xff]  ;;  %v401_v4 = vpack.c.bf16 %v26_v1, %v23_v0  ;;  %v29_v6 = vld [vmem:[%s758_s1 + $0x38] sm:$0xff]  ;;  %v32_v7 = vld [vmem:[%s758_s1 + $0x50] sm:$0xff] }
   0x3   :  { %v403_v8 = vpack.c.bf16 %v25_v5, %v22_v2  ;;  %v405_v9 = vpack.c.bf16 %v32_v7, %v29_v6  ;;  %v28_v10 = vld [vmem:[%s758_s1 + $0x30] sm:$0xff]  ;;  %v31_v11 = vld [vmem:[%s758_s1 + $0x48] sm:$0xff]  ;;  %v38_v13 = vld [vmem:[%s758_s1 + $0x80] sm:$0xff] }
   0x4   :  { %v35_v12 = vld [vmem:[%s758_s1 + $0x68] sm:$0xff]  ;;  %402 = vmatprep.subr.bf16.mxu0 %v401_v4  ;;  %v407_v14 = vpack.c.bf16 %v31_v11, %v28_v10  ;;  %v34_v15 = vld [vmem:[%s758_s1 + $0x60] sm:$0xff]  ;;  %v37_v17 = vld [vmem:[%s758_s1 + $0x78] sm:$0xff] }
   0x5   :  { %404 = vmatpush1.bf16.msra.mxu0 %v403_v8  ;;  %v409_v16 = vpack.c.bf16 %v38_v13, %v35_v12  ;;  %v24_v18 = vld [vmem:[%s758_s1 + $0x10] sm:$0xff]  ;;  %v27_v19 = vld [vmem:[%s758_s1 + $0x28] sm:$0xff]  ;;  %v41_v20 = vld [vmem:[%s758_s1 + $0x98] sm:$0xff]  ;;  %v411_v25 = vpack.c.bf16 %v37_v17, %v34_v15 }
   0x6   :  { %406 = vmatprep.subr.bf16.mxu0 %v405_v9  ;;  %v44_v21 = vld [vmem:[%s758_s1 + $0xb0] sm:$0xff]  ;;  %v433_v22 = vpack.c.bf16 %v27_v19, %v24_v18  ;;  %v30_v23 = vld [vmem:[%s758_s1 + $0x40] sm:$0xff]  ;;  %v33_v24 = vld [vmem:[%s758_s1 + $0x58] sm:$0xff]  ;;  %v72_v18 = vlaneseq }
   0x7   :  { %v40_v26 = vld [vmem:[%s758_s1 + $0x90] sm:$0xff]  ;;  %v437_v27 = vpack.c.bf16 %v33_v24, %v30_v23  ;;  %v413_v28 = vpack.c.bf16 %v44_v21, %v41_v20  ;;  %v43_v29 = vld [vmem:[%s758_s1 + $0xa8] sm:$0xff]  ;;  %v50_v33 = vld [vmem:[%s758_s1 + $0xe0] sm:$0xff] }
   0x8   :  { %434 = vmatprep.subr.bf16.mxu1 %v433_v22  ;;  %v36_v30 = vld [vmem:[%s758_s1 + $0x70] sm:$0xff]  ;;  %v39_v31 = vld [vmem:[%s758_s1 + $0x88] sm:$0xff]  ;;  %v42_v35 = vld [vmem:[%s758_s1 + $0xa0] sm:$0xff]  ;;  %v415_v37 = vpack.c.bf16 %v43_v29, %v40_v26  ;;  %v73_v19 = vshrl.u32 %v72_v18, 7 }
   0x9   :  { %408 = vmatpush1.bf16.msra.mxu0 %v407_v14  ;;  %436 = vmatpush3.bf16.msra.mxu1 %v433_v22  ;;  %v47_v32 = vld [vmem:[%s758_s1 + $0xc8] sm:$0xff]  ;;  %v441_v34 = vpack.c.bf16 %v39_v31, %v36_v30  ;;  %v45_v36 = vld [vmem:[%s758_s1 + $0xb8] sm:$0xff]  ;;  %v46_v39 = vld [vmem:[%s758_s1 + $0xc0] sm:$0xff] }
   0xa   :  { %410 = vmatprep.subr.bf16.mxu0 %v409_v16  ;;  %438 = vmatprep.subr.bf16.mxu1 %v437_v27  ;;  %v417_v38 = vpack.c.bf16 %v50_v33, %v47_v32  ;;  %v49_v40 = vld [vmem:[%s758_s1 + $0xd8] sm:$0xff]  ;;  %v56_v42 = vld [vmem:[%s758_s1 + $0x110] sm:$0xff]  ;;  %v445_v43 = vpack.c.bf16 %v45_v36, %v42_v35  ;;  %v14_v44 = vld [vmem:[%s759_s0] sm:$0xff]  ;;  %v74_v20 = vsub.s32 0, %v73_v19  ;;  %v78_v22 = vsub.s32 1, %v73_v19 }
   0xb   :  { %v53_v41 = vld [vmem:[%s758_s1 + $0xf8] sm:$0xff]  ;;  %v48_v45 = vld [vmem:[%s758_s1 + $0xd0] sm:$0xff]  ;;  %v51_v46 = vld [vmem:[%s758_s1 + $0xe8] sm:$0xff]  ;;  %389 = vmatprep.mubr.f32.mxu1 %v14_v44  ;;  %v419_v47 = vpack.c.bf16 %v49_v40, %v46_v39 }
   0xc   :  { %v421_v48 = vpack.c.bf16 %v56_v42, %v53_v41  ;;  %v52_v49 = vld [vmem:[%s758_s1 + $0xf0] sm:$0xff]  ;;  %v55_v50 = vld [vmem:[%s758_s1 + $0x108] sm:$0xff]  ;;  %v62_v52 = vld [vmem:[%s758_s1 + $0x140] sm:$0xff]  ;;  %v449_v53 = vpack.c.bf16 %v51_v46, %v48_v45 }
   0xd   :  { %412 = vmatpush1.bf16.msra.mxu0 %v411_v25  ;;  %440 = vmatpush3.bf16.msra.mxu1 %v437_v27  ;;  %v59_v51 = vld [vmem:[%s758_s1 + $0x128] sm:$0xff]  ;;  %v54_v54 = vld [vmem:[%s758_s1 + $0x100] sm:$0xff]  ;;  %v57_v55 = vld [vmem:[%s758_s1 + $0x118] sm:$0xff]  ;;  %v423_v56 = vpack.c.bf16 %v55_v50, %v52_v49  ;;  %v82_v25 = vsub.s32 2, %v73_v19 }
   0xe   :  { %414 = vmatprep.subr.bf16.mxu0 %v413_v28  ;;  %442 = vmatprep.subr.bf16.mxu1 %v441_v34  ;;  %v425_v57 = vpack.c.bf16 %v62_v52, %v59_v51  ;;  %v58_v58 = vld [vmem:[%s758_s1 + $0x120] sm:$0xff]  ;;  %v61_v59 = vld [vmem:[%s758_s1 + $0x138] sm:$0xff]  ;;  %v68_v61 = vld [vmem:[%s758_s1 + $0x170] sm:$0xff]  ;;  %v453_v62 = vpack.c.bf16 %v57_v55, %v54_v54 }
   0xf   :  { %v65_v60 = vld [vmem:[%s758_s1 + $0x158] sm:$0xff]  ;;  %v60_v63 = vld [vmem:[%s758_s1 + $0x130] sm:$0xff]  ;;  %v63_v0 = vld [vmem:[%s758_s1 + $0x148] sm:$0xff]  ;;  %v427_v1 = vpack.c.bf16 %v61_v59, %v58_v58 }
  0x10   :  { %v429_v2 = vpack.c.bf16 %v68_v61, %v65_v60  ;;  %v64_v4 = vld [vmem:[%s758_s1 + $0x150] sm:$0xff]  ;;  %v67_v5 = vld [vmem:[%s758_s1 + $0x168] sm:$0xff]  ;;  %v457_v6 = vpack.c.bf16 %v63_v0, %v60_v63  ;;  %v66_v7 = vld [vmem:[%s758_s1 + $0x160] sm:$0xff] }
  0x11   :  { %416 = vmatpush1.bf16.msra.mxu0 %v415_v37  ;;  %444 = vmatpush3.bf16.msra.mxu1 %v441_v34  ;;  %v69_v8 = vld [vmem:[%s758_s1 + $0x178] sm:$0xff]  ;;  %v431_v9 = vpack.c.bf16 %v67_v5, %v64_v4  ;;  %v15_v11 = vld [vmem:[%s759_s0 + $0x8] sm:$0xff]  ;;  %v16_v12 = vld [vmem:[%s759_s0 + $0x10] sm:$0xff] }
  0x12   :  { %418 = vmatprep.subr.bf16.mxu0 %v417_v38  ;;  %446 = vmatprep.subr.bf16.mxu1 %v445_v43  ;;  %v461_v10 = vpack.c.bf16 %v69_v8, %v66_v7  ;;  %v17_v13 = vld [vmem:[%s759_s0 + $0x18] sm:$0xff]  ;;  %v18_v14 = vld [vmem:[%s759_s0 + $0x20] sm:$0xff]  ;;  %v19_v15 = vld [vmem:[%s759_s0 + $0x28] sm:$0xff] }
  0x13   :  { %v20_v16 = vld [vmem:[%s759_s0 + $0x30] sm:$0xff]  ;;  %v21_v17 = vld [vmem:[%s759_s0 + $0x38] sm:$0xff]  ;;  %v70_v21 = vld [vmem:[%s760_s2] sm:$0x7] }
  0x14   :  { %v666_v23 = vrot.slane %v70_v21, %v74_v20  ;;  %v668_v24 = vrot.slane %v70_v21, %v78_v22  ;;  %v83_v29 = vrot.slane %v70_v21, %v82_v25 }
  0x15   :  { %420 = vmatpush1.bf16.msra.mxu0 %v419_v47  ;;  %448 = vmatpush3.bf16.msra.mxu1 %v445_v43 }
  0x16   :  { %422 = vmatprep.subr.bf16.mxu0 %v421_v48  ;;  %450 = vmatprep.subr.bf16.mxu1 %v449_v53 }
  0x19   :  { %424 = vmatpush1.bf16.msra.mxu0 %v423_v56  ;;  %452 = vmatpush3.bf16.msra.mxu1 %v449_v53 }
  0x1a   :  { %426 = vmatprep.subr.bf16.mxu0 %v425_v57  ;;  %454 = vmatprep.subr.bf16.mxu1 %v453_v62 }
  0x1d   :  { %428 = vmatpush1.bf16.msra.mxu0 %v427_v1  ;;  %456 = vmatpush3.bf16.msra.mxu1 %v453_v62 }
  0x1e   :  { %430 = vmatprep.subr.bf16.mxu0 %v429_v2  ;;  %458 = vmatprep.subr.bf16.mxu1 %v457_v6 }
  0x21   :  { %432 = vmatpush1.bf16.msra.mxu0 %v431_v9  ;;  %460 = vmatpush3.bf16.msra.mxu1 %v457_v6 }
  0x22   :  { %462 = vmatprep.subr.bf16.mxu1 %v461_v10 }
  0x24   :  { %152 = vmatmul.mubr.f32.vlgmr.msra.gmra.mrb[0].mxu0 %v14_v44 }
  0x25   :  { %157 = vmatprep.mubr.f32.mxu0 %v466_v3  ;;  %464 = vmatpush3.bf16.msra.mxu1 %v461_v10 }
  0x28   :  { %158 = vmatmul.mubr.f32.gmra.mrb[2].mxu0 %v15_v11  ;;  %390 = vmatmul.mubr.f32.vlgmr.msra.gmra.mrb[0].mxu1 %v15_v11 }
  0x29   :  { %163 = vmatprep.mubr.f32.mxu0 %v466_v3  ;;  %392 = vmatprep.mubr.f32.mxu1 %v16_v12 }
  0x2c   :  { %164 = vmatmul.mubr.f32.gmra.mrb[4].mxu0 %v16_v12  ;;  %393 = vmatmul.mubr.f32.gmra.mrb[2].mxu1 %v17_v13 }
  0x2d   :  { %169 = vmatprep.mubr.f32.mxu0 %v466_v3  ;;  %395 = vmatprep.mubr.f32.mxu1 %v18_v14 }
  0x30   :  { %170 = vmatmul.mubr.f32.gmra.mrb[6].mxu0 %v17_v13  ;;  %396 = vmatmul.mubr.f32.gmra.mrb[4].mxu1 %v19_v15 }
  0x31   :  { %175 = vmatprep.mubr.f32.mxu0 %v466_v3  ;;  %398 = vmatprep.mubr.f32.mxu1 %v20_v16 }
  0x34   :  { %176 = vmatmul.mubr.f32.gmra.mrb[8].mxu0 %v18_v14  ;;  %399 = vmatmul.mubr.f32.gmra.mrb[6].mxu1 %v21_v17 }
  0x35   :  { %181 = vmatprep.mubr.f32.mxu0 %v466_v3 }
  0x38   :  { %182 = vmatmul.mubr.f32.gmra.mrb[10].mxu0 %v19_v15 }
  0x39   :  { %187 = vmatprep.mubr.f32.mxu0 %v466_v3 }
  0x3c   :  { %188 = vmatmul.mubr.f32.gmra.mrb[12].mxu0 %v20_v16 }
  0x3d   :  { %193 = vmatprep.mubr.f32.mxu0 %v466_v3 }
  0x40   :  { %194 = vmatmul.mubr.f32.gmra.mrb[14].mxu0 %v21_v17 }
  0xf7   :  { %v153_v26 = vpop.f32.mrb[0].mxu0 }
  0xf8   :  { %v154_v27 = vadd.f32 %v153_v26, %v666_v23  ;;  %v155_v28 = vpop.f32.mrb[1].mxu0 }
  0xf9   :  { %v156_v3 = vadd.f32 %v155_v28, %v668_v24 }
  0xfa   :  { %305 = vst [vmem:[%s761_s3] sm:$0xff] %v154_v27 }
  0xfb   :  { %306 = vst [vmem:[%s761_s3 + $0x8] sm:$0xff] %v156_v3  ;;  %v159_v30 = vpop.f32.mrb[2].mxu0  ;;  %v391_v33 = vpop.f32.mrb[0].mxu1 }
  0xfc   :  { %v160_v31 = vadd.f32 %v159_v30, %v666_v23  ;;  %v161_v32 = vpop.f32.mrb[3].mxu0  ;;  %v272_v35 = vadd.f32 %v391_v33, %v83_v29  ;;  %v266_v36 = vpop.f32.mrb[1].mxu1 }
  0xfd   :  { %v162_v34 = vadd.f32 %v161_v32, %v668_v24  ;;  %v267_v37 = vadd.f32 %v266_v36, %v83_v29 }
  0xfe   :  { %308 = vst [vmem:[%s761_s3 + $0x18] sm:$0xff] %v160_v31  ;;  %310 = vst [vmem:[%s761_s3 + $0x28] sm:$0xff] %v272_v35 }
  0xff   :  { %309 = vst [vmem:[%s761_s3 + $0x20] sm:$0xff] %v162_v34  ;;  %v165_v38 = vpop.f32.mrb[4].mxu0  ;;  %307 = vst [vmem:[%s761_s3 + $0x10] sm:$0xff] %v267_v37  ;;  %v394_v41 = vpop.f32.mrb[2].mxu1 }
 0x100   :  { %v166_v39 = vadd.f32 %v165_v38, %v666_v23  ;;  %v167_v40 = vpop.f32.mrb[5].mxu0  ;;  %v282_v43 = vadd.f32 %v394_v41, %v83_v29  ;;  %v276_v44 = vpop.f32.mrb[3].mxu1 }
 0x101   :  { %v168_v42 = vadd.f32 %v167_v40, %v668_v24  ;;  %v277_v45 = vadd.f32 %v276_v44, %v83_v29 }
 0x102   :  { %311 = vst [vmem:[%s761_s3 + $0x30] sm:$0xff] %v166_v39  ;;  %316 = vst [vmem:[%s761_s3 + $0x58] sm:$0xff] %v282_v43 }
 0x103   :  { %312 = vst [vmem:[%s761_s3 + $0x38] sm:$0xff] %v168_v42  ;;  %v171_v46 = vpop.f32.mrb[6].mxu0  ;;  %313 = vst [vmem:[%s761_s3 + $0x40] sm:$0xff] %v277_v45  ;;  %v397_v49 = vpop.f32.mrb[4].mxu1 }
 0x104   :  { %v172_v47 = vadd.f32 %v171_v46, %v666_v23  ;;  %v173_v48 = vpop.f32.mrb[7].mxu0  ;;  %v292_v51 = vadd.f32 %v397_v49, %v83_v29  ;;  %v286_v52 = vpop.f32.mrb[5].mxu1 }
 0x105   :  { %v174_v50 = vadd.f32 %v173_v48, %v668_v24  ;;  %v287_v53 = vadd.f32 %v286_v52, %v83_v29 }
 0x106   :  { %314 = vst [vmem:[%s761_s3 + $0x48] sm:$0xff] %v172_v47  ;;  %322 = vst [vmem:[%s761_s3 + $0x88] sm:$0xff] %v292_v51 }
 0x107   :  { %315 = vst [vmem:[%s761_s3 + $0x50] sm:$0xff] %v174_v50  ;;  %v177_v54 = vpop.f32.mrb[8].mxu0  ;;  %319 = vst [vmem:[%s761_s3 + $0x70] sm:$0xff] %v287_v53  ;;  %v400_v57 = vpop.f32.mrb[6].mxu1 }
 0x108   :  { %v178_v55 = vadd.f32 %v177_v54, %v666_v23  ;;  %v179_v56 = vpop.f32.mrb[9].mxu0  ;;  %v302_v59 = vadd.f32 %v400_v57, %v83_v29  ;;  %v296_v60 = vpop.f32.mrb[7].mxu1 }
 0x109   :  { %v180_v58 = vadd.f32 %v179_v56, %v668_v24  ;;  %v297_v61 = vadd.f32 %v296_v60, %v83_v29 }
 0x10a   :  { %317 = vst [vmem:[%s761_s3 + $0x60] sm:$0xff] %v178_v55  ;;  %328 = vst [vmem:[%s761_s3 + $0xb8] sm:$0xff] %v302_v59 }
 0x10b   :  { %318 = vst [vmem:[%s761_s3 + $0x68] sm:$0xff] %v180_v58  ;;  %v183_v62 = vpop.f32.mrb[10].mxu0  ;;  %325 = vst [vmem:[%s761_s3 + $0xa0] sm:$0xff] %v297_v61 }
 0x10c   :  { %v184_v63 = vadd.f32 %v183_v62, %v666_v23  ;;  %v185_v0 = vpop.f32.mrb[11].mxu0 }
 0x10d   :  { %v186_v1 = vadd.f32 %v185_v0, %v668_v24 }
 0x10e   :  { %320 = vst [vmem:[%s761_s3 + $0x78] sm:$0xff] %v184_v63 }
 0x10f   :  { %321 = vst [vmem:[%s761_s3 + $0x80] sm:$0xff] %v186_v1  ;;  %v189_v2 = vpop.f32.mrb[12].mxu0 }
 0x110   :  { %v190_v4 = vadd.f32 %v189_v2, %v666_v23  ;;  %v191_v5 = vpop.f32.mrb[13].mxu0 }
 0x111   :  { %v192_v6 = vadd.f32 %v191_v5, %v668_v24 }
 0x112   :  { %323 = vst [vmem:[%s761_s3 + $0x90] sm:$0xff] %v190_v4 }
 0x113   :  { %324 = vst [vmem:[%s761_s3 + $0x98] sm:$0xff] %v192_v6  ;;  %v195_v7 = vpop.f32.mrb[14].mxu0 }
 0x114   :  { %v196_v8 = vadd.f32 %v195_v7, %v666_v23  ;;  %v197_v9 = vpop.f32.mrb[15].mxu0 }
 0x115   :  { %v198_v10 = vadd.f32 %v197_v9, %v668_v24 }
 0x116   :  { %326 = vst [vmem:[%s761_s3 + $0xa8] sm:$0xff] %v196_v8 }
 0x117   :  { %327 = vst [vmem:[%s761_s3 + $0xb0] sm:$0xff] %v198_v10 }

// kernel: visnet_block_forward.25
= control target key start
LH: loop header
LB: loop body
LE: loop exit
PB: predicated region body
PF: predicated region fallthrough
CT: control target
= control target key end

     0   :  { %s130_s0 = inlined_call_operand.vmem [shape: f32[8,128], index: 0, kind: input, shape index: {}]   ;;  %s131_s1 = inlined_call_operand.vmem [shape: f32[1,128], index: 1, kind: input, shape index: {}]   ;;  %s132_s2 = inlined_call_operand.vmem [shape: f32[1,128], index: 2, kind: input, shape index: {}]   ;;  %s133_s3 = inlined_call_operand.hbm [shape: f32[8,128], index: 3, kind: output, shape index: {}]  }
   0x1   :  { %v15_v0 = vld [vmem:[%s130_s0] sm:$0xff] }
   0x2   :  { %8 = vsyncpa [#allocation3], 0  ;;  %16 = vadd.xlane.f32.xlu0 %v15_v0  ;;  %v59_v9 = vld [vmem:[%s131_s1] ss:$0 sm:$0xff]  ;;  %s88_s0 = smov [#allocation2]  }
   0x3   :  { %v60_v11 = vld [vmem:[%s132_s2] ss:$0 sm:$0xff]  ;;  %s51_s18 = sshll.u32 %s88_s0, 4  ;;  %s52_s18 = int_to_ptr.vmem [resolvable:$true] %s51_s18 }
   0x4   :  { %s64_s19 = scalar_lea.vmem %s52_s18, 128  ;;  %p69_p1 = scmp.lt.s32.totalorder %s52_s18, %s52_s18 }
   0x5   :  { %p65_p0 = scmp.ne.s32.totalorder %s52_s18, %s64_s19  ;;  %p70_p2 = scmp.lt.s32.totalorder %s64_s19, %s64_s19 }
   0x7   :  { %p71_p3 = por %p70_p2, %p69_p1 }
   0x9   :  { %p72_p4 = pnand %p71_p3, %p65_p0 }
  0x8f   :  { %v17_v1 = vpop.xlane.xlu0 %16 }
  0x90   :  { %v19_v2 = vmul.f32 0.0078125, %v17_v1 }
  0x92   :  { %v20_v3 = vsub.f32 %v15_v0, %v19_v2 }
  0x94   :  { %v21_v4 = vmul.f32 %v20_v3, %v20_v3 }
  0x96   :  { %22 = vadd.xlane.f32.xlu0 %v21_v4 }
 0x123   :  { %v23_v5 = vpop.xlane.xlu0 %22 }
 0x124   :  { %v24_v6 = vmul.f32 0.0078125, %v23_v5 }
 0x126   :  { %v25_v7 = vadd.f32 1e-05, %v24_v6 }
 0x128   :  { %62 = vrsqrt.f32 %v25_v7 }
 0x132   :  { %v63_v8 = vpop.eup %62 }
 0x133   :  { %v27_v10 = vmul.f32 %v63_v8, %v20_v3 }
 0x135   :  { %v35_v12 = vmul.f32 %v59_v9, %v27_v10 }
 0x137   :  { %v43_v13 = vadd.f32 %v60_v11, %v35_v12 }
 0x139   :  { %44 = vst [vmem:[#allocation2] sm:$0xff] %v43_v13 }
 0x13a   :  { %75 = shalt.err (!%p72_p4)
}
 0x13b   :  { %s76_s21 = scalar_lea.hbm %s133_s3, 128 }
 0x13c   :  { %p77_p5 = scmp.ne.s32.totalorder %s133_s3, %s76_s21  ;;  %p80_p6 = scmp.lt.u32.totalorder %s76_s21, %s133_s3 }
 0x13e   :  { %p82_p7 = pnand %p80_p6, %p77_p5 }
 0x140   :  { %85 = shalt.err (!%p82_p7)
}
 0x141   :  { %54 = dma.vmem_to_hbm [thread:$0]  %s52_s18, 128, %s133_s3, [#allocation3]  }
 0x142   :  { %86 = dma.done.wait [#allocation3], 128  }
 0x143   :  { %87 = vsyncadd [#allocation3], 4294967168 }
 0x144   :  { %58 = vsyncpa [#allocation3], 1 }

</bundles_post_ra>
